<compile_context>
chip_gen: v7x
topology: tpu7x:2x2x1
jax: 0.10.0
libtpu: 0.0.40
codegen_flags: <defaults>
</compile_context>

<pallas_src>
import jax
import jax.numpy as jnp
from jax.experimental import pallas as pl
from jax.experimental.pallas import tpu as pltpu


# ---------------------------------------------------------------------------
# Pallas kernels
# ---------------------------------------------------------------------------
def _conv_body(p_ref, w_ref, b_ref, g_ref, m_ref, o_ref, r_ref=None):
    # p: (1,B,Lp,Kd) bf16 patches   w: (1,Kd,C) bf16 (BN scale folded)
    # b: (1,1,1,C) f32   g: (1,{1,B},1,{1,C}) f32   m: (1,1,Lp,1) f32
    Bb = p_ref.shape[1]
    w = w_ref[0]
    bias = b_ref[0, 0]                          # (1, C)
    mask = m_ref[0, 0]                          # (Lp, 1)
    gate_per_batch = g_ref.shape[1] == Bb
    for b in range(Bb):                         # tiny (1 for batch-merged calls)
        y = jnp.dot(p_ref[0, b], w, preferred_element_type=jnp.float32)   # (Lp, C)
        g = g_ref[0, b] if gate_per_batch else g_ref[0, 0]
        y = jnp.maximum(y + bias, 0.0) * g * mask
        if r_ref is not None:
            y = y + r_ref[0, b]
        o_ref[0, b] = y


def _conv_kernel(p_ref, w_ref, b_ref, g_ref, m_ref, o_ref):
    _conv_body(p_ref, w_ref, b_ref, g_ref, m_ref, o_ref)


def _conv_res_kernel(p_ref, w_ref, b_ref, g_ref, m_ref, r_ref, o_ref):
    _conv_body(p_ref, w_ref, b_ref, g_ref, m_ref, o_ref, r_ref)


def _pool2_fc_kernel(x_ref, wb_ref, b_ref, g_ref, wfc_ref, fcb_ref, o_ref):
    # conv_pool2 (stride==kernel absorbed into a block-structured weight)
    # + SE gate + Flatten + Linear + Softmax, all fused into one kernel.
    h = jnp.dot(x_ref[...], wb_ref[...], preferred_element_type=jnp.float32)
    h = jnp.maximum(h + b_ref[...], 0.0) * g_ref[...]
    logits = jnp.dot(h, wfc_ref[...], preferred_element_type=jnp.float32)
    logits = logits + fcb_ref[...]
    mx = jnp.max(logits, axis=-1, keepdims=True)
    e = jnp.exp(logits - mx)
    o_ref[...] = e * pl.reciprocal(jnp.sum(e, axis=-1, keepdims=True), approx=True)


# ---------------------------------------------------------------------------
# pallas_call wrapper for the fused conv layers
# ---------------------------------------------------------------------------
def fused_conv(patches, w, bias, gate, mask, residual=None):
    """y = relu(patches @ w + bias) * gate * mask (+ residual), per grid step.

    patches: (G, B, Lp, Kd) bf16   w: (G, Kd, C) bf16   bias: (G,1,1,C) f32
    gate:    (1|G, 1|B, 1, 1|C) f32   mask: (1|G, 1, Lp, 1) f32
    residual:(G, B, Lp, C) f32 or None        returns (G, B, Lp, C) f32
    """
    G, B, Lp, Kd = patches.shape
    C = w.shape[-1]

    def bmap(lead, ndim):
        zeros = (0,) * (ndim - 1)
        if lead == G:
            return lambda j: (j,) + zeros
        return lambda j: (0,) + zeros

    in_specs = [
        pl.BlockSpec((1, B, Lp, Kd), bmap(G, 4)),
        pl.BlockSpec((1, Kd, C), bmap(G, 3)),
        pl.BlockSpec((1, 1, 1, C), bmap(bias.shape[0], 4)),
        pl.BlockSpec((1,) + gate.shape[1:], bmap(gate.shape[0], 4)),
        pl.BlockSpec((1,) + mask.shape[1:], bmap(mask.shape[0], 4)),
    ]
    args = [patches, w, bias, gate, mask]
    kernel = _conv_kernel
    if residual is not None:
        in_specs.append(pl.BlockSpec((1, B, Lp, C), bmap(residual.shape[0], 4)))
        args.append(residual)
        kernel = _conv_res_kernel

    return pl.pallas_call(
        kernel,
        out_shape=jax.ShapeDtypeStruct((G, B, Lp, C), jnp.float32),
        grid=(G,),
        in_specs=in_specs,
        out_specs=pl.BlockSpec((1, B, Lp, C), bmap(G, 4)),
        compiler_params=pltpu.CompilerParams(
            dimension_semantics=("parallel",)),
    )(*args)


# ---------------------------------------------------------------------------
# Wrapper-side glue (plain JAX; weight munging constant-folds under jit)
# ---------------------------------------------------------------------------
def _fold_bn(w_t, b, gamma, beta, eps=1e-5):
    # eval-mode BN (running_mean=0, running_var=1) folded into weight/bias
    scale = gamma / jnp.sqrt(1.0 + eps)
    return w_t * scale[None, :], b * scale + beta


def _se_gate(v, fc1, fc2):
    return jax.nn.sigmoid(jnp.maximum(v @ fc1.T, 0.0) @ fc2.T)


def _im2col(x, lout, taps):
    """(..., L, C) -> (..., lout, taps*C); feature order = tap*C + c.
    Built from `taps` contiguous slices (no gathers)."""
    cols = jnp.stack([x[..., i:i + lout, :] for i in range(taps)], axis=-2)
    return cols.reshape(*x.shape[:-2], lout, taps * x.shape[-1])


def _merge_batch(t):
    """(G, B, L, C) -> (G, 1, B*L, C): fold the batch into the matmul rows."""
    G, B, L, C = t.shape
    return t.reshape(G, 1, B * L, C)


# ---------------------------------------------------------------------------
# Forward pass
# ---------------------------------------------------------------------------
def model_forward(params, x):
    f32, bf16 = jnp.float32, jnp.bfloat16
    B, _, L_in = x.shape
    ones_gate = jnp.ones((1, 1, 1, 1), f32)

    # ---- stage A: three stride-62 SE convs (conv_fs*.conv_se), ONE call ----
    Ks = (500, 250, 125)
    stride = 62
    Louts = tuple((L_in - k) // stride + 1 for k in Ks)        # (234, 238, 240)
    Qs = tuple(-(-k // stride) for k in Ks)                    # 62-wide taps: (9,5,3)
    offs = (3, 1, 0)       # left zero-padding of the following "norm" convs
    LA, KP = 240, 640
    xs = x[:, 0, :]
    v_in = xs.mean(axis=1, keepdims=True)                      # (B, 1) SE avg-pool
    nblk = max(lo + q - 1 for lo, q in zip(Louts, Qs))         # 242
    xblk = jnp.pad(xs, ((0, 0), (0, nblk * stride - L_in))).reshape(B, nblk, stride)
    pA, wA, bA, gA, mA = [], [], [], [], []
    for j, pp in enumerate(params["fs"]):
        K, Q, Lout, off = Ks[j], Qs[j], Louts[j], offs[j]
        # patch[b, l, q*62+r] = xs[b, 62*l + (62*q+r)] : exact im2col of the
        # stride-62 conv via contiguous slices of the block-reshaped signal.
        # Columns >= K carry real data but hit zero-padded weight rows.
        patches = _im2col(xblk, Lout, Q)                       # (B, Lout, Q*62)
        pA.append(jnp.pad(patches,
                          ((0, 0), (off, LA - off - Lout), (0, KP - Q * stride))))
        w_t, bias = _fold_bn(pp["w"].reshape(16, K).T,
                             pp["b"], pp["gamma"], pp["beta"])
        wA.append(jnp.pad(w_t, ((0, KP - K), (0, 0))))
        bA.append(bias)
        gA.append(_se_gate(v_in, pp["fc1"], pp["fc2"]))
        r = jnp.arange(LA)
        mA.append(((r >= off) & (r < off + Lout)).astype(f32))
    a_out = fused_conv(
        jnp.stack(pA).astype(bf16),                            # (3,B,240,640)
        jnp.stack(wA).astype(bf16),                            # (3,640,16)
        jnp.stack(bA)[:, None, None, :],
        jnp.stack(gA)[:, :, None, :],
        jnp.stack(mA)[:, None, :, None],
    )                                                          # (3,B,240,16)

    # ---- stage B: three "norm" convs (K=10), ONE call, batch folded in ----
    LB = 232                                                   # 231 valid + 1 pad
    mask231 = (jnp.arange(LB) < 231).astype(f32)
    maskBm = jnp.tile(mask231, B)[None, None, :, None]         # (1,1,B*232,1)
    pB = jnp.pad(_im2col(a_out, 231, 10),                      # (3,B,231,160)
                 ((0, 0), (0, 0), (0, LB - 231), (0, 0)))
    wB, bB = [], []
    for pp in params["norm"]:
        w_t, bias = _fold_bn(pp["w"].transpose(2, 1, 0).reshape(160, 32),
                             pp["b"], pp["gamma"], pp["beta"])
        wB.append(w_t); bB.append(bias)
    b_out = fused_conv(_merge_batch(pB).astype(bf16),          # (3,1,B*232,160)
                       jnp.stack(wB).astype(bf16),
                       jnp.stack(bB)[:, None, None, :], ones_gate, maskBm)
    b_out = b_out.reshape(3, B, LB, 32)

    # ---- stage C: 3x conv_s5 per branch (+ residual to the norm output) ----
    b_out_m = _merge_batch(b_out)
    cur = b_out
    for d in range(3):
        Xp = jnp.pad(cur, ((0, 0), (0, 0), (2, 2), (0, 0)))    # pad=2 conv
        pC = jnp.pad(_im2col(Xp, 231, 5),
                     ((0, 0), (0, 0), (0, LB - 231), (0, 0)))  # (3,B,232,160)
        wC, bC = [], []
        for j in range(3):
            pp = params["seq"][j][d]
            w_t, bias = _fold_bn(pp["w"].transpose(2, 1, 0).reshape(160, 32),
                                 pp["b"], pp["gamma"], pp["beta"])
            wC.append(w_t); bC.append(bias)
        out = fused_conv(_merge_batch(pC).astype(bf16),
                         jnp.stack(wC).astype(bf16),
                         jnp.stack(bC)[:, None, None, :], ones_gate, maskBm,
                         residual=b_out_m if d == 2 else None)
        cur = out.reshape(3, B, LB, 32)

    # ---- stage D: conv_pool (SE, kernel==stride==7) on the channel concat ----
    Xc = cur.transpose(1, 2, 0, 3).reshape(B, LB, 96)          # NLC concat
    pp = params["pool"]
    gD = _se_gate(Xc[:, :231, :].mean(axis=1), pp["fc1"], pp["fc2"])   # (B,32)
    pD = jnp.pad(Xc[:, :231, :].reshape(B, 33, 672),           # pure reshape im2col
                 ((0, 0), (0, 7), (0, 0)))                     # (B,40,672)
    w_t, bias = _fold_bn(pp["w"].transpose(2, 1, 0).reshape(672, 32),
                         pp["b"], pp["gamma"], pp["beta"])
    mask33 = (jnp.arange(40) < 33).astype(f32)
    mD = mask33[None, None, :, None]
    d_out = fused_conv(pD[None].astype(bf16), w_t[None].astype(bf16),
                       bias[None, None, None, :], gD[None, :, None, :], mD)

    # ---- stage E: conv_series x3 (+ residual to the pool output) ----
    d_out_m = _merge_batch(d_out)                              # (1,1,B*40,32)
    maskEm = jnp.tile(mask33, B)[None, None, :, None]          # (1,1,B*40,1)
    cur = d_out
    for d in range(3):
        pp = params["series"][d]
        cin, cout = pp["w"].shape[1], pp["w"].shape[0]
        Xp = jnp.pad(cur, ((0, 0), (0, 0), (1, 0), (0, 0)))    # pad=1 conv
        pE = jnp.pad(_im2col(Xp, 33, 3),
                     ((0, 0), (0, 0), (0, 7), (0, 0)))         # (1,B,40,3*cin)
        w_t, bias = _fold_bn(pp["w"].transpose(2, 1, 0).reshape(3 * cin, cout),
                             pp["b"], pp["gamma"], pp["beta"])
        out = fused_conv(_merge_batch(pE).astype(bf16), w_t[None].astype(bf16),
                         bias[None, None, None, :], ones_gate, maskEm,
                         residual=d_out_m if d == 2 else None)
        cur = out.reshape(1, B, 40, cout)

    # ---- stage F: conv_pool2 (SE) + Flatten + Linear + Softmax, one kernel ----
    X5 = cur[0]                                                # (B,40,32), rows>=33 zero
    pp = params["pool2"]
    g2 = _se_gate(X5[:, :33, :].mean(axis=1), pp["fc1"], pp["fc2"])    # (B,16)
    gate_flat = jnp.tile(g2, (1, 6))                           # (B,96): idx = t*16+co
    scale = pp["gamma"] / jnp.sqrt(1.0 + 1e-5)
    w2 = (pp["w"] * scale[:, None, None]).transpose(2, 1, 0)   # (5,32,16) [k,ci,co]
    Wb = jnp.zeros((40, 32, 6, 16), f32)
    for t in range(6):                                         # non-overlapping windows
        Wb = Wb.at[5 * t:5 * t + 5, :, t, :].set(w2)
    Wbig = Wb.reshape(1280, 96).astype(bf16)
    bias_flat = jnp.tile(pp["b"] * scale + pp["beta"], 6)[None, :]     # (1,96)
    # PyTorch flatten order is c*6+t; our feature order is t*16+c -> permute FC.
    Wfc = params["fc_w"].reshape(4, 16, 6).transpose(2, 1, 0).reshape(96, 4)
    fcb = params["fc_b"][None, :]
    return pl.pallas_call(
        _pool2_fc_kernel,
        out_shape=jax.ShapeDtypeStruct((B, 4), jnp.float32),
    )(X5.reshape(B, 1280).astype(bf16), Wbig, bias_flat, gate_flat, Wfc, fcb)


# ---------------------------------------------------------------------------
# Deterministic parameter init (shapes follow Para_model / module __init__)
# ---------------------------------------------------------------------------
def _init_conv(key, inchan, outchan, kernel, bn_gamma=1.0):
    k1, k2 = jax.random.split(key)
    fan = inchan * kernel
    return dict(
        w=jax.random.normal(k1, (outchan, inchan, kernel), jnp.float32) / jnp.sqrt(fan),
        b=jax.random.normal(k2, (outchan,), jnp.float32) * 0.01,
        gamma=jnp.full((outchan,), bn_gamma, jnp.float32),
        beta=jnp.zeros((outchan,), jnp.float32),
    )


def _init_conv_se(key, inchan, outchan, kernel, ratio):
    k1, k2, k3 = jax.random.split(key, 3)
    p = _init_conv(k1, inchan, outchan, kernel, bn_gamma=0.5)   # bn.weight=0.5 in conv_SE
    hid = outchan // ratio
    p["fc1"] = jax.random.normal(k2, (hid, inchan), jnp.float32) / jnp.sqrt(inchan)
    p["fc2"] = jax.random.normal(k3, (outchan, hid), jnp.float32) / jnp.sqrt(hid)
    return p


def init_model(key):
    ks = jax.random.split(key, 24)
    fs = 500
    return dict(
        fs=[_init_conv_se(ks[j], 1, 16, fs // d, 8) for j, d in enumerate((1, 2, 4))],
        norm=[_init_conv(ks[3 + j], 16, 32, 10) for j in range(3)],
        seq=[[_init_conv(ks[6 + 3 * j + d], 32, 32, 5) for d in range(3)]
             for j in range(3)],
        pool=_init_conv_se(ks[15], 96, 32, 7, 8),
        series=[_init_conv(ks[16], 32, 64, 3),
                _init_conv(ks[17], 64, 64, 3),
                _init_conv(ks[18], 64, 32, 3)],
        pool2=_init_conv_se(ks[19], 32, 16, 5, 8),
        fc_w=jax.random.normal(ks[20], (4, 96), jnp.float32) / jnp.sqrt(96.0),
        fc_b=jnp.zeros((4,), jnp.float32),
    )


# ---------------------------------------------------------------------------
if __name__ == "__main__":
    key = jax.random.PRNGKey(0)
    pkey, xkey = jax.random.split(key)
    params = init_model(pkey)

    # Input: (B=2, C=1, L=15000).  L=15000 (30 s @ fs=500) is forced by the
    # module's fixed kernel/stride chain ending in Linear(in_features=96).
    x = jax.random.normal(xkey, (2, 1, 15000), jnp.float32)

    fwd = jax.jit(lambda inp: model_forward(params, inp))
    out = jax.block_until_ready(fwd(x))

    assert out.shape == (2, 4), out.shape
    assert bool(jnp.all(jnp.isfinite(out)))
    assert bool(jnp.all(jnp.abs(jnp.sum(out, axis=1) - 1.0) < 2e-2))
    print("KERNEL_OK")
</pallas_src>

<mosaic_0001>
module attributes {stable_mosaic.version = 11 : i64} {
  func.func @_conv_kernel(%arg0: i32, %arg1: memref<1x2x240x640xbf16, #tpu.memory_space<vmem>>, %arg2: memref<1x640x16xbf16, #tpu.memory_space<vmem>>, %arg3: memref<1x1x1x16xf32, #tpu.memory_space<vmem>>, %arg4: memref<1x2x1x16xf32, #tpu.memory_space<vmem>>, %arg5: memref<1x1x240x1xf32, #tpu.memory_space<vmem>>, %arg6: memref<1x2x240x16xf32, #tpu.memory_space<vmem>>) attributes {dimension_semantics = [#tpu.dimension_semantics<parallel>], iteration_bounds = array<i64: 3>, scalar_prefetch = 0 : i64, scratch_operands = 0 : i64, tpu.core_type = #tpu.core_type<tc>, window_params = [{transform_indices = @transform_0, window_bounds = array<i64: 1, 2, 240, 640>}, {transform_indices = @transform_1, window_bounds = array<i64: 1, 640, 16>}, {transform_indices = @transform_2, window_bounds = array<i64: 1, 1, 1, 16>}, {transform_indices = @transform_3, window_bounds = array<i64: 1, 2, 1, 16>}, {transform_indices = @transform_4, window_bounds = array<i64: 1, 1, 240, 1>}, {transform_indices = @transform_5, window_bounds = array<i64: 1, 2, 240, 16>}]} {
    %c0 = arith.constant 0 : index
    %c0_0 = arith.constant 0 : index
    %c0_1 = arith.constant 0 : index
    %0 = vector.load %arg2[%c0, %c0_0, %c0_1] : memref<1x640x16xbf16, #tpu.memory_space<vmem>>, vector<1x640x16xbf16>
    %1 = vector.shape_cast %0 : vector<1x640x16xbf16> to vector<640x16xbf16>
    %c0_2 = arith.constant 0 : index
    %c0_3 = arith.constant 0 : index
    %c0_4 = arith.constant 0 : index
    %c0_5 = arith.constant 0 : index
    %2 = vector.load %arg3[%c0_2, %c0_3, %c0_4, %c0_5] : memref<1x1x1x16xf32, #tpu.memory_space<vmem>>, vector<1x1x1x16xf32>
    %3 = vector.shape_cast %2 : vector<1x1x1x16xf32> to vector<1x16xf32>
    %c0_6 = arith.constant 0 : index
    %c0_7 = arith.constant 0 : index
    %c0_8 = arith.constant 0 : index
    %c0_9 = arith.constant 0 : index
    %4 = vector.load %arg5[%c0_6, %c0_7, %c0_8, %c0_9] : memref<1x1x240x1xf32, #tpu.memory_space<vmem>>, vector<1x1x240x1xf32>
    %5 = vector.shape_cast %4 : vector<1x1x240x1xf32> to vector<240x1xf32>
    %c0_10 = arith.constant 0 : index
    %c0_11 = arith.constant 0 : index
    %c0_12 = arith.constant 0 : index
    %c0_13 = arith.constant 0 : index
    %6 = vector.load %arg1[%c0_10, %c0_11, %c0_12, %c0_13] : memref<1x2x240x640xbf16, #tpu.memory_space<vmem>>, vector<1x1x240x640xbf16>
    %7 = vector.shape_cast %6 : vector<1x1x240x640xbf16> to vector<240x640xbf16>
    %cst = arith.constant dense<0.000000e+00> : vector<240x16xf32>
    %8 = tpu.matmul %7, %1, %cst {dimension_numbers = #tpu.dot_dimension_numbers<[1], [0], [0], [1], [0, 0, 1, 1], [], []>} : vector<240x640xbf16>, vector<640x16xbf16>, vector<240x16xf32> -> vector<240x16xf32>
    %c0_14 = arith.constant 0 : index
    %c0_15 = arith.constant 0 : index
    %c0_16 = arith.constant 0 : index
    %c0_17 = arith.constant 0 : index
    %9 = vector.load %arg4[%c0_14, %c0_15, %c0_16, %c0_17] : memref<1x2x1x16xf32, #tpu.memory_space<vmem>>, vector<1x1x1x16xf32>
    %10 = vector.shape_cast %9 : vector<1x1x1x16xf32> to vector<1x16xf32>
    %11 = vector.broadcast %3 : vector<1x16xf32> to vector<240x16xf32>
    %12 = arith.addf %8, %11 : vector<240x16xf32>
    %cst_18 = arith.constant 0.000000e+00 : f32
    %13 = vector.broadcast %cst_18 : f32 to vector<240x16xf32>
    %14 = arith.maximumf %12, %13 : vector<240x16xf32>
    %15 = vector.broadcast %10 : vector<1x16xf32> to vector<240x16xf32>
    %16 = arith.mulf %14, %15 : vector<240x16xf32>
    %17 = vector.broadcast %5 : vector<240x1xf32> to vector<240x16xf32>
    %18 = arith.mulf %16, %17 : vector<240x16xf32>
    %c0_19 = arith.constant 0 : index
    %c0_20 = arith.constant 0 : index
    %c0_21 = arith.constant 0 : index
    %c0_22 = arith.constant 0 : index
    %19 = vector.load %arg6[%c0_19, %c0_20, %c0_21, %c0_22] : memref<1x2x240x16xf32, #tpu.memory_space<vmem>>, vector<1x1x240x16xf32>
    %20 = vector.shape_cast %19 : vector<1x1x240x16xf32> to vector<240x16xf32>
    %21 = vector.shape_cast %18 : vector<240x16xf32> to vector<1x1x240x16xf32>
    tpu.vector_store %arg6[%c0_19, %c0_20, %c0_21, %c0_22], %21 {strides = array<i32>} : memref<1x2x240x16xf32, #tpu.memory_space<vmem>>, vector<1x1x240x16xf32>,
    %c0_23 = arith.constant 0 : index
    %c1 = arith.constant 1 : index
    %c0_24 = arith.constant 0 : index
    %c0_25 = arith.constant 0 : index
    %22 = vector.load %arg1[%c0_23, %c1, %c0_24, %c0_25] : memref<1x2x240x640xbf16, #tpu.memory_space<vmem>>, vector<1x1x240x640xbf16>
    %23 = vector.shape_cast %22 : vector<1x1x240x640xbf16> to vector<240x640xbf16>
    %cst_26 = arith.constant dense<0.000000e+00> : vector<240x16xf32>
    %24 = tpu.matmul %23, %1, %cst_26 {dimension_numbers = #tpu.dot_dimension_numbers<[1], [0], [0], [1], [0, 0, 1, 1], [], []>} : vector<240x640xbf16>, vector<640x16xbf16>, vector<240x16xf32> -> vector<240x16xf32>
    %c0_27 = arith.constant 0 : index
    %c1_28 = arith.constant 1 : index
    %c0_29 = arith.constant 0 : index
    %c0_30 = arith.constant 0 : index
    %25 = vector.load %arg4[%c0_27, %c1_28, %c0_29, %c0_30] : memref<1x2x1x16xf32, #tpu.memory_space<vmem>>, vector<1x1x1x16xf32>
    %26 = vector.shape_cast %25 : vector<1x1x1x16xf32> to vector<1x16xf32>
    %27 = vector.broadcast %3 : vector<1x16xf32> to vector<240x16xf32>
    %28 = arith.addf %24, %27 : vector<240x16xf32>
    %cst_31 = arith.constant 0.000000e+00 : f32
    %29 = vector.broadcast %cst_31 : f32 to vector<240x16xf32>
    %30 = arith.maximumf %28, %29 : vector<240x16xf32>
    %31 = vector.broadcast %26 : vector<1x16xf32> to vector<240x16xf32>
    %32 = arith.mulf %30, %31 : vector<240x16xf32>
    %33 = vector.broadcast %5 : vector<240x1xf32> to vector<240x16xf32>
    %34 = arith.mulf %32, %33 : vector<240x16xf32>
    %c0_32 = arith.constant 0 : index
    %c1_33 = arith.constant 1 : index
    %c0_34 = arith.constant 0 : index
    %c0_35 = arith.constant 0 : index
    %35 = vector.load %arg6[%c0_32, %c1_33, %c0_34, %c0_35] : memref<1x2x240x16xf32, #tpu.memory_space<vmem>>, vector<1x1x240x16xf32>
    %36 = vector.shape_cast %35 : vector<1x1x240x16xf32> to vector<240x16xf32>
    %37 = vector.shape_cast %34 : vector<240x16xf32> to vector<1x1x240x16xf32>
    tpu.vector_store %arg6[%c0_32, %c1_33, %c0_34, %c0_35], %37 {strides = array<i32>} : memref<1x2x240x16xf32, #tpu.memory_space<vmem>>, vector<1x1x240x16xf32>,
    return
  }
  func.func @transform_0(%arg0: i32) -> (i32, i32, i32, i32) {
    %c0_i32 = arith.constant 0 : i32
    %c0_i32_0 = arith.constant 0 : i32
    %c0_i32_1 = arith.constant 0 : i32
    %c0_i32_2 = arith.constant 0 : i32
    return %arg0, %c0_i32, %c0_i32_0, %c0_i32_1 : i32, i32, i32, i32
  }
  func.func @transform_1(%arg0: i32) -> (i32, i32, i32) {
    %c0_i32 = arith.constant 0 : i32
    %c0_i32_0 = arith.constant 0 : i32
    %c0_i32_1 = arith.constant 0 : i32
    return %arg0, %c0_i32, %c0_i32_0 : i32, i32, i32
  }
  func.func @transform_2(%arg0: i32) -> (i32, i32, i32, i32) {
    %c0_i32 = arith.constant 0 : i32
    %c0_i32_0 = arith.constant 0 : i32
    %c0_i32_1 = arith.constant 0 : i32
    %c0_i32_2 = arith.constant 0 : i32
    return %arg0, %c0_i32, %c0_i32_0, %c0_i32_1 : i32, i32, i32, i32
  }
  func.func @transform_3(%arg0: i32) -> (i32, i32, i32, i32) {
    %c0_i32 = arith.constant 0 : i32
    %c0_i32_0 = arith.constant 0 : i32
    %c0_i32_1 = arith.constant 0 : i32
    %c0_i32_2 = arith.constant 0 : i32
    return %arg0, %c0_i32, %c0_i32_0, %c0_i32_1 : i32, i32, i32, i32
  }
  func.func @transform_4(%arg0: i32) -> (i32, i32, i32, i32) {
    %c0_i32 = arith.constant 0 : i32
    %c0_i32_0 = arith.constant 0 : i32
    %c0_i32_1 = arith.constant 0 : i32
    %c0_i32_2 = arith.constant 0 : i32
    return %arg0, %c0_i32, %c0_i32_0, %c0_i32_1 : i32, i32, i32, i32
  }
  func.func @transform_5(%arg0: i32) -> (i32, i32, i32, i32) {
    %c0_i32 = arith.constant 0 : i32
    %c0_i32_0 = arith.constant 0 : i32
    %c0_i32_1 = arith.constant 0 : i32
    %c0_i32_2 = arith.constant 0 : i32
    return %arg0, %c0_i32, %c0_i32_0, %c0_i32_1 : i32, i32, i32, i32
  }
}

module attributes {stable_mosaic.version = 11 : i64} {
  func.func @_conv_kernel(%arg0: i32, %arg1: memref<1x1x464x160xbf16, #tpu.memory_space<vmem>>, %arg2: memref<1x160x32xbf16, #tpu.memory_space<vmem>>, %arg3: memref<1x1x1x32xf32, #tpu.memory_space<vmem>>, %arg4: memref<1x1x1x1xf32, #tpu.memory_space<vmem>>, %arg5: memref<1x1x464x1xf32, #tpu.memory_space<vmem>>, %arg6: memref<1x1x464x32xf32, #tpu.memory_space<vmem>>) attributes {dimension_semantics = [#tpu.dimension_semantics<parallel>], iteration_bounds = array<i64: 3>, scalar_prefetch = 0 : i64, scratch_operands = 0 : i64, tpu.core_type = #tpu.core_type<tc>, window_params = [{transform_indices = @transform_0, window_bounds = array<i64: 1, 1, 464, 160>}, {transform_indices = @transform_1, window_bounds = array<i64: 1, 160, 32>}, {transform_indices = @transform_2, window_bounds = array<i64: 1, 1, 1, 32>}, {pipeline_mode = #tpu.pipeline_mode<synchronous>, transform_indices = @transform_3, window_bounds = array<i64: 1, 1, 1, 1>}, {pipeline_mode = #tpu.pipeline_mode<synchronous>, transform_indices = @transform_4, window_bounds = array<i64: 1, 1, 464, 1>}, {transform_indices = @transform_5, window_bounds = array<i64: 1, 1, 464, 32>}]} {
    %c0 = arith.constant 0 : index
    %c0_0 = arith.constant 0 : index
    %c0_1 = arith.constant 0 : index
    %0 = vector.load %arg2[%c0, %c0_0, %c0_1] : memref<1x160x32xbf16, #tpu.memory_space<vmem>>, vector<1x160x32xbf16>
    %1 = vector.shape_cast %0 : vector<1x160x32xbf16> to vector<160x32xbf16>
    %c0_2 = arith.constant 0 : index
    %c0_3 = arith.constant 0 : index
    %c0_4 = arith.constant 0 : index
    %c0_5 = arith.constant 0 : index
    %2 = vector.load %arg3[%c0_2, %c0_3, %c0_4, %c0_5] : memref<1x1x1x32xf32, #tpu.memory_space<vmem>>, vector<1x1x1x32xf32>
    %3 = vector.shape_cast %2 : vector<1x1x1x32xf32> to vector<1x32xf32>
    %c0_6 = arith.constant 0 : index
    %c0_7 = arith.constant 0 : index
    %c0_8 = arith.constant 0 : index
    %c0_9 = arith.constant 0 : index
    %4 = vector.load %arg5[%c0_6, %c0_7, %c0_8, %c0_9] : memref<1x1x464x1xf32, #tpu.memory_space<vmem>>, vector<1x1x464x1xf32>
    %5 = vector.shape_cast %4 : vector<1x1x464x1xf32> to vector<464x1xf32>
    %c0_10 = arith.constant 0 : index
    %c0_11 = arith.constant 0 : index
    %c0_12 = arith.constant 0 : index
    %c0_13 = arith.constant 0 : index
    %6 = vector.load %arg1[%c0_10, %c0_11, %c0_12, %c0_13] : memref<1x1x464x160xbf16, #tpu.memory_space<vmem>>, vector<1x1x464x160xbf16>
    %7 = vector.shape_cast %6 : vector<1x1x464x160xbf16> to vector<464x160xbf16>
    %cst = arith.constant dense<0.000000e+00> : vector<464x32xf32>
    %8 = tpu.matmul %7, %1, %cst {dimension_numbers = #tpu.dot_dimension_numbers<[1], [0], [0], [1], [0, 0, 1, 1], [], []>} : vector<464x160xbf16>, vector<160x32xbf16>, vector<464x32xf32> -> vector<464x32xf32>
    %c0_14 = arith.constant 0 : index
    %c0_15 = arith.constant 0 : index
    %c0_16 = arith.constant 0 : index
    %c0_17 = arith.constant 0 : index
    %9 = vector.load %arg4[%c0_14, %c0_15, %c0_16, %c0_17] : memref<1x1x1x1xf32, #tpu.memory_space<vmem>>, vector<1x1x1x1xf32>
    %10 = vector.shape_cast %9 : vector<1x1x1x1xf32> to vector<1x1xf32>
    %11 = vector.broadcast %3 : vector<1x32xf32> to vector<464x32xf32>
    %12 = arith.addf %8, %11 : vector<464x32xf32>
    %cst_18 = arith.constant 0.000000e+00 : f32
    %13 = vector.broadcast %cst_18 : f32 to vector<464x32xf32>
    %14 = arith.maximumf %12, %13 : vector<464x32xf32>
    %15 = vector.broadcast %10 : vector<1x1xf32> to vector<464x32xf32>
    %16 = arith.mulf %14, %15 : vector<464x32xf32>
    %17 = vector.broadcast %5 : vector<464x1xf32> to vector<464x32xf32>
    %18 = arith.mulf %16, %17 : vector<464x32xf32>
    %c0_19 = arith.constant 0 : index
    %c0_20 = arith.constant 0 : index
    %c0_21 = arith.constant 0 : index
    %c0_22 = arith.constant 0 : index
    %19 = vector.load %arg6[%c0_19, %c0_20, %c0_21, %c0_22] : memref<1x1x464x32xf32, #tpu.memory_space<vmem>>, vector<1x1x464x32xf32>
    %20 = vector.shape_cast %19 : vector<1x1x464x32xf32> to vector<464x32xf32>
    %21 = vector.shape_cast %18 : vector<464x32xf32> to vector<1x1x464x32xf32>
    tpu.vector_store %arg6[%c0_19, %c0_20, %c0_21, %c0_22], %21 {strides = array<i32>} : memref<1x1x464x32xf32, #tpu.memory_space<vmem>>, vector<1x1x464x32xf32>,
    return
  }
  func.func @transform_0(%arg0: i32) -> (i32, i32, i32, i32) {
    %c0_i32 = arith.constant 0 : i32
    %c0_i32_0 = arith.constant 0 : i32
    %c0_i32_1 = arith.constant 0 : i32
    %c0_i32_2 = arith.constant 0 : i32
    return %arg0, %c0_i32, %c0_i32_0, %c0_i32_1 : i32, i32, i32, i32
  }
  func.func @transform_1(%arg0: i32) -> (i32, i32, i32) {
    %c0_i32 = arith.constant 0 : i32
    %c0_i32_0 = arith.constant 0 : i32
    %c0_i32_1 = arith.constant 0 : i32
    return %arg0, %c0_i32, %c0_i32_0 : i32, i32, i32
  }
  func.func @transform_2(%arg0: i32) -> (i32, i32, i32, i32) {
    %c0_i32 = arith.constant 0 : i32
    %c0_i32_0 = arith.constant 0 : i32
    %c0_i32_1 = arith.constant 0 : i32
    %c0_i32_2 = arith.constant 0 : i32
    return %arg0, %c0_i32, %c0_i32_0, %c0_i32_1 : i32, i32, i32, i32
  }
  func.func @transform_3(%arg0: i32) -> (i32, i32, i32, i32) {
    %c0_i32 = arith.constant 0 : i32
    %c0_i32_0 = arith.constant 0 : i32
    %c0_i32_1 = arith.constant 0 : i32
    %c0_i32_2 = arith.constant 0 : i32
    %c0_i32_3 = arith.constant 0 : i32
    return %c0_i32, %c0_i32_0, %c0_i32_1, %c0_i32_2 : i32, i32, i32, i32
  }
  func.func @transform_4(%arg0: i32) -> (i32, i32, i32, i32) {
    %c0_i32 = arith.constant 0 : i32
    %c0_i32_0 = arith.constant 0 : i32
    %c0_i32_1 = arith.constant 0 : i32
    %c0_i32_2 = arith.constant 0 : i32
    %c0_i32_3 = arith.constant 0 : i32
    return %c0_i32, %c0_i32_0, %c0_i32_1, %c0_i32_2 : i32, i32, i32, i32
  }
  func.func @transform_5(%arg0: i32) -> (i32, i32, i32, i32) {
    %c0_i32 = arith.constant 0 : i32
    %c0_i32_0 = arith.constant 0 : i32
    %c0_i32_1 = arith.constant 0 : i32
    %c0_i32_2 = arith.constant 0 : i32
    return %arg0, %c0_i32, %c0_i32_0, %c0_i32_1 : i32, i32, i32, i32
  }
}

module attributes {stable_mosaic.version = 11 : i64} {
  func.func @_conv_res_kernel(%arg0: i32, %arg1: memref<1x1x464x160xbf16, #tpu.memory_space<vmem>>, %arg2: memref<1x160x32xbf16, #tpu.memory_space<vmem>>, %arg3: memref<1x1x1x32xf32, #tpu.memory_space<vmem>>, %arg4: memref<1x1x1x1xf32, #tpu.memory_space<vmem>>, %arg5: memref<1x1x464x1xf32, #tpu.memory_space<vmem>>, %arg6: memref<1x1x464x32xf32, #tpu.memory_space<vmem>>, %arg7: memref<1x1x464x32xf32, #tpu.memory_space<vmem>>) attributes {dimension_semantics = [#tpu.dimension_semantics<parallel>], iteration_bounds = array<i64: 3>, scalar_prefetch = 0 : i64, scratch_operands = 0 : i64, tpu.core_type = #tpu.core_type<tc>, window_params = [{transform_indices = @transform_0, window_bounds = array<i64: 1, 1, 464, 160>}, {transform_indices = @transform_1, window_bounds = array<i64: 1, 160, 32>}, {transform_indices = @transform_2, window_bounds = array<i64: 1, 1, 1, 32>}, {pipeline_mode = #tpu.pipeline_mode<synchronous>, transform_indices = @transform_3, window_bounds = array<i64: 1, 1, 1, 1>}, {pipeline_mode = #tpu.pipeline_mode<synchronous>, transform_indices = @transform_4, window_bounds = array<i64: 1, 1, 464, 1>}, {transform_indices = @transform_5, window_bounds = array<i64: 1, 1, 464, 32>}, {transform_indices = @transform_6, window_bounds = array<i64: 1, 1, 464, 32>}]} {
    %c0 = arith.constant 0 : index
    %c0_0 = arith.constant 0 : index
    %c0_1 = arith.constant 0 : index
    %0 = vector.load %arg2[%c0, %c0_0, %c0_1] : memref<1x160x32xbf16, #tpu.memory_space<vmem>>, vector<1x160x32xbf16>
    %1 = vector.shape_cast %0 : vector<1x160x32xbf16> to vector<160x32xbf16>
    %c0_2 = arith.constant 0 : index
    %c0_3 = arith.constant 0 : index
    %c0_4 = arith.constant 0 : index
    %c0_5 = arith.constant 0 : index
    %2 = vector.load %arg3[%c0_2, %c0_3, %c0_4, %c0_5] : memref<1x1x1x32xf32, #tpu.memory_space<vmem>>, vector<1x1x1x32xf32>
    %3 = vector.shape_cast %2 : vector<1x1x1x32xf32> to vector<1x32xf32>
    %c0_6 = arith.constant 0 : index
    %c0_7 = arith.constant 0 : index
    %c0_8 = arith.constant 0 : index
    %c0_9 = arith.constant 0 : index
    %4 = vector.load %arg5[%c0_6, %c0_7, %c0_8, %c0_9] : memref<1x1x464x1xf32, #tpu.memory_space<vmem>>, vector<1x1x464x1xf32>
    %5 = vector.shape_cast %4 : vector<1x1x464x1xf32> to vector<464x1xf32>
    %c0_10 = arith.constant 0 : index
    %c0_11 = arith.constant 0 : index
    %c0_12 = arith.constant 0 : index
    %c0_13 = arith.constant 0 : index
    %6 = vector.load %arg1[%c0_10, %c0_11, %c0_12, %c0_13] : memref<1x1x464x160xbf16, #tpu.memory_space<vmem>>, vector<1x1x464x160xbf16>
    %7 = vector.shape_cast %6 : vector<1x1x464x160xbf16> to vector<464x160xbf16>
    %cst = arith.constant dense<0.000000e+00> : vector<464x32xf32>
    %8 = tpu.matmul %7, %1, %cst {dimension_numbers = #tpu.dot_dimension_numbers<[1], [0], [0], [1], [0, 0, 1, 1], [], []>} : vector<464x160xbf16>, vector<160x32xbf16>, vector<464x32xf32> -> vector<464x32xf32>
    %c0_14 = arith.constant 0 : index
    %c0_15 = arith.constant 0 : index
    %c0_16 = arith.constant 0 : index
    %c0_17 = arith.constant 0 : index
    %9 = vector.load %arg4[%c0_14, %c0_15, %c0_16, %c0_17] : memref<1x1x1x1xf32, #tpu.memory_space<vmem>>, vector<1x1x1x1xf32>
    %10 = vector.shape_cast %9 : vector<1x1x1x1xf32> to vector<1x1xf32>
    %11 = vector.broadcast %3 : vector<1x32xf32> to vector<464x32xf32>
    %12 = arith.addf %8, %11 : vector<464x32xf32>
    %cst_18 = arith.constant 0.000000e+00 : f32
    %13 = vector.broadcast %cst_18 : f32 to vector<464x32xf32>
    %14 = arith.maximumf %12, %13 : vector<464x32xf32>
    %15 = vector.broadcast %10 : vector<1x1xf32> to vector<464x32xf32>
    %16 = arith.mulf %14, %15 : vector<464x32xf32>
    %17 = vector.broadcast %5 : vector<464x1xf32> to vector<464x32xf32>
    %18 = arith.mulf %16, %17 : vector<464x32xf32>
    %c0_19 = arith.constant 0 : index
    %c0_20 = arith.constant 0 : index
    %c0_21 = arith.constant 0 : index
    %c0_22 = arith.constant 0 : index
    %19 = vector.load %arg6[%c0_19, %c0_20, %c0_21, %c0_22] : memref<1x1x464x32xf32, #tpu.memory_space<vmem>>, vector<1x1x464x32xf32>
    %20 = vector.shape_cast %19 : vector<1x1x464x32xf32> to vector<464x32xf32>
    %21 = arith.addf %18, %20 : vector<464x32xf32>
    %c0_23 = arith.constant 0 : index
    %c0_24 = arith.constant 0 : index
    %c0_25 = arith.constant 0 : index
    %c0_26 = arith.constant 0 : index
    %22 = vector.load %arg7[%c0_23, %c0_24, %c0_25, %c0_26] : memref<1x1x464x32xf32, #tpu.memory_space<vmem>>, vector<1x1x464x32xf32>
    %23 = vector.shape_cast %22 : vector<1x1x464x32xf32> to vector<464x32xf32>
    %24 = vector.shape_cast %21 : vector<464x32xf32> to vector<1x1x464x32xf32>
    tpu.vector_store %arg7[%c0_23, %c0_24, %c0_25, %c0_26], %24 {strides = array<i32>} : memref<1x1x464x32xf32, #tpu.memory_space<vmem>>, vector<1x1x464x32xf32>,
    return
  }
  func.func @transform_0(%arg0: i32) -> (i32, i32, i32, i32) {
    %c0_i32 = arith.constant 0 : i32
    %c0_i32_0 = arith.constant 0 : i32
    %c0_i32_1 = arith.constant 0 : i32
    %c0_i32_2 = arith.constant 0 : i32
    return %arg0, %c0_i32, %c0_i32_0, %c0_i32_1 : i32, i32, i32, i32
  }
  func.func @transform_1(%arg0: i32) -> (i32, i32, i32) {
    %c0_i32 = arith.constant 0 : i32
    %c0_i32_0 = arith.constant 0 : i32
    %c0_i32_1 = arith.constant 0 : i32
    return %arg0, %c0_i32, %c0_i32_0 : i32, i32, i32
  }
  func.func @transform_2(%arg0: i32) -> (i32, i32, i32, i32) {
    %c0_i32 = arith.constant 0 : i32
    %c0_i32_0 = arith.constant 0 : i32
    %c0_i32_1 = arith.constant 0 : i32
    %c0_i32_2 = arith.constant 0 : i32
    return %arg0, %c0_i32, %c0_i32_0, %c0_i32_1 : i32, i32, i32, i32
  }
  func.func @transform_3(%arg0: i32) -> (i32, i32, i32, i32) {
    %c0_i32 = arith.constant 0 : i32
    %c0_i32_0 = arith.constant 0 : i32
    %c0_i32_1 = arith.constant 0 : i32
    %c0_i32_2 = arith.constant 0 : i32
    %c0_i32_3 = arith.constant 0 : i32
    return %c0_i32, %c0_i32_0, %c0_i32_1, %c0_i32_2 : i32, i32, i32, i32
  }
  func.func @transform_4(%arg0: i32) -> (i32, i32, i32, i32) {
    %c0_i32 = arith.constant 0 : i32
    %c0_i32_0 = arith.constant 0 : i32
    %c0_i32_1 = arith.constant 0 : i32
    %c0_i32_2 = arith.constant 0 : i32
    %c0_i32_3 = arith.constant 0 : i32
    return %c0_i32, %c0_i32_0, %c0_i32_1, %c0_i32_2 : i32, i32, i32, i32
  }
  func.func @transform_5(%arg0: i32) -> (i32, i32, i32, i32) {
    %c0_i32 = arith.constant 0 : i32
    %c0_i32_0 = arith.constant 0 : i32
    %c0_i32_1 = arith.constant 0 : i32
    %c0_i32_2 = arith.constant 0 : i32
    return %arg0, %c0_i32, %c0_i32_0, %c0_i32_1 : i32, i32, i32, i32
  }
  func.func @transform_6(%arg0: i32) -> (i32, i32, i32, i32) {
    %c0_i32 = arith.constant 0 : i32
    %c0_i32_0 = arith.constant 0 : i32
    %c0_i32_1 = arith.constant 0 : i32
    %c0_i32_2 = arith.constant 0 : i32
    return %arg0, %c0_i32, %c0_i32_0, %c0_i32_1 : i32, i32, i32, i32
  }
}

module attributes {stable_mosaic.version = 11 : i64} {
  func.func @_conv_kernel(%arg0: i32, %arg1: memref<1x2x40x672xbf16, #tpu.memory_space<vmem>>, %arg2: memref<1x672x32xbf16, #tpu.memory_space<vmem>>, %arg3: memref<1x1x1x32xf32, #tpu.memory_space<vmem>>, %arg4: memref<1x2x1x32xf32, #tpu.memory_space<vmem>>, %arg5: memref<1x1x40x1xf32, #tpu.memory_space<vmem>>, %arg6: memref<1x2x40x32xf32, #tpu.memory_space<vmem>>) attributes {dimension_semantics = [#tpu.dimension_semantics<parallel>], iteration_bounds = array<i64: 1>, scalar_prefetch = 0 : i64, scratch_operands = 0 : i64, tpu.core_type = #tpu.core_type<tc>, window_params = [{transform_indices = @transform_0, window_bounds = array<i64: 1, 2, 40, 672>}, {transform_indices = @transform_1, window_bounds = array<i64: 1, 672, 32>}, {transform_indices = @transform_2, window_bounds = array<i64: 1, 1, 1, 32>}, {transform_indices = @transform_3, window_bounds = array<i64: 1, 2, 1, 32>}, {transform_indices = @transform_4, window_bounds = array<i64: 1, 1, 40, 1>}, {transform_indices = @transform_5, window_bounds = array<i64: 1, 2, 40, 32>}]} {
    %c0 = arith.constant 0 : index
    %c0_0 = arith.constant 0 : index
    %c0_1 = arith.constant 0 : index
    %0 = vector.load %arg2[%c0, %c0_0, %c0_1] : memref<1x672x32xbf16, #tpu.memory_space<vmem>>, vector<1x672x32xbf16>
    %1 = vector.shape_cast %0 : vector<1x672x32xbf16> to vector<672x32xbf16>
    %c0_2 = arith.constant 0 : index
    %c0_3 = arith.constant 0 : index
    %c0_4 = arith.constant 0 : index
    %c0_5 = arith.constant 0 : index
    %2 = vector.load %arg3[%c0_2, %c0_3, %c0_4, %c0_5] : memref<1x1x1x32xf32, #tpu.memory_space<vmem>>, vector<1x1x1x32xf32>
    %3 = vector.shape_cast %2 : vector<1x1x1x32xf32> to vector<1x32xf32>
    %c0_6 = arith.constant 0 : index
    %c0_7 = arith.constant 0 : index
    %c0_8 = arith.constant 0 : index
    %c0_9 = arith.constant 0 : index
    %4 = vector.load %arg5[%c0_6, %c0_7, %c0_8, %c0_9] : memref<1x1x40x1xf32, #tpu.memory_space<vmem>>, vector<1x1x40x1xf32>
    %5 = vector.shape_cast %4 : vector<1x1x40x1xf32> to vector<40x1xf32>
    %c0_10 = arith.constant 0 : index
    %c0_11 = arith.constant 0 : index
    %c0_12 = arith.constant 0 : index
    %c0_13 = arith.constant 0 : index
    %6 = vector.load %arg1[%c0_10, %c0_11, %c0_12, %c0_13] : memref<1x2x40x672xbf16, #tpu.memory_space<vmem>>, vector<1x1x40x672xbf16>
    %7 = vector.shape_cast %6 : vector<1x1x40x672xbf16> to vector<40x672xbf16>
    %cst = arith.constant dense<0.000000e+00> : vector<40x32xf32>
    %8 = tpu.matmul %7, %1, %cst {dimension_numbers = #tpu.dot_dimension_numbers<[1], [0], [0], [1], [0, 0, 1, 1], [], []>} : vector<40x672xbf16>, vector<672x32xbf16>, vector<40x32xf32> -> vector<40x32xf32>
    %c0_14 = arith.constant 0 : index
    %c0_15 = arith.constant 0 : index
    %c0_16 = arith.constant 0 : index
    %c0_17 = arith.constant 0 : index
    %9 = vector.load %arg4[%c0_14, %c0_15, %c0_16, %c0_17] : memref<1x2x1x32xf32, #tpu.memory_space<vmem>>, vector<1x1x1x32xf32>
    %10 = vector.shape_cast %9 : vector<1x1x1x32xf32> to vector<1x32xf32>
    %11 = vector.broadcast %3 : vector<1x32xf32> to vector<40x32xf32>
    %12 = arith.addf %8, %11 : vector<40x32xf32>
    %cst_18 = arith.constant 0.000000e+00 : f32
    %13 = vector.broadcast %cst_18 : f32 to vector<40x32xf32>
    %14 = arith.maximumf %12, %13 : vector<40x32xf32>
    %15 = vector.broadcast %10 : vector<1x32xf32> to vector<40x32xf32>
    %16 = arith.mulf %14, %15 : vector<40x32xf32>
    %17 = vector.broadcast %5 : vector<40x1xf32> to vector<40x32xf32>
    %18 = arith.mulf %16, %17 : vector<40x32xf32>
    %c0_19 = arith.constant 0 : index
    %c0_20 = arith.constant 0 : index
    %c0_21 = arith.constant 0 : index
    %c0_22 = arith.constant 0 : index
    %19 = vector.load %arg6[%c0_19, %c0_20, %c0_21, %c0_22] : memref<1x2x40x32xf32, #tpu.memory_space<vmem>>, vector<1x1x40x32xf32>
    %20 = vector.shape_cast %19 : vector<1x1x40x32xf32> to vector<40x32xf32>
    %21 = vector.shape_cast %18 : vector<40x32xf32> to vector<1x1x40x32xf32>
    tpu.vector_store %arg6[%c0_19, %c0_20, %c0_21, %c0_22], %21 {strides = array<i32>} : memref<1x2x40x32xf32, #tpu.memory_space<vmem>>, vector<1x1x40x32xf32>,
    %c0_23 = arith.constant 0 : index
    %c1 = arith.constant 1 : index
    %c0_24 = arith.constant 0 : index
    %c0_25 = arith.constant 0 : index
    %22 = vector.load %arg1[%c0_23, %c1, %c0_24, %c0_25] : memref<1x2x40x672xbf16, #tpu.memory_space<vmem>>, vector<1x1x40x672xbf16>
    %23 = vector.shape_cast %22 : vector<1x1x40x672xbf16> to vector<40x672xbf16>
    %cst_26 = arith.constant dense<0.000000e+00> : vector<40x32xf32>
    %24 = tpu.matmul %23, %1, %cst_26 {dimension_numbers = #tpu.dot_dimension_numbers<[1], [0], [0], [1], [0, 0, 1, 1], [], []>} : vector<40x672xbf16>, vector<672x32xbf16>, vector<40x32xf32> -> vector<40x32xf32>
    %c0_27 = arith.constant 0 : index
    %c1_28 = arith.constant 1 : index
    %c0_29 = arith.constant 0 : index
    %c0_30 = arith.constant 0 : index
    %25 = vector.load %arg4[%c0_27, %c1_28, %c0_29, %c0_30] : memref<1x2x1x32xf32, #tpu.memory_space<vmem>>, vector<1x1x1x32xf32>
    %26 = vector.shape_cast %25 : vector<1x1x1x32xf32> to vector<1x32xf32>
    %27 = vector.broadcast %3 : vector<1x32xf32> to vector<40x32xf32>
    %28 = arith.addf %24, %27 : vector<40x32xf32>
    %cst_31 = arith.constant 0.000000e+00 : f32
    %29 = vector.broadcast %cst_31 : f32 to vector<40x32xf32>
    %30 = arith.maximumf %28, %29 : vector<40x32xf32>
    %31 = vector.broadcast %26 : vector<1x32xf32> to vector<40x32xf32>
    %32 = arith.mulf %30, %31 : vector<40x32xf32>
    %33 = vector.broadcast %5 : vector<40x1xf32> to vector<40x32xf32>
    %34 = arith.mulf %32, %33 : vector<40x32xf32>
    %c0_32 = arith.constant 0 : index
    %c1_33 = arith.constant 1 : index
    %c0_34 = arith.constant 0 : index
    %c0_35 = arith.constant 0 : index
    %35 = vector.load %arg6[%c0_32, %c1_33, %c0_34, %c0_35] : memref<1x2x40x32xf32, #tpu.memory_space<vmem>>, vector<1x1x40x32xf32>
    %36 = vector.shape_cast %35 : vector<1x1x40x32xf32> to vector<40x32xf32>
    %37 = vector.shape_cast %34 : vector<40x32xf32> to vector<1x1x40x32xf32>
    tpu.vector_store %arg6[%c0_32, %c1_33, %c0_34, %c0_35], %37 {strides = array<i32>} : memref<1x2x40x32xf32, #tpu.memory_space<vmem>>, vector<1x1x40x32xf32>,
    return
  }
  func.func @transform_0(%arg0: i32) -> (i32, i32, i32, i32) {
    %c0_i32 = arith.constant 0 : i32
    %c0_i32_0 = arith.constant 0 : i32
    %c0_i32_1 = arith.constant 0 : i32
    %c0_i32_2 = arith.constant 0 : i32
    return %arg0, %c0_i32, %c0_i32_0, %c0_i32_1 : i32, i32, i32, i32
  }
  func.func @transform_1(%arg0: i32) -> (i32, i32, i32) {
    %c0_i32 = arith.constant 0 : i32
    %c0_i32_0 = arith.constant 0 : i32
    %c0_i32_1 = arith.constant 0 : i32
    return %arg0, %c0_i32, %c0_i32_0 : i32, i32, i32
  }
  func.func @transform_2(%arg0: i32) -> (i32, i32, i32, i32) {
    %c0_i32 = arith.constant 0 : i32
    %c0_i32_0 = arith.constant 0 : i32
    %c0_i32_1 = arith.constant 0 : i32
    %c0_i32_2 = arith.constant 0 : i32
    return %arg0, %c0_i32, %c0_i32_0, %c0_i32_1 : i32, i32, i32, i32
  }
  func.func @transform_3(%arg0: i32) -> (i32, i32, i32, i32) {
    %c0_i32 = arith.constant 0 : i32
    %c0_i32_0 = arith.constant 0 : i32
    %c0_i32_1 = arith.constant 0 : i32
    %c0_i32_2 = arith.constant 0 : i32
    return %arg0, %c0_i32, %c0_i32_0, %c0_i32_1 : i32, i32, i32, i32
  }
  func.func @transform_4(%arg0: i32) -> (i32, i32, i32, i32) {
    %c0_i32 = arith.constant 0 : i32
    %c0_i32_0 = arith.constant 0 : i32
    %c0_i32_1 = arith.constant 0 : i32
    %c0_i32_2 = arith.constant 0 : i32
    return %arg0, %c0_i32, %c0_i32_0, %c0_i32_1 : i32, i32, i32, i32
  }
  func.func @transform_5(%arg0: i32) -> (i32, i32, i32, i32) {
    %c0_i32 = arith.constant 0 : i32
    %c0_i32_0 = arith.constant 0 : i32
    %c0_i32_1 = arith.constant 0 : i32
    %c0_i32_2 = arith.constant 0 : i32
    return %arg0, %c0_i32, %c0_i32_0, %c0_i32_1 : i32, i32, i32, i32
  }
}

module attributes {stable_mosaic.version = 11 : i64} {
  func.func @_conv_kernel(%arg0: i32, %arg1: memref<1x1x80x96xbf16, #tpu.memory_space<vmem>>, %arg2: memref<1x96x64xbf16, #tpu.memory_space<vmem>>, %arg3: memref<1x1x1x64xf32, #tpu.memory_space<vmem>>, %arg4: memref<1x1x1x1xf32, #tpu.memory_space<vmem>>, %arg5: memref<1x1x80x1xf32, #tpu.memory_space<vmem>>, %arg6: memref<1x1x80x64xf32, #tpu.memory_space<vmem>>) attributes {dimension_semantics = [#tpu.dimension_semantics<parallel>], iteration_bounds = array<i64: 1>, scalar_prefetch = 0 : i64, scratch_operands = 0 : i64, tpu.core_type = #tpu.core_type<tc>, window_params = [{transform_indices = @transform_0, window_bounds = array<i64: 1, 1, 80, 96>}, {transform_indices = @transform_1, window_bounds = array<i64: 1, 96, 64>}, {transform_indices = @transform_2, window_bounds = array<i64: 1, 1, 1, 64>}, {transform_indices = @transform_3, window_bounds = array<i64: 1, 1, 1, 1>}, {transform_indices = @transform_4, window_bounds = array<i64: 1, 1, 80, 1>}, {transform_indices = @transform_5, window_bounds = array<i64: 1, 1, 80, 64>}]} {
    %c0 = arith.constant 0 : index
    %c0_0 = arith.constant 0 : index
    %c0_1 = arith.constant 0 : index
    %0 = vector.load %arg2[%c0, %c0_0, %c0_1] : memref<1x96x64xbf16, #tpu.memory_space<vmem>>, vector<1x96x64xbf16>
    %1 = vector.shape_cast %0 : vector<1x96x64xbf16> to vector<96x64xbf16>
    %c0_2 = arith.constant 0 : index
    %c0_3 = arith.constant 0 : index
    %c0_4 = arith.constant 0 : index
    %c0_5 = arith.constant 0 : index
    %2 = vector.load %arg3[%c0_2, %c0_3, %c0_4, %c0_5] : memref<1x1x1x64xf32, #tpu.memory_space<vmem>>, vector<1x1x1x64xf32>
    %3 = vector.shape_cast %2 : vector<1x1x1x64xf32> to vector<1x64xf32>
    %c0_6 = arith.constant 0 : index
    %c0_7 = arith.constant 0 : index
    %c0_8 = arith.constant 0 : index
    %c0_9 = arith.constant 0 : index
    %4 = vector.load %arg5[%c0_6, %c0_7, %c0_8, %c0_9] : memref<1x1x80x1xf32, #tpu.memory_space<vmem>>, vector<1x1x80x1xf32>
    %5 = vector.shape_cast %4 : vector<1x1x80x1xf32> to vector<80x1xf32>
    %c0_10 = arith.constant 0 : index
    %c0_11 = arith.constant 0 : index
    %c0_12 = arith.constant 0 : index
    %c0_13 = arith.constant 0 : index
    %6 = vector.load %arg1[%c0_10, %c0_11, %c0_12, %c0_13] : memref<1x1x80x96xbf16, #tpu.memory_space<vmem>>, vector<1x1x80x96xbf16>
    %7 = vector.shape_cast %6 : vector<1x1x80x96xbf16> to vector<80x96xbf16>
    %cst = arith.constant dense<0.000000e+00> : vector<80x64xf32>
    %8 = tpu.matmul %7, %1, %cst {dimension_numbers = #tpu.dot_dimension_numbers<[1], [0], [0], [1], [0, 0, 1, 1], [], []>} : vector<80x96xbf16>, vector<96x64xbf16>, vector<80x64xf32> -> vector<80x64xf32>
    %c0_14 = arith.constant 0 : index
    %c0_15 = arith.constant 0 : index
    %c0_16 = arith.constant 0 : index
    %c0_17 = arith.constant 0 : index
    %9 = vector.load %arg4[%c0_14, %c0_15, %c0_16, %c0_17] : memref<1x1x1x1xf32, #tpu.memory_space<vmem>>, vector<1x1x1x1xf32>
    %10 = vector.shape_cast %9 : vector<1x1x1x1xf32> to vector<1x1xf32>
    %11 = vector.broadcast %3 : vector<1x64xf32> to vector<80x64xf32>
    %12 = arith.addf %8, %11 : vector<80x64xf32>
    %cst_18 = arith.constant 0.000000e+00 : f32
    %13 = vector.broadcast %cst_18 : f32 to vector<80x64xf32>
    %14 = arith.maximumf %12, %13 : vector<80x64xf32>
    %15 = vector.broadcast %10 : vector<1x1xf32> to vector<80x64xf32>
    %16 = arith.mulf %14, %15 : vector<80x64xf32>
    %17 = vector.broadcast %5 : vector<80x1xf32> to vector<80x64xf32>
    %18 = arith.mulf %16, %17 : vector<80x64xf32>
    %c0_19 = arith.constant 0 : index
    %c0_20 = arith.constant 0 : index
    %c0_21 = arith.constant 0 : index
    %c0_22 = arith.constant 0 : index
    %19 = vector.load %arg6[%c0_19, %c0_20, %c0_21, %c0_22] : memref<1x1x80x64xf32, #tpu.memory_space<vmem>>, vector<1x1x80x64xf32>
    %20 = vector.shape_cast %19 : vector<1x1x80x64xf32> to vector<80x64xf32>
    %21 = vector.shape_cast %18 : vector<80x64xf32> to vector<1x1x80x64xf32>
    tpu.vector_store %arg6[%c0_19, %c0_20, %c0_21, %c0_22], %21 {strides = array<i32>} : memref<1x1x80x64xf32, #tpu.memory_space<vmem>>, vector<1x1x80x64xf32>,
    return
  }
  func.func @transform_0(%arg0: i32) -> (i32, i32, i32, i32) {
    %c0_i32 = arith.constant 0 : i32
    %c0_i32_0 = arith.constant 0 : i32
    %c0_i32_1 = arith.constant 0 : i32
    %c0_i32_2 = arith.constant 0 : i32
    return %arg0, %c0_i32, %c0_i32_0, %c0_i32_1 : i32, i32, i32, i32
  }
  func.func @transform_1(%arg0: i32) -> (i32, i32, i32) {
    %c0_i32 = arith.constant 0 : i32
    %c0_i32_0 = arith.constant 0 : i32
    %c0_i32_1 = arith.constant 0 : i32
    return %arg0, %c0_i32, %c0_i32_0 : i32, i32, i32
  }
  func.func @transform_2(%arg0: i32) -> (i32, i32, i32, i32) {
    %c0_i32 = arith.constant 0 : i32
    %c0_i32_0 = arith.constant 0 : i32
    %c0_i32_1 = arith.constant 0 : i32
    %c0_i32_2 = arith.constant 0 : i32
    return %arg0, %c0_i32, %c0_i32_0, %c0_i32_1 : i32, i32, i32, i32
  }
  func.func @transform_3(%arg0: i32) -> (i32, i32, i32, i32) {
    %c0_i32 = arith.constant 0 : i32
    %c0_i32_0 = arith.constant 0 : i32
    %c0_i32_1 = arith.constant 0 : i32
    %c0_i32_2 = arith.constant 0 : i32
    return %arg0, %c0_i32, %c0_i32_0, %c0_i32_1 : i32, i32, i32, i32
  }
  func.func @transform_4(%arg0: i32) -> (i32, i32, i32, i32) {
    %c0_i32 = arith.constant 0 : i32
    %c0_i32_0 = arith.constant 0 : i32
    %c0_i32_1 = arith.constant 0 : i32
    %c0_i32_2 = arith.constant 0 : i32
    return %arg0, %c0_i32, %c0_i32_0, %c0_i32_1 : i32, i32, i32, i32
  }
  func.func @transform_5(%arg0: i32) -> (i32, i32, i32, i32) {
    %c0_i32 = arith.constant 0 : i32
    %c0_i32_0 = arith.constant 0 : i32
    %c0_i32_1 = arith.constant 0 : i32
    %c0_i32_2 = arith.constant 0 : i32
    return %arg0, %c0_i32, %c0_i32_0, %c0_i32_1 : i32, i32, i32, i32
  }
}

module attributes {stable_mosaic.version = 11 : i64} {
  func.func @_conv_res_kernel(%arg0: i32, %arg1: memref<1x1x80x192xbf16, #tpu.memory_space<vmem>>, %arg2: memref<1x192x32xbf16, #tpu.memory_space<vmem>>, %arg3: memref<1x1x1x32xf32, #tpu.memory_space<vmem>>, %arg4: memref<1x1x1x1xf32, #tpu.memory_space<vmem>>, %arg5: memref<1x1x80x1xf32, #tpu.memory_space<vmem>>, %arg6: memref<1x1x80x32xf32, #tpu.memory_space<vmem>>, %arg7: memref<1x1x80x32xf32, #tpu.memory_space<vmem>>) attributes {dimension_semantics = [#tpu.dimension_semantics<parallel>], iteration_bounds = array<i64: 1>, scalar_prefetch = 0 : i64, scratch_operands = 0 : i64, tpu.core_type = #tpu.core_type<tc>, window_params = [{transform_indices = @transform_0, window_bounds = array<i64: 1, 1, 80, 192>}, {transform_indices = @transform_1, window_bounds = array<i64: 1, 192, 32>}, {transform_indices = @transform_2, window_bounds = array<i64: 1, 1, 1, 32>}, {transform_indices = @transform_3, window_bounds = array<i64: 1, 1, 1, 1>}, {transform_indices = @transform_4, window_bounds = array<i64: 1, 1, 80, 1>}, {transform_indices = @transform_5, window_bounds = array<i64: 1, 1, 80, 32>}, {transform_indices = @transform_6, window_bounds = array<i64: 1, 1, 80, 32>}]} {
    %c0 = arith.constant 0 : index
    %c0_0 = arith.constant 0 : index
    %c0_1 = arith.constant 0 : index
    %0 = vector.load %arg2[%c0, %c0_0, %c0_1] : memref<1x192x32xbf16, #tpu.memory_space<vmem>>, vector<1x192x32xbf16>
    %1 = vector.shape_cast %0 : vector<1x192x32xbf16> to vector<192x32xbf16>
    %c0_2 = arith.constant 0 : index
    %c0_3 = arith.constant 0 : index
    %c0_4 = arith.constant 0 : index
    %c0_5 = arith.constant 0 : index
    %2 = vector.load %arg3[%c0_2, %c0_3, %c0_4, %c0_5] : memref<1x1x1x32xf32, #tpu.memory_space<vmem>>, vector<1x1x1x32xf32>
    %3 = vector.shape_cast %2 : vector<1x1x1x32xf32> to vector<1x32xf32>
    %c0_6 = arith.constant 0 : index
    %c0_7 = arith.constant 0 : index
    %c0_8 = arith.constant 0 : index
    %c0_9 = arith.constant 0 : index
    %4 = vector.load %arg5[%c0_6, %c0_7, %c0_8, %c0_9] : memref<1x1x80x1xf32, #tpu.memory_space<vmem>>, vector<1x1x80x1xf32>
    %5 = vector.shape_cast %4 : vector<1x1x80x1xf32> to vector<80x1xf32>
    %c0_10 = arith.constant 0 : index
    %c0_11 = arith.constant 0 : index
    %c0_12 = arith.constant 0 : index
    %c0_13 = arith.constant 0 : index
    %6 = vector.load %arg1[%c0_10, %c0_11, %c0_12, %c0_13] : memref<1x1x80x192xbf16, #tpu.memory_space<vmem>>, vector<1x1x80x192xbf16>
    %7 = vector.shape_cast %6 : vector<1x1x80x192xbf16> to vector<80x192xbf16>
    %cst = arith.constant dense<0.000000e+00> : vector<80x32xf32>
    %8 = tpu.matmul %7, %1, %cst {dimension_numbers = #tpu.dot_dimension_numbers<[1], [0], [0], [1], [0, 0, 1, 1], [], []>} : vector<80x192xbf16>, vector<192x32xbf16>, vector<80x32xf32> -> vector<80x32xf32>
    %c0_14 = arith.constant 0 : index
    %c0_15 = arith.constant 0 : index
    %c0_16 = arith.constant 0 : index
    %c0_17 = arith.constant 0 : index
    %9 = vector.load %arg4[%c0_14, %c0_15, %c0_16, %c0_17] : memref<1x1x1x1xf32, #tpu.memory_space<vmem>>, vector<1x1x1x1xf32>
    %10 = vector.shape_cast %9 : vector<1x1x1x1xf32> to vector<1x1xf32>
    %11 = vector.broadcast %3 : vector<1x32xf32> to vector<80x32xf32>
    %12 = arith.addf %8, %11 : vector<80x32xf32>
    %cst_18 = arith.constant 0.000000e+00 : f32
    %13 = vector.broadcast %cst_18 : f32 to vector<80x32xf32>
    %14 = arith.maximumf %12, %13 : vector<80x32xf32>
    %15 = vector.broadcast %10 : vector<1x1xf32> to vector<80x32xf32>
    %16 = arith.mulf %14, %15 : vector<80x32xf32>
    %17 = vector.broadcast %5 : vector<80x1xf32> to vector<80x32xf32>
    %18 = arith.mulf %16, %17 : vector<80x32xf32>
    %c0_19 = arith.constant 0 : index
    %c0_20 = arith.constant 0 : index
    %c0_21 = arith.constant 0 : index
    %c0_22 = arith.constant 0 : index
    %19 = vector.load %arg6[%c0_19, %c0_20, %c0_21, %c0_22] : memref<1x1x80x32xf32, #tpu.memory_space<vmem>>, vector<1x1x80x32xf32>
    %20 = vector.shape_cast %19 : vector<1x1x80x32xf32> to vector<80x32xf32>
    %21 = arith.addf %18, %20 : vector<80x32xf32>
    %c0_23 = arith.constant 0 : index
    %c0_24 = arith.constant 0 : index
    %c0_25 = arith.constant 0 : index
    %c0_26 = arith.constant 0 : index
    %22 = vector.load %arg7[%c0_23, %c0_24, %c0_25, %c0_26] : memref<1x1x80x32xf32, #tpu.memory_space<vmem>>, vector<1x1x80x32xf32>
    %23 = vector.shape_cast %22 : vector<1x1x80x32xf32> to vector<80x32xf32>
    %24 = vector.shape_cast %21 : vector<80x32xf32> to vector<1x1x80x32xf32>
    tpu.vector_store %arg7[%c0_23, %c0_24, %c0_25, %c0_26], %24 {strides = array<i32>} : memref<1x1x80x32xf32, #tpu.memory_space<vmem>>, vector<1x1x80x32xf32>,
    return
  }
  func.func @transform_0(%arg0: i32) -> (i32, i32, i32, i32) {
    %c0_i32 = arith.constant 0 : i32
    %c0_i32_0 = arith.constant 0 : i32
    %c0_i32_1 = arith.constant 0 : i32
    %c0_i32_2 = arith.constant 0 : i32
    return %arg0, %c0_i32, %c0_i32_0, %c0_i32_1 : i32, i32, i32, i32
  }
  func.func @transform_1(%arg0: i32) -> (i32, i32, i32) {
    %c0_i32 = arith.constant 0 : i32
    %c0_i32_0 = arith.constant 0 : i32
    %c0_i32_1 = arith.constant 0 : i32
    return %arg0, %c0_i32, %c0_i32_0 : i32, i32, i32
  }
  func.func @transform_2(%arg0: i32) -> (i32, i32, i32, i32) {
    %c0_i32 = arith.constant 0 : i32
    %c0_i32_0 = arith.constant 0 : i32
    %c0_i32_1 = arith.constant 0 : i32
    %c0_i32_2 = arith.constant 0 : i32
    return %arg0, %c0_i32, %c0_i32_0, %c0_i32_1 : i32, i32, i32, i32
  }
  func.func @transform_3(%arg0: i32) -> (i32, i32, i32, i32) {
    %c0_i32 = arith.constant 0 : i32
    %c0_i32_0 = arith.constant 0 : i32
    %c0_i32_1 = arith.constant 0 : i32
    %c0_i32_2 = arith.constant 0 : i32
    return %arg0, %c0_i32, %c0_i32_0, %c0_i32_1 : i32, i32, i32, i32
  }
  func.func @transform_4(%arg0: i32) -> (i32, i32, i32, i32) {
    %c0_i32 = arith.constant 0 : i32
    %c0_i32_0 = arith.constant 0 : i32
    %c0_i32_1 = arith.constant 0 : i32
    %c0_i32_2 = arith.constant 0 : i32
    return %arg0, %c0_i32, %c0_i32_0, %c0_i32_1 : i32, i32, i32, i32
  }
  func.func @transform_5(%arg0: i32) -> (i32, i32, i32, i32) {
    %c0_i32 = arith.constant 0 : i32
    %c0_i32_0 = arith.constant 0 : i32
    %c0_i32_1 = arith.constant 0 : i32
    %c0_i32_2 = arith.constant 0 : i32
    return %arg0, %c0_i32, %c0_i32_0, %c0_i32_1 : i32, i32, i32, i32
  }
  func.func @transform_6(%arg0: i32) -> (i32, i32, i32, i32) {
    %c0_i32 = arith.constant 0 : i32
    %c0_i32_0 = arith.constant 0 : i32
    %c0_i32_1 = arith.constant 0 : i32
    %c0_i32_2 = arith.constant 0 : i32
    return %arg0, %c0_i32, %c0_i32_0, %c0_i32_1 : i32, i32, i32, i32
  }
}

module attributes {stable_mosaic.version = 11 : i64} {
  func.func @_conv_kernel(%arg0: i32, %arg1: memref<1x1x80x192xbf16, #tpu.memory_space<vmem>>, %arg2: memref<1x192x64xbf16, #tpu.memory_space<vmem>>, %arg3: memref<1x1x1x64xf32, #tpu.memory_space<vmem>>, %arg4: memref<1x1x1x1xf32, #tpu.memory_space<vmem>>, %arg5: memref<1x1x80x1xf32, #tpu.memory_space<vmem>>, %arg6: memref<1x1x80x64xf32, #tpu.memory_space<vmem>>) attributes {dimension_semantics = [#tpu.dimension_semantics<parallel>], iteration_bounds = array<i64: 1>, scalar_prefetch = 0 : i64, scratch_operands = 0 : i64, tpu.core_type = #tpu.core_type<tc>, window_params = [{transform_indices = @transform_0, window_bounds = array<i64: 1, 1, 80, 192>}, {transform_indices = @transform_1, window_bounds = array<i64: 1, 192, 64>}, {transform_indices = @transform_2, window_bounds = array<i64: 1, 1, 1, 64>}, {transform_indices = @transform_3, window_bounds = array<i64: 1, 1, 1, 1>}, {transform_indices = @transform_4, window_bounds = array<i64: 1, 1, 80, 1>}, {transform_indices = @transform_5, window_bounds = array<i64: 1, 1, 80, 64>}]} {
    %c0 = arith.constant 0 : index
    %c0_0 = arith.constant 0 : index
    %c0_1 = arith.constant 0 : index
    %0 = vector.load %arg2[%c0, %c0_0, %c0_1] : memref<1x192x64xbf16, #tpu.memory_space<vmem>>, vector<1x192x64xbf16>
    %1 = vector.shape_cast %0 : vector<1x192x64xbf16> to vector<192x64xbf16>
    %c0_2 = arith.constant 0 : index
    %c0_3 = arith.constant 0 : index
    %c0_4 = arith.constant 0 : index
    %c0_5 = arith.constant 0 : index
    %2 = vector.load %arg3[%c0_2, %c0_3, %c0_4, %c0_5] : memref<1x1x1x64xf32, #tpu.memory_space<vmem>>, vector<1x1x1x64xf32>
    %3 = vector.shape_cast %2 : vector<1x1x1x64xf32> to vector<1x64xf32>
    %c0_6 = arith.constant 0 : index
    %c0_7 = arith.constant 0 : index
    %c0_8 = arith.constant 0 : index
    %c0_9 = arith.constant 0 : index
    %4 = vector.load %arg5[%c0_6, %c0_7, %c0_8, %c0_9] : memref<1x1x80x1xf32, #tpu.memory_space<vmem>>, vector<1x1x80x1xf32>
    %5 = vector.shape_cast %4 : vector<1x1x80x1xf32> to vector<80x1xf32>
    %c0_10 = arith.constant 0 : index
    %c0_11 = arith.constant 0 : index
    %c0_12 = arith.constant 0 : index
    %c0_13 = arith.constant 0 : index
    %6 = vector.load %arg1[%c0_10, %c0_11, %c0_12, %c0_13] : memref<1x1x80x192xbf16, #tpu.memory_space<vmem>>, vector<1x1x80x192xbf16>
    %7 = vector.shape_cast %6 : vector<1x1x80x192xbf16> to vector<80x192xbf16>
    %cst = arith.constant dense<0.000000e+00> : vector<80x64xf32>
    %8 = tpu.matmul %7, %1, %cst {dimension_numbers = #tpu.dot_dimension_numbers<[1], [0], [0], [1], [0, 0, 1, 1], [], []>} : vector<80x192xbf16>, vector<192x64xbf16>, vector<80x64xf32> -> vector<80x64xf32>
    %c0_14 = arith.constant 0 : index
    %c0_15 = arith.constant 0 : index
    %c0_16 = arith.constant 0 : index
    %c0_17 = arith.constant 0 : index
    %9 = vector.load %arg4[%c0_14, %c0_15, %c0_16, %c0_17] : memref<1x1x1x1xf32, #tpu.memory_space<vmem>>, vector<1x1x1x1xf32>
    %10 = vector.shape_cast %9 : vector<1x1x1x1xf32> to vector<1x1xf32>
    %11 = vector.broadcast %3 : vector<1x64xf32> to vector<80x64xf32>
    %12 = arith.addf %8, %11 : vector<80x64xf32>
    %cst_18 = arith.constant 0.000000e+00 : f32
    %13 = vector.broadcast %cst_18 : f32 to vector<80x64xf32>
    %14 = arith.maximumf %12, %13 : vector<80x64xf32>
    %15 = vector.broadcast %10 : vector<1x1xf32> to vector<80x64xf32>
    %16 = arith.mulf %14, %15 : vector<80x64xf32>
    %17 = vector.broadcast %5 : vector<80x1xf32> to vector<80x64xf32>
    %18 = arith.mulf %16, %17 : vector<80x64xf32>
    %c0_19 = arith.constant 0 : index
    %c0_20 = arith.constant 0 : index
    %c0_21 = arith.constant 0 : index
    %c0_22 = arith.constant 0 : index
    %19 = vector.load %arg6[%c0_19, %c0_20, %c0_21, %c0_22] : memref<1x1x80x64xf32, #tpu.memory_space<vmem>>, vector<1x1x80x64xf32>
    %20 = vector.shape_cast %19 : vector<1x1x80x64xf32> to vector<80x64xf32>
    %21 = vector.shape_cast %18 : vector<80x64xf32> to vector<1x1x80x64xf32>
    tpu.vector_store %arg6[%c0_19, %c0_20, %c0_21, %c0_22], %21 {strides = array<i32>} : memref<1x1x80x64xf32, #tpu.memory_space<vmem>>, vector<1x1x80x64xf32>,
    return
  }
  func.func @transform_0(%arg0: i32) -> (i32, i32, i32, i32) {
    %c0_i32 = arith.constant 0 : i32
    %c0_i32_0 = arith.constant 0 : i32
    %c0_i32_1 = arith.constant 0 : i32
    %c0_i32_2 = arith.constant 0 : i32
    return %arg0, %c0_i32, %c0_i32_0, %c0_i32_1 : i32, i32, i32, i32
  }
  func.func @transform_1(%arg0: i32) -> (i32, i32, i32) {
    %c0_i32 = arith.constant 0 : i32
    %c0_i32_0 = arith.constant 0 : i32
    %c0_i32_1 = arith.constant 0 : i32
    return %arg0, %c0_i32, %c0_i32_0 : i32, i32, i32
  }
  func.func @transform_2(%arg0: i32) -> (i32, i32, i32, i32) {
    %c0_i32 = arith.constant 0 : i32
    %c0_i32_0 = arith.constant 0 : i32
    %c0_i32_1 = arith.constant 0 : i32
    %c0_i32_2 = arith.constant 0 : i32
    return %arg0, %c0_i32, %c0_i32_0, %c0_i32_1 : i32, i32, i32, i32
  }
  func.func @transform_3(%arg0: i32) -> (i32, i32, i32, i32) {
    %c0_i32 = arith.constant 0 : i32
    %c0_i32_0 = arith.constant 0 : i32
    %c0_i32_1 = arith.constant 0 : i32
    %c0_i32_2 = arith.constant 0 : i32
    return %arg0, %c0_i32, %c0_i32_0, %c0_i32_1 : i32, i32, i32, i32
  }
  func.func @transform_4(%arg0: i32) -> (i32, i32, i32, i32) {
    %c0_i32 = arith.constant 0 : i32
    %c0_i32_0 = arith.constant 0 : i32
    %c0_i32_1 = arith.constant 0 : i32
    %c0_i32_2 = arith.constant 0 : i32
    return %arg0, %c0_i32, %c0_i32_0, %c0_i32_1 : i32, i32, i32, i32
  }
  func.func @transform_5(%arg0: i32) -> (i32, i32, i32, i32) {
    %c0_i32 = arith.constant 0 : i32
    %c0_i32_0 = arith.constant 0 : i32
    %c0_i32_1 = arith.constant 0 : i32
    %c0_i32_2 = arith.constant 0 : i32
    return %arg0, %c0_i32, %c0_i32_0, %c0_i32_1 : i32, i32, i32, i32
  }
}

module attributes {stable_mosaic.version = 11 : i64} {
  func.func @_pool2_fc_kernel(%arg0: memref<2x1280xbf16, #tpu.memory_space<vmem>>, %arg1: memref<1280x96xbf16, #tpu.memory_space<vmem>>, %arg2: memref<1x96xf32, #tpu.memory_space<vmem>>, %arg3: memref<2x96xf32, #tpu.memory_space<vmem>>, %arg4: memref<96x4xf32, #tpu.memory_space<vmem>>, %arg5: memref<1x4xf32, #tpu.memory_space<vmem>>, %arg6: memref<2x4xf32, #tpu.memory_space<vmem>>) attributes {dimension_semantics = [], scalar_prefetch = 0 : i64, scratch_operands = 0 : i64, tpu.core_type = #tpu.core_type<tc>} {
    %c0 = arith.constant 0 : index
    %c0_0 = arith.constant 0 : index
    %0 = vector.load %arg0[%c0, %c0_0] : memref<2x1280xbf16, #tpu.memory_space<vmem>>, vector<2x1280xbf16>
    %c0_1 = arith.constant 0 : index
    %c0_2 = arith.constant 0 : index
    %1 = vector.load %arg1[%c0_1, %c0_2] : memref<1280x96xbf16, #tpu.memory_space<vmem>>, vector<1280x96xbf16>
    %cst = arith.constant dense<0.000000e+00> : vector<2x96xf32>
    %2 = tpu.matmul %0, %1, %cst {dimension_numbers = #tpu.dot_dimension_numbers<[1], [0], [0], [1], [0, 0, 1, 1], [], []>} : vector<2x1280xbf16>, vector<1280x96xbf16>, vector<2x96xf32> -> vector<2x96xf32>
    %c0_3 = arith.constant 0 : index
    %c0_4 = arith.constant 0 : index
    %3 = vector.load %arg2[%c0_3, %c0_4] : memref<1x96xf32, #tpu.memory_space<vmem>>, vector<1x96xf32>
    %4 = vector.broadcast %3 : vector<1x96xf32> to vector<2x96xf32>
    %5 = arith.addf %2, %4 : vector<2x96xf32>
    %cst_5 = arith.constant 0.000000e+00 : f32
    %6 = vector.broadcast %cst_5 : f32 to vector<2x96xf32>
    %7 = arith.maximumf %5, %6 : vector<2x96xf32>
    %c0_6 = arith.constant 0 : index
    %c0_7 = arith.constant 0 : index
    %8 = vector.load %arg3[%c0_6, %c0_7] : memref<2x96xf32, #tpu.memory_space<vmem>>, vector<2x96xf32>
    %9 = arith.mulf %7, %8 : vector<2x96xf32>
    %c0_8 = arith.constant 0 : index
    %c0_9 = arith.constant 0 : index
    %10 = vector.load %arg4[%c0_8, %c0_9] : memref<96x4xf32, #tpu.memory_space<vmem>>, vector<96x4xf32>
    %cst_10 = arith.constant dense<0.000000e+00> : vector<2x4xf32>
    %11 = tpu.matmul %9, %10, %cst_10 {dimension_numbers = #tpu.dot_dimension_numbers<[1], [0], [0], [1], [0, 0, 1, 1], [], []>} : vector<2x96xf32>, vector<96x4xf32>, vector<2x4xf32> -> vector<2x4xf32>
    %c0_11 = arith.constant 0 : index
    %c0_12 = arith.constant 0 : index
    %12 = vector.load %arg5[%c0_11, %c0_12] : memref<1x4xf32, #tpu.memory_space<vmem>>, vector<1x4xf32>
    %13 = vector.broadcast %12 : vector<1x4xf32> to vector<2x4xf32>
    %14 = arith.addf %11, %13 : vector<2x4xf32>
    %cst_13 = arith.constant dense<0xFF800000> : vector<2xf32>
    %15 = vector.multi_reduction <maximumf>, %14, %cst_13 [1] : vector<2x4xf32> to vector<2xf32>
    %16 = vector.shape_cast %15 : vector<2xf32> to vector<2x1xf32>
    %17 = vector.broadcast %16 : vector<2x1xf32> to vector<2x4xf32>
    %18 = arith.subf %14, %17 : vector<2x4xf32>
    %19 = math.exp %18 : vector<2x4xf32>
    %cst_14 = arith.constant dense<0.000000e+00> : vector<2xf32>
    %20 = vector.multi_reduction <add>, %19, %cst_14 [1] : vector<2x4xf32> to vector<2xf32>
    %21 = vector.shape_cast %20 : vector<2xf32> to vector<2x1xf32>
    %22 = tpu.reciprocal %21 {approx = true} : vector<2x1xf32> -> vector<2x1xf32>
    %23 = vector.broadcast %22 : vector<2x1xf32> to vector<2x4xf32>
    %24 = arith.mulf %19, %23 : vector<2x4xf32>
    %c0_15 = arith.constant 0 : index
    %c0_16 = arith.constant 0 : index
    %25 = vector.load %arg6[%c0_15, %c0_16] : memref<2x4xf32, #tpu.memory_space<vmem>>, vector<2x4xf32>
    tpu.vector_store %arg6[%c0_15, %c0_16], %24 {strides = array<i32>} : memref<2x4xf32, #tpu.memory_space<vmem>>, vector<2x4xf32>,
    return
  }
}

</mosaic_0001>

<bundles_post_ra>
// kernel: _lambda_.10
= control target key start
LH: loop header
LB: loop body
LE: loop exit
PB: predicated region body
PF: predicated region fallthrough
CT: control target
= control target key end

     0   :  { %s4297_s18 = smov 0   ;;  %s5354_s0 = inlined_call_operand.vmem [shape: bf16[3,2,240,640], index: 0, kind: input, shape index: {}]   ;;  %s5355_s1 = inlined_call_operand.vmem [shape: bf16[3,640,16], index: 1, kind: input, shape index: {}]   ;;  %s5356_s2 = inlined_call_operand.vmem [shape: f32[3,1,1,16], index: 2, kind: input, shape index: {}]   ;;  %s5357_s3 = inlined_call_operand.vmem [shape: f32[3,2,1,16], index: 3, kind: input, shape index: {}]   ;;  %s5358_s4 = inlined_call_operand.vmem [shape: f32[3,1,240,1], index: 4, kind: input, shape index: {}]   ;;  %s5359_s5 = inlined_call_operand.vmem [shape: f32[3,2,240,16], index: 5, kind: output, shape index: {}]  }
   0x1 LB: > { %s3040_s19 = sadd.s32 4294967295, %s4262_s18   ;;  %p3044_p0 = scmp.ge.s32.totalorder %s4262_s18, 1  ;;  %s4262_s18 = sphi %s4297_s18, %s15_s18  }
   0x2   : > { %p224_p1 = scmp.lt.s32.totalorder %s4262_s18, 4 }
   0x4   : > { %p225_p2 = pnand %p3044_p0, %p224_p1 }
   0x6   : > { %228 = sbr.rel (%p225_p2) target bundleno = 632 (0x278), region = 40 }
   0xd   : > { %p269_p3 = scmp.lt.s32.totalorder %s3040_s19, 2  ;;  %v4264_v33 = vmov 0.0   ;;  %vm4266_vm0 = vmmov 0   ;;  %vm1840_vm1 = vcmask 130048  }
   0xf   : > { %s5406_s19 = smov (!%p269_p3, %s3040_s19), 2 }
  0x10   : > { %s3989_s20 = smul.u32 320, %s5406_s19  ;;  %s4696_s9 = scalar_lea.vmem %s5356_s2, %s5406_s19 }
  0x11   : > { %s3988_s24 = smul.u32 1200, %s5406_s19  ;;  %s3047_s10 = sshll.u32 %s5406_s19, 1 }
  0x12   : > { %s4311_s23 = scalar_lea.vmem %s5355_s1, %s3989_s20  ;;  %s3990_s28 = smul.u32 240, %s5406_s19 }
  0x13   : > { %v4314_v0 = vld [vmem:[%s4311_s23 + $0x40] sm:$0xff]   ;;  %v4329_v4 = vld [vmem:[%s4311_s23 + $0x48] sm:$0xff]   ;;  %v4345_v8 = vld [vmem:[%s4311_s23 + $0x50] sm:$0xff]   ;;  %s4431_s27 = scalar_lea.vmem %s5354_s0, %s3988_s24  ;;  %s4866_s13 = scalar_lea.vmem %s5357_s3, %s3047_s10 }
  0x14   : > { %v4317_v1 = vld [vmem:[%s4311_s23] sm:$0xff]   ;;  %3366 = vmatprep.subr.bf16.mxu0 %v4314_v0  ;;  %v4333_v5 = vld [vmem:[%s4311_s23 + $0x8] sm:$0xff]   ;;  %v4349_v9 = vld [vmem:[%s4311_s23 + $0x10] sm:$0xff]   ;;  %s4554_s6 = scalar_lea.vmem %s5358_s4, %s3990_s28  ;;  %s3991_s14 = smul.u32 480, %s5406_s19 }
  0x15   : > { %v4321_v2 = vld [vmem:[%s4311_s23 + $0xc0] sm:$0xff]   ;;  %3367 = vmatpush3.bf16.msra.mxu0 %v4317_v1  ;;  %v4337_v6 = vld [vmem:[%s4311_s23 + $0xc8] sm:$0xff]   ;;  %v4353_v10 = vld [vmem:[%s4311_s23 + $0xd0] sm:$0xff]  }
  0x16   : > { %v4325_v3 = vld [vmem:[%s4311_s23 + $0x80] sm:$0xff]   ;;  %3472 = vmatprep.subr.bf16.mxu1 %v4321_v2  ;;  %3368 = vmatprep.subr.bf16.mxu0 %v4329_v4  ;;  %v4341_v7 = vld [vmem:[%s4311_s23 + $0x88] sm:$0xff]   ;;  %v4357_v11 = vld [vmem:[%s4311_s23 + $0x90] sm:$0xff]   ;;  %s4891_s17 = scalar_lea.vmem %s5359_s5, %s3991_s14 }
  0x17   : > { %3473 = vmatpush3.bf16.msra.mxu1 %v4325_v3  ;;  %v4361_v12 = vld [vmem:[%s4311_s23 + $0x58] sm:$0xff]   ;;  %v4377_v16 = vld [vmem:[%s4311_s23 + $0x60] sm:$0xff]   ;;  %v4393_v20 = vld [vmem:[%s4311_s23 + $0x68] sm:$0xff]  }
  0x18   : > { %3474 = vmatprep.subr.bf16.mxu1 %v4337_v6  ;;  %v4365_v13 = vld [vmem:[%s4311_s23 + $0x18] sm:$0xff]   ;;  %v4381_v17 = vld [vmem:[%s4311_s23 + $0x20] sm:$0xff]   ;;  %v4397_v21 = vld [vmem:[%s4311_s23 + $0x28] sm:$0xff]  }
  0x19   : > { %3369 = vmatpush3.bf16.msra.mxu0 %v4333_v5  ;;  %v4369_v14 = vld [vmem:[%s4311_s23 + $0xd8] sm:$0xff]   ;;  %v4385_v18 = vld [vmem:[%s4311_s23 + $0xe0] sm:$0xff]   ;;  %v4401_v22 = vld [vmem:[%s4311_s23 + $0xe8] sm:$0xff]  }
  0x1a   : > { %3370 = vmatprep.subr.bf16.mxu0 %v4345_v8  ;;  %v4373_v15 = vld [vmem:[%s4311_s23 + $0x98] sm:$0xff]   ;;  %v4389_v19 = vld [vmem:[%s4311_s23 + $0xa0] sm:$0xff]   ;;  %v4405_v23 = vld [vmem:[%s4311_s23 + $0xa8] sm:$0xff]  }
  0x1b   : > { %3475 = vmatpush3.bf16.msra.mxu1 %v4341_v7  ;;  %v4409_v24 = vld [vmem:[%s4311_s23 + $0x70] sm:$0xff]   ;;  %v4426_v28 = vld [vmem:[%s4311_s23 + $0x78] sm:$0xff]   ;;  %v4042_v36 = vld [vmem:[%s4431_s27 + $0xc] ss:$20 sps:$4 sm:$0xff]  }
  0x1c   : > { %3476 = vmatprep.subr.bf16.mxu1 %v4353_v10  ;;  %v4414_v25 = vld [vmem:[%s4311_s23 + $0x30] sm:$0xff]   ;;  %v4435_v29 = vld [vmem:[%s4311_s23 + $0x38] sm:$0xff]   ;;  %v4453_v37 = vld [vmem:[%s4311_s23 + $0x100] sm:$0xff]   ;;  %1320 = vmatprep.mubr.bf16.mxu1 %v4042_v36 }
  0x1d   : > { %3371 = vmatpush3.bf16.msra.mxu0 %v4349_v9  ;;  %v4418_v26 = vld [vmem:[%s4311_s23 + $0xf0] sm:$0xff]   ;;  %v4439_v30 = vld [vmem:[%s4311_s23 + $0xf8] sm:$0xff]   ;;  %v4044_v38 = vld [vmem:[%s4431_s27 + $0x2c] ss:$20 sps:$4 sm:$0xff]  }
  0x1e   : > { %3372 = vmatprep.subr.bf16.mxu0 %v4361_v12  ;;  %v4422_v27 = vld [vmem:[%s4311_s23 + $0xb0] sm:$0xff]   ;;  %v4038_v32 = vld [vmem:[%s4431_s27 + $0x4] ss:$20 sps:$4 sm:$0xff]   ;;  %v4040_v35 = vld [vmem:[%s4431_s27 + $0x8] ss:$20 sps:$4 sm:$0xff]  }
  0x1f   : > { %3477 = vmatpush3.bf16.msra.mxu1 %v4357_v11  ;;  %v4036_v31 = vld [vmem:[%s4431_s27] ss:$20 sps:$4 sm:$0xff]   ;;  %v4447_v34 = vld [vmem:[%s4311_s23 + $0xb8] sm:$0xff]   ;;  %1167 = vmatprep.mubr.bf16.mxu0 %v4038_v32  ;;  %v4464_v42 = vld [vmem:[%s4311_s23 + $0x108] sm:$0xff]  }
  0x20   : > { %3478 = vmatprep.subr.bf16.mxu1 %v4369_v14  ;;  %v4047_v39 = vld [vmem:[%s4431_s27 + $0x34] ss:$20 sps:$4 sm:$0xff]   ;;  %v4049_v43 = vld [vmem:[%s4431_s27 + $0x30] ss:$20 sps:$4 sm:$0xff]   ;;  %v4056_v48 = vld [vmem:[%s4431_s27 + $0x58] ss:$20 sps:$4 sm:$0xff]  }
  0x21   : > { %3373 = vmatpush3.bf16.msra.mxu0 %v4365_v13  ;;  %v4046_v40 = vld [vmem:[%s4431_s27 + $0x28] ss:$20 sps:$4 sm:$0xff]   ;;  %v4474_v45 = vld [vmem:[%s4311_s23 + $0x110] sm:$0xff]   ;;  %v4060_v49 = vld [vmem:[%s4431_s27 + $0x84] ss:$20 sps:$4 sm:$0xff]  }
  0x22   : > { %3374 = vmatprep.subr.bf16.mxu0 %v4377_v16  ;;  %v4050_v41 = vld [vmem:[%s4431_s27 + $0x54] ss:$20 sps:$4 sm:$0xff]   ;;  %v4054_v44 = vld [vmem:[%s4431_s27 + $0x5c] ss:$20 sps:$4 sm:$0xff]   ;;  %v4059_v51 = vld [vmem:[%s4431_s27 + $0x78] ss:$20 sps:$4 sm:$0xff]  }
  0x23   : > { %3479 = vmatpush3.bf16.msra.mxu1 %v4373_v15  ;;  %v4052_v46 = vld [vmem:[%s4431_s27 + $0x50] ss:$20 sps:$4 sm:$0xff]   ;;  %v4485_v50 = vld [vmem:[%s4311_s23 + $0x118] sm:$0xff]   ;;  %v4062_v53 = vld [vmem:[%s4431_s27 + $0x80] ss:$20 sps:$4 sm:$0xff]  }
  0x24   : > { %3480 = vmatprep.subr.bf16.mxu1 %v4385_v18  ;;  %v4057_v47 = vld [vmem:[%s4431_s27 + $0x7c] ss:$20 sps:$4 sm:$0xff]   ;;  %v4063_v52 = vld [vmem:[%s4431_s27 + $0xa4] ss:$20 sps:$4 sm:$0xff]   ;;  %v4067_v55 = vld [vmem:[%s4431_s27 + $0xac] ss:$20 sps:$4 sm:$0xff]  }
  0x25   : > { %3375 = vmatpush3.bf16.msra.mxu0 %v4381_v17  ;;  %v4497_v54 = vld [vmem:[%s4311_s23 + $0x120] sm:$0xff]   ;;  %v4508_v58 = vld [vmem:[%s4311_s23 + $0x128] sm:$0xff]   ;;  %v4518_v61 = vld [vmem:[%s4311_s23 + $0x130] sm:$0xff]  }
  0x26   : > { %3376 = vmatprep.subr.bf16.mxu0 %v4393_v20  ;;  %v4066_v56 = vld [vmem:[%s4431_s27 + $0xa0] ss:$20 sps:$4 sm:$0xff]   ;;  %v4069_v59 = vld [vmem:[%s4431_s27 + $0xa8] ss:$20 sps:$4 sm:$0xff]  }
  0x27   : > { %3481 = vmatpush3.bf16.msra.mxu1 %v4389_v19  ;;  %v4070_v57 = vld [vmem:[%s4431_s27 + $0xcc] ss:$20 sps:$4 sm:$0xff]   ;;  %v4073_v60 = vld [vmem:[%s4431_s27 + $0xd4] ss:$20 sps:$4 sm:$0xff]   ;;  %v4106_v32 = vld [vmem:[%s4431_s27 + $0x19c] ss:$20 sps:$4 sm:$0xff]  }
  0x28   : > { %3482 = vmatprep.subr.bf16.mxu1 %v4401_v22  ;;  %v4072_v62 = vld [vmem:[%s4431_s27 + $0xc8] ss:$20 sps:$4 sm:$0xff]  }
  0x29   : > { %3377 = vmatpush3.bf16.msra.mxu0 %v4397_v21  ;;  %v4077_v63 = vld [vmem:[%s4431_s27 + $0xf4] ss:$20 sps:$4 sm:$0xff]   ;;  %v4109_v36 = vld [vmem:[%s4431_s27 + $0x1bc] ss:$20 sps:$4 sm:$0xff]  }
  0x2a   : > { %3378 = vmatprep.subr.bf16.mxu0 %v4409_v24 }
  0x2b   : > { %3483 = vmatpush3.bf16.msra.mxu1 %v4405_v23 }
  0x2c   : > { %3484 = vmatprep.subr.bf16.mxu1 %v4418_v26 }
  0x2d   : > { %3379 = vmatpush3.bf16.msra.mxu0 %v4414_v25 }
  0x2e   : > { %3380 = vmatprep.subr.bf16.mxu0 %v4426_v28 }
  0x2f   : > { %3485 = vmatpush3.bf16.msra.mxu1 %v4422_v27 }
  0x30   : > { %3486 = vmatprep.subr.bf16.mxu1 %v4439_v30 }
  0x31   : > { %3381 = vmatpush3.bf16.msra.mxu0 %v4435_v29 }
  0x32   : > { %3836 = vmatprep.subr.bf16.mxu0 %v4264_v33 }
  0x33   : > { %3487 = vmatpush3.bf16.msra.mxu1 %v4447_v34 }
  0x34   : > { %1168 = vmatmul.mubr.bf16.vlgmr.msra.gmra.mrb[0].mxu0 %v4036_v31  ;;  %3601 = vmatprep.subr.bf16.mxu1 %v4314_v0  ;;  %v4075_v0 = vld [vmem:[%s4431_s27 + $0xd0] ss:$20 sps:$4 sm:$0xff]   ;;  %v4103_v31 = vld [vmem:[%s4431_s27 + $0x194] ss:$20 sps:$4 sm:$0xff]  }
  0x35   : > { %3837 = vmatpush3.bf16.msra.mxu0 %v4453_v37  ;;  %1175 = vmatprep.mubr.bf16.mxu0 %v4044_v38  ;;  %v4265_v38 = vmov 0  }
  0x36   : > { %1321 = vmatmul.mubr.bf16.vlgmr.msra.gmra.mrb[0].mxu1 %v4040_v35  ;;  %3838 = vmatprep.subr.bf16.mxu0 %v4264_v33  ;;  %v4105_v35 = vld [vmem:[%s4431_s27 + $0x190] ss:$20 sps:$4 sm:$0xff]  }
  0x37   : > { %3602 = vmatpush3.bf16.msra.mxu1 %v4317_v1  ;;  %1328 = vmatprep.mubr.bf16.mxu1 %v4047_v39  ;;  %v4080_v1 = vld [vmem:[%s4431_s27 + $0xfc] ss:$20 sps:$4 sm:$0xff]   ;;  %v4108_v39 = vld [vmem:[%s4431_s27 + $0x198] ss:$20 sps:$4 sm:$0xff]  }
  0x38   : > { %3603 = vmatprep.subr.bf16.mxu1 %v4329_v4  ;;  %v4527_v4 = vld [vmem:[%s4311_s23 + $0x138] sm:$0xff]   ;;  %4003 = vset.pattern.permute.xlu0 %v4265_v38 }
  0x39   : > { %3839 = vmatpush3.bf16.msra.mxu0 %v4464_v42  ;;  %4004 = vset.pattern.permute.xlu1 %v4265_v38  ;;  %v4163_v38 = vld [vmem:[%s4431_s27 + $0x128] ss:$20 sps:$4 sm:$0xff]  }
  0x3a   : > { %3840 = vmatprep.subr.bf16.mxu0 %v4264_v33 }
  0x3b   : > { %3604 = vmatpush3.bf16.msra.mxu1 %v4333_v5  ;;  %v4079_v5 = vld [vmem:[%s4431_s27 + $0xf0] ss:$20 sps:$4 sm:$0xff]  }
  0x3c   : > { %1176 = vmatmul.mubr.bf16.gmra.mrb[4].mxu0 %v4046_v40  ;;  %3605 = vmatprep.subr.bf16.mxu1 %v4345_v8  ;;  %v4083_v8 = vld [vmem:[%s4431_s27 + $0x11c] ss:$20 sps:$4 sm:$0xff]   ;;  %v378_v40 = vld [vmem:[%s4554_s6] sm:$0xff] }
  0x3d   : > { %1183 = vmatprep.mubr.bf16.mxu0 %v4050_v41  ;;  %3841 = vmatpush3.bf16.msra.mxu0 %v4474_v45  ;;  %v4112_v41 = vld [vmem:[%s4431_s27 + $0x1c4] ss:$20 sps:$4 sm:$0xff]  }
  0x3e   : > { %1329 = vmatmul.mubr.bf16.gmra.mrb[4].mxu1 %v4049_v43  ;;  %3842 = vmatprep.subr.bf16.mxu0 %v4264_v33  ;;  %v4111_v43 = vld [vmem:[%s4431_s27 + $0x1b8] ss:$20 sps:$4 sm:$0xff]  }
  0x3f   : > { %1336 = vmatprep.mubr.bf16.mxu1 %v4054_v44  ;;  %3606 = vmatpush3.bf16.msra.mxu1 %v4349_v9  ;;  %v4082_v9 = vld [vmem:[%s4431_s27 + $0xf8] ss:$20 sps:$4 sm:$0xff]  }
  0x40   : > { %3607 = vmatprep.subr.bf16.mxu1 %v4361_v12  ;;  %v4086_v12 = vld [vmem:[%s4431_s27 + $0x124] ss:$20 sps:$4 sm:$0xff]   ;;  %1662 = vperm.xlu0 %4003, %v378_v40   ;;  %v379_v44 = vld [vmem:[%s4554_s6 + $0x8] sm:$0xff]  ;;  %v4168_v40 = vld [vmem:[%s4431_s27 + $0x39c] ss:$20 sps:$4 sm:$0xff]  }
  0x41   : > { %3843 = vmatpush3.bf16.msra.mxu0 %v4485_v50 }
  0x42   : > { %3844 = vmatprep.subr.bf16.mxu0 %v4264_v33 }
  0x43   : > { %3608 = vmatpush3.bf16.msra.mxu1 %v4365_v13  ;;  %v4085_v13 = vld [vmem:[%s4431_s27 + $0x118] ss:$20 sps:$4 sm:$0xff]  }
  0x44   : > { %1184 = vmatmul.mubr.bf16.gmra.mrb[8].mxu0 %v4052_v46  ;;  %3609 = vmatprep.subr.bf16.mxu1 %v4377_v16  ;;  %v4090_v16 = vld [vmem:[%s4431_s27 + $0x144] ss:$20 sps:$4 sm:$0xff]  }
  0x45   : > { %1191 = vmatprep.mubr.bf16.mxu0 %v4057_v47  ;;  %3845 = vmatpush3.bf16.msra.mxu0 %v4497_v54  ;;  %v4116_v46 = vld [vmem:[%s4431_s27 + $0x1e4] ss:$20 sps:$4 sm:$0xff]   ;;  %v4114_v47 = vld [vmem:[%s4431_s27 + $0x1c0] ss:$20 sps:$4 sm:$0xff]  }
  0x46   : > { %1337 = vmatmul.mubr.bf16.gmra.mrb[8].mxu1 %v4056_v48  ;;  %3846 = vmatprep.subr.bf16.mxu0 %v4264_v33  ;;  %v4119_v48 = vld [vmem:[%s4431_s27 + $0x1ec] ss:$20 sps:$4 sm:$0xff]  }
  0x47   : > { %1344 = vmatprep.mubr.bf16.mxu1 %v4060_v49  ;;  %3610 = vmatpush3.bf16.msra.mxu1 %v4381_v17  ;;  %v4088_v17 = vld [vmem:[%s4431_s27 + $0x120] ss:$20 sps:$4 sm:$0xff]  }
  0x48   : > { %3611 = vmatprep.subr.bf16.mxu1 %v4393_v20  ;;  %v4093_v20 = vld [vmem:[%s4431_s27 + $0x14c] ss:$20 sps:$4 sm:$0xff]   ;;  %1667 = vperm.xlu0 %4003, %v379_v44   ;;  %v380_v49 = vld [vmem:[%s4554_s6 + $0x10] sm:$0xff] }
  0x49   : > { %3847 = vmatpush3.bf16.msra.mxu0 %v4508_v58  ;;  %1672 = vperm.xlu1 %4004, %v380_v49   ;;  %v4167_v44 = vld [vmem:[%s4431_s27 + $0x150] ss:$20 sps:$4 sm:$0xff]   ;;  %v405_v49 = vld [vmem:[%s4554_s6 + $0xd8] sm:$0xff] }
  0x4a   : > { %3848 = vmatprep.subr.bf16.mxu0 %v4264_v33 }
  0x4b   : > { %3612 = vmatpush3.bf16.msra.mxu1 %v4397_v21  ;;  %v4096_v21 = vld [vmem:[%s4431_s27 + $0x16c] ss:$20 sps:$4 sm:$0xff]  }
  0x4c   : > { %1192 = vmatmul.mubr.bf16.gmra.mrb[12].mxu0 %v4059_v51  ;;  %3613 = vmatprep.subr.bf16.mxu1 %v4409_v24  ;;  %v4095_v24 = vld [vmem:[%s4431_s27 + $0x148] ss:$20 sps:$4 sm:$0xff]   ;;  %v4118_v51 = vld [vmem:[%s4431_s27 + $0x1e0] ss:$20 sps:$4 sm:$0xff]  }
  0x4d   : > { %1199 = vmatprep.mubr.bf16.mxu0 %v4063_v52  ;;  %3849 = vmatpush3.bf16.msra.mxu0 %v4518_v61  ;;  %v4122_v52 = vld [vmem:[%s4431_s27 + $0x20c] ss:$20 sps:$4 sm:$0xff]  }
  0x4e   : > { %1345 = vmatmul.mubr.bf16.gmra.mrb[12].mxu1 %v4062_v53  ;;  %3850 = vmatprep.subr.bf16.mxu0 %v4264_v33  ;;  %v381_v53 = vld [vmem:[%s4554_s6 + $0x18] sm:$0xff] }
  0x4f   : > { %1352 = vmatprep.mubr.bf16.mxu1 %v4067_v55  ;;  %3614 = vmatpush3.bf16.msra.mxu1 %v4414_v25  ;;  %v4099_v25 = vld [vmem:[%s4431_s27 + $0x174] ss:$20 sps:$4 sm:$0xff]  }
  0x50   : > { %3615 = vmatprep.subr.bf16.mxu1 %v4426_v28  ;;  %v4098_v28 = vld [vmem:[%s4431_s27 + $0x168] ss:$20 sps:$4 sm:$0xff]   ;;  %1677 = vperm.xlu1 %4004, %v381_v53   ;;  %v4176_v53 = vld [vmem:[%s4431_s27 + $0x3ec] ss:$20 sps:$4 sm:$0xff]  }
  0x51   : > { %3851 = vmatpush3.bf16.msra.mxu0 %v4527_v4  ;;  %v4121_v55 = vld [vmem:[%s4431_s27 + $0x1e8] ss:$20 sps:$4 sm:$0xff]  }
  0x52   : > { %3707 = vmatprep.subr.bf16.mxu0 %v4321_v2  ;;  %v4092_v2 = vld [vmem:[%s4431_s27 + $0x140] ss:$20 sps:$4 sm:$0xff]  }
  0x53   : > { %3616 = vmatpush3.bf16.msra.mxu1 %v4435_v29  ;;  %v4101_v29 = vld [vmem:[%s4431_s27 + $0x170] ss:$20 sps:$4 sm:$0xff]  }
  0x54   : > { %1200 = vmatmul.mubr.bf16.gmra.mrb[16].mxu0 %v4066_v56  ;;  %3912 = vmatprep.subr.bf16.mxu1 %v4264_v33  ;;  %v4125_v56 = vld [vmem:[%s4431_s27 + $0x214] ss:$20 sps:$4 sm:$0xff]  }
  0x55   : > { %1207 = vmatprep.mubr.bf16.mxu0 %v4070_v57  ;;  %v4124_v57 = vld [vmem:[%s4431_s27 + $0x208] ss:$20 sps:$4 sm:$0xff]  }
  0x56   : > { %1353 = vmatmul.mubr.bf16.gmra.mrb[16].mxu1 %v4069_v59  ;;  %v382_v59 = vld [vmem:[%s4554_s6 + $0x20] sm:$0xff] }
  0x57   : > { %1360 = vmatprep.mubr.bf16.mxu1 %v4073_v60  ;;  %1682 = vperm.xlu0 %4003, %v382_v59   ;;  %v383_v60 = vld [vmem:[%s4554_s6 + $0x28] sm:$0xff] }
  0x58   : > { %1687 = vperm.xlu1 %4004, %v383_v60   ;;  %v4178_v59 = vld [vmem:[%s4431_s27 + $0x3e8] ss:$20 sps:$4 sm:$0xff]  }
  0x59   : > { %v4180_v60 = vld [vmem:[%s4431_s27 + $0x414] ss:$20 sps:$4 sm:$0xff]  }
  0x5c   : > { %1208 = vmatmul.mubr.bf16.gmra.mrb[20].mxu0 %v4072_v62  ;;  %v4129_v62 = vld [vmem:[%s4431_s27 + $0x234] ss:$20 sps:$4 sm:$0xff]  }
  0x5d   : > { %1215 = vmatprep.mubr.bf16.mxu0 %v4077_v63  ;;  %v4127_v63 = vld [vmem:[%s4431_s27 + $0x210] ss:$20 sps:$4 sm:$0xff]  }
  0x5e   : > { %1361 = vmatmul.mubr.bf16.gmra.mrb[20].mxu1 %v4075_v0  ;;  %v4132_v0 = vld [vmem:[%s4431_s27 + $0x23c] ss:$20 sps:$4 sm:$0xff]  }
  0x5f   : > { %1368 = vmatprep.mubr.bf16.mxu1 %v4080_v1  ;;  %v384_v1 = vld [vmem:[%s4554_s6 + $0x30] sm:$0xff] }
  0x60   : > { %1692 = vperm.xlu0 %4003, %v384_v1  }
  0x64   : > { %1216 = vmatmul.mubr.bf16.gmra.mrb[24].mxu0 %v4079_v5  ;;  %v385_v5 = vld [vmem:[%s4554_s6 + $0x38] sm:$0xff] }
  0x65   : > { %1223 = vmatprep.mubr.bf16.mxu0 %v4083_v8  ;;  %v4131_v8 = vld [vmem:[%s4431_s27 + $0x230] ss:$20 sps:$4 sm:$0xff]   ;;  %1697 = vperm.xlu1 %4004, %v385_v5   ;;  %v4701_v5 = vld [vmem:[%s4696_s9] ss:$0 sm:$0xff] }
  0x66   : > { %1369 = vmatmul.mubr.bf16.gmra.mrb[24].mxu1 %v4082_v9  ;;  %v4134_v9 = vld [vmem:[%s4431_s27 + $0x238] ss:$20 sps:$4 sm:$0xff]  }
  0x67   : > { %1376 = vmatprep.mubr.bf16.mxu1 %v4086_v12  ;;  %v4138_v12 = vld [vmem:[%s4431_s27 + $0x25c] ss:$20 sps:$4 sm:$0xff]  }
  0x6c   : > { %1224 = vmatmul.mubr.bf16.gmra.mrb[28].mxu0 %v4085_v13  ;;  %v386_v13 = vld [vmem:[%s4554_s6 + $0x40] sm:$0xff] }
  0x6d   : > { %1231 = vmatprep.mubr.bf16.mxu0 %v4090_v16  ;;  %1702 = vperm.xlu0 %4003, %v386_v13   ;;  %v387_v16 = vld [vmem:[%s4554_s6 + $0x48] sm:$0xff] }
  0x6e   : > { %1377 = vmatmul.mubr.bf16.gmra.mrb[28].mxu1 %v4088_v17  ;;  %v4135_v17 = vld [vmem:[%s4431_s27 + $0x10] ss:$20 sps:$4 sm:$0xff]   ;;  %1707 = vperm.xlu1 %4004, %v387_v16  }
  0x6f   : > { %1384 = vmatprep.mubr.bf16.mxu1 %v4093_v20  ;;  %v4136_v20 = vld [vmem:[%s4431_s27 + $0x258] ss:$20 sps:$4 sm:$0xff]  }
  0x74   : > { %1232 = vmatmul.mubr.bf16.gmra.mrb[32].mxu0 %v4092_v2  ;;  %v4140_v2 = vld [vmem:[%s4431_s27 + $0x284] ss:$20 sps:$4 sm:$0xff]  }
  0x75   : > { %1239 = vmatprep.mubr.bf16.mxu0 %v4096_v21  ;;  %v388_v21 = vld [vmem:[%s4554_s6 + $0x50] sm:$0xff] }
  0x76   : > { %1385 = vmatmul.mubr.bf16.gmra.mrb[32].mxu1 %v4095_v24  ;;  %1712 = vperm.xlu0 %4003, %v388_v21   ;;  %v389_v24 = vld [vmem:[%s4554_s6 + $0x58] sm:$0xff] }
  0x77   : > { %1392 = vmatprep.mubr.bf16.mxu1 %v4099_v25  ;;  %v4139_v25 = vld [vmem:[%s4431_s27 + $0x38] ss:$20 sps:$4 sm:$0xff]   ;;  %1717 = vperm.xlu1 %4004, %v389_v24  }
  0x78   : > { %v4186_v24 = vld [vmem:[%s4431_s27 + $0x438] ss:$20 sps:$4 sm:$0xff]  }
  0x7c   : > { %1240 = vmatmul.mubr.bf16.gmra.mrb[36].mxu0 %v4098_v28  ;;  %v399_v28 = vld [vmem:[%s4554_s6 + $0xa8] sm:$0xff] }
  0x7d   : > { %1247 = vmatprep.mubr.bf16.mxu0 %v4103_v31  ;;  %v4162_v31 = vld [vmem:[%s4431_s27 + $0x348] ss:$20 sps:$4 sm:$0xff]  }
  0x7e   : > { %1393 = vmatmul.mubr.bf16.gmra.mrb[36].mxu1 %v4101_v29  ;;  %v4159_v29 = vld [vmem:[%s4431_s27 + $0x100] ss:$20 sps:$4 sm:$0xff]  }
  0x7f   : > { %1400 = vmatprep.mubr.bf16.mxu1 %v4106_v32  ;;  %v4164_v32 = vld [vmem:[%s4431_s27 + $0x374] ss:$20 sps:$4 sm:$0xff]  }
  0x84   : > { %1248 = vmatmul.mubr.bf16.gmra.mrb[40].mxu0 %v4105_v35  ;;  %v400_v35 = vld [vmem:[%s4554_s6 + $0xb0] sm:$0xff] }
  0x85   : > { %1255 = vmatprep.mubr.bf16.mxu0 %v4109_v36  ;;  %v401_v36 = vld [vmem:[%s4554_s6 + $0xb8] sm:$0xff] }
  0x86   : > { %1401 = vmatmul.mubr.bf16.gmra.mrb[40].mxu1 %v4108_v39  ;;  %v4166_v39 = vld [vmem:[%s4431_s27 + $0x370] ss:$20 sps:$4 sm:$0xff]  }
  0x87   : > { %1408 = vmatprep.mubr.bf16.mxu1 %v4112_v41  ;;  %v402_v41 = vld [vmem:[%s4554_s6 + $0xc0] sm:$0xff] }
  0x8c   : > { %1256 = vmatmul.mubr.bf16.gmra.mrb[44].mxu0 %v4111_v43  ;;  %v403_v43 = vld [vmem:[%s4554_s6 + $0xc8] sm:$0xff] }
  0x8d   : > { %1263 = vmatprep.mubr.bf16.mxu0 %v4116_v46  ;;  %v4170_v46 = vld [vmem:[%s4431_s27 + $0x398] ss:$20 sps:$4 sm:$0xff]  }
  0x8e   : > { %1409 = vmatmul.mubr.bf16.gmra.mrb[44].mxu1 %v4114_v47  ;;  %v4172_v47 = vld [vmem:[%s4431_s27 + $0x3c4] ss:$20 sps:$4 sm:$0xff]  }
  0x8f   : > { %1416 = vmatprep.mubr.bf16.mxu1 %v4119_v48  ;;  %v404_v48 = vld [vmem:[%s4554_s6 + $0xd0] sm:$0xff] }
  0x94   : > { %1264 = vmatmul.mubr.bf16.gmra.mrb[48].mxu0 %v4118_v51  ;;  %v4171_v51 = vld [vmem:[%s4431_s27 + $0x178] ss:$20 sps:$4 sm:$0xff]  }
  0x95   : > { %1271 = vmatprep.mubr.bf16.mxu0 %v4122_v52  ;;  %v4174_v52 = vld [vmem:[%s4431_s27 + $0x3c0] ss:$20 sps:$4 sm:$0xff]  }
  0x96   : > { %1417 = vmatmul.mubr.bf16.gmra.mrb[48].mxu1 %v4121_v55  ;;  %v406_v55 = vld [vmem:[%s4554_s6 + $0xe0] sm:$0xff] }
  0x97   : > { %1424 = vmatprep.mubr.bf16.mxu1 %v4125_v56  ;;  %v407_v56 = vld [vmem:[%s4554_s6 + $0xe8] sm:$0xff] }
  0x9c   : > { %1272 = vmatmul.mubr.bf16.gmra.mrb[52].mxu0 %v4124_v57  ;;  %v4175_v57 = vld [vmem:[%s4431_s27 + $0x1a0] ss:$20 sps:$4 sm:$0xff]  }
  0x9d   : > { %1279 = vmatprep.mubr.bf16.mxu0 %v4129_v62  ;;  %v4179_v62 = vld [vmem:[%s4431_s27 + $0x1c8] ss:$20 sps:$4 sm:$0xff]  }
  0x9e   : > { %1425 = vmatmul.mubr.bf16.gmra.mrb[52].mxu1 %v4127_v63  ;;  %v4182_v63 = vld [vmem:[%s4431_s27 + $0x410] ss:$20 sps:$4 sm:$0xff]  }
  0x9f   : > { %1432 = vmatprep.mubr.bf16.mxu1 %v4132_v0  ;;  %v4184_v0 = vld [vmem:[%s4431_s27 + $0x43c] ss:$20 sps:$4 sm:$0xff]  }
  0xa4   : > { %1280 = vmatmul.mubr.bf16.gmra.mrb[56].mxu0 %v4131_v8 }
  0xa5   : > { %3852 = vmatprep.mubr.msk.bf16.mxu0 %vm4266_vm0, %v4264_v33 }
  0xa6   : > { %1433 = vmatmul.mubr.bf16.gmra.mrb[56].mxu1 %v4134_v9  ;;  %v4183_v9 = vld [vmem:[%s4431_s27 + $0x1f0] ss:$20 sps:$4 sm:$0xff]  }
  0xa7   : > { %2386 = vmatprep.mubr.bf16.mxu1 %v4138_v12 }
  0xac   : > { %3853 = vmatmul.mubr.bf16.vlgmr.msra.gmra.mrb[60].mxu0 %v4135_v17 }
  0xad   : > { %3708 = vmatpush3.bf16.msra.mxu0 %v4325_v3  ;;  %3856 = vmatprep.mubr.msk.bf16.mxu0 %vm4266_vm0, %v4264_v33  ;;  %v4142_v3 = vld [vmem:[%s4431_s27 + $0x280] ss:$20 sps:$4 sm:$0xff]  }
  0xae   : > { %3709 = vmatprep.subr.bf16.mxu0 %v4337_v6  ;;  %2387 = vmatmul.mubr.bf16.vlgmr.msra.gmra.mrb[60].mxu1 %v4136_v20  ;;  %v4144_v6 = vld [vmem:[%s4431_s27 + $0x2ac] ss:$20 sps:$4 sm:$0xff]  }
  0xaf   : > { %3913 = vmatpush3.bf16.msra.mxu1 %v4453_v37  ;;  %2394 = vmatprep.mubr.bf16.mxu1 %v4140_v2  ;;  %v4143_v37 = vld [vmem:[%s4431_s27 + $0x60] ss:$20 sps:$4 sm:$0xff]  }
  0xb0   : > { %3914 = vmatprep.subr.bf16.mxu1 %v4264_v33 }
  0xb1   : > { %3710 = vmatpush3.bf16.msra.mxu0 %v4341_v7  ;;  %v390_v7 = vld [vmem:[%s4554_s6 + $0x60] sm:$0xff] }
  0xb2   : > { %3711 = vmatprep.subr.bf16.mxu0 %v4353_v10  ;;  %1722 = vperm.xlu0 %4003, %v390_v7   ;;  %v391_v10 = vld [vmem:[%s4554_s6 + $0x68] sm:$0xff] }
  0xb3   : > { %3915 = vmatpush3.bf16.msra.mxu1 %v4464_v42  ;;  %1727 = vperm.xlu1 %4004, %v391_v10   ;;  %v4147_v42 = vld [vmem:[%s4431_s27 + $0x88] ss:$20 sps:$4 sm:$0xff]  }
  0xb4   : > { %3857 = vmatmul.mubr.bf16.gmra.mrb[64].mxu0 %v4139_v25  ;;  %3916 = vmatprep.subr.bf16.mxu1 %v4264_v33 }
  0xb5   : > { %3860 = vmatprep.mubr.msk.bf16.mxu0 %vm4266_vm0, %v4264_v33  ;;  %3712 = vmatpush3.bf16.msra.mxu0 %v4357_v11  ;;  %v4146_v11 = vld [vmem:[%s4431_s27 + $0x2a8] ss:$20 sps:$4 sm:$0xff]  }
  0xb6   : > { %3713 = vmatprep.subr.bf16.mxu0 %v4369_v14  ;;  %2395 = vmatmul.mubr.bf16.gmra.mrb[64].mxu1 %v4142_v3  ;;  %v4148_v14 = vld [vmem:[%s4431_s27 + $0x2d4] ss:$20 sps:$4 sm:$0xff]  }
  0xb7   : > { %2402 = vmatprep.mubr.bf16.mxu1 %v4144_v6  ;;  %3917 = vmatpush3.bf16.msra.mxu1 %v4474_v45  ;;  %v4151_v45 = vld [vmem:[%s4431_s27 + $0xb0] ss:$20 sps:$4 sm:$0xff]  }
  0xb8   : > { %3918 = vmatprep.subr.bf16.mxu1 %v4264_v33  ;;  %v4188_v6 = vld [vmem:[%s4431_s27 + $0x464] ss:$20 sps:$4 sm:$0xff]  }
  0xb9   : > { %3714 = vmatpush3.bf16.msra.mxu0 %v4373_v15  ;;  %v392_v15 = vld [vmem:[%s4554_s6 + $0x70] sm:$0xff] }
  0xba   : > { %3715 = vmatprep.subr.bf16.mxu0 %v4385_v18  ;;  %1732 = vperm.xlu0 %4003, %v392_v15   ;;  %v393_v18 = vld [vmem:[%s4554_s6 + $0x78] sm:$0xff] }
  0xbb   : > { %3919 = vmatpush3.bf16.msra.mxu1 %v4485_v50  ;;  %1737 = vperm.xlu1 %4004, %v393_v18   ;;  %v396_v50 = vld [vmem:[%s4554_s6 + $0x90] sm:$0xff]  ;;  %v4187_v18 = vld [vmem:[%s4431_s27 + $0x218] ss:$20 sps:$4 sm:$0xff]  }
  0xbc   : > { %3861 = vmatmul.mubr.bf16.gmra.mrb[68].mxu0 %v4143_v37  ;;  %3920 = vmatprep.subr.bf16.mxu1 %v4264_v33 }
  0xbd   : > { %3864 = vmatprep.mubr.msk.bf16.mxu0 %vm4266_vm0, %v4264_v33  ;;  %3716 = vmatpush3.bf16.msra.mxu0 %v4389_v19  ;;  %v4150_v19 = vld [vmem:[%s4431_s27 + $0x2d0] ss:$20 sps:$4 sm:$0xff]  }
  0xbe   : > { %3717 = vmatprep.subr.bf16.mxu0 %v4401_v22  ;;  %2403 = vmatmul.mubr.bf16.gmra.mrb[68].mxu1 %v4146_v11  ;;  %v4152_v22 = vld [vmem:[%s4431_s27 + $0x2fc] ss:$20 sps:$4 sm:$0xff]  }
  0xbf   : > { %2410 = vmatprep.mubr.bf16.mxu1 %v4148_v14  ;;  %3921 = vmatpush3.bf16.msra.mxu1 %v4497_v54  ;;  %v4155_v54 = vld [vmem:[%s4431_s27 + $0xd8] ss:$20 sps:$4 sm:$0xff]  }
  0xc0   : > { %3922 = vmatprep.subr.bf16.mxu1 %v4264_v33 }
  0xc1   : > { %3718 = vmatpush3.bf16.msra.mxu0 %v4405_v23  ;;  %v394_v23 = vld [vmem:[%s4554_s6 + $0x80] sm:$0xff] }
  0xc2   : > { %3719 = vmatprep.subr.bf16.mxu0 %v4418_v26  ;;  %1742 = vperm.xlu0 %4003, %v394_v23   ;;  %v395_v26 = vld [vmem:[%s4554_s6 + $0x88] sm:$0xff] }
  0xc3   : > { %3923 = vmatpush3.bf16.msra.mxu1 %v4508_v58  ;;  %1747 = vperm.xlu1 %4004, %v395_v26   ;;  %v4158_v58 = vld [vmem:[%s4431_s27 + $0x320] ss:$20 sps:$4 sm:$0xff]  }
  0xc4   : > { %3865 = vmatmul.mubr.bf16.gmra.mrb[72].mxu0 %v4147_v42  ;;  %3924 = vmatprep.subr.bf16.mxu1 %v4264_v33 }
  0xc5   : > { %3868 = vmatprep.mubr.msk.bf16.mxu0 %vm4266_vm0, %v4264_v33  ;;  %3720 = vmatpush3.bf16.msra.mxu0 %v4422_v27  ;;  %v4154_v27 = vld [vmem:[%s4431_s27 + $0x2f8] ss:$20 sps:$4 sm:$0xff]  }
  0xc6   : > { %3721 = vmatprep.subr.bf16.mxu0 %v4439_v30  ;;  %2411 = vmatmul.mubr.bf16.gmra.mrb[72].mxu1 %v4150_v19  ;;  %v4156_v30 = vld [vmem:[%s4431_s27 + $0x324] ss:$20 sps:$4 sm:$0xff]  }
  0xc7   : > { %2418 = vmatprep.mubr.bf16.mxu1 %v4152_v22  ;;  %3925 = vmatpush3.bf16.msra.mxu1 %v4518_v61  ;;  %v4160_v61 = vld [vmem:[%s4431_s27 + $0x34c] ss:$20 sps:$4 sm:$0xff]  }
  0xc8   : > { %3926 = vmatprep.subr.bf16.mxu1 %v4264_v33  ;;  %1752 = vperm.xlu0 %4003, %v396_v50   ;;  %v4190_v50 = vld [vmem:[%s4431_s27 + $0x460] ss:$20 sps:$4 sm:$0xff]  }
  0xc9   : > { %3722 = vmatpush3.bf16.msra.mxu0 %v4447_v34  ;;  %v397_v34 = vld [vmem:[%s4554_s6 + $0x98] sm:$0xff] }
  0xca   : > { %1757 = vperm.xlu1 %4004, %v397_v34  }
  0xcb   : > { %3927 = vmatpush3.bf16.msra.mxu1 %v4527_v4  ;;  %v398_v4 = vld [vmem:[%s4554_s6 + $0xa0] sm:$0xff] }
  0xcc   : > { %3869 = vmatmul.mubr.bf16.gmra.mrb[76].mxu0 %v4151_v45  ;;  %1762 = vperm.xlu0 %4003, %v398_v4  }
  0xcd   : > { %3872 = vmatprep.mubr.msk.bf16.mxu0 %vm4266_vm0, %v4264_v33 }
  0xce   : > { %2419 = vmatmul.mubr.bf16.gmra.mrb[76].mxu1 %v4154_v27  ;;  %1767 = vperm.xlu1 %4004, %v399_v28  }
  0xcf   : > { %2426 = vmatprep.mubr.bf16.mxu1 %v4156_v30 }
  0xd0   : > { %1772 = vperm.xlu0 %4003, %v400_v35   ;;  %v4191_v35 = vld [vmem:[%s4431_s27 + $0x240] ss:$20 sps:$4 sm:$0xff]  }
  0xd2   : > { %1777 = vperm.xlu1 %4004, %v401_v36  }
  0xd4   : > { %3873 = vmatmul.mubr.bf16.gmra.mrb[80].mxu0 %v4155_v54  ;;  %1782 = vperm.xlu0 %4003, %v402_v41  }
  0xd5   : > { %3876 = vmatprep.mubr.msk.bf16.mxu0 %vm4266_vm0, %v4264_v33 }
  0xd6   : > { %2427 = vmatmul.mubr.bf16.gmra.mrb[80].mxu1 %v4158_v58  ;;  %1787 = vperm.xlu1 %4004, %v403_v43   ;;  %v4192_v58 = vld [vmem:[%s4431_s27 + $0x48c] ss:$20 sps:$4 sm:$0xff]  }
  0xd7   : > { %2434 = vmatprep.mubr.bf16.mxu1 %v4160_v61 }
  0xd8   : > { %1792 = vperm.xlu0 %4003, %v404_v48   ;;  %v4194_v48 = vld [vmem:[%s4431_s27 + $0x488] ss:$20 sps:$4 sm:$0xff]  }
  0xda   : > { %1797 = vperm.xlu1 %4004, %v405_v49  }
  0xdc   : > { %3877 = vmatmul.mubr.bf16.gmra.mrb[84].mxu0 %v4159_v29  ;;  %1802 = vperm.xlu0 %4003, %v406_v55  }
  0xdd   : > { %3880 = vmatprep.mubr.msk.bf16.mxu0 %vm4266_vm0, %v4264_v33 }
  0xde   : > { %2435 = vmatmul.mubr.bf16.gmra.mrb[84].mxu1 %v4162_v31  ;;  %1807 = vperm.xlu1 %4004, %v407_v56  }
  0xdf   : > { %2442 = vmatprep.mubr.bf16.mxu1 %v4164_v32 }
  0xe4   : > { %3881 = vmatmul.mubr.bf16.gmra.mrb[88].mxu0 %v4163_v38 }
  0xe5   : > { %3884 = vmatprep.mubr.msk.bf16.mxu0 %vm4266_vm0, %v4264_v33 }
  0xe6   : > { %2443 = vmatmul.mubr.bf16.gmra.mrb[88].mxu1 %v4166_v39 }
  0xe7   : > { %2450 = vmatprep.mubr.bf16.mxu1 %v4168_v40  ;;  %v4197_v40 = vld [vmem:[%s4431_s27 + $0x264] ss:$20 sps:$4 sm:$0xff]  }
  0xec   : > { %3885 = vmatmul.mubr.bf16.gmra.mrb[92].mxu0 %v4167_v44 }
  0xed   : > { %3888 = vmatprep.mubr.msk.bf16.mxu0 %vm4266_vm0, %v4264_v33 }
  0xee   : > { %2451 = vmatmul.mubr.bf16.gmra.mrb[92].mxu1 %v4170_v46 }
  0xef   : > { %2458 = vmatprep.mubr.bf16.mxu1 %v4172_v47 }
  0xf4   : > { %3889 = vmatmul.mubr.bf16.gmra.mrb[96].mxu0 %v4171_v51 }
  0xf5   : > { %3892 = vmatprep.mubr.msk.bf16.mxu0 %vm4266_vm0, %v4264_v33 }
  0xf6   : > { %2459 = vmatmul.mubr.bf16.gmra.mrb[96].mxu1 %v4174_v52 }
  0xf7   : > { %2466 = vmatprep.mubr.bf16.mxu1 %v4176_v53 }
  0xfc   : > { %3893 = vmatmul.mubr.bf16.gmra.mrb[100].mxu0 %v4175_v57 }
  0xfd   : > { %3896 = vmatprep.mubr.msk.bf16.mxu0 %vm4266_vm0, %v4264_v33 }
  0xfe   : > { %2467 = vmatmul.mubr.bf16.gmra.mrb[100].mxu1 %v4178_v59 }
  0xff   : > { %2474 = vmatprep.mubr.bf16.mxu1 %v4180_v60  ;;  %v4195_v60 = vld [vmem:[%s4431_s27 + $0x260] ss:$20 sps:$4 sm:$0xff]  }
 0x104   : > { %3897 = vmatmul.mubr.bf16.gmra.mrb[104].mxu0 %v4179_v62 }
 0x105   : > { %3900 = vmatprep.mubr.msk.bf16.mxu0 %vm4266_vm0, %v4264_v33 }
 0x106   : > { %2475 = vmatmul.mubr.bf16.gmra.mrb[104].mxu1 %v4182_v63 }
 0x107   : > { %v3382_v1 = vpop.f32.mrb[0].mxu0  ;;  %2482 = vmatprep.mubr.bf16.mxu1 %v4184_v0 }
 0x108   : > { %v3383_v8 = vpop.f32.mrb[1].mxu0 }
 0x109   : > { %v3384_v12 = vadd.f32 %v3383_v8, %v3382_v1  ;;  %v3385_v13 = vpop.f32.mrb[2].mxu0  ;;  %v3488_v16 = vpop.f32.mrb[0].mxu1  ;;  %v4199_v1 = vld [vmem:[%s4431_s27 + $0x28c] ss:$20 sps:$4 sm:$0xff]  }
 0x10a   : > { %v3386_v17 = vpop.f32.mrb[3].mxu0  ;;  %v3489_v21 = vpop.f32.mrb[1].mxu1 }
 0x10b   : > { %v1170_v20 = vadd.f32 %v3384_v12, %v4701_v5  ;;  %v3387_v2 = vadd.f32 %v3386_v17, %v3385_v13  ;;  %v3490_v25 = vadd.f32 %v3489_v21, %v3488_v16  ;;  %v3491_v3 = vpop.f32.mrb[2].mxu1  ;;  %v4198_v17 = vld [vmem:[%s4431_s27 + $0x268] ss:$20 sps:$4 sm:$0xff]  }
 0x10c   : > { %3901 = vmatmul.mubr.bf16.gmra.mrb[108].mxu0 %v4183_v9  ;;  %v3492_v10 = vpop.f32.mrb[3].mxu1 }
 0x10d   : > { %v1173_v7 = vadd.f32 %v3387_v2, %v4701_v5  ;;  %3904 = vmatprep.mubr.msk.bf16.mxu0 %vm4266_vm0, %v4264_v33  ;;  %v3493_v37 = vadd.f32 %v3492_v10, %v3491_v3  ;;  %v4710_v11 = vadd.f32 %v3490_v25, %v1170_v20  ;;  %v4201_v10 = vld [vmem:[%s4431_s27 + $0x288] ss:$20 sps:$4 sm:$0xff]  }
 0x10e   : > { %2483 = vmatmul.mubr.bf16.gmra.mrb[108].mxu1 %v4186_v24 }
 0x10f   : > { %v3388_v14 = vpop.f32.mrb[4].mxu0  ;;  %2490 = vmatprep.mubr.bf16.mxu1 %v4188_v6  ;;  %v4713_v42 = vadd.f32 %v3493_v37, %v1173_v7 }
 0x110   : > { %v3389_v15 = vpop.f32.mrb[5].mxu0 }
 0x111   : > { %v3390_v19 = vadd.f32 %v3389_v15, %v3388_v14  ;;  %v3391_v22 = vpop.f32.mrb[6].mxu0  ;;  %v3494_v23 = vpop.f32.mrb[4].mxu1 }
 0x112   : > { %v3392_v26 = vpop.f32.mrb[7].mxu0  ;;  %v3495_v30 = vpop.f32.mrb[5].mxu1 }
 0x113   : > { %v1178_v45 = vadd.f32 %v3390_v19, %v4701_v5  ;;  %v3393_v27 = vadd.f32 %v3392_v26, %v3391_v22  ;;  %v3496_v34 = vadd.f32 %v3495_v30, %v3494_v23  ;;  %v3497_v54 = vpop.f32.mrb[6].mxu1 }
 0x114   : > { %3905 = vmatmul.mubr.bf16.gmra.mrb[112].mxu0 %v4187_v18  ;;  %v3498_v4 = vpop.f32.mrb[7].mxu1  ;;  %v4203_v18 = vld [vmem:[%s4431_s27 + $0x2b4] ss:$20 sps:$4 sm:$0xff]  }
 0x115   : > { %v1181_v61 = vadd.f32 %v3393_v27, %v4701_v5  ;;  %3908 = vmatprep.mubr.msk.bf16.mxu0 %vm4266_vm0, %v4264_v33  ;;  %v3499_v28 = vadd.f32 %v3498_v4, %v3497_v54  ;;  %v4721_v29 = vadd.f32 %v3496_v34, %v1178_v45  ;;  %v4202_v27 = vld [vmem:[%s4431_s27 + $0x290] ss:$20 sps:$4 sm:$0xff]  }
 0x116   : > { %2491 = vmatmul.mubr.bf16.gmra.mrb[112].mxu1 %v4190_v50 }
 0x117   : > { %v3394_v31 = vpop.f32.mrb[8].mxu0  ;;  %2498 = vmatprep.mubr.bf16.mxu1 %v4192_v58  ;;  %v4724_v36 = vadd.f32 %v3499_v28, %v1181_v61 }
 0x118   : > { %v3395_v32 = vpop.f32.mrb[9].mxu0 }
 0x119   : > { %v3396_v38 = vadd.f32 %v3395_v32, %v3394_v31  ;;  %v3397_v39 = vpop.f32.mrb[10].mxu0  ;;  %v3500_v41 = vpop.f32.mrb[8].mxu1  ;;  %v4205_v31 = vld [vmem:[%s4431_s27 + $0x2b0] ss:$20 sps:$4 sm:$0xff]  }
 0x11a   : > { %v3398_v43 = vpop.f32.mrb[11].mxu0  ;;  %v3501_v47 = vpop.f32.mrb[9].mxu1 }
 0x11b   : > { %v1186_v44 = vadd.f32 %v3396_v38, %v4701_v5  ;;  %v3399_v46 = vadd.f32 %v3398_v43, %v3397_v39  ;;  %v3502_v49 = vadd.f32 %v3501_v47, %v3500_v41  ;;  %v3503_v51 = vpop.f32.mrb[10].mxu1  ;;  %v4207_v39 = vld [vmem:[%s4431_s27 + $0x2dc] ss:$20 sps:$4 sm:$0xff]   ;;  %v4206_v47 = vld [vmem:[%s4431_s27 + $0x2b8] ss:$20 sps:$4 sm:$0xff]  }
 0x11c   : > { %3909 = vmatmul.mubr.bf16.gmra.mrb[116].mxu0 %v4191_v35  ;;  %v3504_v53 = vpop.f32.mrb[11].mxu1 }
 0x11d   : > { %v1189_v52 = vadd.f32 %v3399_v46, %v4701_v5  ;;  %2539 = vmatprep.mubr.bf16.mxu0 %v4197_v40  ;;  %v3505_v55 = vadd.f32 %v3504_v53, %v3503_v51  ;;  %v4730_v56 = vadd.f32 %v3502_v49, %v1186_v44 }
 0x11e   : > { %2499 = vmatmul.mubr.bf16.gmra.mrb[116].mxu1 %v4194_v48 }
 0x11f   : > { %v3400_v57 = vpop.f32.mrb[12].mxu0  ;;  %3928 = vmatprep.mubr.msk.bf16.mxu1 %vm4266_vm0, %v4264_v33  ;;  %v4735_v62 = vadd.f32 %v3505_v55, %v1189_v52 }
 0x120   : > { %v3401_v59 = vpop.f32.mrb[13].mxu0 }
 0x121   : > { %v3402_v63 = vadd.f32 %v3401_v59, %v3400_v57  ;;  %v3403_v0 = vpop.f32.mrb[14].mxu0  ;;  %v3506_v8 = vpop.f32.mrb[12].mxu1 }
 0x122   : > { %v3404_v9 = vpop.f32.mrb[15].mxu0  ;;  %v3507_v16 = vpop.f32.mrb[13].mxu1 }
 0x123   : > { %v1194_v12 = vadd.f32 %v3402_v63, %v4701_v5  ;;  %v3405_v13 = vadd.f32 %v3404_v9, %v3403_v0  ;;  %v3508_v20 = vadd.f32 %v3507_v16, %v3506_v8  ;;  %v3509_v2 = vpop.f32.mrb[14].mxu1  ;;  %v4211_v8 = vld [vmem:[%s4431_s27 + $0x304] ss:$20 sps:$4 sm:$0xff]  }
 0x124   : > { %2540 = vmatmul.mubr.bf16.vlgmr.msra.gmra.mrb[120].mxu0 %v4195_v60  ;;  %v3510_v24 = vpop.f32.mrb[15].mxu1  ;;  %v4209_v60 = vld [vmem:[%s4431_s27 + $0x2d8] ss:$20 sps:$4 sm:$0xff]  }
 0x125   : > { %v1197_v21 = vadd.f32 %v3405_v13, %v4701_v5  ;;  %2547 = vmatprep.mubr.bf16.mxu0 %v4199_v1  ;;  %v3511_v25 = vadd.f32 %v3510_v24, %v3509_v2  ;;  %v4741_v3 = vadd.f32 %v3508_v20, %v1194_v12  ;;  %v4210_v20 = vld [vmem:[%s4431_s27 + $0x2e0] ss:$20 sps:$4 sm:$0xff]  }
 0x126   : > { %3929 = vmatmul.mubr.bf16.vlgmr.msra.gmra.mrb[120].mxu1 %v4198_v17 }
 0x127   : > { %v3406_v6 = vpop.f32.mrb[16].mxu0  ;;  %3932 = vmatprep.mubr.msk.bf16.mxu1 %vm4266_vm0, %v4264_v33  ;;  %v4746_v37 = vadd.f32 %v3511_v25, %v1197_v21 }
 0x128   : > { %v3407_v7 = vpop.f32.mrb[17].mxu0 }
 0x129   : > { %v3408_v14 = vadd.f32 %v3407_v7, %v3406_v6  ;;  %v3409_v15 = vpop.f32.mrb[18].mxu0  ;;  %v3512_v19 = vpop.f32.mrb[16].mxu1 }
 0x12a   : > { %v3410_v22 = vpop.f32.mrb[19].mxu0  ;;  %v3513_v45 = vpop.f32.mrb[17].mxu1 }
 0x12b   : > { %v1202_v23 = vadd.f32 %v3408_v14, %v4701_v5  ;;  %v3411_v26 = vadd.f32 %v3410_v22, %v3409_v15  ;;  %v3514_v30 = vadd.f32 %v3513_v45, %v3512_v19  ;;  %v3515_v50 = vpop.f32.mrb[18].mxu1  ;;  %v4213_v15 = vld [vmem:[%s4431_s27 + $0x300] ss:$20 sps:$4 sm:$0xff]  }
 0x12c   : > { %2548 = vmatmul.mubr.bf16.gmra.mrb[124].mxu0 %v4201_v10  ;;  %v3516_v54 = vpop.f32.mrb[19].mxu1 }
 0x12d   : > { %v1205_v34 = vadd.f32 %v3411_v26, %v4701_v5  ;;  %2555 = vmatprep.mubr.bf16.mxu0 %v4203_v18  ;;  %v3517_v58 = vadd.f32 %v3516_v54, %v3515_v50  ;;  %v4752_v61 = vadd.f32 %v3514_v30, %v1202_v23  ;;  %v4215_v23 = vld [vmem:[%s4431_s27 + $0x32c] ss:$20 sps:$4 sm:$0xff]  }
 0x12e   : > { %3933 = vmatmul.mubr.bf16.gmra.mrb[124].mxu1 %v4202_v27 }
 0x12f   : > { %v3412_v4 = vpop.f32.mrb[20].mxu0  ;;  %3936 = vmatprep.mubr.msk.bf16.mxu1 %vm4266_vm0, %v4264_v33  ;;  %v4757_v32 = vadd.f32 %v3517_v58, %v1205_v34  ;;  %v4214_v34 = vld [vmem:[%s4431_s27 + $0x308] ss:$20 sps:$4 sm:$0xff]  }
 0x130   : > { %v3413_v28 = vpop.f32.mrb[21].mxu0 }
 0x131   : > { %v3414_v35 = vadd.f32 %v3413_v28, %v3412_v4  ;;  %v3415_v38 = vpop.f32.mrb[22].mxu0  ;;  %v3518_v40 = vpop.f32.mrb[20].mxu1 }
 0x132   : > { %v3416_v41 = vpop.f32.mrb[23].mxu0  ;;  %v3519_v46 = vpop.f32.mrb[21].mxu1 }
 0x133   : > { %v1210_v43 = vadd.f32 %v3414_v35, %v4701_v5  ;;  %v3417_v44 = vadd.f32 %v3416_v41, %v3415_v38  ;;  %v3520_v48 = vadd.f32 %v3519_v46, %v3518_v40  ;;  %v3521_v49 = vpop.f32.mrb[22].mxu1  ;;  %v4217_v40 = vld [vmem:[%s4431_s27 + $0x328] ss:$20 sps:$4 sm:$0xff]  }
 0x134   : > { %2556 = vmatmul.mubr.bf16.gmra.mrb[128].mxu0 %v4205_v31  ;;  %v3522_v52 = vpop.f32.mrb[23].mxu1  ;;  %v4219_v46 = vld [vmem:[%s4431_s27 + $0x354] ss:$20 sps:$4 sm:$0xff]  }
 0x135   : > { %v1213_v51 = vadd.f32 %v3417_v44, %v4701_v5  ;;  %2563 = vmatprep.mubr.bf16.mxu0 %v4207_v39  ;;  %v3523_v53 = vadd.f32 %v3522_v52, %v3521_v49  ;;  %v4763_v55 = vadd.f32 %v3520_v48, %v1210_v43 }
 0x136   : > { %3937 = vmatmul.mubr.bf16.gmra.mrb[128].mxu1 %v4206_v47 }
 0x137   : > { %v3418_v57 = vpop.f32.mrb[24].mxu0  ;;  %3940 = vmatprep.mubr.msk.bf16.mxu1 %vm4266_vm0, %v4264_v33  ;;  %v4768_v63 = vadd.f32 %v3523_v53, %v1213_v51  ;;  %v4218_v53 = vld [vmem:[%s4431_s27 + $0x330] ss:$20 sps:$4 sm:$0xff]  }
 0x138   : > { %v3419_v59 = vpop.f32.mrb[25].mxu0 }
 0x139   : > { %v3420_v0 = vadd.f32 %v3419_v59, %v3418_v57  ;;  %v3421_v1 = vpop.f32.mrb[26].mxu0  ;;  %v3524_v9 = vpop.f32.mrb[24].mxu1 }
 0x13a   : > { %v3422_v12 = vpop.f32.mrb[27].mxu0  ;;  %v3525_v17 = vpop.f32.mrb[25].mxu1 }
 0x13b   : > { %v1218_v13 = vadd.f32 %v3420_v0, %v4701_v5  ;;  %v3423_v16 = vadd.f32 %v3422_v12, %v3421_v1  ;;  %v3526_v2 = vadd.f32 %v3525_v17, %v3524_v9  ;;  %v3527_v21 = vpop.f32.mrb[26].mxu1 }
 0x13c   : > { %2564 = vmatmul.mubr.bf16.gmra.mrb[132].mxu0 %v4209_v60  ;;  %v3528_v25 = vpop.f32.mrb[27].mxu1 }
 0x13d   : > { %v1221_v24 = vadd.f32 %v3423_v16, %v4701_v5  ;;  %2571 = vmatprep.mubr.bf16.mxu0 %v4211_v8  ;;  %v3529_v6 = vadd.f32 %v3528_v25, %v3527_v21  ;;  %v4774_v7 = vadd.f32 %v3526_v2, %v1218_v13  ;;  %v4221_v13 = vld [vmem:[%s4431_s27 + $0x350] ss:$20 sps:$4 sm:$0xff]  }
 0x13e   : > { %3941 = vmatmul.mubr.bf16.gmra.mrb[132].mxu1 %v4210_v20  ;;  %v4223_v2 = vld [vmem:[%s4431_s27 + $0x37c] ss:$20 sps:$4 sm:$0xff]  }
 0x13f   : > { %v3424_v10 = vpop.f32.mrb[28].mxu0  ;;  %3944 = vmatprep.mubr.msk.bf16.mxu1 %vm4266_vm0, %v4264_v33  ;;  %v4779_v18 = vadd.f32 %v3529_v6, %v1221_v24 }
 0x140   : > { %v3425_v14 = vpop.f32.mrb[29].mxu0 }
 0x141   : > { %v3426_v19 = vadd.f32 %v3425_v14, %v3424_v10  ;;  %v3427_v22 = vpop.f32.mrb[30].mxu0  ;;  %v3530_v26 = vpop.f32.mrb[28].mxu1  ;;  %v4222_v14 = vld [vmem:[%s4431_s27 + $0x358] ss:$20 sps:$4 sm:$0xff]  }
 0x142   : > { %v3428_v45 = vpop.f32.mrb[31].mxu0  ;;  %v3531_v50 = vpop.f32.mrb[29].mxu1 }
 0x143   : > { %v1226_v27 = vadd.f32 %v3426_v19, %v4701_v5  ;;  %v3429_v30 = vadd.f32 %v3428_v45, %v3427_v22  ;;  %v3532_v54 = vadd.f32 %v3531_v50, %v3530_v26  ;;  %v3533_v58 = vpop.f32.mrb[30].mxu1  ;;  %v4225_v50 = vld [vmem:[%s4431_s27 + $0x378] ss:$20 sps:$4 sm:$0xff]  }
 0x144   : > { %2572 = vmatmul.mubr.bf16.gmra.mrb[136].mxu0 %v4213_v15  ;;  %v3534_v28 = vpop.f32.mrb[31].mxu1 }
 0x145   : > { %v1229_v4 = vadd.f32 %v3429_v30, %v4701_v5  ;;  %2579 = vmatprep.mubr.bf16.mxu0 %v4215_v23  ;;  %v3535_v31 = vadd.f32 %v3534_v28, %v3533_v58  ;;  %v4785_v35 = vadd.f32 %v3532_v54, %v1226_v27 }
 0x146   : > { %3945 = vmatmul.mubr.bf16.gmra.mrb[136].mxu1 %v4214_v34 }
 0x147   : > { %v3430_v38 = vpop.f32.mrb[32].mxu0  ;;  %3948 = vmatprep.mubr.msk.bf16.mxu1 %vm4266_vm0, %v4264_v33  ;;  %v4790_v41 = vadd.f32 %v3535_v31, %v1229_v4  ;;  %v4227_v4 = vld [vmem:[%s4431_s27 + $0x3a4] ss:$20 sps:$4 sm:$0xff]  }
 0x148   : > { %v3431_v39 = vpop.f32.mrb[33].mxu0 }
 0x149   : > { %v3432_v43 = vadd.f32 %v3431_v39, %v3430_v38  ;;  %v3433_v44 = vpop.f32.mrb[34].mxu0  ;;  %v3536_v47 = vpop.f32.mrb[32].mxu1 }
 0x14a   : > { %v3434_v48 = vpop.f32.mrb[35].mxu0  ;;  %v3537_v52 = vpop.f32.mrb[33].mxu1 }
 0x14b   : > { %v1234_v49 = vadd.f32 %v3432_v43, %v4701_v5  ;;  %v3435_v51 = vadd.f32 %v3434_v48, %v3433_v44  ;;  %v3538_v57 = vadd.f32 %v3537_v52, %v3536_v47  ;;  %v3539_v59 = vpop.f32.mrb[34].mxu1  ;;  %v4226_v43 = vld [vmem:[%s4431_s27 + $0x380] ss:$20 sps:$4 sm:$0xff]  }
 0x14c   : > { %2580 = vmatmul.mubr.bf16.gmra.mrb[140].mxu0 %v4217_v40  ;;  %v3540_v0 = vpop.f32.mrb[35].mxu1 }
 0x14d   : > { %v1237_v60 = vadd.f32 %v3435_v51, %v4701_v5  ;;  %2587 = vmatprep.mubr.bf16.mxu0 %v4219_v46  ;;  %v3541_v1 = vadd.f32 %v3540_v0, %v3539_v59  ;;  %v4796_v8 = vadd.f32 %v3538_v57, %v1234_v49  ;;  %v4229_v57 = vld [vmem:[%s4431_s27 + $0x3a0] ss:$20 sps:$4 sm:$0xff]  }
 0x14e   : > { %3949 = vmatmul.mubr.bf16.gmra.mrb[140].mxu1 %v4218_v53 }
 0x14f   : > { %v3436_v9 = vpop.f32.mrb[36].mxu0  ;;  %3952 = vmatprep.mubr.msk.bf16.mxu1 %vm4266_vm0, %v4264_v33  ;;  %v4801_v16 = vadd.f32 %v3541_v1, %v1237_v60  ;;  %v4231_v1 = vld [vmem:[%s4431_s27 + $0x3cc] ss:$20 sps:$4 sm:$0xff]  }
 0x150   : > { %v3437_v12 = vpop.f32.mrb[37].mxu0 }
 0x151   : > { %v3438_v17 = vadd.f32 %v3437_v12, %v3436_v9  ;;  %v3439_v20 = vpop.f32.mrb[38].mxu0  ;;  %v3542_v21 = vpop.f32.mrb[36].mxu1 }
 0x152   : > { %v3440_v24 = vpop.f32.mrb[39].mxu0  ;;  %v3543_v10 = vpop.f32.mrb[37].mxu1 }
 0x153   : > { %v1242_v25 = vadd.f32 %v3438_v17, %v4701_v5  ;;  %v3441_v6 = vadd.f32 %v3440_v24, %v3439_v20  ;;  %v3544_v15 = vadd.f32 %v3543_v10, %v3542_v21  ;;  %v3545_v19 = vpop.f32.mrb[38].mxu1 }
 0x154   : > { %2588 = vmatmul.mubr.bf16.gmra.mrb[144].mxu0 %v4221_v13  ;;  %v3546_v23 = vpop.f32.mrb[39].mxu1 }
 0x155   : > { %v1245_v22 = vadd.f32 %v3441_v6, %v4701_v5  ;;  %2595 = vmatprep.mubr.bf16.mxu0 %v4223_v2  ;;  %v3547_v26 = vadd.f32 %v3546_v23, %v3545_v19  ;;  %v4807_v45 = vadd.f32 %v3544_v15, %v1242_v25  ;;  %v4230_v2 = vld [vmem:[%s4431_s27 + $0x3a8] ss:$20 sps:$4 sm:$0xff]  }
 0x156   : > { %3953 = vmatmul.mubr.bf16.gmra.mrb[144].mxu1 %v4222_v14 }
 0x157   : > { %v3442_v27 = vpop.f32.mrb[40].mxu0  ;;  %3956 = vmatprep.mubr.msk.bf16.mxu1 %vm4266_vm0, %v4264_v33  ;;  %v4812_v34 = vadd.f32 %v3547_v26, %v1245_v22  ;;  %v4233_v22 = vld [vmem:[%s4431_s27 + $0x3c8] ss:$20 sps:$4 sm:$0xff]  }
 0x158   : > { %v3443_v30 = vpop.f32.mrb[41].mxu0 }
 0x159   : > { %v3444_v54 = vadd.f32 %v3443_v30, %v3442_v27  ;;  %v3445_v58 = vpop.f32.mrb[42].mxu0  ;;  %v3548_v28 = vpop.f32.mrb[40].mxu1  ;;  %v4235_v30 = vld [vmem:[%s4431_s27 + $0x3f4] ss:$20 sps:$4 sm:$0xff]  }
 0x15a   : > { %v3446_v31 = vpop.f32.mrb[43].mxu0  ;;  %v3549_v40 = vpop.f32.mrb[41].mxu1 }
 0x15b   : > { %v1250_v38 = vadd.f32 %v3444_v54, %v4701_v5  ;;  %v3447_v39 = vadd.f32 %v3446_v31, %v3445_v58  ;;  %v3550_v44 = vadd.f32 %v3549_v40, %v3548_v28  ;;  %v3551_v46 = vpop.f32.mrb[42].mxu1  ;;  %v4234_v31 = vld [vmem:[%s4431_s27 + $0x3d0] ss:$20 sps:$4 sm:$0xff]  }
 0x15c   : > { %2596 = vmatmul.mubr.bf16.gmra.mrb[148].mxu0 %v4225_v50  ;;  %v3552_v48 = vpop.f32.mrb[43].mxu1 }
 0x15d   : > { %v1253_v47 = vadd.f32 %v3447_v39, %v4701_v5  ;;  %2603 = vmatprep.mubr.bf16.mxu0 %v4227_v4  ;;  %v3553_v49 = vadd.f32 %v3552_v48, %v3551_v46  ;;  %v4818_v51 = vadd.f32 %v3550_v44, %v1250_v38 }
 0x15e   : > { %3957 = vmatmul.mubr.bf16.gmra.mrb[148].mxu1 %v4226_v43 }
 0x15f   : > { %v3448_v52 = vpop.f32.mrb[44].mxu0  ;;  %3960 = vmatprep.mubr.msk.bf16.mxu1 %vm4266_vm0, %v4264_v33  ;;  %v4823_v59 = vadd.f32 %v3553_v49, %v1253_v47  ;;  %v4237_v49 = vld [vmem:[%s4431_s27 + $0x3f0] ss:$20 sps:$4 sm:$0xff]  }
 0x160   : > { %v3449_v53 = vpop.f32.mrb[45].mxu0 }
 0x161   : > { %v3450_v60 = vadd.f32 %v3449_v53, %v3448_v52  ;;  %v3451_v0 = vpop.f32.mrb[46].mxu0  ;;  %v3554_v9 = vpop.f32.mrb[44].mxu1 }
 0x162   : > { %v3452_v12 = vpop.f32.mrb[47].mxu0  ;;  %v3555_v20 = vpop.f32.mrb[45].mxu1 }
 0x163   : > { %v1258_v13 = vadd.f32 %v3450_v60, %v4701_v5  ;;  %v3453_v17 = vadd.f32 %v3452_v12, %v3451_v0  ;;  %v3556_v21 = vadd.f32 %v3555_v20, %v3554_v9  ;;  %v3557_v24 = vpop.f32.mrb[46].mxu1  ;;  %v4239_v60 = vld [vmem:[%s4431_s27 + $0x41c] ss:$20 sps:$4 sm:$0xff]  }
 0x164   : > { %2604 = vmatmul.mubr.bf16.gmra.mrb[152].mxu0 %v4229_v57  ;;  %v3558_v6 = vpop.f32.mrb[47].mxu1 }
 0x165   : > { %v1261_v25 = vadd.f32 %v3453_v17, %v4701_v5  ;;  %2611 = vmatprep.mubr.bf16.mxu0 %v4231_v1  ;;  %v3559_v10 = vadd.f32 %v3558_v6, %v3557_v24  ;;  %v4829_v14 = vadd.f32 %v3556_v21, %v1258_v13  ;;  %v4238_v17 = vld [vmem:[%s4431_s27 + $0x3f8] ss:$20 sps:$4 sm:$0xff]  }
 0x166   : > { %3961 = vmatmul.mubr.bf16.gmra.mrb[152].mxu1 %v4230_v2 }
 0x167   : > { %v3454_v15 = vpop.f32.mrb[48].mxu0  ;;  %3964 = vmatprep.mubr.msk.bf16.mxu1 %vm4266_vm0, %v4264_v33  ;;  %v4834_v23 = vadd.f32 %v3559_v10, %v1261_v25 }
 0x168   : > { %v3455_v19 = vpop.f32.mrb[49].mxu0 }
 0x169   : > { %v3456_v26 = vadd.f32 %v3455_v19, %v3454_v15  ;;  %v3457_v27 = vpop.f32.mrb[50].mxu0  ;;  %v3560_v50 = vpop.f32.mrb[48].mxu1  ;;  %v4241_v19 = vld [vmem:[%s4431_s27 + $0x418] ss:$20 sps:$4 sm:$0xff]  }
 0x16a   : > { %v3458_v54 = vpop.f32.mrb[51].mxu0  ;;  %v3561_v28 = vpop.f32.mrb[49].mxu1 }
 0x16b   : > { %v1266_v58 = vadd.f32 %v3456_v26, %v4701_v5  ;;  %v3459_v4 = vadd.f32 %v3458_v54, %v3457_v27  ;;  %v3562_v38 = vadd.f32 %v3561_v28, %v3560_v50  ;;  %v3563_v39 = vpop.f32.mrb[50].mxu1 }
 0x16c   : > { %2612 = vmatmul.mubr.bf16.gmra.mrb[156].mxu0 %v4233_v22  ;;  %v3564_v43 = vpop.f32.mrb[51].mxu1 }
 0x16d   : > { %v1269_v40 = vadd.f32 %v3459_v4, %v4701_v5  ;;  %2619 = vmatprep.mubr.bf16.mxu0 %v4235_v30  ;;  %v3565_v44 = vadd.f32 %v3564_v43, %v3563_v39  ;;  %v4840_v46 = vadd.f32 %v3562_v38, %v1266_v58  ;;  %v4243_v30 = vld [vmem:[%s4431_s27 + $0x444] ss:$20 sps:$4 sm:$0xff]  }
 0x16e   : > { %3965 = vmatmul.mubr.bf16.gmra.mrb[156].mxu1 %v4234_v31  ;;  %v4242_v31 = vld [vmem:[%s4431_s27 + $0x420] ss:$20 sps:$4 sm:$0xff]  }
 0x16f   : > { %v3460_v47 = vpop.f32.mrb[52].mxu0  ;;  %3968 = vmatprep.mubr.msk.bf16.mxu1 %vm4266_vm0, %v4264_v33  ;;  %v4845_v52 = vadd.f32 %v3565_v44, %v1269_v40 }
 0x170   : > { %v3461_v48 = vpop.f32.mrb[53].mxu0 }
 0x171   : > { %v3462_v53 = vadd.f32 %v3461_v48, %v3460_v47  ;;  %v3463_v57 = vpop.f32.mrb[54].mxu0  ;;  %v3566_v0 = vpop.f32.mrb[52].mxu1 }
 0x172   : > { %v3464_v1 = vpop.f32.mrb[55].mxu0  ;;  %v3567_v13 = vpop.f32.mrb[53].mxu1 }
 0x173   : > { %v1274_v9 = vadd.f32 %v3462_v53, %v4701_v5  ;;  %v3465_v12 = vadd.f32 %v3464_v1, %v3463_v57  ;;  %v3568_v20 = vadd.f32 %v3567_v13, %v3566_v0  ;;  %v3569_v2 = vpop.f32.mrb[54].mxu1  ;;  %v4245_v57 = vld [vmem:[%s4431_s27 + $0x440] ss:$20 sps:$4 sm:$0xff]  }
 0x174   : > { %2620 = vmatmul.mubr.bf16.gmra.mrb[160].mxu0 %v4237_v49  ;;  %v3570_v24 = vpop.f32.mrb[55].mxu1  ;;  %v4870_v49 = vpop.permute.xlu0 %1662  ;;  %v4879_v0 = vld [vmem:[%s4866_s13] ss:$0 sm:$0xff] }
 0x175   : > { %v1277_v21 = vadd.f32 %v3465_v12, %v4701_v5  ;;  %2627 = vmatprep.mubr.bf16.mxu0 %v4239_v60  ;;  %v3571_v25 = vadd.f32 %v3570_v24, %v3569_v2  ;;  %v4851_v6 = vadd.f32 %v3568_v20, %v1274_v9  ;;  %v4247_v9 = vld [vmem:[%s4431_s27 + $0x46c] ss:$20 sps:$4 sm:$0xff]  }
 0x176   : > { %3969 = vmatmul.mubr.bf16.gmra.mrb[160].mxu1 %v4238_v17 }
 0x177   : > { %v3466_v10 = vpop.f32.mrb[56].mxu0  ;;  %3972 = vmatprep.mubr.msk.bf16.mxu1 %vm4266_vm0, %v4264_v33  ;;  %v4856_v22 = vadd.f32 %v3571_v25, %v1277_v21  ;;  %v4246_v21 = vld [vmem:[%s4431_s27 + $0x448] ss:$20 sps:$4 sm:$0xff]  }
 0x178   : > { %v3467_v15 = vpop.f32.mrb[57].mxu0 }
 0x179   : > { %v3468_v26 = vadd.f32 %v3467_v15, %v3466_v10  ;;  %v3469_v27 = vpop.f32.mrb[58].mxu0  ;;  %v3572_v50 = vpop.f32.mrb[56].mxu1 }
 0x17a   : > { %v3470_v54 = vpop.f32.mrb[59].mxu0  ;;  %v3573_v28 = vpop.f32.mrb[57].mxu1 }
 0x17b   : > { %v1282_v58 = vadd.f32 %v3468_v26, %v4701_v5  ;;  %v3471_v4 = vadd.f32 %v3470_v54, %v3469_v27  ;;  %v3574_v38 = vadd.f32 %v3573_v28, %v3572_v50  ;;  %v3575_v39 = vpop.f32.mrb[58].mxu1  ;;  %v4893_v15 = vpop.permute.xlu0 %1667  ;;  %v4249_v28 = vld [vmem:[%s4431_s27 + $0x468] ss:$20 sps:$4 sm:$0xff]  }
 0x17c   : > { %2628 = vmatmul.mubr.bf16.gmra.mrb[164].mxu0 %v4241_v19  ;;  %v3576_v43 = vpop.f32.mrb[59].mxu1  ;;  %v4899_v50 = vpop.permute.xlu1 %1672 }
 0x17d   : > { %v1285_v40 = vadd.f32 %v3471_v4, %v4701_v5  ;;  %2635 = vmatprep.mubr.bf16.mxu0 %v4243_v30  ;;  %v3577_v44 = vadd.f32 %v3576_v43, %v3575_v39  ;;  %v4868_v47 = vadd.f32 %v3574_v38, %v1282_v58  ;;  %v4251_v38 = vld [vmem:[%s4431_s27 + $0x494] ss:$20 sps:$4 sm:$0xff]  }
 0x17e   : > { %3973 = vmatmul.mubr.bf16.gmra.mrb[164].mxu1 %v4242_v31 }
 0x17f   : > { %v1475_v48 = vpop.f32.mrb[60].mxu0  ;;  %3976 = vmatprep.mubr.msk.bf16.mxu1 %vm4266_vm0, %v4264_v33  ;;  %v4876_v60 = vadd.f32 %v3577_v44, %v1285_v40 }
 0x180   : > { %v1476_v5 = vadd.f32 %v1475_v48, %v4710_v11  ;;  %v3854_v53 = vpop.f32.mrb[61].mxu0 }
 0x181   : > { %v1478_v1 = vpop.f32.mrb[62].mxu0  ;;  %v3617_v20 = vpop.f32.mrb[60].mxu1 }
 0x182   : > { %v1594_v12 = vmax.f32 %v1476_v5, 0.0  ;;  %v1479_v13 = vadd.f32 %v1478_v1, %v4713_v42  ;;  %v3855_v17 = vpop.f32.mrb[63].mxu0  ;;  %v3618_v2 = vpop.f32.mrb[61].mxu1  ;;  %v4250_v5 = vld [vmem:[%s4431_s27 + $0x470] ss:$20 sps:$4 sm:$0xff]  }
 0x183   : > { %v4886_v25 = vadd.f32 %v3618_v2, %v3617_v20  ;;  %v3620_v10 = vpop.f32.mrb[62].mxu1 }
 0x184   : > { %v1630_v11 = vmul.f32 %v4879_v0, %v1594_v12  ;;  %v1595_v24 = vmax.f32 %v1479_v13, 0.0  ;;  %2636 = vmatmul.mubr.bf16.gmra.mrb[168].mxu0 %v4245_v57  ;;  %v3621_v42 = vpop.f32.mrb[63].mxu1  ;;  %v4916_v12 = vpop.permute.xlu1 %1677 }
 0x185   : > { %2643 = vmatprep.mubr.bf16.mxu0 %v4247_v9  ;;  %v4897_v27 = vadd.f32 %v3621_v42, %v3620_v10 }
 0x186   : > { %v1631_v19 = vmul.f32 %v4879_v0, %v1595_v24  ;;  %v1810_v26 = vmul.f32 %v4870_v49, %v1630_v11  ;;  %3977 = vmatmul.mubr.bf16.gmra.mrb[168].mxu1 %v4246_v21  ;;  %v4253_v24 = vld [vmem:[%s4431_s27 + $0x490] ss:$20 sps:$4 sm:$0xff]  }
 0x187   : > { %v1483_v30 = vpop.f32.mrb[64].mxu0  ;;  %3980 = vmatprep.mubr.msk.bf16.mxu1 %vm4266_vm0, %v4264_v33 }
 0x188   : > { %1841 = vst.msk [vmem:[%s4891_s17] sm:$0xff] %vm1840_vm1, %v1810_v26  ;;  %v1811_v54 = vmul.f32 %v4893_v15, %v1631_v19  ;;  %v1484_v58 = vadd.f32 %v1483_v30, %v4721_v29  ;;  %v3858_v4 = vpop.f32.mrb[65].mxu0 }
 0x189   : > { %v1486_v31 = vpop.f32.mrb[66].mxu0  ;;  %v3623_v44 = vpop.f32.mrb[64].mxu1  ;;  %v4254_v4 = vld [vmem:[%s4431_s27 + $0x498] ss:$20 sps:$4 sm:$0xff]  }
 0x18a   : > { %1842 = vst.msk [vmem:[%s4891_s17 + $0x8] sm:$0xff] %vm1840_vm1, %v1811_v54  ;;  %v1596_v39 = vmax.f32 %v1484_v58, 0.0  ;;  %v1487_v40 = vadd.f32 %v1486_v31, %v4724_v36  ;;  %v3859_v43 = vpop.f32.mrb[67].mxu0  ;;  %v3624_v48 = vpop.f32.mrb[65].mxu1 }
 0x18b   : > { %v4914_v57 = vadd.f32 %v3624_v48, %v3623_v44  ;;  %v3626_v1 = vpop.f32.mrb[66].mxu1  ;;  %v4932_v58 = vpop.permute.xlu0 %1682 }
 0x18c   : > { %v1632_v53 = vmul.f32 %v4879_v0, %v1596_v39  ;;  %v1597_v29 = vmax.f32 %v1487_v40, 0.0  ;;  %2644 = vmatmul.mubr.bf16.gmra.mrb[172].mxu0 %v4249_v28  ;;  %v3627_v9 = vpop.f32.mrb[67].mxu1  ;;  %v4938_v39 = vpop.permute.xlu1 %1687 }
 0x18d   : > { %2651 = vmatprep.mubr.bf16.mxu0 %v4251_v38  ;;  %v4920_v17 = vadd.f32 %v3627_v9, %v3626_v1 }
 0x18e   : > { %v1633_v36 = vmul.f32 %v4879_v0, %v1597_v29  ;;  %v1812_v13 = vmul.f32 %v4899_v50, %v1632_v53  ;;  %3981 = vmatmul.mubr.bf16.gmra.mrb[172].mxu1 %v4250_v5 }
 0x18f   : > { %v1491_v20 = vpop.f32.mrb[68].mxu0  ;;  %3984 = vmatprep.mubr.msk.bf16.mxu1 %vm4266_vm0, %v4264_v33 }
 0x190   : > { %1843 = vst.msk [vmem:[%s4891_s17 + $0x10] sm:$0xff] %vm1840_vm1, %v1812_v13  ;;  %v1813_v2 = vmul.f32 %v4916_v12, %v1633_v36  ;;  %v1492_v21 = vadd.f32 %v1491_v20, %v4730_v56  ;;  %v3862_v11 = vpop.f32.mrb[69].mxu0 }
 0x191   : > { %v1494_v10 = vpop.f32.mrb[70].mxu0  ;;  %v3629_v30 = vpop.f32.mrb[68].mxu1 }
 0x192   : > { %1844 = vst.msk [vmem:[%s4891_s17 + $0x18] sm:$0xff] %vm1840_vm1, %v1813_v2  ;;  %v1598_v42 = vmax.f32 %v1492_v21, 0.0  ;;  %v1495_v19 = vadd.f32 %v1494_v10, %v4735_v62  ;;  %v3863_v26 = vpop.f32.mrb[71].mxu0  ;;  %v3630_v54 = vpop.f32.mrb[69].mxu1 }
 0x193   : > { %v4936_v31 = vadd.f32 %v3630_v54, %v3629_v30  ;;  %v3632_v33 = vpop.f32.mrb[70].mxu1  ;;  %v4951_v2 = vpop.permute.xlu0 %1692 }
 0x194   : > { %v1634_v56 = vmul.f32 %v4879_v0, %v1598_v42  ;;  %v1599_v28 = vmax.f32 %v1495_v19, 0.0  ;;  %2652 = vmatmul.mubr.bf16.gmra.mrb[176].mxu0 %v4253_v24  ;;  %v3633_v38 = vpop.f32.mrb[71].mxu1  ;;  %v4956_v42 = vpop.permute.xlu1 %1697 }
 0x195   : > { %v4942_v43 = vadd.f32 %v3633_v38, %v3632_v33 }
 0x196   : > { %v1635_v62 = vmul.f32 %v4879_v0, %v1599_v28  ;;  %v1814_v40 = vmul.f32 %v4932_v58, %v1634_v56  ;;  %3985 = vmatmul.mubr.bf16.gmra.mrb[176].mxu1 %v4254_v4 }
 0x197   : > { %v1499_v44 = vpop.f32.mrb[72].mxu0 }
 0x198   : > { %1845 = vst.msk [vmem:[%s4891_s17 + $0x20] sm:$0xff] %vm1840_vm1, %v1814_v40  ;;  %v1815_v48 = vmul.f32 %v4938_v39, %v1635_v62  ;;  %v1500_v5 = vadd.f32 %v1499_v44, %v4741_v3  ;;  %v3866_v53 = vpop.f32.mrb[73].mxu0 }
 0x199   : > { %v1502_v29 = vpop.f32.mrb[74].mxu0  ;;  %v3635_v13 = vpop.f32.mrb[72].mxu1 }
 0x19a   : > { %1846 = vst.msk [vmem:[%s4891_s17 + $0x28] sm:$0xff] %vm1840_vm1, %v1815_v48  ;;  %v1600_v1 = vmax.f32 %v1500_v5, 0.0  ;;  %v1503_v9 = vadd.f32 %v1502_v29, %v4746_v37  ;;  %v3867_v36 = vpop.f32.mrb[75].mxu0  ;;  %v3636_v20 = vpop.f32.mrb[73].mxu1 }
 0x19b   : > { %v4954_v24 = vadd.f32 %v3636_v20, %v3635_v13  ;;  %v3638_v3 = vpop.f32.mrb[74].mxu1  ;;  %v4969_v48 = vpop.permute.xlu0 %1702 }
 0x19c   : > { %v1636_v21 = vmul.f32 %v4879_v0, %v1600_v1  ;;  %v1601_v11 = vmax.f32 %v1503_v9, 0.0  ;;  %v3639_v10 = vpop.f32.mrb[75].mxu1  ;;  %v4974_v9 = vpop.permute.xlu1 %1707 }
 0x19d   : > { %v4960_v37 = vadd.f32 %v3639_v10, %v3638_v3 }
 0x19e   : > { %v1637_v19 = vmul.f32 %v4879_v0, %v1601_v11  ;;  %v1816_v26 = vmul.f32 %v4951_v2, %v1636_v21 }
 0x19f   : > { %v1507_v30 = vpop.f32.mrb[76].mxu0 }
 0x1a0   : > { %1847 = vst.msk [vmem:[%s4891_s17 + $0x30] sm:$0xff] %vm1840_vm1, %v1816_v26  ;;  %v1817_v54 = vmul.f32 %v4956_v42, %v1637_v19  ;;  %v1508_v4 = vadd.f32 %v1507_v30, %v4752_v61  ;;  %v3870_v56 = vpop.f32.mrb[77].mxu0 }
 0x1a1   : > { %v1510_v28 = vpop.f32.mrb[78].mxu0  ;;  %v3641_v40 = vpop.f32.mrb[76].mxu1 }
 0x1a2   : > { %1848 = vst.msk [vmem:[%s4891_s17 + $0x38] sm:$0xff] %vm1840_vm1, %v1817_v54  ;;  %v1602_v33 = vmax.f32 %v1508_v4, 0.0  ;;  %v1511_v38 = vadd.f32 %v1510_v28, %v4757_v32  ;;  %v3871_v62 = vpop.f32.mrb[79].mxu0  ;;  %v3642_v44 = vpop.f32.mrb[77].mxu1 }
 0x1a3   : > { %v4972_v29 = vadd.f32 %v3642_v44, %v3641_v40  ;;  %v3644_v61 = vpop.f32.mrb[78].mxu1  ;;  %v4987_v56 = vpop.permute.xlu0 %1712 }
 0x1a4   : > { %v1638_v5 = vmul.f32 %v4879_v0, %v1602_v33  ;;  %v1603_v53 = vmax.f32 %v1511_v38, 0.0  ;;  %v3645_v1 = vpop.f32.mrb[79].mxu1  ;;  %v4992_v40 = vpop.permute.xlu1 %1717 }
 0x1a5   : > { %v4978_v32 = vadd.f32 %v3645_v1, %v3644_v61 }
 0x1a6   : > { %v1639_v36 = vmul.f32 %v4879_v0, %v1603_v53  ;;  %v1818_v13 = vmul.f32 %v4969_v48, %v1638_v5 }
 0x1a7   : > { %v1515_v20 = vpop.f32.mrb[80].mxu0 }
 0x1a8   : > { %1849 = vst.msk [vmem:[%s4891_s17 + $0x40] sm:$0xff] %vm1840_vm1, %v1818_v13  ;;  %v1819_v21 = vmul.f32 %v4974_v9, %v1639_v36  ;;  %v1516_v11 = vadd.f32 %v1515_v20, %v4763_v55  ;;  %v3874_v3 = vpop.f32.mrb[81].mxu0 }
 0x1a9   : > { %v1518_v10 = vpop.f32.mrb[82].mxu0  ;;  %v3647_v54 = vpop.f32.mrb[80].mxu1 }
 0x1aa   : > { %1850 = vst.msk [vmem:[%s4891_s17 + $0x48] sm:$0xff] %vm1840_vm1, %v1819_v21  ;;  %v1604_v19 = vmax.f32 %v1516_v11, 0.0  ;;  %v1519_v26 = vadd.f32 %v1518_v10, %v4768_v63  ;;  %v3875_v30 = vpop.f32.mrb[83].mxu0  ;;  %v3648_v4 = vpop.f32.mrb[81].mxu1 }
 0x1ab   : > { %v4990_v38 = vadd.f32 %v3648_v4, %v3647_v54  ;;  %v3650_v55 = vpop.f32.mrb[82].mxu1 }
 0x1ac   : > { %v1640_v28 = vmul.f32 %v4879_v0, %v1604_v19  ;;  %v1605_v33 = vmax.f32 %v1519_v26, 0.0  ;;  %v3651_v62 = vpop.f32.mrb[83].mxu1  ;;  %v5005_v19 = vpop.permute.xlu0 %1722 }
 0x1ad   : > { %v4996_v63 = vadd.f32 %v3651_v62, %v3650_v55 }
 0x1ae   : > { %v1641_v44 = vmul.f32 %v4879_v0, %v1605_v33  ;;  %v1820_v5 = vmul.f32 %v4987_v56, %v1640_v28  ;;  %v5010_v28 = vpop.permute.xlu1 %1727 }
 0x1af   : > { %v1523_v53 = vpop.f32.mrb[84].mxu0 }
 0x1b0   : > { %1851 = vst.msk [vmem:[%s4891_s17 + $0x50] sm:$0xff] %vm1840_vm1, %v1820_v5  ;;  %v1821_v61 = vmul.f32 %v4992_v40, %v1641_v44  ;;  %v1524_v1 = vadd.f32 %v1523_v53, %v4774_v7  ;;  %v3878_v36 = vpop.f32.mrb[85].mxu0 }
 0x1b1   : > { %v1526_v13 = vpop.f32.mrb[86].mxu0  ;;  %v3653_v3 = vpop.f32.mrb[84].mxu1 }
 0x1b2   : > { %1852 = vst.msk [vmem:[%s4891_s17 + $0x58] sm:$0xff] %vm1840_vm1, %v1821_v61  ;;  %v1606_v20 = vmax.f32 %v1524_v1, 0.0  ;;  %v1527_v21 = vadd.f32 %v1526_v13, %v4779_v18  ;;  %v3879_v11 = vpop.f32.mrb[87].mxu0  ;;  %v3654_v10 = vpop.f32.mrb[85].mxu1 }
 0x1b3   : > { %v5008_v54 = vadd.f32 %v3654_v10, %v3653_v3  ;;  %v3656_v7 = vpop.f32.mrb[86].mxu1  ;;  %v5023_v11 = vpop.permute.xlu0 %1732 }
 0x1b4   : > { %v1642_v26 = vmul.f32 %v4879_v0, %v1606_v20  ;;  %v1607_v30 = vmax.f32 %v1527_v21, 0.0  ;;  %v3657_v4 = vpop.f32.mrb[87].mxu1 }
 0x1b5   : > { %v5014_v18 = vadd.f32 %v3657_v4, %v3656_v7  ;;  %v5028_v7 = vpop.permute.xlu1 %1737 }
 0x1b6   : > { %v1643_v33 = vmul.f32 %v4879_v0, %v1607_v30  ;;  %v1822_v55 = vmul.f32 %v5005_v19, %v1642_v26 }
 0x1b7   : > { %v1531_v62 = vpop.f32.mrb[88].mxu0 }
 0x1b8   : > { %1853 = vst.msk [vmem:[%s4891_s17 + $0x60] sm:$0xff] %vm1840_vm1, %v1822_v55  ;;  %v1823_v44 = vmul.f32 %v5010_v28, %v1643_v33  ;;  %v1532_v5 = vadd.f32 %v1531_v62, %v4785_v35  ;;  %v3882_v53 = vpop.f32.mrb[89].mxu0 }
 0x1b9   : > { %v1534_v61 = vpop.f32.mrb[90].mxu0  ;;  %v3659_v20 = vpop.f32.mrb[88].mxu1 }
 0x1ba   : > { %1854 = vst.msk [vmem:[%s4891_s17 + $0x68] sm:$0xff] %vm1840_vm1, %v1823_v44  ;;  %v1608_v1 = vmax.f32 %v1532_v5, 0.0  ;;  %v1535_v36 = vadd.f32 %v1534_v61, %v4790_v41  ;;  %v3883_v13 = vpop.f32.mrb[91].mxu0  ;;  %v3660_v21 = vpop.f32.mrb[89].mxu1 }
 0x1bb   : > { %v5026_v26 = vadd.f32 %v3660_v21, %v3659_v20  ;;  %v3662_v35 = vpop.f32.mrb[90].mxu1  ;;  %v5041_v21 = vpop.permute.xlu0 %1742 }
 0x1bc   : > { %v1644_v3 = vmul.f32 %v4879_v0, %v1608_v1  ;;  %v1609_v10 = vmax.f32 %v1535_v36, 0.0  ;;  %v3663_v30 = vpop.f32.mrb[91].mxu1 }
 0x1bd   : > { %v5032_v41 = vadd.f32 %v3663_v30, %v3662_v35 }
 0x1be   : > { %v1645_v4 = vmul.f32 %v4879_v0, %v1609_v10  ;;  %v1824_v33 = vmul.f32 %v5023_v11, %v1644_v3 }
 0x1bf   : > { %v1539_v55 = vpop.f32.mrb[92].mxu0 }
 0x1c0   : > { %1855 = vst.msk [vmem:[%s4891_s17 + $0x70] sm:$0xff] %vm1840_vm1, %v1824_v33  ;;  %v1825_v62 = vmul.f32 %v5028_v7, %v1645_v4  ;;  %v1540_v44 = vadd.f32 %v1539_v55, %v4796_v8  ;;  %v3886_v5 = vpop.f32.mrb[93].mxu0  ;;  %v5046_v4 = vpop.permute.xlu1 %1747 }
 0x1c1   : > { %v1542_v53 = vpop.f32.mrb[94].mxu0  ;;  %v3665_v13 = vpop.f32.mrb[92].mxu1  ;;  %5373 = vst [vmem:[#allocation2_spill] sm:$0xff] %v5046_v4 }
 0x1c2   : > { %1856 = vst.msk [vmem:[%s4891_s17 + $0x78] sm:$0xff] %vm1840_vm1, %v1825_v62  ;;  %v1610_v61 = vmax.f32 %v1540_v44, 0.0  ;;  %v1543_v1 = vadd.f32 %v1542_v53, %v4801_v16  ;;  %v3887_v36 = vpop.f32.mrb[95].mxu0  ;;  %v3666_v20 = vpop.f32.mrb[93].mxu1 }
 0x1c3   : > { %v5044_v35 = vadd.f32 %v3666_v20, %v3665_v13  ;;  %v3668_v8 = vpop.f32.mrb[94].mxu1 }
 0x1c4   : > { %v1646_v3 = vmul.f32 %v4879_v0, %v1610_v61  ;;  %v1611_v10 = vmax.f32 %v1543_v1, 0.0  ;;  %v3669_v30 = vpop.f32.mrb[95].mxu1 }
 0x1c5   : > { %v5050_v16 = vadd.f32 %v3669_v30, %v3668_v8 }
 0x1c6   : > { %v1647_v33 = vmul.f32 %v4879_v0, %v1611_v10  ;;  %v1826_v55 = vmul.f32 %v5041_v21, %v1646_v3  ;;  %v5059_v10 = vpop.permute.xlu0 %1752 }
 0x1c7   : > { %v1547_v62 = vpop.f32.mrb[96].mxu0  ;;  %5374 = vst [vmem:[#allocation3_spill] sm:$0xff] %v5059_v10 }
 0x1c8   : > { %1857 = vst.msk [vmem:[%s4891_s17 + $0x80] sm:$0xff] %vm1840_vm1, %v1826_v55  ;;  %v1827_v44 = vmul.f32 %v5046_v4, %v1647_v33  ;;  %v1548_v5 = vadd.f32 %v1547_v62, %v4807_v45  ;;  %v3890_v53 = vpop.f32.mrb[97].mxu0  ;;  %v5064_v62 = vpop.permute.xlu1 %1757 }
 0x1c9   : > { %v1550_v61 = vpop.f32.mrb[98].mxu0  ;;  %v3671_v20 = vpop.f32.mrb[96].mxu1  ;;  %5375 = vst [vmem:[#allocation4_spill] sm:$0xff] %v5064_v62 }
 0x1ca   : > { %1858 = vst.msk [vmem:[%s4891_s17 + $0x88] sm:$0xff] %vm1840_vm1, %v1827_v44  ;;  %v1612_v1 = vmax.f32 %v1548_v5, 0.0  ;;  %v1551_v36 = vadd.f32 %v1550_v61, %v4812_v34  ;;  %v3891_v13 = vpop.f32.mrb[99].mxu0  ;;  %v3672_v3 = vpop.f32.mrb[97].mxu1 }
 0x1cb   : > { %v5062_v33 = vadd.f32 %v3672_v3, %v3671_v20  ;;  %v3674_v45 = vpop.f32.mrb[98].mxu1 }
 0x1cc   : > { %v1648_v8 = vmul.f32 %v4879_v0, %v1612_v1  ;;  %v1613_v30 = vmax.f32 %v1551_v36, 0.0  ;;  %v3675_v55 = vpop.f32.mrb[99].mxu1 }
 0x1cd   : > { %v5068_v34 = vadd.f32 %v3675_v55, %v3674_v45  ;;  %v5077_v45 = vpop.permute.xlu0 %1762 }
 0x1ce   : > { %v1649_v44 = vmul.f32 %v4879_v0, %v1613_v30  ;;  %v1828_v5 = vmul.f32 %v5059_v10, %v1648_v8  ;;  %5376 = vst [vmem:[#allocation5_spill] sm:$0xff] %v5077_v45 }
 0x1cf   : > { %v1555_v53 = vpop.f32.mrb[100].mxu0 }
 0x1d0   : > { %1859 = vst.msk [vmem:[%s4891_s17 + $0x90] sm:$0xff] %vm1840_vm1, %v1828_v5  ;;  %v1829_v61 = vmul.f32 %v5064_v62, %v1649_v44  ;;  %v1556_v1 = vadd.f32 %v1555_v53, %v4818_v51  ;;  %v3894_v36 = vpop.f32.mrb[101].mxu0 }
 0x1d1   : > { %v1558_v13 = vpop.f32.mrb[102].mxu0  ;;  %v3677_v4 = vpop.f32.mrb[100].mxu1 }
 0x1d2   : > { %1860 = vst.msk [vmem:[%s4891_s17 + $0x98] sm:$0xff] %vm1840_vm1, %v1829_v61  ;;  %v1614_v20 = vmax.f32 %v1556_v1, 0.0  ;;  %v1559_v3 = vadd.f32 %v1558_v13, %v4823_v59  ;;  %v3895_v30 = vpop.f32.mrb[103].mxu0  ;;  %v3678_v8 = vpop.f32.mrb[101].mxu1 }
 0x1d3   : > { %v5080_v44 = vadd.f32 %v3678_v8, %v3677_v4  ;;  %v3680_v51 = vpop.f32.mrb[102].mxu1  ;;  %v5082_v36 = vpop.permute.xlu1 %1767 }
 0x1d4   : > { %v1650_v55 = vmul.f32 %v4879_v0, %v1614_v20  ;;  %v1615_v5 = vmax.f32 %v1559_v3, 0.0  ;;  %v3681_v53 = vpop.f32.mrb[103].mxu1  ;;  %5377 = vst [vmem:[#allocation6_spill] sm:$0xff] %v5082_v36 }
 0x1d5   : > { %v5086_v59 = vadd.f32 %v3681_v53, %v3680_v51  ;;  %v5095_v51 = vpop.permute.xlu0 %1772 }
 0x1d6   : > { %v1651_v61 = vmul.f32 %v4879_v0, %v1615_v5  ;;  %v1830_v1 = vmul.f32 %v5077_v45, %v1650_v55  ;;  %5378 = vst [vmem:[#allocation7_spill] sm:$0xff] %v5095_v51 }
 0x1d7   : > { %v1563_v13 = vpop.f32.mrb[104].mxu0 }
 0x1d8   : > { %1861 = vst.msk [vmem:[%s4891_s17 + $0xa0] sm:$0xff] %vm1840_vm1, %v1830_v1  ;;  %v1831_v30 = vmul.f32 %v5082_v36, %v1651_v61  ;;  %v1564_v20 = vadd.f32 %v1563_v13, %v4829_v14  ;;  %v3898_v3 = vpop.f32.mrb[105].mxu0 }
 0x1d9   : > { %v1566_v4 = vpop.f32.mrb[106].mxu0  ;;  %v3683_v10 = vpop.f32.mrb[104].mxu1 }
 0x1da   : > { %1862 = vst.msk [vmem:[%s4891_s17 + $0xa8] sm:$0xff] %vm1840_vm1, %v1831_v30  ;;  %v1616_v8 = vmax.f32 %v1564_v20, 0.0  ;;  %v1567_v62 = vadd.f32 %v1566_v4, %v4834_v23  ;;  %v3899_v5 = vpop.f32.mrb[107].mxu0  ;;  %v3684_v55 = vpop.f32.mrb[105].mxu1 }
 0x1db   : > { %v5098_v61 = vadd.f32 %v3684_v55, %v3683_v10  ;;  %v3686_v14 = vpop.f32.mrb[106].mxu1  ;;  %v5100_v3 = vpop.permute.xlu1 %1777 }
 0x1dc   : > { %v1652_v53 = vmul.f32 %v4879_v0, %v1616_v8  ;;  %v1617_v1 = vmax.f32 %v1567_v62, 0.0  ;;  %v3687_v13 = vpop.f32.mrb[107].mxu1  ;;  %5379 = vst [vmem:[#allocation8_spill] sm:$0xff] %v5100_v3 }
 0x1dd   : > { %v5104_v23 = vadd.f32 %v3687_v13, %v3686_v14  ;;  %v5113_v14 = vpop.permute.xlu0 %1782 }
 0x1de   : > { %v1653_v30 = vmul.f32 %v4879_v0, %v1617_v1  ;;  %v1832_v20 = vmul.f32 %v5095_v51, %v1652_v53  ;;  %5380 = vst [vmem:[#allocation9_spill] sm:$0xff] %v5113_v14 }
 0x1df   : > { %v1571_v4 = vpop.f32.mrb[108].mxu0 }
 0x1e0   : > { %1863 = vst.msk [vmem:[%s4891_s17 + $0xb0] sm:$0xff] %vm1840_vm1, %v1832_v20  ;;  %v1833_v5 = vmul.f32 %v5100_v3, %v1653_v30  ;;  %v1572_v8 = vadd.f32 %v1571_v4, %v4840_v46  ;;  %v3902_v62 = vpop.f32.mrb[109].mxu0 }
 0x1e1   : > { %v1574_v10 = vpop.f32.mrb[110].mxu0  ;;  %v3689_v45 = vpop.f32.mrb[108].mxu1 }
 0x1e2   : > { %1864 = vst.msk [vmem:[%s4891_s17 + $0xb8] sm:$0xff] %vm1840_vm1, %v1833_v5  ;;  %v1618_v55 = vmax.f32 %v1572_v8, 0.0  ;;  %v1575_v36 = vadd.f32 %v1574_v10, %v4845_v52  ;;  %v3903_v1 = vpop.f32.mrb[111].mxu0  ;;  %v3690_v53 = vpop.f32.mrb[109].mxu1 }
 0x1e3   : > { %v5116_v30 = vadd.f32 %v3690_v53, %v3689_v45  ;;  %v3692_v46 = vpop.f32.mrb[110].mxu1  ;;  %v5118_v62 = vpop.permute.xlu1 %1787 }
 0x1e4   : > { %v1654_v13 = vmul.f32 %v4879_v0, %v1618_v55  ;;  %v1619_v20 = vmax.f32 %v1575_v36, 0.0  ;;  %v3693_v4 = vpop.f32.mrb[111].mxu1  ;;  %5381 = vst [vmem:[#allocation10_spill] sm:$0xff] %v5118_v62 }
 0x1e5   : > { %v5122_v52 = vadd.f32 %v3693_v4, %v3692_v46  ;;  %v5131_v46 = vpop.permute.xlu0 %1792 }
 0x1e6   : > { %v1655_v5 = vmul.f32 %v4879_v0, %v1619_v20  ;;  %v1834_v8 = vmul.f32 %v5113_v14, %v1654_v13  ;;  %5382 = vst [vmem:[#allocation11_spill] sm:$0xff] %v5131_v46 }
 0x1e7   : > { %v1579_v10 = vpop.f32.mrb[112].mxu0 }
 0x1e8   : > { %1865 = vst.msk [vmem:[%s4891_s17 + $0xc0] sm:$0xff] %vm1840_vm1, %v1834_v8  ;;  %v1835_v1 = vmul.f32 %v5118_v62, %v1655_v5  ;;  %v1580_v55 = vadd.f32 %v1579_v10, %v4851_v6  ;;  %v3906_v36 = vpop.f32.mrb[113].mxu0 }
 0x1e9   : > { %v1582_v45 = vpop.f32.mrb[114].mxu0  ;;  %v3695_v51 = vpop.f32.mrb[112].mxu1 }
 0x1ea   : > { %1866 = vst.msk [vmem:[%s4891_s17 + $0xc8] sm:$0xff] %vm1840_vm1, %v1835_v1  ;;  %v1620_v53 = vmax.f32 %v1580_v55, 0.0  ;;  %v1583_v3 = vadd.f32 %v1582_v45, %v4856_v22  ;;  %v3907_v20 = vpop.f32.mrb[115].mxu0  ;;  %v3696_v13 = vpop.f32.mrb[113].mxu1 }
 0x1eb   : > { %v5134_v5 = vadd.f32 %v3696_v13, %v3695_v51  ;;  %v3698_v6 = vpop.f32.mrb[114].mxu1  ;;  %v5136_v36 = vpop.permute.xlu1 %1797 }
 0x1ec   : > { %v1656_v4 = vmul.f32 %v4879_v0, %v1620_v53  ;;  %v1621_v8 = vmax.f32 %v1583_v3, 0.0  ;;  %v3699_v10 = vpop.f32.mrb[115].mxu1  ;;  %5383 = vst [vmem:[#allocation12_spill] sm:$0xff] %v5136_v36 }
 0x1ed   : > { %v5140_v22 = vadd.f32 %v3699_v10, %v3698_v6  ;;  %v5149_v6 = vpop.permute.xlu0 %1802 }
 0x1ee   : > { %v1657_v1 = vmul.f32 %v4879_v0, %v1621_v8  ;;  %v1836_v55 = vmul.f32 %v5131_v46, %v1656_v4  ;;  %5385 = vst [vmem:[#allocation14_spill] sm:$0xff] %v5149_v6 }
 0x1ef   : > { %5384 = vst [vmem:[#allocation13_spill] sm:$0xff] %v5140_v22  ;;  %v1587_v45 = vpop.f32.mrb[116].mxu0 }
 0x1f0   : > { %1867 = vst.msk [vmem:[%s4891_s17 + $0xd0] sm:$0xff] %vm1840_vm1, %v1836_v55  ;;  %v1837_v20 = vmul.f32 %v5136_v36, %v1657_v1  ;;  %v1588_v53 = vadd.f32 %v1587_v45, %v4868_v47  ;;  %v3910_v3 = vpop.f32.mrb[117].mxu0 }
 0x1f1   : > { %v1590_v51 = vpop.f32.mrb[118].mxu0  ;;  %v3701_v14 = vpop.f32.mrb[116].mxu1 }
 0x1f2   : > { %1868 = vst.msk [vmem:[%s4891_s17 + $0xd8] sm:$0xff] %vm1840_vm1, %v1837_v20  ;;  %v1622_v13 = vmax.f32 %v1588_v53, 0.0  ;;  %v1591_v62 = vadd.f32 %v1590_v51, %v4876_v60  ;;  %v3911_v8 = vpop.f32.mrb[119].mxu0  ;;  %v3702_v4 = vpop.f32.mrb[117].mxu1 }
 0x1f3   : > { %v5151_v55 = vadd.f32 %v3702_v4, %v3701_v14  ;;  %v3704_v1 = vpop.f32.mrb[118].mxu1  ;;  %v5154_v3 = vpop.permute.xlu1 %1807  ;;  %v5164_v8 = vld [vmem:[%s4696_s9] ss:$0 sm:$0xff] }
 0x1f4   : > { %v1623_v10 = vmax.f32 %v1591_v62, 0.0  ;;  %v1658_v47 = vmul.f32 %v4879_v0, %v1622_v13  ;;  %v3705_v45 = vpop.f32.mrb[119].mxu1  ;;  %5387 = vst [vmem:[#allocation16_spill] sm:$0xff] %v5154_v3  ;;  %v2389_v13 = vadd.f32 %v5164_v8, %v4886_v25 }
 0x1f5   : > { %5386 = vst [vmem:[#allocation15_spill] sm:$0xff] %v5151_v55  ;;  %v5157_v53 = vadd.f32 %v3705_v45, %v3704_v1 }
 0x1f6   : > { %v1838_v20 = vmul.f32 %v5149_v6, %v1658_v47  ;;  %v1659_v60 = vmul.f32 %v4879_v0, %v1623_v10  ;;  %v2392_v0 = vadd.f32 %v5164_v8, %v4897_v27 }
 0x1f7   : > { %5388 = vst [vmem:[#allocation17_spill] sm:$0xff] %v5157_v53  ;;  %v3723_v51 = vpop.f32.mrb[120].mxu0  ;;  %v5173_v53 = vld [vmem:[%s4866_s13 + $0x1] ss:$0 sm:$0xff] }
 0x1f8   : > { %1869 = vst.msk [vmem:[%s4891_s17 + $0xe0] sm:$0xff] %vm1840_vm1, %v1838_v20  ;;  %v1839_v62 = vmul.f32 %v5154_v3, %v1659_v60  ;;  %v3724_v14 = vpop.f32.mrb[121].mxu0 }
 0x1f9   : > { %v3725_v4 = vadd.f32 %v3724_v14, %v3723_v51  ;;  %v3726_v36 = vpop.f32.mrb[122].mxu0  ;;  %v2694_v47 = vpop.f32.mrb[120].mxu1 }
 0x1fa   : > { %1870 = vst.msk [vmem:[%s4891_s17 + $0xe8] sm:$0xff] %vm1840_vm1, %v1839_v62  ;;  %v3727_v1 = vpop.f32.mrb[123].mxu0  ;;  %v3930_v20 = vpop.f32.mrb[121].mxu1  ;;  %v2397_v62 = vadd.f32 %v5164_v8, %v4914_v57 }
 0x1fb   : > { %v3728_v10 = vadd.f32 %v3727_v1, %v3726_v36  ;;  %v2542_v45 = vadd.f32 %v3725_v4, %v2389_v13  ;;  %v2697_v60 = vpop.f32.mrb[122].mxu1  ;;  %v2400_v4 = vadd.f32 %v5164_v8, %v4920_v17 }
 0x1fc   : > { %v3931_v46 = vpop.f32.mrb[123].mxu1 }
 0x1fd   : > { %v2695_v3 = vadd.f32 %v2694_v47, %v2542_v45  ;;  %v2545_v6 = vadd.f32 %v3728_v10, %v2392_v0 }
 0x1ff   : > { %v2813_v55 = vmax.f32 %v2695_v3, 0.0  ;;  %v2698_v25 = vadd.f32 %v2697_v60, %v2545_v6  ;;  %v3729_v51 = vpop.f32.mrb[124].mxu0 }
 0x200   : > { %v3730_v14 = vpop.f32.mrb[125].mxu0 }
 0x201   : > { %v2849_v22 = vmul.f32 %v5173_v53, %v2813_v55  ;;  %v2814_v27 = vmax.f32 %v2698_v25, 0.0  ;;  %v3731_v36 = vadd.f32 %v3730_v14, %v3729_v51  ;;  %v3732_v13 = vpop.f32.mrb[126].mxu0  ;;  %v2702_v1 = vpop.f32.mrb[124].mxu1 }
 0x202   : > { %v3733_v46 = vpop.f32.mrb[127].mxu0  ;;  %v3934_v10 = vpop.f32.mrb[125].mxu1 }
 0x203   : > { %v2879_v3 = vmul.f32 %v2849_v22, %v4870_v49  ;;  %v2850_v6 = vmul.f32 %v5173_v53, %v2814_v27  ;;  %v3734_v47 = vadd.f32 %v3733_v46, %v3732_v13  ;;  %v2550_v0 = vadd.f32 %v3731_v36, %v2397_v62  ;;  %v2705_v45 = vpop.f32.mrb[126].mxu1 }
 0x204   : > { %v3935_v60 = vpop.f32.mrb[127].mxu1  ;;  %v2405_v22 = vadd.f32 %v5164_v8, %v4936_v31 }
 0x205   : > { %3334 = vst.msk [vmem:[%s4891_s17 + $0xf0] sm:$0xff] %vm1840_vm1, %v2879_v3  ;;  %v2880_v57 = vmul.f32 %v2850_v6, %v4893_v15  ;;  %v2703_v55 = vadd.f32 %v2702_v1, %v2550_v0  ;;  %v2553_v20 = vadd.f32 %v3734_v47, %v2400_v4  ;;  %v2408_v15 = vadd.f32 %v5164_v8, %v4942_v43 }
 0x206   : > { %v2413_v60 = vadd.f32 %v5164_v8, %v4954_v24 }
 0x207   : > { %3335 = vst.msk [vmem:[%s4891_s17 + $0xf8] sm:$0xff] %vm1840_vm1, %v2880_v57  ;;  %v2815_v17 = vmax.f32 %v2703_v55, 0.0  ;;  %v2706_v25 = vadd.f32 %v2705_v45, %v2553_v20  ;;  %v3735_v51 = vpop.f32.mrb[128].mxu0 }
 0x208   : > { %v3736_v49 = vpop.f32.mrb[129].mxu0 }
 0x209   : > { %v2851_v14 = vmul.f32 %v5173_v53, %v2815_v17  ;;  %v2816_v62 = vmax.f32 %v2706_v25, 0.0  ;;  %v3737_v27 = vadd.f32 %v3736_v49, %v3735_v51  ;;  %v3738_v36 = vpop.f32.mrb[130].mxu0  ;;  %v2710_v4 = vpop.f32.mrb[128].mxu1 }
 0x20a   : > { %v3739_v13 = vpop.f32.mrb[131].mxu0  ;;  %v3938_v47 = vpop.f32.mrb[129].mxu1 }
 0x20b   : > { %v2881_v46 = vmul.f32 %v2851_v14, %v4899_v50  ;;  %v2852_v1 = vmul.f32 %v5173_v53, %v2816_v62  ;;  %v3740_v3 = vadd.f32 %v3739_v13, %v3738_v36  ;;  %v2558_v6 = vadd.f32 %v3737_v27, %v2405_v22  ;;  %v2713_v0 = vpop.f32.mrb[130].mxu1 }
 0x20c   : > { %v3939_v57 = vpop.f32.mrb[131].mxu1 }
 0x20d   : > { %3336 = vst.msk [vmem:[%s4891_s17 + $0x100] sm:$0xff] %vm1840_vm1, %v2881_v46  ;;  %v2882_v31 = vmul.f32 %v2852_v1, %v4916_v12  ;;  %v2711_v10 = vadd.f32 %v2710_v4, %v2558_v6  ;;  %v2561_v45 = vadd.f32 %v3740_v3, %v2408_v15  ;;  %v2416_v12 = vadd.f32 %v5164_v8, %v4960_v37 }
 0x20f   : > { %3337 = vst.msk [vmem:[%s4891_s17 + $0x108] sm:$0xff] %vm1840_vm1, %v2882_v31  ;;  %v2817_v43 = vmax.f32 %v2711_v10, 0.0  ;;  %v2714_v55 = vadd.f32 %v2713_v0, %v2561_v45  ;;  %v3741_v20 = vpop.f32.mrb[132].mxu0  ;;  %v2421_v0 = vadd.f32 %v5164_v8, %v4972_v29 }
 0x210   : > { %v3742_v50 = vpop.f32.mrb[133].mxu0 }
 0x211   : > { %v2853_v17 = vmul.f32 %v5173_v53, %v2817_v43  ;;  %v2818_v25 = vmax.f32 %v2714_v55, 0.0  ;;  %v3743_v51 = vadd.f32 %v3742_v50, %v3741_v20  ;;  %v3744_v49 = vpop.f32.mrb[134].mxu0  ;;  %v2718_v14 = vpop.f32.mrb[132].mxu1 }
 0x212   : > { %v3745_v22 = vpop.f32.mrb[135].mxu0  ;;  %v3942_v13 = vpop.f32.mrb[133].mxu1 }
 0x213   : > { %v2883_v62 = vmul.f32 %v2853_v17, %v4932_v58  ;;  %v2854_v27 = vmul.f32 %v5173_v53, %v2818_v25  ;;  %v3746_v36 = vadd.f32 %v3745_v22, %v3744_v49  ;;  %v2566_v15 = vadd.f32 %v3743_v51, %v2413_v60  ;;  %v2721_v4 = vpop.f32.mrb[134].mxu1 }
 0x214   : > { %v3943_v3 = vpop.f32.mrb[135].mxu1 }
 0x215   : > { %3338 = vst.msk [vmem:[%s4891_s17 + $0x110] sm:$0xff] %vm1840_vm1, %v2883_v62  ;;  %v2884_v24 = vmul.f32 %v2854_v27, %v4938_v39  ;;  %v2719_v46 = vadd.f32 %v2718_v14, %v2566_v15  ;;  %v2569_v1 = vadd.f32 %v3746_v36, %v2416_v12  ;;  %v2424_v39 = vadd.f32 %v5164_v8, %v4978_v32 }
 0x216   : > { %v2429_v27 = vadd.f32 %v5164_v8, %v4990_v38 }
 0x217   : > { %3339 = vst.msk [vmem:[%s4891_s17 + $0x118] sm:$0xff] %vm1840_vm1, %v2884_v24  ;;  %v2819_v37 = vmax.f32 %v2719_v46, 0.0  ;;  %v2722_v6 = vadd.f32 %v2721_v4, %v2569_v1  ;;  %v3747_v47 = vpop.f32.mrb[136].mxu0 }
 0x218   : > { %v3748_v58 = vpop.f32.mrb[137].mxu0 }
 0x219   : > { %v2855_v31 = vmul.f32 %v5173_v53, %v2819_v37  ;;  %v2820_v10 = vmax.f32 %v2722_v6, 0.0  ;;  %v3749_v45 = vadd.f32 %v3748_v58, %v3747_v47  ;;  %v3750_v57 = vpop.f32.mrb[138].mxu0  ;;  %v2726_v55 = vpop.f32.mrb[136].mxu1 }
 0x21a   : > { %v3751_v43 = vpop.f32.mrb[139].mxu0  ;;  %v3946_v25 = vpop.f32.mrb[137].mxu1 }
 0x21b   : > { %v2885_v20 = vmul.f32 %v2855_v31, %v4951_v2  ;;  %v2856_v50 = vmul.f32 %v5173_v53, %v2820_v10  ;;  %v3752_v60 = vadd.f32 %v3751_v43, %v3750_v57  ;;  %v2574_v17 = vadd.f32 %v3749_v45, %v2421_v0  ;;  %v2729_v51 = vpop.f32.mrb[138].mxu1 }
 0x21c   : > { %v3947_v22 = vpop.f32.mrb[139].mxu1 }
 0x21d   : > { %3340 = vst.msk [vmem:[%s4891_s17 + $0x120] sm:$0xff] %vm1840_vm1, %v2885_v20  ;;  %v2886_v29 = vmul.f32 %v2856_v50, %v4956_v42  ;;  %v2727_v49 = vadd.f32 %v2726_v55, %v2574_v17  ;;  %v2577_v12 = vadd.f32 %v3752_v60, %v2424_v39  ;;  %v2432_v42 = vadd.f32 %v5164_v8, %v4996_v63 }
 0x21e   : > { %v2437_v39 = vadd.f32 %v5164_v8, %v5008_v54 }
 0x21f   : > { %3341 = vst.msk [vmem:[%s4891_s17 + $0x128] sm:$0xff] %vm1840_vm1, %v2886_v29  ;;  %v2821_v32 = vmax.f32 %v2727_v49, 0.0  ;;  %v2730_v14 = vadd.f32 %v2729_v51, %v2577_v12  ;;  %v3753_v62 = vpop.f32.mrb[140].mxu0 }
 0x220   : > { %v3754_v2 = vpop.f32.mrb[141].mxu0 }
 0x221   : > { %v2857_v36 = vmul.f32 %v5173_v53, %v2821_v32  ;;  %v2822_v15 = vmax.f32 %v2730_v14, 0.0  ;;  %v3755_v13 = vadd.f32 %v3754_v2, %v3753_v62  ;;  %v3756_v4 = vpop.f32.mrb[142].mxu0  ;;  %v2734_v46 = vpop.f32.mrb[140].mxu1 }
 0x222   : > { %v3757_v24 = vpop.f32.mrb[143].mxu0  ;;  %v3950_v47 = vpop.f32.mrb[141].mxu1 }
 0x223   : > { %v2887_v1 = vmul.f32 %v2857_v36, %v4969_v48  ;;  %v2858_v3 = vmul.f32 %v5173_v53, %v2822_v15  ;;  %v3758_v37 = vadd.f32 %v3757_v24, %v3756_v4  ;;  %v2582_v6 = vadd.f32 %v3755_v13, %v2429_v27  ;;  %v2737_v58 = vpop.f32.mrb[142].mxu1 }
 0x224   : > { %v3951_v10 = vpop.f32.mrb[143].mxu1  ;;  %v2445_v36 = vadd.f32 %v5164_v8, %v5026_v26 }
 0x225   : > { %3342 = vst.msk [vmem:[%s4891_s17 + $0x130] sm:$0xff] %vm1840_vm1, %v2887_v1  ;;  %v2888_v38 = vmul.f32 %v2858_v3, %v4974_v9  ;;  %v2735_v0 = vadd.f32 %v2734_v46, %v2582_v6  ;;  %v2585_v31 = vadd.f32 %v3758_v37, %v2432_v42  ;;  %v2440_v9 = vadd.f32 %v5164_v8, %v5014_v18 }
 0x227   : > { %3343 = vst.msk [vmem:[%s4891_s17 + $0x138] sm:$0xff] %vm1840_vm1, %v2888_v38  ;;  %v2823_v63 = vmax.f32 %v2735_v0, 0.0  ;;  %v2738_v45 = vadd.f32 %v2737_v58, %v2585_v31  ;;  %v3759_v57 = vpop.f32.mrb[144].mxu0 }
 0x228   : > { %v3760_v48 = vpop.f32.mrb[145].mxu0 }
 0x229   : > { %v2859_v43 = vmul.f32 %v5173_v53, %v2823_v63  ;;  %v2824_v55 = vmax.f32 %v2738_v45, 0.0  ;;  %v3761_v20 = vadd.f32 %v3760_v48, %v3759_v57  ;;  %v3762_v50 = vpop.f32.mrb[146].mxu0  ;;  %v2742_v17 = vpop.f32.mrb[144].mxu1  ;;  %v2453_v45 = vadd.f32 %v5164_v8, %v5044_v35 }
 0x22a   : > { %v3763_v60 = vpop.f32.mrb[147].mxu0  ;;  %v3954_v12 = vpop.f32.mrb[145].mxu1 }
 0x22b   : > { %v2889_v25 = vmul.f32 %v2859_v43, %v4987_v56  ;;  %v2860_v51 = vmul.f32 %v5173_v53, %v2824_v55  ;;  %v3764_v29 = vadd.f32 %v3763_v60, %v3762_v50  ;;  %v2590_v49 = vadd.f32 %v3761_v20, %v2437_v39  ;;  %v2745_v22 = vpop.f32.mrb[146].mxu1 }
 0x22c   : > { %v3955_v62 = vpop.f32.mrb[147].mxu1 }
 0x22d   : > { %3344 = vst.msk [vmem:[%s4891_s17 + $0x140] sm:$0xff] %vm1840_vm1, %v2889_v25  ;;  %v2890_v54 = vmul.f32 %v2860_v51, %v4992_v40  ;;  %v2743_v32 = vadd.f32 %v2742_v17, %v2590_v49  ;;  %v2593_v14 = vadd.f32 %v3764_v29, %v2440_v9  ;;  %v2448_v40 = vadd.f32 %v5164_v8, %v5032_v41 }
 0x22f   : > { %3345 = vst.msk [vmem:[%s4891_s17 + $0x148] sm:$0xff] %vm1840_vm1, %v2890_v54  ;;  %v2825_v18 = vmax.f32 %v2743_v32, 0.0  ;;  %v2746_v2 = vadd.f32 %v2745_v22, %v2593_v14  ;;  %v3765_v27 = vpop.f32.mrb[148].mxu0  ;;  %v2461_v32 = vadd.f32 %v5164_v8, %v5062_v33  ;;  %v5389_v33 = vld [vmem:[#allocation2_spill] sm:$0xff] }
 0x230   : > { %v3766_v56 = vpop.f32.mrb[149].mxu0 }
 0x231   : > { %v2861_v15 = vmul.f32 %v5173_v53, %v2825_v18  ;;  %v2826_v13 = vmax.f32 %v2746_v2, 0.0  ;;  %v3767_v4 = vadd.f32 %v3766_v56, %v3765_v27  ;;  %v3768_v42 = vpop.f32.mrb[150].mxu0  ;;  %v2750_v46 = vpop.f32.mrb[148].mxu1 }
 0x232   : > { %v3769_v24 = vpop.f32.mrb[151].mxu0  ;;  %v3958_v47 = vpop.f32.mrb[149].mxu1 }
 0x233   : > { %v2891_v1 = vmul.f32 %v2861_v15, %v5005_v19  ;;  %v2862_v3 = vmul.f32 %v5173_v53, %v2826_v13  ;;  %v3770_v37 = vadd.f32 %v3769_v24, %v3768_v42  ;;  %v2598_v6 = vadd.f32 %v3767_v4, %v2445_v36  ;;  %v2753_v58 = vpop.f32.mrb[150].mxu1 }
 0x234   : > { %v3959_v31 = vpop.f32.mrb[151].mxu1  ;;  %v2469_v47 = vadd.f32 %v5164_v8, %v5080_v44  ;;  %v5391_v44 = vld [vmem:[#allocation4_spill] sm:$0xff] }
 0x235   : > { %3346 = vst.msk [vmem:[%s4891_s17 + $0x150] sm:$0xff] %vm1840_vm1, %v2891_v1  ;;  %v2892_v26 = vmul.f32 %v2862_v3, %v5010_v28  ;;  %v2751_v38 = vadd.f32 %v2750_v46, %v2598_v6  ;;  %v2601_v0 = vadd.f32 %v3770_v37, %v2448_v40  ;;  %v2456_v28 = vadd.f32 %v5164_v8, %v5050_v16 }
 0x236   : > { %v2472_v31 = vadd.f32 %v5164_v8, %v5086_v59 }
 0x237   : > { %3347 = vst.msk [vmem:[%s4891_s17 + $0x158] sm:$0xff] %vm1840_vm1, %v2892_v26  ;;  %v2827_v41 = vmax.f32 %v2751_v38, 0.0  ;;  %v2754_v10 = vadd.f32 %v2753_v58, %v2601_v0  ;;  %v3771_v63 = vpop.f32.mrb[152].mxu0 }
 0x238   : > { %v3772_v19 = vpop.f32.mrb[153].mxu0 }
 0x239   : > { %v2863_v57 = vmul.f32 %v5173_v53, %v2827_v41  ;;  %v2828_v48 = vmax.f32 %v2754_v10, 0.0  ;;  %v3773_v39 = vadd.f32 %v3772_v19, %v3771_v63  ;;  %v3774_v43 = vpop.f32.mrb[154].mxu0  ;;  %v2758_v20 = vpop.f32.mrb[152].mxu1  ;;  %v5390_v63 = vld [vmem:[#allocation3_spill] sm:$0xff] }
 0x23a   : > { %v3775_v55 = vpop.f32.mrb[155].mxu0  ;;  %v3962_v25 = vpop.f32.mrb[153].mxu1 }
 0x23b   : > { %v2893_v50 = vmul.f32 %v2863_v57, %v5023_v11  ;;  %v2864_v9 = vmul.f32 %v5173_v53, %v2828_v48  ;;  %v3776_v60 = vadd.f32 %v3775_v55, %v3774_v43  ;;  %v2606_v17 = vadd.f32 %v3773_v39, %v2453_v45  ;;  %v2761_v51 = vpop.f32.mrb[154].mxu1 }
 0x23c   : > { %v3963_v12 = vpop.f32.mrb[155].mxu1  ;;  %v2477_v25 = vadd.f32 %v5164_v8, %v5098_v61  ;;  %v5393_v61 = vld [vmem:[#allocation6_spill] sm:$0xff] }
 0x23d   : > { %3348 = vst.msk [vmem:[%s4891_s17 + $0x160] sm:$0xff] %vm1840_vm1, %v2893_v50  ;;  %v2894_v35 = vmul.f32 %v2864_v9, %v5028_v7  ;;  %v2759_v29 = vadd.f32 %v2758_v20, %v2606_v17  ;;  %v2609_v49 = vadd.f32 %v3776_v60, %v2456_v28  ;;  %v2464_v7 = vadd.f32 %v5164_v8, %v5068_v34 }
 0x23e   : > { %v2480_v12 = vadd.f32 %v5164_v8, %v5104_v23 }
 0x23f   : > { %3349 = vst.msk [vmem:[%s4891_s17 + $0x168] sm:$0xff] %vm1840_vm1, %v2894_v35  ;;  %v2829_v16 = vmax.f32 %v2759_v29, 0.0  ;;  %v2762_v22 = vadd.f32 %v2761_v51, %v2609_v49  ;;  %v3777_v54 = vpop.f32.mrb[156].mxu0 }
 0x240   : > { %v3778_v11 = vpop.f32.mrb[157].mxu0 }
 0x241   : > { %v2865_v14 = vmul.f32 %v5173_v53, %v2829_v16  ;;  %v2830_v62 = vmax.f32 %v2762_v22, 0.0  ;;  %v3779_v18 = vadd.f32 %v3778_v11, %v3777_v54  ;;  %v3780_v2 = vpop.f32.mrb[158].mxu0  ;;  %v2766_v56 = vpop.f32.mrb[156].mxu1  ;;  %v5392_v54 = vld [vmem:[#allocation5_spill] sm:$0xff] }
 0x242   : > { %v3781_v27 = vpop.f32.mrb[159].mxu0  ;;  %v3966_v42 = vpop.f32.mrb[157].mxu1 }
 0x243   : > { %v2895_v36 = vmul.f32 %v2865_v14, %v5041_v21  ;;  %v2866_v15 = vmul.f32 %v5173_v53, %v2830_v62  ;;  %v3782_v13 = vadd.f32 %v3781_v27, %v3780_v2  ;;  %v2614_v4 = vadd.f32 %v3779_v18, %v2461_v32  ;;  %v2769_v40 = vpop.f32.mrb[158].mxu1 }
 0x244   : > { %v3967_v3 = vpop.f32.mrb[159].mxu1  ;;  %v2485_v42 = vadd.f32 %v5164_v8, %v5116_v30  ;;  %v5395_v30 = vld [vmem:[#allocation8_spill] sm:$0xff] }
 0x245   : > { %3350 = vst.msk [vmem:[%s4891_s17 + $0x170] sm:$0xff] %vm1840_vm1, %v2895_v36  ;;  %v2896_v24 = vmul.f32 %v2866_v15, %v5389_v33  ;;  %v2767_v46 = vadd.f32 %v2766_v56, %v2614_v4  ;;  %v2617_v1 = vadd.f32 %v3782_v13, %v2464_v7 }
 0x247   : > { %3351 = vst.msk [vmem:[%s4891_s17 + $0x178] sm:$0xff] %vm1840_vm1, %v2896_v24  ;;  %v2831_v34 = vmax.f32 %v2767_v46, 0.0  ;;  %v2770_v37 = vadd.f32 %v2769_v40, %v2617_v1  ;;  %v3783_v6 = vpop.f32.mrb[160].mxu0  ;;  %v2488_v1 = vadd.f32 %v5164_v8, %v5122_v52 }
 0x248   : > { %v3784_v21 = vpop.f32.mrb[161].mxu0 }
 0x249   : > { %v2867_v58 = vmul.f32 %v5173_v53, %v2831_v34  ;;  %v2832_v26 = vmax.f32 %v2770_v37, 0.0  ;;  %v3785_v38 = vadd.f32 %v3784_v21, %v3783_v6  ;;  %v3786_v0 = vpop.f32.mrb[162].mxu0  ;;  %v2774_v10 = vpop.f32.mrb[160].mxu1  ;;  %v5394_v37 = vld [vmem:[#allocation7_spill] sm:$0xff] }
 0x24a   : > { %v3787_v41 = vpop.f32.mrb[163].mxu0  ;;  %v3970_v39 = vpop.f32.mrb[161].mxu1 }
 0x24b   : > { %v2897_v19 = vmul.f32 %v2867_v58, %v5390_v63  ;;  %v2868_v45 = vmul.f32 %v5173_v53, %v2832_v26  ;;  %v3788_v57 = vadd.f32 %v3787_v41, %v3786_v0  ;;  %v2622_v48 = vadd.f32 %v3785_v38, %v2469_v47  ;;  %v2777_v43 = vpop.f32.mrb[162].mxu1 }
 0x24c   : > { %v3971_v50 = vpop.f32.mrb[163].mxu1 }
 0x24d   : > { %3352 = vst.msk [vmem:[%s4891_s17 + $0x180] sm:$0xff] %vm1840_vm1, %v2897_v19  ;;  %v2898_v28 = vmul.f32 %v2868_v45, %v5391_v44  ;;  %v2775_v55 = vadd.f32 %v2774_v10, %v2622_v48  ;;  %v2625_v20 = vadd.f32 %v3788_v57, %v2472_v31  ;;  %v2493_v57 = vadd.f32 %v5164_v8, %v5134_v5  ;;  %v5398_v5 = vld [vmem:[#allocation10_spill] sm:$0xff] }
 0x24f   : > { %3353 = vst.msk [vmem:[%s4891_s17 + $0x188] sm:$0xff] %vm1840_vm1, %v2898_v28  ;;  %v2833_v59 = vmax.f32 %v2775_v55, 0.0  ;;  %v2778_v9 = vadd.f32 %v2777_v43, %v2625_v20  ;;  %v3789_v60 = vpop.f32.mrb[164].mxu0  ;;  %v5396_v28 = vld [vmem:[#allocation13_spill] sm:$0xff] }
 0x250   : > { %v3790_v17 = vpop.f32.mrb[165].mxu0  ;;  %v2496_v55 = vadd.f32 %v5164_v8, %v5396_v28 }
 0x251   : > { %v2869_v51 = vmul.f32 %v5173_v53, %v2833_v59  ;;  %v2834_v35 = vmax.f32 %v2778_v9, 0.0  ;;  %v3791_v29 = vadd.f32 %v3790_v17, %v3789_v60  ;;  %v3792_v49 = vpop.f32.mrb[166].mxu0  ;;  %v2782_v22 = vpop.f32.mrb[164].mxu1  ;;  %v5397_v59 = vld [vmem:[#allocation9_spill] sm:$0xff] }
 0x252   : > { %v3793_v16 = vpop.f32.mrb[167].mxu0  ;;  %v3974_v18 = vpop.f32.mrb[165].mxu1 }
 0x253   : > { %v2899_v11 = vmul.f32 %v2869_v51, %v5392_v54  ;;  %v2870_v32 = vmul.f32 %v5173_v53, %v2834_v35  ;;  %v3794_v14 = vadd.f32 %v3793_v16, %v3792_v49  ;;  %v2630_v62 = vadd.f32 %v3791_v29, %v2477_v25  ;;  %v2785_v2 = vpop.f32.mrb[166].mxu1 }
 0x254   : > { %v3975_v36 = vpop.f32.mrb[167].mxu1 }
 0x255   : > { %3354 = vst.msk [vmem:[%s4891_s17 + $0x190] sm:$0xff] %vm1840_vm1, %v2899_v11  ;;  %v2900_v7 = vmul.f32 %v2870_v32, %v5393_v61  ;;  %v2783_v27 = vadd.f32 %v2782_v22, %v2630_v62  ;;  %v2633_v56 = vadd.f32 %v3794_v14, %v2480_v12  ;;  %v5399_v14 = vld [vmem:[#allocation15_spill] sm:$0xff] }
 0x256   : > { %v2501_v62 = vadd.f32 %v5164_v8, %v5399_v14 }
 0x257   : > { %3355 = vst.msk [vmem:[%s4891_s17 + $0x198] sm:$0xff] %vm1840_vm1, %v2900_v7  ;;  %v2835_v23 = vmax.f32 %v2783_v27, 0.0  ;;  %v2786_v15 = vadd.f32 %v2785_v2, %v2633_v56  ;;  %v3795_v13 = vpop.f32.mrb[168].mxu0  ;;  %v5400_v27 = vld [vmem:[#allocation17_spill] sm:$0xff] }
 0x258   : > { %v3796_v4 = vpop.f32.mrb[169].mxu0  ;;  %v2504_v56 = vadd.f32 %v5164_v8, %v5400_v27 }
 0x259   : > { %v2871_v40 = vmul.f32 %v5173_v53, %v2835_v23  ;;  %v2836_v33 = vmax.f32 %v2786_v15, 0.0  ;;  %v3797_v24 = vadd.f32 %v3796_v4, %v3795_v13  ;;  %v3798_v46 = vpop.f32.mrb[170].mxu0  ;;  %v2790_v34 = vpop.f32.mrb[168].mxu1  ;;  %v5401_v15 = vld [vmem:[#allocation11_spill] sm:$0xff] }
 0x25a   : > { %v3799_v3 = vpop.f32.mrb[171].mxu0  ;;  %v3978_v26 = vpop.f32.mrb[169].mxu1 }
 0x25b   : > { %v2901_v6 = vmul.f32 %v2871_v40, %v5394_v37  ;;  %v2872_v21 = vmul.f32 %v5173_v53, %v2836_v33  ;;  %v3800_v47 = vadd.f32 %v3799_v3, %v3798_v46  ;;  %v2638_v58 = vadd.f32 %v3797_v24, %v2485_v42  ;;  %v2793_v38 = vpop.f32.mrb[170].mxu1  ;;  %v5402_v46 = vld [vmem:[#allocation12_spill] sm:$0xff] }
 0x25c   : > { %v3979_v10 = vpop.f32.mrb[171].mxu1 }
 0x25d   : > { %3356 = vst.msk [vmem:[%s4891_s17 + $0x1a0] sm:$0xff] %vm1840_vm1, %v2901_v6  ;;  %v2902_v0 = vmul.f32 %v2872_v21, %v5395_v30  ;;  %v2791_v31 = vadd.f32 %v2790_v34, %v2638_v58  ;;  %v2641_v41 = vadd.f32 %v3800_v47, %v2488_v1  ;;  %v5403_v58 = vld [vmem:[#allocation14_spill] sm:$0xff]  ;;  %v5404_v30 = vld [vmem:[#allocation16_spill] sm:$0xff] }
 0x25f   : > { %3357 = vst.msk [vmem:[%s4891_s17 + $0x1a8] sm:$0xff] %vm1840_vm1, %v2902_v0  ;;  %v2837_v52 = vmax.f32 %v2791_v31, 0.0  ;;  %v2794_v63 = vadd.f32 %v2793_v38, %v2641_v41  ;;  %v3801_v19 = vpop.f32.mrb[172].mxu0 }
 0x260   : > { %v3802_v45 = vpop.f32.mrb[173].mxu0 }
 0x261   : > { %v2873_v48 = vmul.f32 %v5173_v53, %v2837_v52  ;;  %v2838_v39 = vmax.f32 %v2794_v63, 0.0  ;;  %v3803_v43 = vadd.f32 %v3802_v45, %v3801_v19  ;;  %v3804_v44 = vpop.f32.mrb[174].mxu0  ;;  %v2798_v50 = vpop.f32.mrb[172].mxu1 }
 0x262   : > { %v3805_v20 = vpop.f32.mrb[175].mxu0  ;;  %v3982_v51 = vpop.f32.mrb[173].mxu1 }
 0x263   : > { %v2903_v9 = vmul.f32 %v2873_v48, %v5397_v59  ;;  %v2874_v60 = vmul.f32 %v5173_v53, %v2838_v39  ;;  %v3806_v17 = vadd.f32 %v3805_v20, %v3804_v44  ;;  %v2646_v25 = vadd.f32 %v3803_v43, %v2493_v57  ;;  %v2801_v35 = vpop.f32.mrb[174].mxu1 }
 0x264   : > { %v3983_v16 = vpop.f32.mrb[175].mxu1 }
 0x265   : > { %3358 = vst.msk [vmem:[%s4891_s17 + $0x1b0] sm:$0xff] %vm1840_vm1, %v2903_v9  ;;  %v2904_v29 = vmul.f32 %v2874_v60, %v5398_v5  ;;  %v2799_v49 = vadd.f32 %v2798_v50, %v2646_v25  ;;  %v2649_v12 = vadd.f32 %v3806_v17, %v2496_v55 }
 0x267   : > { %3359 = vst.msk [vmem:[%s4891_s17 + $0x1b8] sm:$0xff] %vm1840_vm1, %v2904_v29  ;;  %v2839_v22 = vmax.f32 %v2799_v49, 0.0  ;;  %v2802_v54 = vadd.f32 %v2801_v35, %v2649_v12  ;;  %v3807_v11 = vpop.f32.mrb[176].mxu0 }
 0x268   : > { %v3808_v32 = vpop.f32.mrb[177].mxu0 }
 0x269   : > { %v2875_v18 = vmul.f32 %v5173_v53, %v2839_v22  ;;  %v2840_v2 = vmax.f32 %v2802_v54, 0.0  ;;  %v3809_v61 = vadd.f32 %v3808_v32, %v3807_v11  ;;  %v3810_v7 = vpop.f32.mrb[178].mxu0  ;;  %v2806_v23 = vpop.f32.mrb[176].mxu1 }
 0x26a   : > { %v3811_v36 = vpop.f32.mrb[179].mxu0  ;;  %v3986_v33 = vpop.f32.mrb[177].mxu1 }
 0x26b   : > { %v2905_v13 = vmul.f32 %v2875_v18, %v5401_v15  ;;  %v2876_v4 = vmul.f32 %v5173_v53, %v2840_v2  ;;  %v3812_v42 = vadd.f32 %v3811_v36, %v3810_v7  ;;  %v2654_v40 = vadd.f32 %v3809_v61, %v2501_v62  ;;  %v2809_v24 = vpop.f32.mrb[178].mxu1 }
 0x26c   : > { %v3987_v37 = vpop.f32.mrb[179].mxu1 }
 0x26d   : > { %3360 = vst.msk [vmem:[%s4891_s17 + $0x1c0] sm:$0xff] %vm1840_vm1, %v2905_v13  ;;  %v2906_v1 = vmul.f32 %v2876_v4, %v5402_v46  ;;  %v2807_v3 = vadd.f32 %v2806_v23, %v2654_v40  ;;  %v2657_v34 = vadd.f32 %v3812_v42, %v2504_v56 }
 0x26f   : > { %3361 = vst.msk [vmem:[%s4891_s17 + $0x1c8] sm:$0xff] %vm1840_vm1, %v2906_v1  ;;  %v2841_v8 = vmax.f32 %v2807_v3, 0.0  ;;  %v2810_v6 = vadd.f32 %v2809_v24, %v2657_v34 }
 0x271   : > { %v2877_v21 = vmul.f32 %v5173_v53, %v2841_v8  ;;  %v2842_v47 = vmax.f32 %v2810_v6, 0.0 }
 0x273   : > { %v2907_v26 = vmul.f32 %v2877_v21, %v5403_v58  ;;  %v2878_v38 = vmul.f32 %v5173_v53, %v2842_v47 }
 0x275   : > { %3362 = vst.msk [vmem:[%s4891_s17 + $0x1d0] sm:$0xff] %vm1840_vm1, %v2907_v26  ;;  %v2908_v0 = vmul.f32 %v2878_v38, %v5404_v30 }
 0x277   : > { %3363 = vst.msk [vmem:[%s4891_s17 + $0x1d8] sm:$0xff] %vm1840_vm1, %v2908_v0 }
 0x278 PF: > { %s15_s18 = sadd.s32 1, %s4262_s18  }
 0x279   : > { %p12_p4 = scmp.ge.s32.totalorder %s15_s18, 5  }
 0x27b   :  { %14 = sbr.rel (!%p12_p4) target bundleno = 1 (0x1), region = 85 }

// kernel: tile.22
= control target key start
LH: loop header
LB: loop body
LE: loop exit
PB: predicated region body
PF: predicated region fallthrough
CT: control target
= control target key end

     0   :  { %s34_s0 = inlined_call_operand.vmem [shape: f32[232], index: 0, kind: input, shape index: {}]   ;;  %s35_s1 = inlined_call_operand.vmem [shape: f32[2,232], index: 1, kind: output, shape index: {}]  }
   0x1   :  { %v4_v0 = vld [vmem:[%s34_s0] ss:$0 sm:$0xff]  ;;  %v10_v1 = vld [vmem:[%s34_s0 + $0x1] ss:$0 sm:$0xff] }
   0x2   :  { %5 = vst [vmem:[%s35_s1] sm:$0x3] %v4_v0  ;;  %11 = vst [vmem:[%s35_s1 + $0x2] sm:$0x3] %v10_v1 }

// kernel: tile.0
= control target key start
LH: loop header
LB: loop body
LE: loop exit
PB: predicated region body
PF: predicated region fallthrough
CT: control target
= control target key end

     0   :  { %s1362_s10 = smov 125   ;;  %s1363_s11 = smov 126   ;;  %vm11_vm0 = vcmask 7168   ;;  %s2539_s0 = inlined_call_operand.vmem [shape: f32[2,232], index: 0, kind: input, shape index: {}]   ;;  %s2540_s1 = inlined_call_operand.vmem [shape: f32[1,1,464,1], index: 1, kind: output, shape index: {}]  }
   0x1   :  { %v1002_v0 = vld [vmem:[%s2539_s0 + $0x2] sm:$0x3]  ;;  %v8_v1 = vld [vmem:[%s2539_s0] sm:$0x3]  ;;  %s1361_s0 = smov 127   ;;  %s1364_s12 = smov 124  }
   0x2   :  { %7 = vst [vmem:[#allocation0 + $0x8] sm:$0x3] %v1002_v0  ;;  %9 = vst [vmem:[#allocation0] sm:$0x3] %v8_v1  ;;  %s1365_s13 = smov 123   ;;  %s1366_s14 = smov 122  }
   0x3   :  { %s1367_s15 = smov 121   ;;  %s1368_s16 = smov 120  }
   0x4   :  { %s1369_s17 = smov 119   ;;  %s1370_s18 = smov 118  }
   0x5   :  { %s1371_s19 = smov 117   ;;  %s1372_s20 = smov 116  }
   0x6   :  { %s1373_s21 = smov 115   ;;  %s1374_s22 = smov 114  }
   0x7   :  { %s1375_s23 = smov 113   ;;  %s1376_s24 = smov 112  }
   0x8   :  { %s1377_s25 = smov 111   ;;  %s1378_s26 = smov 110  }
   0x9   :  { %v1504_v2 = vld.sshfl [vmem:[#allocation0] sm:$0xff pattern:$0x99999810]   ;;  %s1379_s27 = smov 109   ;;  %s1380_s28 = smov 108  }
   0xa   :  { %19 = vrot.lane.b32.xlu0 %v1504_v2, %s1361_s0  ;;  %35 = vrot.lane.b32.xlu1 %v1504_v2, %s1362_s10  ;;  %s1381_s29 = smov 107   ;;  %s1382_s30 = smov 106   ;;  %v1528_v3 = vld.sshfl [vmem:[#allocation0] sm:$0xff pattern:$0x88888901]  }
   0xb   :  { %s1383_s2 = smov 105   ;;  %s1384_s3 = smov 104   ;;  %v842_v48 = vld [vmem:[#allocation0] sm:$0x3]  }
   0xc   :  { %s1385_s4 = smov 103   ;;  %s1386_s5 = smov 102   ;;  %v848_v51 = vld [vmem:[#allocation0] sm:$0x3]  }
   0xd   :  { %s1387_s6 = smov 101   ;;  %s1388_s7 = smov 100   ;;  %v854_v52 = vld [vmem:[#allocation0] sm:$0x3]  }
   0xe   :  { %27 = vrot.lane.b32.xlu0 %v1504_v2, %s1363_s11  ;;  %43 = vrot.lane.b32.xlu1 %v1504_v2, %s1364_s12  ;;  %s1389_s8 = smov 99   ;;  %s1390_s9 = smov 98   ;;  %v860_v55 = vld [vmem:[#allocation0] sm:$0x3]  }
   0xf   :  { %s1391_s0 = smov 97   ;;  %s1392_s10 = smov 96   ;;  %v866_v56 = vld [vmem:[#allocation0] sm:$0x3]  }
  0x10   :  { %s1393_s11 = smov 95   ;;  %s1394_s12 = smov 94   ;;  %v872_v59 = vld [vmem:[#allocation0] sm:$0x3]  }
  0x11   :  { %v878_v60 = vld [vmem:[#allocation0] sm:$0x3]  }
  0x12   :  { %51 = vrot.lane.b32.xlu0 %v1504_v2, %s1365_s13  ;;  %59 = vrot.lane.b32.xlu1 %v1504_v2, %s1366_s14  ;;  %s1395_s13 = smov 93   ;;  %s1396_s14 = smov 92   ;;  %v884_v63 = vld [vmem:[#allocation0] sm:$0x3]  }
  0x13   :  { %v890_v0 = vld [vmem:[#allocation0] sm:$0x3]  }
  0x16   :  { %67 = vrot.lane.b32.xlu0 %v1504_v2, %s1367_s15  ;;  %75 = vrot.lane.b32.xlu1 %v1504_v2, %s1368_s16  ;;  %s1397_s15 = smov 91   ;;  %s1398_s16 = smov 90  }
  0x1a   :  { %83 = vrot.lane.b32.xlu0 %v1504_v2, %s1369_s17  ;;  %91 = vrot.lane.b32.xlu1 %v1504_v2, %s1370_s18  ;;  %s1399_s17 = smov 89   ;;  %s1400_s18 = smov 88  }
  0x1e   :  { %99 = vrot.lane.b32.xlu0 %v1504_v2, %s1371_s19  ;;  %107 = vrot.lane.b32.xlu1 %v1504_v2, %s1372_s20  ;;  %s1401_s19 = smov 87   ;;  %s1402_s20 = smov 86  }
  0x22   :  { %115 = vrot.lane.b32.xlu0 %v1504_v2, %s1373_s21  ;;  %123 = vrot.lane.b32.xlu1 %v1504_v2, %s1374_s22  ;;  %s1403_s21 = smov 85   ;;  %s1404_s22 = smov 84  }
  0x26   :  { %131 = vrot.lane.b32.xlu0 %v1504_v2, %s1375_s23  ;;  %139 = vrot.lane.b32.xlu1 %v1504_v2, %s1376_s24  ;;  %s1405_s23 = smov 83   ;;  %s1406_s24 = smov 82  }
  0x2a   :  { %147 = vrot.lane.b32.xlu0 %v1504_v2, %s1377_s25  ;;  %155 = vrot.lane.b32.xlu1 %v1504_v2, %s1378_s26  ;;  %s1407_s25 = smov 81   ;;  %s1408_s26 = smov 80  }
  0x2e   :  { %163 = vrot.lane.b32.xlu0 %v1504_v2, %s1379_s27  ;;  %171 = vrot.lane.b32.xlu1 %v1504_v2, %s1380_s28  ;;  %s1409_s27 = smov 79   ;;  %s1410_s28 = smov 78  }
  0x32   :  { %179 = vrot.lane.b32.xlu0 %v1504_v2, %s1381_s29  ;;  %187 = vrot.lane.b32.xlu1 %v1504_v2, %s1382_s30  ;;  %s1411_s29 = smov 77   ;;  %s1412_s30 = smov 76  }
  0x36   :  { %195 = vrot.lane.b32.xlu0 %v1504_v2, %s1383_s2  ;;  %203 = vrot.lane.b32.xlu1 %v1528_v3, %s1384_s3  ;;  %s1413_s2 = smov 75   ;;  %s1414_s3 = smov 74  }
  0x3a   :  { %211 = vrot.lane.b32.xlu0 %v1528_v3, %s1385_s4  ;;  %219 = vrot.lane.b32.xlu1 %v1528_v3, %s1386_s5  ;;  %s1415_s4 = smov 73   ;;  %s1416_s5 = smov 72  }
  0x3e   :  { %227 = vrot.lane.b32.xlu0 %v1528_v3, %s1387_s6  ;;  %235 = vrot.lane.b32.xlu1 %v1528_v3, %s1388_s7  ;;  %s1417_s6 = smov 71   ;;  %s1418_s7 = smov 70  }
  0x42   :  { %243 = vrot.lane.b32.xlu0 %v1528_v3, %s1389_s8  ;;  %251 = vrot.lane.b32.xlu1 %v1528_v3, %s1390_s9  ;;  %s1478_s8 = smov 10   ;;  %s947_s9 = smov 3 }
  0x46   :  { %259 = vrot.lane.b32.xlu0 %v1528_v3, %s1391_s0  ;;  %267 = vrot.lane.b32.xlu1 %v1504_v2, %s1392_s10  ;;  %s955_s0 = smov 3 }
  0x4a   :  { %275 = vrot.lane.b32.xlu0 %v1504_v2, %s1393_s11  ;;  %283 = vrot.lane.b32.xlu1 %v1504_v2, %s1394_s12 }
  0x4e   :  { %291 = vrot.lane.b32.xlu0 %v1504_v2, %s1395_s13  ;;  %299 = vrot.lane.b32.xlu1 %v1504_v2, %s1396_s14 }
  0x52   :  { %307 = vrot.lane.b32.xlu0 %v1504_v2, %s1397_s15  ;;  %315 = vrot.lane.b32.xlu1 %v1504_v2, %s1398_s16  ;;  %s1419_s15 = smov 69   ;;  %s1420_s16 = smov 68  }
  0x56   :  { %323 = vrot.lane.b32.xlu0 %v1504_v2, %s1399_s17  ;;  %331 = vrot.lane.b32.xlu1 %v1504_v2, %s1400_s18  ;;  %s1479_s18 = smov 9   ;;  %s1484_s17 = smov 4  }
  0x5a   :  { %339 = vrot.lane.b32.xlu0 %v1504_v2, %s1401_s19  ;;  %347 = vrot.lane.b32.xlu1 %v1504_v2, %s1402_s20  ;;  %s1480_s19 = smov 8   ;;  %s963_s20 = smov 3 }
  0x5e   :  { %355 = vrot.lane.b32.xlu0 %v1504_v2, %s1403_s21  ;;  %363 = vrot.lane.b32.xlu1 %v1504_v2, %s1404_s22  ;;  %s971_s21 = smov 3 }
  0x62   :  { %371 = vrot.lane.b32.xlu0 %v1504_v2, %s1405_s23  ;;  %379 = vrot.lane.b32.xlu1 %v1504_v2, %s1406_s24 }
  0x66   :  { %387 = vrot.lane.b32.xlu0 %v1504_v2, %s1407_s25  ;;  %395 = vrot.lane.b32.xlu1 %v1504_v2, %s1408_s26  ;;  %s1421_s25 = smov 67   ;;  %s1422_s26 = smov 66  }
  0x6a   :  { %403 = vrot.lane.b32.xlu0 %v1504_v2, %s1409_s27  ;;  %411 = vrot.lane.b32.xlu1 %v1504_v2, %s1410_s28  ;;  %s939_s27 = smov 3  ;;  %s1486_s28 = smov 2  }
  0x6e   :  { %419 = vrot.lane.b32.xlu0 %v1504_v2, %s1411_s29  ;;  %427 = vrot.lane.b32.xlu1 %v1504_v2, %s1412_s30 }
  0x72   :  { %435 = vrot.lane.b32.xlu0 %v1504_v2, %s1413_s2  ;;  %443 = vrot.lane.b32.xlu1 %v1504_v2, %s1414_s3 }
  0x76   :  { %451 = vrot.lane.b32.xlu0 %v1504_v2, %s1415_s4  ;;  %459 = vrot.lane.b32.xlu1 %v1528_v3, %s1416_s5  ;;  %s1481_s5 = smov 7  }
  0x7a   :  { %467 = vrot.lane.b32.xlu0 %v1528_v3, %s1417_s6  ;;  %475 = vrot.lane.b32.xlu1 %v1528_v3, %s1418_s7  ;;  %s1423_s6 = smov 65   ;;  %s1424_s7 = smov 64  }
  0x7c   :  { %v20_v4 = vpop.permute.xlu0 %19   ;;  %v36_v5 = vpop.permute.xlu1 %35  }
  0x7d   :  { %1004 = vst.msk [vmem:[%s2540_s1 + $0x1] ss:$232 sm:$0x3] %vm11_vm0, %v20_v4   ;;  %1005 = vst.msk [vmem:[%s2540_s1 - $0x14f] ss:$232 sm:$0xc] %vm11_vm0, %v20_v4  }
  0x7e   :  { %1008 = vst.msk [vmem:[%s2540_s1 + $0x3] ss:$232 sm:$0x3] %vm11_vm0, %v36_v5   ;;  %1009 = vst.msk [vmem:[%s2540_s1 - $0x14d] ss:$232 sm:$0xc] %vm11_vm0, %v36_v5   ;;  %483 = vrot.lane.b32.xlu0 %v1528_v3, %s1419_s15  ;;  %491 = vrot.lane.b32.xlu1 %v1528_v3, %s1420_s16 }
  0x7f   :  { %s1425_s15 = smov 63   ;;  %s1426_s16 = smov 62   ;;  %v902_v4 = vld [vmem:[#allocation0] sm:$0x3]  }
  0x80   :  { %v28_v6 = vpop.permute.xlu0 %27   ;;  %v44_v7 = vpop.permute.xlu1 %43  }
  0x81   :  { %1006 = vst.msk [vmem:[%s2540_s1 + $0x2] ss:$232 sm:$0x3] %vm11_vm0, %v28_v6   ;;  %1007 = vst.msk [vmem:[%s2540_s1 - $0x14e] ss:$232 sm:$0xc] %vm11_vm0, %v28_v6  }
  0x82   :  { %1010 = vst.msk [vmem:[%s2540_s1 + $0x4] ss:$232 sm:$0x3] %vm11_vm0, %v44_v7   ;;  %1011 = vst.msk [vmem:[%s2540_s1 - $0x14c] ss:$232 sm:$0xc] %vm11_vm0, %v44_v7   ;;  %499 = vrot.lane.b32.xlu0 %v1528_v3, %s1421_s25  ;;  %507 = vrot.lane.b32.xlu1 %v1528_v3, %s1422_s26 }
  0x83   :  { %s1427_s25 = smov 61   ;;  %s1428_s26 = smov 60   ;;  %v908_v7 = vld [vmem:[#allocation0] sm:$0x3]  }
  0x84   :  { %v52_v8 = vpop.permute.xlu0 %51   ;;  %v60_v9 = vpop.permute.xlu1 %59  }
  0x85   :  { %1012 = vst.msk [vmem:[%s2540_s1 + $0x5] ss:$232 sm:$0x3] %vm11_vm0, %v52_v8   ;;  %1013 = vst.msk [vmem:[%s2540_s1 - $0x14b] ss:$232 sm:$0xc] %vm11_vm0, %v52_v8  }
  0x86   :  { %1014 = vst.msk [vmem:[%s2540_s1 + $0x6] ss:$232 sm:$0x3] %vm11_vm0, %v60_v9   ;;  %1015 = vst.msk [vmem:[%s2540_s1 - $0x14a] ss:$232 sm:$0xc] %vm11_vm0, %v60_v9   ;;  %515 = vrot.lane.b32.xlu0 %v1528_v3, %s1423_s6  ;;  %523 = vrot.lane.b32.xlu1 %v1504_v2, %s1424_s7 }
  0x87   :  { %s1429_s6 = smov 59   ;;  %s1430_s7 = smov 58   ;;  %v914_v8 = vld [vmem:[#allocation0] sm:$0x3]  }
  0x88   :  { %v68_v10 = vpop.permute.xlu0 %67   ;;  %v76_v11 = vpop.permute.xlu1 %75  }
  0x89   :  { %1016 = vst.msk [vmem:[%s2540_s1 + $0x7] ss:$232 sm:$0x3] %vm11_vm0, %v68_v10   ;;  %1017 = vst.msk [vmem:[%s2540_s1 - $0x149] ss:$232 sm:$0xc] %vm11_vm0, %v68_v10  }
  0x8a   :  { %1018 = vst.msk [vmem:[%s2540_s1 + $0x8] ss:$232 sm:$0x3] %vm11_vm0, %v76_v11   ;;  %1019 = vst.msk [vmem:[%s2540_s1 - $0x148] ss:$232 sm:$0xc] %vm11_vm0, %v76_v11   ;;  %531 = vrot.lane.b32.xlu0 %v1504_v2, %s1425_s15  ;;  %539 = vrot.lane.b32.xlu1 %v1504_v2, %s1426_s16 }
  0x8b   :  { %s1431_s15 = smov 57   ;;  %s1432_s16 = smov 56   ;;  %v920_v11 = vld [vmem:[#allocation0] sm:$0x3]  }
  0x8c   :  { %v84_v12 = vpop.permute.xlu0 %83   ;;  %v92_v13 = vpop.permute.xlu1 %91  }
  0x8d   :  { %1020 = vst.msk [vmem:[%s2540_s1 + $0x9] ss:$232 sm:$0x3] %vm11_vm0, %v84_v12   ;;  %1021 = vst.msk [vmem:[%s2540_s1 - $0x147] ss:$232 sm:$0xc] %vm11_vm0, %v84_v12  }
  0x8e   :  { %1022 = vst.msk [vmem:[%s2540_s1 + $0xa] ss:$232 sm:$0x3] %vm11_vm0, %v92_v13   ;;  %1023 = vst.msk [vmem:[%s2540_s1 - $0x146] ss:$232 sm:$0xc] %vm11_vm0, %v92_v13   ;;  %547 = vrot.lane.b32.xlu0 %v1504_v2, %s1427_s25  ;;  %555 = vrot.lane.b32.xlu1 %v1504_v2, %s1428_s26 }
  0x8f   :  { %s1433_s25 = smov 55   ;;  %s1434_s26 = smov 54   ;;  %v926_v12 = vld [vmem:[#allocation0] sm:$0x3]  }
  0x90   :  { %v100_v14 = vpop.permute.xlu0 %99   ;;  %v108_v15 = vpop.permute.xlu1 %107  }
  0x91   :  { %1024 = vst.msk [vmem:[%s2540_s1 + $0xb] ss:$232 sm:$0x3] %vm11_vm0, %v100_v14   ;;  %1025 = vst.msk [vmem:[%s2540_s1 - $0x145] ss:$232 sm:$0xc] %vm11_vm0, %v100_v14  }
  0x92   :  { %1026 = vst.msk [vmem:[%s2540_s1 + $0xc] ss:$232 sm:$0x3] %vm11_vm0, %v108_v15   ;;  %1027 = vst.msk [vmem:[%s2540_s1 - $0x144] ss:$232 sm:$0xc] %vm11_vm0, %v108_v15   ;;  %563 = vrot.lane.b32.xlu0 %v1504_v2, %s1429_s6  ;;  %571 = vrot.lane.b32.xlu1 %v1504_v2, %s1430_s7 }
  0x93   :  { %s1435_s6 = smov 53   ;;  %s1436_s7 = smov 52   ;;  %v932_v15 = vld [vmem:[#allocation0] sm:$0x3]  }
  0x94   :  { %v116_v16 = vpop.permute.xlu0 %115   ;;  %v124_v17 = vpop.permute.xlu1 %123  }
  0x95   :  { %1028 = vst.msk [vmem:[%s2540_s1 + $0xd] ss:$232 sm:$0x3] %vm11_vm0, %v116_v16   ;;  %1029 = vst.msk [vmem:[%s2540_s1 - $0x143] ss:$232 sm:$0xc] %vm11_vm0, %v116_v16  }
  0x96   :  { %1030 = vst.msk [vmem:[%s2540_s1 + $0xe] ss:$232 sm:$0x3] %vm11_vm0, %v124_v17   ;;  %1031 = vst.msk [vmem:[%s2540_s1 - $0x142] ss:$232 sm:$0xc] %vm11_vm0, %v124_v17   ;;  %579 = vrot.lane.b32.xlu0 %v1504_v2, %s1431_s15  ;;  %587 = vrot.lane.b32.xlu1 %v1504_v2, %s1432_s16 }
  0x97   :  { %s1437_s15 = smov 51   ;;  %s1438_s16 = smov 50   ;;  %v940_v16 = vld [vmem:[#allocation0 + $0x1] ss:$-1 sm:%s939_s27]  }
  0x98   :  { %v132_v18 = vpop.permute.xlu0 %131   ;;  %v140_v19 = vpop.permute.xlu1 %139   ;;  %s1485_s27 = smov 3  }
  0x99   :  { %1032 = vst.msk [vmem:[%s2540_s1 + $0xf] ss:$232 sm:$0x3] %vm11_vm0, %v132_v18   ;;  %1033 = vst.msk [vmem:[%s2540_s1 - $0x141] ss:$232 sm:$0xc] %vm11_vm0, %v132_v18  }
  0x9a   :  { %1034 = vst.msk [vmem:[%s2540_s1 + $0x10] ss:$232 sm:$0x3] %vm11_vm0, %v140_v19   ;;  %1035 = vst.msk [vmem:[%s2540_s1 - $0x140] ss:$232 sm:$0xc] %vm11_vm0, %v140_v19   ;;  %595 = vrot.lane.b32.xlu0 %v1504_v2, %s1433_s25  ;;  %603 = vrot.lane.b32.xlu1 %v1504_v2, %s1434_s26 }
  0x9b   :  { %s1439_s25 = smov 49   ;;  %s1440_s26 = smov 48   ;;  %v948_v19 = vld [vmem:[#allocation0 + $0x1] ss:$-1 sm:%s947_s9]  }
  0x9c   :  { %v148_v20 = vpop.permute.xlu0 %147   ;;  %v156_v21 = vpop.permute.xlu1 %155  }
  0x9d   :  { %1036 = vst.msk [vmem:[%s2540_s1 + $0x11] ss:$232 sm:$0x3] %vm11_vm0, %v148_v20   ;;  %1037 = vst.msk [vmem:[%s2540_s1 - $0x13f] ss:$232 sm:$0xc] %vm11_vm0, %v148_v20  }
  0x9e   :  { %1038 = vst.msk [vmem:[%s2540_s1 + $0x12] ss:$232 sm:$0x3] %vm11_vm0, %v156_v21   ;;  %1039 = vst.msk [vmem:[%s2540_s1 - $0x13e] ss:$232 sm:$0xc] %vm11_vm0, %v156_v21   ;;  %611 = vrot.lane.b32.xlu0 %v1504_v2, %s1435_s6  ;;  %619 = vrot.lane.b32.xlu1 %v1504_v2, %s1436_s7 }
  0x9f   :  { %s1441_s6 = smov 47   ;;  %s1442_s7 = smov 46   ;;  %v956_v20 = vld [vmem:[#allocation0 + $0x1] ss:$-1 sm:%s955_s0]  }
  0xa0   :  { %v164_v22 = vpop.permute.xlu0 %163   ;;  %v172_v23 = vpop.permute.xlu1 %171  }
  0xa1   :  { %1040 = vst.msk [vmem:[%s2540_s1 + $0x13] ss:$232 sm:$0x3] %vm11_vm0, %v164_v22   ;;  %1041 = vst.msk [vmem:[%s2540_s1 - $0x13d] ss:$232 sm:$0xc] %vm11_vm0, %v164_v22  }
  0xa2   :  { %1042 = vst.msk [vmem:[%s2540_s1 + $0x14] ss:$232 sm:$0x3] %vm11_vm0, %v172_v23   ;;  %1043 = vst.msk [vmem:[%s2540_s1 - $0x13c] ss:$232 sm:$0xc] %vm11_vm0, %v172_v23   ;;  %627 = vrot.lane.b32.xlu0 %v1504_v2, %s1437_s15  ;;  %635 = vrot.lane.b32.xlu1 %v1504_v2, %s1438_s16 }
  0xa3   :  { %s1443_s15 = smov 45   ;;  %s1444_s16 = smov 44   ;;  %v10_v23 = vld [vmem:[#allocation0] sm:$0x3]  }
  0xa4   :  { %v180_v24 = vpop.permute.xlu0 %179   ;;  %v188_v25 = vpop.permute.xlu1 %187   ;;  %12 = vst.msk [vmem:[%s2540_s1] ss:$232 sm:$0x3] %vm11_vm0, %v10_v23  }
  0xa5   :  { %1044 = vst.msk [vmem:[%s2540_s1 + $0x15] ss:$232 sm:$0x3] %vm11_vm0, %v180_v24   ;;  %1045 = vst.msk [vmem:[%s2540_s1 - $0x13b] ss:$232 sm:$0xc] %vm11_vm0, %v180_v24  }
  0xa6   :  { %1046 = vst.msk [vmem:[%s2540_s1 + $0x16] ss:$232 sm:$0x3] %vm11_vm0, %v188_v25   ;;  %1047 = vst.msk [vmem:[%s2540_s1 - $0x13a] ss:$232 sm:$0xc] %vm11_vm0, %v188_v25   ;;  %643 = vrot.lane.b32.xlu0 %v1504_v2, %s1439_s25  ;;  %651 = vrot.lane.b32.xlu1 %v1504_v2, %s1440_s26 }
  0xa7   :  { %s1445_s25 = smov 43   ;;  %s1446_s26 = smov 42   ;;  %v14_v24 = vld [vmem:[#allocation0 + $0x8] sm:$0x3]   ;;  %v964_v25 = vld [vmem:[#allocation0 + $0x1] ss:$-1 sm:%s963_s20]  }
  0xa8   :  { %v196_v26 = vpop.permute.xlu0 %195   ;;  %v204_v27 = vpop.permute.xlu1 %203   ;;  %1003 = vst.msk [vmem:[%s2540_s1 + $0x80] ss:$232 sm:$0x3] %vm11_vm0, %v14_v24  }
  0xa9   :  { %1048 = vst.msk [vmem:[%s2540_s1 + $0x17] ss:$232 sm:$0x3] %vm11_vm0, %v196_v26   ;;  %1049 = vst.msk [vmem:[%s2540_s1 - $0x139] ss:$232 sm:$0xc] %vm11_vm0, %v196_v26  }
  0xaa   :  { %1050 = vst.msk [vmem:[%s2540_s1 + $0x100] ss:$-232 sm:$0x3] %vm11_vm0, %v204_v27   ;;  %1051 = vst.msk [vmem:[%s2540_s1 + $0x350] ss:$-232 sm:$0xc] %vm11_vm0, %v204_v27   ;;  %659 = vrot.lane.b32.xlu0 %v1504_v2, %s1441_s6  ;;  %667 = vrot.lane.b32.xlu1 %v1504_v2, %s1442_s7 }
  0xab   :  { %s1447_s6 = smov 41   ;;  %s1448_s7 = smov 40   ;;  %v972_v26 = vld [vmem:[#allocation0 + $0x1] ss:$-1 sm:%s971_s21]  }
  0xac   :  { %v212_v28 = vpop.permute.xlu0 %211   ;;  %v220_v29 = vpop.permute.xlu1 %219  }
  0xad   :  { %1052 = vst.msk [vmem:[%s2540_s1 + $0x101] ss:$-232 sm:$0x3] %vm11_vm0, %v212_v28   ;;  %1053 = vst.msk [vmem:[%s2540_s1 + $0x351] ss:$-232 sm:$0xc] %vm11_vm0, %v212_v28  }
  0xae   :  { %1054 = vst.msk [vmem:[%s2540_s1 + $0x102] ss:$-232 sm:$0x3] %vm11_vm0, %v220_v29   ;;  %1055 = vst.msk [vmem:[%s2540_s1 + $0x352] ss:$-232 sm:$0xc] %vm11_vm0, %v220_v29   ;;  %675 = vrot.lane.b32.xlu0 %v1504_v2, %s1443_s15  ;;  %683 = vrot.lane.b32.xlu1 %v1504_v2, %s1444_s16 }
  0xaf   :  { %s1449_s15 = smov 39   ;;  %s1450_s16 = smov 38  }
  0xb0   :  { %v228_v30 = vpop.permute.xlu0 %227   ;;  %v236_v31 = vpop.permute.xlu1 %235  }
  0xb1   :  { %1056 = vst.msk [vmem:[%s2540_s1 + $0x103] ss:$-232 sm:$0x3] %vm11_vm0, %v228_v30   ;;  %1057 = vst.msk [vmem:[%s2540_s1 + $0x353] ss:$-232 sm:$0xc] %vm11_vm0, %v228_v30  }
  0xb2   :  { %1058 = vst.msk [vmem:[%s2540_s1 + $0x104] ss:$-232 sm:$0x3] %vm11_vm0, %v236_v31   ;;  %1059 = vst.msk [vmem:[%s2540_s1 + $0x354] ss:$-232 sm:$0xc] %vm11_vm0, %v236_v31   ;;  %691 = vrot.lane.b32.xlu0 %v1504_v2, %s1445_s25  ;;  %699 = vrot.lane.b32.xlu1 %v1504_v2, %s1446_s26 }
  0xb3   :  { %s1451_s25 = smov 37   ;;  %s1452_s26 = smov 36  }
  0xb4   :  { %v244_v32 = vpop.permute.xlu0 %243   ;;  %v252_v33 = vpop.permute.xlu1 %251  }
  0xb5   :  { %1060 = vst.msk [vmem:[%s2540_s1 + $0x105] ss:$-232 sm:$0x3] %vm11_vm0, %v244_v32   ;;  %1061 = vst.msk [vmem:[%s2540_s1 + $0x355] ss:$-232 sm:$0xc] %vm11_vm0, %v244_v32  }
  0xb6   :  { %1062 = vst.msk [vmem:[%s2540_s1 + $0x106] ss:$-232 sm:$0x3] %vm11_vm0, %v252_v33   ;;  %1063 = vst.msk [vmem:[%s2540_s1 + $0x356] ss:$-232 sm:$0xc] %vm11_vm0, %v252_v33   ;;  %707 = vrot.lane.b32.xlu0 %v1504_v2, %s1447_s6  ;;  %715 = vrot.lane.b32.xlu1 %v1528_v3, %s1448_s7 }
  0xb7   :  { %s1453_s6 = smov 35   ;;  %s1454_s7 = smov 34  }
  0xb8   :  { %v260_v34 = vpop.permute.xlu0 %259   ;;  %v268_v35 = vpop.permute.xlu1 %267  }
  0xb9   :  { %1064 = vst.msk [vmem:[%s2540_s1 + $0x107] ss:$-232 sm:$0x3] %vm11_vm0, %v260_v34   ;;  %1065 = vst.msk [vmem:[%s2540_s1 + $0x357] ss:$-232 sm:$0xc] %vm11_vm0, %v260_v34  }
  0xba   :  { %1066 = vst.msk [vmem:[%s2540_s1 + $0x20] ss:$232 sm:$0x3] %vm11_vm0, %v268_v35   ;;  %1067 = vst.msk [vmem:[%s2540_s1 - $0x130] ss:$232 sm:$0xc] %vm11_vm0, %v268_v35   ;;  %723 = vrot.lane.b32.xlu0 %v1528_v3, %s1449_s15  ;;  %731 = vrot.lane.b32.xlu1 %v1528_v3, %s1450_s16 }
  0xbb   :  { %s1455_s15 = smov 33   ;;  %s1456_s16 = smov 32  }
  0xbc   :  { %v276_v36 = vpop.permute.xlu0 %275   ;;  %v284_v37 = vpop.permute.xlu1 %283  }
  0xbd   :  { %1068 = vst.msk [vmem:[%s2540_s1 + $0x21] ss:$232 sm:$0x3] %vm11_vm0, %v276_v36   ;;  %1069 = vst.msk [vmem:[%s2540_s1 - $0x12f] ss:$232 sm:$0xc] %vm11_vm0, %v276_v36  }
  0xbe   :  { %1070 = vst.msk [vmem:[%s2540_s1 + $0x22] ss:$232 sm:$0x3] %vm11_vm0, %v284_v37   ;;  %1071 = vst.msk [vmem:[%s2540_s1 - $0x12e] ss:$232 sm:$0xc] %vm11_vm0, %v284_v37   ;;  %739 = vrot.lane.b32.xlu0 %v1528_v3, %s1451_s25  ;;  %747 = vrot.lane.b32.xlu1 %v1528_v3, %s1452_s26 }
  0xbf   :  { %s1457_s25 = smov 31   ;;  %s1458_s26 = smov 30  }
  0xc0   :  { %v292_v38 = vpop.permute.xlu0 %291   ;;  %v300_v39 = vpop.permute.xlu1 %299  }
  0xc1   :  { %1072 = vst.msk [vmem:[%s2540_s1 + $0x23] ss:$232 sm:$0x3] %vm11_vm0, %v292_v38   ;;  %1073 = vst.msk [vmem:[%s2540_s1 - $0x12d] ss:$232 sm:$0xc] %vm11_vm0, %v292_v38  }
  0xc2   :  { %1074 = vst.msk [vmem:[%s2540_s1 + $0x24] ss:$232 sm:$0x3] %vm11_vm0, %v300_v39   ;;  %1075 = vst.msk [vmem:[%s2540_s1 - $0x12c] ss:$232 sm:$0xc] %vm11_vm0, %v300_v39   ;;  %755 = vrot.lane.b32.xlu0 %v1528_v3, %s1453_s6  ;;  %763 = vrot.lane.b32.xlu1 %v1528_v3, %s1454_s7 }
  0xc3   :  { %s1459_s6 = smov 29   ;;  %s1460_s7 = smov 28  }
  0xc4   :  { %v308_v40 = vpop.permute.xlu0 %307   ;;  %v316_v41 = vpop.permute.xlu1 %315  }
  0xc5   :  { %1076 = vst.msk [vmem:[%s2540_s1 + $0x25] ss:$232 sm:$0x3] %vm11_vm0, %v308_v40   ;;  %1077 = vst.msk [vmem:[%s2540_s1 - $0x12b] ss:$232 sm:$0xc] %vm11_vm0, %v308_v40  }
  0xc6   :  { %1078 = vst.msk [vmem:[%s2540_s1 + $0x26] ss:$232 sm:$0x3] %vm11_vm0, %v316_v41   ;;  %1079 = vst.msk [vmem:[%s2540_s1 - $0x12a] ss:$232 sm:$0xc] %vm11_vm0, %v316_v41   ;;  %771 = vrot.lane.b32.xlu0 %v1528_v3, %s1455_s15  ;;  %779 = vrot.lane.b32.xlu1 %v1504_v2, %s1456_s16 }
  0xc7   :  { %s1461_s15 = smov 27   ;;  %s1462_s16 = smov 26   ;;  %v896_v3 = vld [vmem:[#allocation0] sm:$0x3]  }
  0xc8   :  { %v324_v42 = vpop.permute.xlu0 %323   ;;  %v332_v43 = vpop.permute.xlu1 %331  }
  0xc9   :  { %1080 = vst.msk [vmem:[%s2540_s1 + $0x27] ss:$232 sm:$0x3] %vm11_vm0, %v324_v42   ;;  %1081 = vst.msk [vmem:[%s2540_s1 - $0x129] ss:$232 sm:$0xc] %vm11_vm0, %v324_v42  }
  0xca   :  { %1082 = vst.msk [vmem:[%s2540_s1 + $0x28] ss:$232 sm:$0x3] %vm11_vm0, %v332_v43   ;;  %1083 = vst.msk [vmem:[%s2540_s1 - $0x128] ss:$232 sm:$0xc] %vm11_vm0, %v332_v43   ;;  %787 = vrot.lane.b32.xlu0 %v1504_v2, %s1457_s25  ;;  %795 = vrot.lane.b32.xlu1 %v1504_v2, %s1458_s26 }
  0xcb   :  { %s1463_s25 = smov 25   ;;  %s1464_s26 = smov 24  }
  0xcc   :  { %v340_v44 = vpop.permute.xlu0 %339   ;;  %v348_v45 = vpop.permute.xlu1 %347  }
  0xcd   :  { %1084 = vst.msk [vmem:[%s2540_s1 + $0x29] ss:$232 sm:$0x3] %vm11_vm0, %v340_v44   ;;  %1085 = vst.msk [vmem:[%s2540_s1 - $0x127] ss:$232 sm:$0xc] %vm11_vm0, %v340_v44  }
  0xce   :  { %1086 = vst.msk [vmem:[%s2540_s1 + $0x2a] ss:$232 sm:$0x3] %vm11_vm0, %v348_v45   ;;  %1087 = vst.msk [vmem:[%s2540_s1 - $0x126] ss:$232 sm:$0xc] %vm11_vm0, %v348_v45   ;;  %803 = vrot.lane.b32.xlu0 %v1504_v2, %s1459_s6  ;;  %811 = vrot.lane.b32.xlu1 %v1504_v2, %s1460_s7 }
  0xcf   :  { %s1465_s6 = smov 23   ;;  %s1466_s7 = smov 22  }
  0xd0   :  { %v356_v46 = vpop.permute.xlu0 %355   ;;  %v364_v47 = vpop.permute.xlu1 %363  }
  0xd1   :  { %1088 = vst.msk [vmem:[%s2540_s1 + $0x2b] ss:$232 sm:$0x3] %vm11_vm0, %v356_v46   ;;  %1089 = vst.msk [vmem:[%s2540_s1 - $0x125] ss:$232 sm:$0xc] %vm11_vm0, %v356_v46  }
  0xd2   :  { %1090 = vst.msk [vmem:[%s2540_s1 + $0x2c] ss:$232 sm:$0x3] %vm11_vm0, %v364_v47   ;;  %1091 = vst.msk [vmem:[%s2540_s1 - $0x124] ss:$232 sm:$0xc] %vm11_vm0, %v364_v47   ;;  %819 = vrot.lane.b32.xlu0 %v1504_v2, %s1461_s15  ;;  %827 = vrot.lane.b32.xlu1 %v1504_v2, %s1462_s16 }
  0xd3   :  { %s1467_s15 = smov 21   ;;  %s1468_s16 = smov 20  }
  0xd4   :  { %v372_v49 = vpop.permute.xlu0 %371   ;;  %v380_v50 = vpop.permute.xlu1 %379  }
  0xd5   :  { %1092 = vst.msk [vmem:[%s2540_s1 + $0x2d] ss:$232 sm:$0x3] %vm11_vm0, %v372_v49   ;;  %1093 = vst.msk [vmem:[%s2540_s1 - $0x123] ss:$232 sm:$0xc] %vm11_vm0, %v372_v49  }
  0xd6   :  { %1094 = vst.msk [vmem:[%s2540_s1 + $0x2e] ss:$232 sm:$0x3] %vm11_vm0, %v380_v50   ;;  %1095 = vst.msk [vmem:[%s2540_s1 - $0x122] ss:$232 sm:$0xc] %vm11_vm0, %v380_v50   ;;  %835 = vrot.lane.b32.xlu0 %v1504_v2, %s1463_s25  ;;  %843 = vrot.lane.b32.xlu1 %v842_v48, %s1464_s26 }
  0xd7   :  { %s1469_s25 = smov 19   ;;  %s1470_s26 = smov 18  }
  0xd8   :  { %v388_v53 = vpop.permute.xlu0 %387   ;;  %v396_v54 = vpop.permute.xlu1 %395  }
  0xd9   :  { %1096 = vst.msk [vmem:[%s2540_s1 + $0x2f] ss:$232 sm:$0x3] %vm11_vm0, %v388_v53   ;;  %1097 = vst.msk [vmem:[%s2540_s1 - $0x121] ss:$232 sm:$0xc] %vm11_vm0, %v388_v53  }
  0xda   :  { %1098 = vst.msk [vmem:[%s2540_s1 + $0x30] ss:$232 sm:$0x3] %vm11_vm0, %v396_v54   ;;  %1099 = vst.msk [vmem:[%s2540_s1 - $0x120] ss:$232 sm:$0xc] %vm11_vm0, %v396_v54   ;;  %849 = vrot.lane.b32.xlu0 %v848_v51, %s1465_s6  ;;  %855 = vrot.lane.b32.xlu1 %v854_v52, %s1466_s7 }
  0xdb   :  { %s1471_s6 = smov 17   ;;  %s1472_s7 = smov 16  }
  0xdc   :  { %v404_v57 = vpop.permute.xlu0 %403   ;;  %v412_v58 = vpop.permute.xlu1 %411  }
  0xdd   :  { %1100 = vst.msk [vmem:[%s2540_s1 + $0x31] ss:$232 sm:$0x3] %vm11_vm0, %v404_v57   ;;  %1101 = vst.msk [vmem:[%s2540_s1 - $0x11f] ss:$232 sm:$0xc] %vm11_vm0, %v404_v57  }
  0xde   :  { %1102 = vst.msk [vmem:[%s2540_s1 + $0x32] ss:$232 sm:$0x3] %vm11_vm0, %v412_v58   ;;  %1103 = vst.msk [vmem:[%s2540_s1 - $0x11e] ss:$232 sm:$0xc] %vm11_vm0, %v412_v58   ;;  %861 = vrot.lane.b32.xlu0 %v860_v55, %s1467_s15  ;;  %867 = vrot.lane.b32.xlu1 %v866_v56, %s1468_s16 }
  0xdf   :  { %s1473_s15 = smov 15   ;;  %s1474_s16 = smov 14  }
  0xe0   :  { %v420_v61 = vpop.permute.xlu0 %419   ;;  %v428_v62 = vpop.permute.xlu1 %427  }
  0xe1   :  { %1104 = vst.msk [vmem:[%s2540_s1 + $0x33] ss:$232 sm:$0x3] %vm11_vm0, %v420_v61   ;;  %1105 = vst.msk [vmem:[%s2540_s1 - $0x11d] ss:$232 sm:$0xc] %vm11_vm0, %v420_v61  }
  0xe2   :  { %1106 = vst.msk [vmem:[%s2540_s1 + $0x34] ss:$232 sm:$0x3] %vm11_vm0, %v428_v62   ;;  %1107 = vst.msk [vmem:[%s2540_s1 - $0x11c] ss:$232 sm:$0xc] %vm11_vm0, %v428_v62   ;;  %873 = vrot.lane.b32.xlu0 %v872_v59, %s1469_s25  ;;  %879 = vrot.lane.b32.xlu1 %v878_v60, %s1470_s26 }
  0xe3   :  { %s1475_s25 = smov 13   ;;  %s1476_s26 = smov 12  }
  0xe4   :  { %v436_v1 = vpop.permute.xlu0 %435   ;;  %v444_v2 = vpop.permute.xlu1 %443  }
  0xe5   :  { %1108 = vst.msk [vmem:[%s2540_s1 + $0x35] ss:$232 sm:$0x3] %vm11_vm0, %v436_v1   ;;  %1109 = vst.msk [vmem:[%s2540_s1 - $0x11b] ss:$232 sm:$0xc] %vm11_vm0, %v436_v1  }
  0xe6   :  { %1110 = vst.msk [vmem:[%s2540_s1 + $0x36] ss:$232 sm:$0x3] %vm11_vm0, %v444_v2   ;;  %1111 = vst.msk [vmem:[%s2540_s1 - $0x11a] ss:$232 sm:$0xc] %vm11_vm0, %v444_v2   ;;  %885 = vrot.lane.b32.xlu0 %v884_v63, %s1471_s6  ;;  %891 = vrot.lane.b32.xlu1 %v890_v0, %s1472_s7 }
  0xe7   :  { %s1477_s7 = smov 11   ;;  %s1482_s6 = smov 6  }
  0xe8   :  { %v452_v5 = vpop.permute.xlu0 %451   ;;  %v460_v6 = vpop.permute.xlu1 %459  }
  0xe9   :  { %1112 = vst.msk [vmem:[%s2540_s1 + $0x37] ss:$232 sm:$0x3] %vm11_vm0, %v452_v5   ;;  %1113 = vst.msk [vmem:[%s2540_s1 - $0x119] ss:$232 sm:$0xc] %vm11_vm0, %v452_v5  }
  0xea   :  { %1114 = vst.msk [vmem:[%s2540_s1 + $0x120] ss:$-232 sm:$0x3] %vm11_vm0, %v460_v6   ;;  %1115 = vst.msk [vmem:[%s2540_s1 + $0x370] ss:$-232 sm:$0xc] %vm11_vm0, %v460_v6   ;;  %897 = vrot.lane.b32.xlu0 %v896_v3, %s1473_s15  ;;  %903 = vrot.lane.b32.xlu1 %v902_v4, %s1474_s16 }
  0xeb   :  { %s1483_s16 = smov 5  }
  0xec   :  { %v468_v9 = vpop.permute.xlu0 %467   ;;  %v476_v10 = vpop.permute.xlu1 %475  }
  0xed   :  { %1116 = vst.msk [vmem:[%s2540_s1 + $0x121] ss:$-232 sm:$0x3] %vm11_vm0, %v468_v9   ;;  %1117 = vst.msk [vmem:[%s2540_s1 + $0x371] ss:$-232 sm:$0xc] %vm11_vm0, %v468_v9  }
  0xee   :  { %1118 = vst.msk [vmem:[%s2540_s1 + $0x122] ss:$-232 sm:$0x3] %vm11_vm0, %v476_v10   ;;  %1119 = vst.msk [vmem:[%s2540_s1 + $0x372] ss:$-232 sm:$0xc] %vm11_vm0, %v476_v10   ;;  %909 = vrot.lane.b32.xlu0 %v908_v7, %s1475_s25  ;;  %915 = vrot.lane.b32.xlu1 %v914_v8, %s1476_s26 }
  0xf0   :  { %v484_v13 = vpop.permute.xlu0 %483   ;;  %v492_v14 = vpop.permute.xlu1 %491  }
  0xf1   :  { %1120 = vst.msk [vmem:[%s2540_s1 + $0x123] ss:$-232 sm:$0x3] %vm11_vm0, %v484_v13   ;;  %1121 = vst.msk [vmem:[%s2540_s1 + $0x373] ss:$-232 sm:$0xc] %vm11_vm0, %v484_v13  }
  0xf2   :  { %1122 = vst.msk [vmem:[%s2540_s1 + $0x124] ss:$-232 sm:$0x3] %vm11_vm0, %v492_v14   ;;  %1123 = vst.msk [vmem:[%s2540_s1 + $0x374] ss:$-232 sm:$0xc] %vm11_vm0, %v492_v14   ;;  %921 = vrot.lane.b32.xlu0 %v920_v11, %s1477_s7  ;;  %927 = vrot.lane.b32.xlu1 %v926_v12, %s1478_s8 }
  0xf3   :  { %s979_s7 = smov 3  ;;  %s987_s8 = smov 3 }
  0xf4   :  { %v500_v17 = vpop.permute.xlu0 %499   ;;  %v508_v18 = vpop.permute.xlu1 %507   ;;  %v980_v29 = vld [vmem:[#allocation0 + $0x1] ss:$-1 sm:%s979_s7]  }
  0xf5   :  { %1124 = vst.msk [vmem:[%s2540_s1 + $0x125] ss:$-232 sm:$0x3] %vm11_vm0, %v500_v17   ;;  %1125 = vst.msk [vmem:[%s2540_s1 + $0x375] ss:$-232 sm:$0xc] %vm11_vm0, %v500_v17  }
  0xf6   :  { %1126 = vst.msk [vmem:[%s2540_s1 + $0x126] ss:$-232 sm:$0x3] %vm11_vm0, %v508_v18   ;;  %1127 = vst.msk [vmem:[%s2540_s1 + $0x376] ss:$-232 sm:$0xc] %vm11_vm0, %v508_v18   ;;  %933 = vrot.lane.b32.xlu0 %v932_v15, %s1479_s18  ;;  %941 = vrot.lane.b32.xlu1 %v940_v16, %s1480_s19 }
  0xf7   :  { %v988_v30 = vld [vmem:[#allocation0 + $0x1] ss:$-1 sm:%s987_s8]   ;;  %s995_s18 = smov 3  ;;  %s1487_s8 = smov 1  }
  0xf8   :  { %v516_v21 = vpop.permute.xlu0 %515   ;;  %v524_v22 = vpop.permute.xlu1 %523   ;;  %v996_v33 = vld [vmem:[#allocation0 + $0x1] ss:$-1 sm:%s995_s18]  }
  0xf9   :  { %1128 = vst.msk [vmem:[%s2540_s1 + $0x127] ss:$-232 sm:$0x3] %vm11_vm0, %v516_v21   ;;  %1129 = vst.msk [vmem:[%s2540_s1 + $0x377] ss:$-232 sm:$0xc] %vm11_vm0, %v516_v21  }
  0xfa   :  { %1130 = vst.msk [vmem:[%s2540_s1 + $0x40] ss:$232 sm:$0x3] %vm11_vm0, %v524_v22   ;;  %1131 = vst.msk [vmem:[%s2540_s1 - $0x110] ss:$232 sm:$0xc] %vm11_vm0, %v524_v22   ;;  %949 = vrot.lane.b32.xlu0 %v948_v19, %s1481_s5  ;;  %957 = vrot.lane.b32.xlu1 %v956_v20, %s1482_s6 }
  0xfc   :  { %v532_v27 = vpop.permute.xlu0 %531   ;;  %v540_v28 = vpop.permute.xlu1 %539  }
  0xfd   :  { %1132 = vst.msk [vmem:[%s2540_s1 + $0x41] ss:$232 sm:$0x3] %vm11_vm0, %v532_v27   ;;  %1133 = vst.msk [vmem:[%s2540_s1 - $0x10f] ss:$232 sm:$0xc] %vm11_vm0, %v532_v27  }
  0xfe   :  { %1134 = vst.msk [vmem:[%s2540_s1 + $0x42] ss:$232 sm:$0x3] %vm11_vm0, %v540_v28   ;;  %1135 = vst.msk [vmem:[%s2540_s1 - $0x10e] ss:$232 sm:$0xc] %vm11_vm0, %v540_v28   ;;  %965 = vrot.lane.b32.xlu0 %v964_v25, %s1483_s16  ;;  %973 = vrot.lane.b32.xlu1 %v972_v26, %s1484_s17 }
 0x100   :  { %v548_v31 = vpop.permute.xlu0 %547   ;;  %v556_v32 = vpop.permute.xlu1 %555  }
 0x101   :  { %1136 = vst.msk [vmem:[%s2540_s1 + $0x43] ss:$232 sm:$0x3] %vm11_vm0, %v548_v31   ;;  %1137 = vst.msk [vmem:[%s2540_s1 - $0x10d] ss:$232 sm:$0xc] %vm11_vm0, %v548_v31  }
 0x102   :  { %1138 = vst.msk [vmem:[%s2540_s1 + $0x44] ss:$232 sm:$0x3] %vm11_vm0, %v556_v32   ;;  %1139 = vst.msk [vmem:[%s2540_s1 - $0x10c] ss:$232 sm:$0xc] %vm11_vm0, %v556_v32   ;;  %981 = vrot.lane.b32.xlu0 %v980_v29, %s1485_s27  ;;  %989 = vrot.lane.b32.xlu1 %v988_v30, %s1486_s28 }
 0x104   :  { %v564_v34 = vpop.permute.xlu0 %563   ;;  %v572_v35 = vpop.permute.xlu1 %571  }
 0x105   :  { %1140 = vst.msk [vmem:[%s2540_s1 + $0x45] ss:$232 sm:$0x3] %vm11_vm0, %v564_v34   ;;  %1141 = vst.msk [vmem:[%s2540_s1 - $0x10b] ss:$232 sm:$0xc] %vm11_vm0, %v564_v34  }
 0x106   :  { %1142 = vst.msk [vmem:[%s2540_s1 + $0x46] ss:$232 sm:$0x3] %vm11_vm0, %v572_v35   ;;  %1143 = vst.msk [vmem:[%s2540_s1 - $0x10a] ss:$232 sm:$0xc] %vm11_vm0, %v572_v35   ;;  %997 = vrot.lane.b32.xlu0 %v996_v33, %s1487_s8 }
 0x108   :  { %v580_v36 = vpop.permute.xlu0 %579   ;;  %v588_v37 = vpop.permute.xlu1 %587  }
 0x109   :  { %1144 = vst.msk [vmem:[%s2540_s1 + $0x47] ss:$232 sm:$0x3] %vm11_vm0, %v580_v36   ;;  %1145 = vst.msk [vmem:[%s2540_s1 - $0x109] ss:$232 sm:$0xc] %vm11_vm0, %v580_v36  }
 0x10a   :  { %1146 = vst.msk [vmem:[%s2540_s1 + $0x48] ss:$232 sm:$0x3] %vm11_vm0, %v588_v37   ;;  %1147 = vst.msk [vmem:[%s2540_s1 - $0x108] ss:$232 sm:$0xc] %vm11_vm0, %v588_v37  }
 0x10c   :  { %v596_v38 = vpop.permute.xlu0 %595   ;;  %v604_v39 = vpop.permute.xlu1 %603  }
 0x10d   :  { %1148 = vst.msk [vmem:[%s2540_s1 + $0x49] ss:$232 sm:$0x3] %vm11_vm0, %v596_v38   ;;  %1149 = vst.msk [vmem:[%s2540_s1 - $0x107] ss:$232 sm:$0xc] %vm11_vm0, %v596_v38  }
 0x10e   :  { %1150 = vst.msk [vmem:[%s2540_s1 + $0x4a] ss:$232 sm:$0x3] %vm11_vm0, %v604_v39   ;;  %1151 = vst.msk [vmem:[%s2540_s1 - $0x106] ss:$232 sm:$0xc] %vm11_vm0, %v604_v39  }
 0x110   :  { %v612_v40 = vpop.permute.xlu0 %611   ;;  %v620_v41 = vpop.permute.xlu1 %619  }
 0x111   :  { %1152 = vst.msk [vmem:[%s2540_s1 + $0x4b] ss:$232 sm:$0x3] %vm11_vm0, %v612_v40   ;;  %1153 = vst.msk [vmem:[%s2540_s1 - $0x105] ss:$232 sm:$0xc] %vm11_vm0, %v612_v40  }
 0x112   :  { %1154 = vst.msk [vmem:[%s2540_s1 + $0x4c] ss:$232 sm:$0x3] %vm11_vm0, %v620_v41   ;;  %1155 = vst.msk [vmem:[%s2540_s1 - $0x104] ss:$232 sm:$0xc] %vm11_vm0, %v620_v41  }
 0x114   :  { %v628_v42 = vpop.permute.xlu0 %627   ;;  %v636_v43 = vpop.permute.xlu1 %635  }
 0x115   :  { %1156 = vst.msk [vmem:[%s2540_s1 + $0x4d] ss:$232 sm:$0x3] %vm11_vm0, %v628_v42   ;;  %1157 = vst.msk [vmem:[%s2540_s1 - $0x103] ss:$232 sm:$0xc] %vm11_vm0, %v628_v42  }
 0x116   :  { %1158 = vst.msk [vmem:[%s2540_s1 + $0x4e] ss:$232 sm:$0x3] %vm11_vm0, %v636_v43   ;;  %1159 = vst.msk [vmem:[%s2540_s1 - $0x102] ss:$232 sm:$0xc] %vm11_vm0, %v636_v43  }
 0x118   :  { %v644_v44 = vpop.permute.xlu0 %643   ;;  %v652_v45 = vpop.permute.xlu1 %651  }
 0x119   :  { %1160 = vst.msk [vmem:[%s2540_s1 + $0x4f] ss:$232 sm:$0x3] %vm11_vm0, %v644_v44   ;;  %1161 = vst.msk [vmem:[%s2540_s1 - $0x101] ss:$232 sm:$0xc] %vm11_vm0, %v644_v44  }
 0x11a   :  { %1162 = vst.msk [vmem:[%s2540_s1 + $0x50] ss:$232 sm:$0x3] %vm11_vm0, %v652_v45   ;;  %1163 = vst.msk [vmem:[%s2540_s1 - $0x100] ss:$232 sm:$0xc] %vm11_vm0, %v652_v45  }
 0x11c   :  { %v660_v46 = vpop.permute.xlu0 %659   ;;  %v668_v47 = vpop.permute.xlu1 %667  }
 0x11d   :  { %1164 = vst.msk [vmem:[%s2540_s1 + $0x51] ss:$232 sm:$0x3] %vm11_vm0, %v660_v46   ;;  %1165 = vst.msk [vmem:[%s2540_s1 - $0xff] ss:$232 sm:$0xc] %vm11_vm0, %v660_v46  }
 0x11e   :  { %1166 = vst.msk [vmem:[%s2540_s1 + $0x52] ss:$232 sm:$0x3] %vm11_vm0, %v668_v47   ;;  %1167 = vst.msk [vmem:[%s2540_s1 - $0xfe] ss:$232 sm:$0xc] %vm11_vm0, %v668_v47  }
 0x120   :  { %v676_v48 = vpop.permute.xlu0 %675   ;;  %v684_v49 = vpop.permute.xlu1 %683  }
 0x121   :  { %1168 = vst.msk [vmem:[%s2540_s1 + $0x53] ss:$232 sm:$0x3] %vm11_vm0, %v676_v48   ;;  %1169 = vst.msk [vmem:[%s2540_s1 - $0xfd] ss:$232 sm:$0xc] %vm11_vm0, %v676_v48  }
 0x122   :  { %1170 = vst.msk [vmem:[%s2540_s1 + $0x54] ss:$232 sm:$0x3] %vm11_vm0, %v684_v49   ;;  %1171 = vst.msk [vmem:[%s2540_s1 - $0xfc] ss:$232 sm:$0xc] %vm11_vm0, %v684_v49  }
 0x124   :  { %v692_v50 = vpop.permute.xlu0 %691   ;;  %v700_v51 = vpop.permute.xlu1 %699  }
 0x125   :  { %1172 = vst.msk [vmem:[%s2540_s1 + $0x55] ss:$232 sm:$0x3] %vm11_vm0, %v692_v50   ;;  %1173 = vst.msk [vmem:[%s2540_s1 - $0xfb] ss:$232 sm:$0xc] %vm11_vm0, %v692_v50  }
 0x126   :  { %1174 = vst.msk [vmem:[%s2540_s1 + $0x56] ss:$232 sm:$0x3] %vm11_vm0, %v700_v51   ;;  %1175 = vst.msk [vmem:[%s2540_s1 - $0xfa] ss:$232 sm:$0xc] %vm11_vm0, %v700_v51  }
 0x128   :  { %v708_v52 = vpop.permute.xlu0 %707   ;;  %v716_v53 = vpop.permute.xlu1 %715  }
 0x129   :  { %1176 = vst.msk [vmem:[%s2540_s1 + $0x57] ss:$232 sm:$0x3] %vm11_vm0, %v708_v52   ;;  %1177 = vst.msk [vmem:[%s2540_s1 - $0xf9] ss:$232 sm:$0xc] %vm11_vm0, %v708_v52  }
 0x12a   :  { %1178 = vst.msk [vmem:[%s2540_s1 + $0x140] ss:$-232 sm:$0x3] %vm11_vm0, %v716_v53   ;;  %1179 = vst.msk [vmem:[%s2540_s1 + $0x390] ss:$-232 sm:$0xc] %vm11_vm0, %v716_v53  }
 0x12c   :  { %v724_v54 = vpop.permute.xlu0 %723   ;;  %v732_v55 = vpop.permute.xlu1 %731  }
 0x12d   :  { %1180 = vst.msk [vmem:[%s2540_s1 + $0x141] ss:$-232 sm:$0x3] %vm11_vm0, %v724_v54   ;;  %1181 = vst.msk [vmem:[%s2540_s1 + $0x391] ss:$-232 sm:$0xc] %vm11_vm0, %v724_v54  }
 0x12e   :  { %1182 = vst.msk [vmem:[%s2540_s1 + $0x142] ss:$-232 sm:$0x3] %vm11_vm0, %v732_v55   ;;  %1183 = vst.msk [vmem:[%s2540_s1 + $0x392] ss:$-232 sm:$0xc] %vm11_vm0, %v732_v55  }
 0x130   :  { %v740_v56 = vpop.permute.xlu0 %739   ;;  %v748_v57 = vpop.permute.xlu1 %747  }
 0x131   :  { %1184 = vst.msk [vmem:[%s2540_s1 + $0x143] ss:$-232 sm:$0x3] %vm11_vm0, %v740_v56   ;;  %1185 = vst.msk [vmem:[%s2540_s1 + $0x393] ss:$-232 sm:$0xc] %vm11_vm0, %v740_v56  }
 0x132   :  { %1186 = vst.msk [vmem:[%s2540_s1 + $0x144] ss:$-232 sm:$0x3] %vm11_vm0, %v748_v57   ;;  %1187 = vst.msk [vmem:[%s2540_s1 + $0x394] ss:$-232 sm:$0xc] %vm11_vm0, %v748_v57  }
 0x134   :  { %v756_v58 = vpop.permute.xlu0 %755   ;;  %v764_v59 = vpop.permute.xlu1 %763  }
 0x135   :  { %1188 = vst.msk [vmem:[%s2540_s1 + $0x145] ss:$-232 sm:$0x3] %vm11_vm0, %v756_v58   ;;  %1189 = vst.msk [vmem:[%s2540_s1 + $0x395] ss:$-232 sm:$0xc] %vm11_vm0, %v756_v58  }
 0x136   :  { %1190 = vst.msk [vmem:[%s2540_s1 + $0x146] ss:$-232 sm:$0x3] %vm11_vm0, %v764_v59   ;;  %1191 = vst.msk [vmem:[%s2540_s1 + $0x396] ss:$-232 sm:$0xc] %vm11_vm0, %v764_v59  }
 0x138   :  { %v772_v60 = vpop.permute.xlu0 %771   ;;  %v780_v61 = vpop.permute.xlu1 %779  }
 0x139   :  { %1192 = vst.msk [vmem:[%s2540_s1 + $0x147] ss:$-232 sm:$0x3] %vm11_vm0, %v772_v60   ;;  %1193 = vst.msk [vmem:[%s2540_s1 + $0x397] ss:$-232 sm:$0xc] %vm11_vm0, %v772_v60  }
 0x13a   :  { %1194 = vst.msk [vmem:[%s2540_s1 + $0x60] ss:$232 sm:$0x3] %vm11_vm0, %v780_v61   ;;  %1195 = vst.msk [vmem:[%s2540_s1 - $0xf0] ss:$232 sm:$0xc] %vm11_vm0, %v780_v61  }
 0x13c   :  { %v788_v62 = vpop.permute.xlu0 %787   ;;  %v796_v63 = vpop.permute.xlu1 %795  }
 0x13d   :  { %1196 = vst.msk [vmem:[%s2540_s1 + $0x61] ss:$232 sm:$0x3] %vm11_vm0, %v788_v62   ;;  %1197 = vst.msk [vmem:[%s2540_s1 - $0xef] ss:$232 sm:$0xc] %vm11_vm0, %v788_v62  }
 0x13e   :  { %1198 = vst.msk [vmem:[%s2540_s1 + $0x62] ss:$232 sm:$0x3] %vm11_vm0, %v796_v63   ;;  %1199 = vst.msk [vmem:[%s2540_s1 - $0xee] ss:$232 sm:$0xc] %vm11_vm0, %v796_v63  }
 0x140   :  { %v804_v0 = vpop.permute.xlu0 %803   ;;  %v812_v1 = vpop.permute.xlu1 %811  }
 0x141   :  { %1200 = vst.msk [vmem:[%s2540_s1 + $0x63] ss:$232 sm:$0x3] %vm11_vm0, %v804_v0   ;;  %1201 = vst.msk [vmem:[%s2540_s1 - $0xed] ss:$232 sm:$0xc] %vm11_vm0, %v804_v0  }
 0x142   :  { %1202 = vst.msk [vmem:[%s2540_s1 + $0x64] ss:$232 sm:$0x3] %vm11_vm0, %v812_v1   ;;  %1203 = vst.msk [vmem:[%s2540_s1 - $0xec] ss:$232 sm:$0xc] %vm11_vm0, %v812_v1  }
 0x144   :  { %v820_v2 = vpop.permute.xlu0 %819   ;;  %v828_v3 = vpop.permute.xlu1 %827  }
 0x145   :  { %1204 = vst.msk [vmem:[%s2540_s1 + $0x65] ss:$232 sm:$0x3] %vm11_vm0, %v820_v2   ;;  %1205 = vst.msk [vmem:[%s2540_s1 - $0xeb] ss:$232 sm:$0xc] %vm11_vm0, %v820_v2  }
 0x146   :  { %1206 = vst.msk [vmem:[%s2540_s1 + $0x66] ss:$232 sm:$0x3] %vm11_vm0, %v828_v3   ;;  %1207 = vst.msk [vmem:[%s2540_s1 - $0xea] ss:$232 sm:$0xc] %vm11_vm0, %v828_v3  }
 0x148   :  { %v836_v4 = vpop.permute.xlu0 %835   ;;  %v844_v5 = vpop.permute.xlu1 %843  }
 0x149   :  { %1208 = vst.msk [vmem:[%s2540_s1 + $0x67] ss:$232 sm:$0x3] %vm11_vm0, %v836_v4   ;;  %1209 = vst.msk [vmem:[%s2540_s1 - $0xe9] ss:$232 sm:$0xc] %vm11_vm0, %v836_v4  }
 0x14a   :  { %1210 = vst.msk [vmem:[%s2540_s1 + $0x68] ss:$232 sm:$0x3] %vm11_vm0, %v844_v5  }
 0x14c   :  { %v850_v6 = vpop.permute.xlu0 %849   ;;  %v856_v7 = vpop.permute.xlu1 %855  }
 0x14d   :  { %1211 = vst.msk [vmem:[%s2540_s1 + $0x69] ss:$232 sm:$0x3] %vm11_vm0, %v850_v6   ;;  %1212 = vst.msk [vmem:[%s2540_s1 + $0x6a] ss:$232 sm:$0x3] %vm11_vm0, %v856_v7  }
 0x150   :  { %v862_v8 = vpop.permute.xlu0 %861   ;;  %v868_v9 = vpop.permute.xlu1 %867  }
 0x151   :  { %1213 = vst.msk [vmem:[%s2540_s1 + $0x6b] ss:$232 sm:$0x3] %vm11_vm0, %v862_v8   ;;  %1214 = vst.msk [vmem:[%s2540_s1 + $0x6c] ss:$232 sm:$0x3] %vm11_vm0, %v868_v9  }
 0x154   :  { %v874_v10 = vpop.permute.xlu0 %873   ;;  %v880_v11 = vpop.permute.xlu1 %879  }
 0x155   :  { %1215 = vst.msk [vmem:[%s2540_s1 + $0x6d] ss:$232 sm:$0x3] %vm11_vm0, %v874_v10   ;;  %1216 = vst.msk [vmem:[%s2540_s1 + $0x6e] ss:$232 sm:$0x3] %vm11_vm0, %v880_v11  }
 0x158   :  { %v886_v12 = vpop.permute.xlu0 %885   ;;  %v892_v13 = vpop.permute.xlu1 %891  }
 0x159   :  { %1217 = vst.msk [vmem:[%s2540_s1 + $0x6f] ss:$232 sm:$0x3] %vm11_vm0, %v886_v12   ;;  %1218 = vst.msk [vmem:[%s2540_s1 + $0x70] ss:$232 sm:$0x3] %vm11_vm0, %v892_v13  }
 0x15c   :  { %v898_v14 = vpop.permute.xlu0 %897   ;;  %v904_v15 = vpop.permute.xlu1 %903  }
 0x15d   :  { %1219 = vst.msk [vmem:[%s2540_s1 + $0x71] ss:$232 sm:$0x3] %vm11_vm0, %v898_v14   ;;  %1220 = vst.msk [vmem:[%s2540_s1 + $0x72] ss:$232 sm:$0x3] %vm11_vm0, %v904_v15  }
 0x160   :  { %v910_v16 = vpop.permute.xlu0 %909   ;;  %v916_v17 = vpop.permute.xlu1 %915  }
 0x161   :  { %1221 = vst.msk [vmem:[%s2540_s1 + $0x73] ss:$232 sm:$0x3] %vm11_vm0, %v910_v16   ;;  %1222 = vst.msk [vmem:[%s2540_s1 + $0x74] ss:$232 sm:$0x3] %vm11_vm0, %v916_v17  }
 0x164   :  { %v922_v18 = vpop.permute.xlu0 %921   ;;  %v928_v19 = vpop.permute.xlu1 %927  }
 0x165   :  { %1223 = vst.msk [vmem:[%s2540_s1 + $0x75] ss:$232 sm:$0x3] %vm11_vm0, %v922_v18   ;;  %1224 = vst.msk [vmem:[%s2540_s1 + $0x76] ss:$232 sm:$0x3] %vm11_vm0, %v928_v19  }
 0x168   :  { %v934_v20 = vpop.permute.xlu0 %933   ;;  %v942_v21 = vpop.permute.xlu1 %941  }
 0x169   :  { %1225 = vst.msk [vmem:[%s2540_s1 + $0x77] ss:$232 sm:$0x3] %vm11_vm0, %v934_v20   ;;  %1226 = vst.msk [vmem:[%s2540_s1 + $0x160] ss:$-232 sm:$0x3] %vm11_vm0, %v942_v21  }
 0x16c   :  { %v950_v22 = vpop.permute.xlu0 %949   ;;  %v958_v23 = vpop.permute.xlu1 %957  }
 0x16d   :  { %1227 = vst.msk [vmem:[%s2540_s1 + $0x161] ss:$-232 sm:$0x3] %vm11_vm0, %v950_v22   ;;  %1228 = vst.msk [vmem:[%s2540_s1 + $0x162] ss:$-232 sm:$0x3] %vm11_vm0, %v958_v23  }
 0x170   :  { %v966_v24 = vpop.permute.xlu0 %965   ;;  %v974_v25 = vpop.permute.xlu1 %973  }
 0x171   :  { %1229 = vst.msk [vmem:[%s2540_s1 + $0x163] ss:$-232 sm:$0x3] %vm11_vm0, %v966_v24   ;;  %1230 = vst.msk [vmem:[%s2540_s1 + $0x164] ss:$-232 sm:$0x3] %vm11_vm0, %v974_v25  }
 0x174   :  { %v982_v26 = vpop.permute.xlu0 %981   ;;  %v990_v27 = vpop.permute.xlu1 %989  }
 0x175   :  { %1231 = vst.msk [vmem:[%s2540_s1 + $0x165] ss:$-232 sm:$0x3] %vm11_vm0, %v982_v26   ;;  %1232 = vst.msk [vmem:[%s2540_s1 + $0x166] ss:$-232 sm:$0x3] %vm11_vm0, %v990_v27  }
 0x178   :  { %v998_v28 = vpop.permute.xlu0 %997  }
 0x179   :  { %1233 = vst.msk [vmem:[%s2540_s1 + $0x167] ss:$-232 sm:$0x3] %vm11_vm0, %v998_v28  }

// kernel: _lambda_.11
= control target key start
LH: loop header
LB: loop body
LE: loop exit
PB: predicated region body
PF: predicated region fallthrough
CT: control target
= control target key end

     0   :  { %s1968_s20 = smov 0   ;;  %s2619_s0 = inlined_call_operand.vmem [shape: bf16[3,1,464,160], index: 0, kind: input, shape index: {}]   ;;  %s2620_s1 = inlined_call_operand.vmem [shape: bf16[3,160,32], index: 1, kind: input, shape index: {}]   ;;  %s2621_s2 = inlined_call_operand.vmem [shape: f32[3,1,1,32], index: 2, kind: input, shape index: {}]   ;;  %s2622_s3 = inlined_call_operand.<no memory space> [shape: f32[1,1,1,1], index: 3, kind: input, shape index: {}]   ;;  %s2623_s4 = inlined_call_operand.vmem [shape: f32[1,1,464,1], index: 4, kind: input, shape index: {}]   ;;  %s2624_s5 = inlined_call_operand.vmem [shape: f32[3,1,464,32], index: 5, kind: output, shape index: {}]  }
   0x1   :  { %v10_v0 = vstv %s2622_s3 }
   0x2   :  { %11 = vst [vmem:[#allocation2] sm:$0x1] %v10_v0 }
   0x3 LB: > { %s1687_s21 = sadd.s32 4294967295, %s1932_s20   ;;  %p1691_p0 = scmp.ge.s32.totalorder %s1932_s20, 1  ;;  %s1932_s20 = sphi %s1968_s20, %s17_s20  }
   0x4   : > { %p207_p1 = scmp.lt.s32.totalorder %s1932_s20, 4 }
   0x6   : > { %p208_p2 = pnand %p1691_p0, %p207_p1 }
   0x7   : > { %p243_p3 = scmp.lt.s32.totalorder (!%p208_p2), %s1687_s21, 2  ;;  %v284_v2 = vld [vmem:[%s2623_s4 + $0x8] sm:$0xff] (!%p208_p2)  ;;  %v1934_v3 = vmov (!%p208_p2), 0   ;;  %v283_v4 = vld [vmem:[%s2623_s4] sm:$0xff] (!%p208_p2)  ;;  %v285_v5 = vld [vmem:[%s2623_s4 + $0x10] sm:$0xff] (!%p208_p2)  ;;  %vm727_vm0 = vcmask (!%p208_p2), 261120  }
   0x8   : > { %211 = sbr.rel (%p208_p2) target bundleno = 395 (0x18b), region = 40  ;;  %815 = vmatprep.subr.bf16.mxu0 (!%p208_p2), %v1934_v3  ;;  %1796 = vmatprep.subr.bf16.mxu1 (!%p208_p2), %v1934_v3  ;;  %v286_v6 = vld [vmem:[%s2623_s4 + $0x18] sm:$0xff] (!%p208_p2)  ;;  %v287_v8 = vld [vmem:[%s2623_s4 + $0x20] sm:$0xff] (!%p208_p2)  ;;  %v288_v10 = vld [vmem:[%s2623_s4 + $0x28] sm:$0xff] (!%p208_p2) }
   0x9   : > { %v1793_v1 = vld [vmem:[#allocation2] ss:$0 sm:$0xff] (!%p208_p2)  ;;  %1827 = vset.pattern.permute.xlu0 (!%p208_p2), %v1934_v3  ;;  %1828 = vset.pattern.permute.xlu1 (!%p208_p2), %v1934_v3  ;;  %v289_v11 = vld [vmem:[%s2623_s4 + $0x30] sm:$0xff] (!%p208_p2)  ;;  %v290_v13 = vld [vmem:[%s2623_s4 + $0x38] sm:$0xff] (!%p208_p2) }
   0xa   : > { %1144 = vperm.xlu0 (!%p208_p2), %1827, %v1793_v1   ;;  %1212 = vperm.xlu1 (!%p208_p2), %1828, %v284_v2   ;;  %v291_v14 = vld [vmem:[%s2623_s4 + $0x40] sm:$0xff] (!%p208_p2)  ;;  %v292_v18 = vld [vmem:[%s2623_s4 + $0x48] sm:$0xff] (!%p208_p2)  ;;  %v293_v19 = vld [vmem:[%s2623_s4 + $0x50] sm:$0xff] (!%p208_p2) }
   0xb   : > { %v294_v21 = vld [vmem:[%s2623_s4 + $0x58] sm:$0xff] (!%p208_p2)  ;;  %v295_v22 = vld [vmem:[%s2623_s4 + $0x60] sm:$0xff] (!%p208_p2)  ;;  %v296_v24 = vld [vmem:[%s2623_s4 + $0x68] sm:$0xff] (!%p208_p2) }
   0xc   : > { %v297_v25 = vld [vmem:[%s2623_s4 + $0x70] sm:$0xff] (!%p208_p2)  ;;  %v298_v27 = vld [vmem:[%s2623_s4 + $0x78] sm:$0xff] (!%p208_p2)  ;;  %v299_v28 = vld [vmem:[%s2623_s4 + $0x80] sm:$0xff] (!%p208_p2) }
   0xd   : > { %v300_v30 = vld [vmem:[%s2623_s4 + $0x88] sm:$0xff] (!%p208_p2)  ;;  %v301_v31 = vld [vmem:[%s2623_s4 + $0x90] sm:$0xff] (!%p208_p2)  ;;  %v302_v33 = vld [vmem:[%s2623_s4 + $0x98] sm:$0xff] (!%p208_p2) }
   0xe   : > { %1207 = vperm.xlu0 (!%p208_p2), %1827, %v283_v4   ;;  %1217 = vperm.xlu1 (!%p208_p2), %1828, %v285_v5   ;;  %v303_v34 = vld [vmem:[%s2623_s4 + $0xa0] sm:$0xff] (!%p208_p2)  ;;  %v304_v39 = vld [vmem:[%s2623_s4 + $0xa8] sm:$0xff] (!%p208_p2)  ;;  %v305_v40 = vld [vmem:[%s2623_s4 + $0xb0] sm:$0xff] (!%p208_p2) }
   0xf   : > { %s2626_s21 = smov (!%p243_p3, %s1687_s21), 2  ;;  %v306_v42 = vld [vmem:[%s2623_s4 + $0xb8] sm:$0xff]  ;;  %v307_v43 = vld [vmem:[%s2623_s4 + $0xc0] sm:$0xff]  ;;  %v308_v47 = vld [vmem:[%s2623_s4 + $0xc8] sm:$0xff] }
  0x10   : > { %s1816_s23 = smul.u32 464, %s2626_s21  ;;  %v309_v48 = vld [vmem:[%s2623_s4 + $0xd0] sm:$0xff]  ;;  %v310_v50 = vld [vmem:[%s2623_s4 + $0xd8] sm:$0xff]  ;;  %v311_v51 = vld [vmem:[%s2623_s4 + $0xe0] sm:$0xff]  ;;  %s255_s12 = scalar_lea.vmem %s2621_s2, %s2626_s21 }
  0x11   : > { %s1817_s28 = smul.u32 80, %s2626_s21  ;;  %v312_v55 = vld [vmem:[%s2623_s4 + $0xe8] sm:$0xff]  ;;  %v313_v56 = vld [vmem:[%s2623_s4 + $0xf0] sm:$0xff]  ;;  %v314_v58 = vld [vmem:[%s2623_s4 + $0xf8] sm:$0xff] }
  0x12   : > { %s1998_s6 = scalar_lea.vmem %s2619_s0, %s1816_s23  ;;  %1222 = vperm.xlu0 %1827, %v286_v6   ;;  %1227 = vperm.xlu1 %1828, %v287_v8   ;;  %v315_v59 = vld [vmem:[%s2623_s4 + $0x100] sm:$0xff]  ;;  %v316_v62 = vld [vmem:[%s2623_s4 + $0x108] sm:$0xff]  ;;  %v317_v63 = vld [vmem:[%s2623_s4 + $0x110] sm:$0xff]  ;;  %s2360_s15 = scalar_lea.vmem %s2624_s5, %s1816_s23 }
  0x13   : > { %s2003_s9 = scalar_lea.vmem %s2620_s1, %s1817_s28  ;;  %v1841_v16 = vld [vmem:[%s1998_s6 + $0x4] ss:$8 sps:$4 sm:$0xff]   ;;  %v1844_v17 = vld [vmem:[%s1998_s6 + $0xf4] ss:$8 sps:$4 sm:$0xff]   ;;  %v1839_v36 = vld [vmem:[%s1998_s6] ss:$8 sps:$4 sm:$0xff]  }
  0x14   : > { %v1829_v7 = vld [vmem:[%s2003_s9] sm:$0xff]   ;;  %v1830_v9 = vld [vmem:[%s2003_s9 + $0x8] sm:$0xff]   ;;  %v1831_v12 = vld [vmem:[%s2003_s9 + $0x10] sm:$0xff]   ;;  %1764 = vmatprep.mubr.msk.bf16.mxu0 %vm727_vm0, %v1841_v16  ;;  %1779 = vmatprep.mubr.msk.bf16.mxu1 %vm727_vm0, %v1844_v17 }
  0x15   : > { %816 = vmatpush1.bf16.msra.mxu0 %v1829_v7  ;;  %1806 = vmatpush1.bf16.msra.mxu1 %v1829_v7  ;;  %v1832_v15 = vld [vmem:[%s2003_s9 + $0x18] sm:$0xff]   ;;  %v1833_v20 = vld [vmem:[%s2003_s9 + $0x20] sm:$0xff]   ;;  %v1834_v23 = vld [vmem:[%s2003_s9 + $0x28] sm:$0xff]  }
  0x16   : > { %817 = vmatprep.subr.bf16.mxu0 %v1934_v3  ;;  %1797 = vmatprep.subr.bf16.mxu1 %v1934_v3  ;;  %v1835_v26 = vld [vmem:[%s2003_s9 + $0x30] sm:$0xff]   ;;  %v1836_v29 = vld [vmem:[%s2003_s9 + $0x38] sm:$0xff]   ;;  %v1837_v32 = vld [vmem:[%s2003_s9 + $0x40] sm:$0xff]  }
  0x17   : > { %1232 = vperm.xlu0 %1827, %v288_v10   ;;  %1237 = vperm.xlu1 %1828, %v289_v11   ;;  %v1838_v35 = vld [vmem:[%s2003_s9 + $0x48] sm:$0xff]   ;;  %v1842_v37 = vld [vmem:[%s1998_s6 + $0xf0] ss:$8 sps:$4 sm:$0xff]   ;;  %v1845_v38 = vld [vmem:[%s1998_s6 + $0x14] ss:$8 sps:$4 sm:$0xff]  }
  0x18   : > { %v1847_v41 = vld [vmem:[%s1998_s6 + $0x104] ss:$8 sps:$4 sm:$0xff]   ;;  %v1849_v44 = vld [vmem:[%s1998_s6 + $0x10] ss:$8 sps:$4 sm:$0xff]   ;;  %v1850_v45 = vld [vmem:[%s1998_s6 + $0x100] ss:$8 sps:$4 sm:$0xff]  }
  0x19   : > { %818 = vmatpush1.bf16.msra.mxu0 %v1830_v9  ;;  %1807 = vmatpush1.bf16.msra.mxu1 %v1830_v9  ;;  %v1851_v46 = vld [vmem:[%s1998_s6 + $0x24] ss:$8 sps:$4 sm:$0xff]   ;;  %v1853_v49 = vld [vmem:[%s1998_s6 + $0x114] ss:$8 sps:$4 sm:$0xff]   ;;  %v1855_v52 = vld [vmem:[%s1998_s6 + $0x20] ss:$8 sps:$4 sm:$0xff]  }
  0x1a   : > { %819 = vmatprep.subr.bf16.mxu0 %v1934_v3  ;;  %1798 = vmatprep.subr.bf16.mxu1 %v1934_v3  ;;  %v1856_v53 = vld [vmem:[%s1998_s6 + $0x110] ss:$8 sps:$4 sm:$0xff]   ;;  %v1857_v54 = vld [vmem:[%s1998_s6 + $0x34] ss:$8 sps:$4 sm:$0xff]   ;;  %v1859_v57 = vld [vmem:[%s1998_s6 + $0x124] ss:$8 sps:$4 sm:$0xff]  }
  0x1b   : > { %1242 = vperm.xlu0 %1827, %v290_v13   ;;  %1247 = vperm.xlu1 %1828, %v291_v14   ;;  %v1861_v60 = vld [vmem:[%s1998_s6 + $0x30] ss:$8 sps:$4 sm:$0xff]   ;;  %v1862_v61 = vld [vmem:[%s1998_s6 + $0x120] ss:$8 sps:$4 sm:$0xff]   ;;  %v1863_v0 = vld [vmem:[%s1998_s6 + $0x44] ss:$8 sps:$4 sm:$0xff]  }
  0x1c   : > { %v1865_v1 = vld [vmem:[%s1998_s6 + $0x134] ss:$8 sps:$4 sm:$0xff]   ;;  %v1867_v4 = vld [vmem:[%s1998_s6 + $0x40] ss:$8 sps:$4 sm:$0xff]   ;;  %v1868_v5 = vld [vmem:[%s1998_s6 + $0x130] ss:$8 sps:$4 sm:$0xff]  }
  0x1d   : > { %820 = vmatpush1.bf16.msra.mxu0 %v1831_v12  ;;  %1808 = vmatpush1.bf16.msra.mxu1 %v1831_v12  ;;  %v318_v2 = vld [vmem:[%s2623_s4 + $0x118] sm:$0xff]  ;;  %v320_v6 = vld [vmem:[%s2623_s4 + $0x128] sm:$0xff]  ;;  %v321_v7 = vld [vmem:[%s2623_s4 + $0x130] sm:$0xff] }
  0x1e   : > { %821 = vmatprep.subr.bf16.mxu0 %v1934_v3  ;;  %1799 = vmatprep.subr.bf16.mxu1 %v1934_v3  ;;  %v1869_v8 = vld [vmem:[%s1998_s6 + $0x54] ss:$8 sps:$4 sm:$0xff]   ;;  %v1871_v9 = vld [vmem:[%s1998_s6 + $0x144] ss:$8 sps:$4 sm:$0xff]   ;;  %v1873_v12 = vld [vmem:[%s1998_s6 + $0x50] ss:$8 sps:$4 sm:$0xff]  }
  0x1f   : > { %1252 = vperm.xlu0 %1827, %v292_v18   ;;  %1257 = vperm.xlu1 %1828, %v293_v19   ;;  %v322_v10 = vld [vmem:[%s2623_s4 + $0x138] sm:$0xff]  ;;  %v323_v11 = vld [vmem:[%s2623_s4 + $0x140] sm:$0xff]  ;;  %v324_v14 = vld [vmem:[%s2623_s4 + $0x148] sm:$0xff] }
  0x20   : > { %v1874_v13 = vld [vmem:[%s1998_s6 + $0x140] ss:$8 sps:$4 sm:$0xff]   ;;  %v1875_v16 = vld [vmem:[%s1998_s6 + $0x64] ss:$8 sps:$4 sm:$0xff]   ;;  %v1877_v17 = vld [vmem:[%s1998_s6 + $0x154] ss:$8 sps:$4 sm:$0xff]  }
  0x21   : > { %822 = vmatpush1.bf16.msra.mxu0 %v1832_v15  ;;  %1809 = vmatpush1.bf16.msra.mxu1 %v1832_v15  ;;  %v325_v15 = vld [vmem:[%s2623_s4 + $0x150] sm:$0xff]  ;;  %v326_v18 = vld [vmem:[%s2623_s4 + $0x158] sm:$0xff]  ;;  %v327_v19 = vld [vmem:[%s2623_s4 + $0x160] sm:$0xff] }
  0x22   : > { %823 = vmatprep.subr.bf16.mxu0 %v1934_v3  ;;  %1800 = vmatprep.subr.bf16.mxu1 %v1934_v3 }
  0x23   : > { %1262 = vperm.xlu0 %1827, %v294_v21   ;;  %1267 = vperm.xlu1 %1828, %v295_v22   ;;  %v1880_v21 = vld [vmem:[%s1998_s6 + $0x150] ss:$8 sps:$4 sm:$0xff]   ;;  %v328_v22 = vld [vmem:[%s2623_s4 + $0x168] sm:$0xff] }
  0x25   : > { %824 = vmatpush1.bf16.msra.mxu0 %v1833_v20  ;;  %1810 = vmatpush1.bf16.msra.mxu1 %v1833_v20  ;;  %v1879_v20 = vld [vmem:[%s1998_s6 + $0x60] ss:$8 sps:$4 sm:$0xff]  }
  0x26   : > { %825 = vmatprep.subr.bf16.mxu0 %v1934_v3  ;;  %1801 = vmatprep.subr.bf16.mxu1 %v1934_v3 }
  0x27   : > { %1272 = vperm.xlu0 %1827, %v296_v24   ;;  %1277 = vperm.xlu1 %1828, %v297_v25   ;;  %v1881_v24 = vld [vmem:[%s1998_s6 + $0x74] ss:$8 sps:$4 sm:$0xff]   ;;  %v1883_v25 = vld [vmem:[%s1998_s6 + $0x164] ss:$8 sps:$4 sm:$0xff]  }
  0x29   : > { %826 = vmatpush1.bf16.msra.mxu0 %v1834_v23  ;;  %1811 = vmatpush1.bf16.msra.mxu1 %v1834_v23  ;;  %v329_v23 = vld [vmem:[%s2623_s4 + $0x170] sm:$0xff] }
  0x2a   : > { %827 = vmatprep.subr.bf16.mxu0 %v1934_v3  ;;  %1802 = vmatprep.subr.bf16.mxu1 %v1934_v3 }
  0x2b   : > { %1282 = vperm.xlu0 %1827, %v298_v27   ;;  %1287 = vperm.xlu1 %1828, %v299_v28   ;;  %v331_v27 = vld [vmem:[%s2623_s4 + $0x180] sm:$0xff]  ;;  %v1885_v28 = vld [vmem:[%s1998_s6 + $0x70] ss:$8 sps:$4 sm:$0xff]  }
  0x2d   : > { %828 = vmatpush1.bf16.msra.mxu0 %v1835_v26  ;;  %1812 = vmatpush1.bf16.msra.mxu1 %v1835_v26  ;;  %v330_v26 = vld [vmem:[%s2623_s4 + $0x178] sm:$0xff] }
  0x2e   : > { %829 = vmatprep.subr.bf16.mxu0 %v1934_v3  ;;  %1803 = vmatprep.subr.bf16.mxu1 %v1934_v3 }
  0x2f   : > { %1292 = vperm.xlu0 %1827, %v300_v30   ;;  %1297 = vperm.xlu1 %1828, %v301_v31   ;;  %v332_v30 = vld [vmem:[%s2623_s4 + $0x188] sm:$0xff]  ;;  %v333_v31 = vld [vmem:[%s2623_s4 + $0x190] sm:$0xff] }
  0x31   : > { %830 = vmatpush1.bf16.msra.mxu0 %v1836_v29  ;;  %1813 = vmatpush1.bf16.msra.mxu1 %v1836_v29  ;;  %v1886_v29 = vld [vmem:[%s1998_s6 + $0x160] ss:$8 sps:$4 sm:$0xff]  }
  0x32   : > { %831 = vmatprep.subr.bf16.mxu0 %v1934_v3  ;;  %1804 = vmatprep.subr.bf16.mxu1 %v1934_v3 }
  0x33   : > { %1302 = vperm.xlu0 %1827, %v302_v33   ;;  %1307 = vperm.xlu1 %1828, %v303_v34   ;;  %v1889_v33 = vld [vmem:[%s1998_s6 + $0x174] ss:$8 sps:$4 sm:$0xff]  }
  0x34   : > { %v334_v34 = vld [vmem:[%s2623_s4 + $0x198] sm:$0xff] }
  0x35   : > { %832 = vmatpush1.bf16.msra.mxu0 %v1837_v32  ;;  %1814 = vmatpush1.bf16.msra.mxu1 %v1837_v32  ;;  %v1887_v32 = vld [vmem:[%s1998_s6 + $0x84] ss:$8 sps:$4 sm:$0xff]  }
  0x36   : > { %833 = vmatprep.subr.bf16.mxu0 %v1934_v3  ;;  %1805 = vmatprep.subr.bf16.mxu1 %v1934_v3  ;;  %v319_v3 = vld [vmem:[%s2623_s4 + $0x120] sm:$0xff] }
  0x37   : > { %1312 = vperm.xlu0 %1827, %v304_v39   ;;  %1317 = vperm.xlu1 %1828, %v305_v40   ;;  %v337_v39 = vld [vmem:[%s2623_s4 + $0x1b0] sm:$0xff] }
  0x38   : > { %v1893_v40 = vld [vmem:[%s1998_s6 + $0x94] ss:$8 sps:$4 sm:$0xff]  }
  0x39   : > { %834 = vmatpush1.bf16.msra.mxu0 %v1838_v35  ;;  %1815 = vmatpush1.bf16.msra.mxu1 %v1838_v35  ;;  %v335_v35 = vld [vmem:[%s2623_s4 + $0x1a0] sm:$0xff] }
  0x3b   : > { %1322 = vperm.xlu0 %1827, %v306_v42   ;;  %1327 = vperm.xlu1 %1828, %v307_v43   ;;  %v338_v42 = vld [vmem:[%s2623_s4 + $0x1b8] sm:$0xff]  ;;  %v339_v43 = vld [vmem:[%s2623_s4 + $0x1c0] sm:$0xff] }
  0x3c   : > { %848 = vmatmul.mubr.bf16.vlgmr.msra.gmra.mrb[0].mxu0 %v1839_v36  ;;  %968 = vmatmul.mubr.bf16.vlgmr.msra.gmra.mrb[0].mxu1 %v1842_v37  ;;  %v1891_v36 = vld [vmem:[%s1998_s6 + $0x80] ss:$8 sps:$4 sm:$0xff]   ;;  %v1892_v37 = vld [vmem:[%s1998_s6 + $0x170] ss:$8 sps:$4 sm:$0xff]  }
  0x3d   : > { %1765 = vmatprep.mubr.msk.bf16.mxu0 %vm727_vm0, %v1845_v38  ;;  %1780 = vmatprep.mubr.msk.bf16.mxu1 %vm727_vm0, %v1847_v41  ;;  %v336_v38 = vld [vmem:[%s2623_s4 + $0x1a8] sm:$0xff] }
  0x3e   : > { %v1895_v41 = vld [vmem:[%s1998_s6 + $0x184] ss:$8 sps:$4 sm:$0xff]  }
  0x3f   : > { %1332 = vperm.xlu0 %1827, %v308_v47   ;;  %1337 = vperm.xlu1 %1828, %v309_v48   ;;  %v1899_v47 = vld [vmem:[%s1998_s6 + $0xa4] ss:$8 sps:$4 sm:$0xff]   ;;  %v1901_v48 = vld [vmem:[%s1998_s6 + $0x194] ss:$8 sps:$4 sm:$0xff]  }
  0x43   : > { %1342 = vperm.xlu0 %1827, %v310_v50   ;;  %1347 = vperm.xlu1 %1828, %v311_v51   ;;  %v1904_v50 = vld [vmem:[%s1998_s6 + $0x190] ss:$8 sps:$4 sm:$0xff]   ;;  %v1905_v51 = vld [vmem:[%s1998_s6 + $0xb4] ss:$8 sps:$4 sm:$0xff]  }
  0x44   : > { %856 = vmatmul.mubr.bf16.gmra.mrb[4].mxu0 %v1849_v44  ;;  %976 = vmatmul.mubr.bf16.gmra.mrb[4].mxu1 %v1850_v45  ;;  %v1897_v44 = vld [vmem:[%s1998_s6 + $0x90] ss:$8 sps:$4 sm:$0xff]   ;;  %v1898_v45 = vld [vmem:[%s1998_s6 + $0x180] ss:$8 sps:$4 sm:$0xff]  }
  0x45   : > { %1766 = vmatprep.mubr.msk.bf16.mxu0 %vm727_vm0, %v1851_v46  ;;  %1781 = vmatprep.mubr.msk.bf16.mxu1 %vm727_vm0, %v1853_v49  ;;  %v340_v46 = vld [vmem:[%s2623_s4 + $0x1c8] sm:$0xff] }
  0x46   : > { %v1903_v49 = vld [vmem:[%s1998_s6 + $0xa0] ss:$8 sps:$4 sm:$0xff]  }
  0x47   : > { %1352 = vperm.xlu0 %1827, %v312_v55   ;;  %1357 = vperm.xlu1 %1828, %v313_v56   ;;  %v1911_v55 = vld [vmem:[%s1998_s6 + $0xc4] ss:$8 sps:$4 sm:$0xff]   ;;  %v1913_v56 = vld [vmem:[%s1998_s6 + $0x1b4] ss:$8 sps:$4 sm:$0xff]  }
  0x4b   : > { %1362 = vperm.xlu0 %1827, %v314_v58   ;;  %1367 = vperm.xlu1 %1828, %v315_v59   ;;  %v1916_v58 = vld [vmem:[%s1998_s6 + $0x1b0] ss:$8 sps:$4 sm:$0xff]   ;;  %v1917_v59 = vld [vmem:[%s1998_s6 + $0xd4] ss:$8 sps:$4 sm:$0xff]  }
  0x4c   : > { %864 = vmatmul.mubr.bf16.gmra.mrb[8].mxu0 %v1855_v52  ;;  %984 = vmatmul.mubr.bf16.gmra.mrb[8].mxu1 %v1856_v53  ;;  %v1907_v52 = vld [vmem:[%s1998_s6 + $0x1a4] ss:$8 sps:$4 sm:$0xff]   ;;  %v1909_v53 = vld [vmem:[%s1998_s6 + $0xb0] ss:$8 sps:$4 sm:$0xff]  }
  0x4d   : > { %1767 = vmatprep.mubr.msk.bf16.mxu0 %vm727_vm0, %v1857_v54  ;;  %1782 = vmatprep.mubr.msk.bf16.mxu1 %vm727_vm0, %v1859_v57  ;;  %v1910_v54 = vld [vmem:[%s1998_s6 + $0x1a0] ss:$8 sps:$4 sm:$0xff]  }
  0x4e   : > { %v1915_v57 = vld [vmem:[%s1998_s6 + $0xc0] ss:$8 sps:$4 sm:$0xff]  }
  0x4f   : > { %1372 = vperm.xlu0 %1827, %v316_v62   ;;  %1377 = vperm.xlu1 %1828, %v317_v63   ;;  %v1922_v62 = vld [vmem:[%s1998_s6 + $0x1c0] ss:$8 sps:$4 sm:$0xff]   ;;  %v1923_v63 = vld [vmem:[%s1998_s6 + $0xe4] ss:$8 sps:$4 sm:$0xff]  }
  0x53   : > { %1382 = vperm.xlu0 %1827, %v318_v2   ;;  %1387 = vperm.xlu1 %1828, %v319_v3  }
  0x54   : > { %872 = vmatmul.mubr.bf16.gmra.mrb[12].mxu0 %v1861_v60  ;;  %992 = vmatmul.mubr.bf16.gmra.mrb[12].mxu1 %v1862_v61  ;;  %v1919_v60 = vld [vmem:[%s1998_s6 + $0x1c4] ss:$8 sps:$4 sm:$0xff]   ;;  %v1921_v61 = vld [vmem:[%s1998_s6 + $0xd0] ss:$8 sps:$4 sm:$0xff]  }
  0x55   : > { %1768 = vmatprep.mubr.msk.bf16.mxu0 %vm727_vm0, %v1863_v0  ;;  %1783 = vmatprep.mubr.msk.bf16.mxu1 %vm727_vm0, %v1865_v1  ;;  %v1925_v0 = vld [vmem:[%s1998_s6 + $0xe0] ss:$8 sps:$4 sm:$0xff]  }
  0x57   : > { %1392 = vperm.xlu0 %1827, %v320_v6   ;;  %1397 = vperm.xlu1 %1828, %v321_v7  }
  0x5b   : > { %1402 = vperm.xlu0 %1827, %v322_v10   ;;  %1407 = vperm.xlu1 %1828, %v323_v11  }
  0x5c   : > { %880 = vmatmul.mubr.bf16.gmra.mrb[16].mxu0 %v1867_v4  ;;  %1000 = vmatmul.mubr.bf16.gmra.mrb[16].mxu1 %v1868_v5 }
  0x5d   : > { %1769 = vmatprep.mubr.msk.bf16.mxu0 %vm727_vm0, %v1869_v8  ;;  %1784 = vmatprep.mubr.msk.bf16.mxu1 %vm727_vm0, %v1871_v9 }
  0x5f   : > { %1412 = vperm.xlu0 %1827, %v324_v14   ;;  %1417 = vperm.xlu1 %1828, %v325_v15  }
  0x63   : > { %1422 = vperm.xlu0 %1827, %v326_v18   ;;  %1427 = vperm.xlu1 %1828, %v327_v19  }
  0x64   : > { %888 = vmatmul.mubr.bf16.gmra.mrb[20].mxu0 %v1873_v12  ;;  %1008 = vmatmul.mubr.bf16.gmra.mrb[20].mxu1 %v1874_v13 }
  0x65   : > { %1770 = vmatprep.mubr.msk.bf16.mxu0 %vm727_vm0, %v1875_v16  ;;  %1785 = vmatprep.mubr.msk.bf16.mxu1 %vm727_vm0, %v1877_v17 }
  0x67   : > { %1432 = vperm.xlu0 %1827, %v328_v22   ;;  %1437 = vperm.xlu1 %1828, %v329_v23  }
  0x6b   : > { %1442 = vperm.xlu0 %1827, %v330_v26   ;;  %1447 = vperm.xlu1 %1828, %v331_v27  }
  0x6c   : > { %896 = vmatmul.mubr.bf16.gmra.mrb[24].mxu0 %v1879_v20  ;;  %1016 = vmatmul.mubr.bf16.gmra.mrb[24].mxu1 %v1880_v21 }
  0x6d   : > { %1771 = vmatprep.mubr.msk.bf16.mxu0 %vm727_vm0, %v1881_v24  ;;  %1786 = vmatprep.mubr.msk.bf16.mxu1 %vm727_vm0, %v1883_v25 }
  0x6f   : > { %1452 = vperm.xlu0 %1827, %v332_v30   ;;  %1457 = vperm.xlu1 %1828, %v333_v31   ;;  %v2343_v30 = vld [vmem:[%s255_s12] ss:$0 sm:$0xff] }
  0x73   : > { %1462 = vperm.xlu0 %1827, %v334_v34   ;;  %1467 = vperm.xlu1 %1828, %v335_v35  }
  0x74   : > { %904 = vmatmul.mubr.bf16.gmra.mrb[28].mxu0 %v1885_v28  ;;  %1024 = vmatmul.mubr.bf16.gmra.mrb[28].mxu1 %v1886_v29 }
  0x75   : > { %1772 = vmatprep.mubr.msk.bf16.mxu0 %vm727_vm0, %v1887_v32  ;;  %1787 = vmatprep.mubr.msk.bf16.mxu1 %vm727_vm0, %v1889_v33 }
  0x77   : > { %1472 = vperm.xlu0 %1827, %v336_v38   ;;  %1477 = vperm.xlu1 %1828, %v337_v39  }
  0x7b   : > { %1482 = vperm.xlu0 %1827, %v338_v42   ;;  %1487 = vperm.xlu1 %1828, %v339_v43  }
  0x7c   : > { %912 = vmatmul.mubr.bf16.gmra.mrb[32].mxu0 %v1891_v36  ;;  %1032 = vmatmul.mubr.bf16.gmra.mrb[32].mxu1 %v1892_v37 }
  0x7d   : > { %1773 = vmatprep.mubr.msk.bf16.mxu0 %vm727_vm0, %v1893_v40  ;;  %1788 = vmatprep.mubr.msk.bf16.mxu1 %vm727_vm0, %v1895_v41 }
  0x7f   : > { %1492 = vperm.xlu0 %1827, %v340_v46  }
  0x84   : > { %920 = vmatmul.mubr.bf16.gmra.mrb[36].mxu0 %v1897_v44  ;;  %1040 = vmatmul.mubr.bf16.gmra.mrb[36].mxu1 %v1898_v45 }
  0x85   : > { %1774 = vmatprep.mubr.msk.bf16.mxu0 %vm727_vm0, %v1899_v47  ;;  %1789 = vmatprep.mubr.msk.bf16.mxu1 %vm727_vm0, %v1901_v48 }
  0x89   : > { %v2285_v1 = vpop.permute.xlu0 %1144  ;;  %v1213_v3 = vpop.permute.xlu1 %1212 }
  0x8c   : > { %928 = vmatmul.mubr.bf16.gmra.mrb[40].mxu0 %v1903_v49  ;;  %1048 = vmatmul.mubr.bf16.gmra.mrb[40].mxu1 %v1904_v50 }
  0x8d   : > { %1775 = vmatprep.mubr.msk.bf16.mxu0 %vm727_vm0, %v1905_v51  ;;  %1790 = vmatprep.mubr.msk.bf16.mxu1 %vm727_vm0, %v1907_v52  ;;  %v1208_v2 = vpop.permute.xlu0 %1207  ;;  %v2289_v5 = vpop.permute.xlu1 %1217 }
  0x91   : > { %v2287_v4 = vpop.permute.xlu0 %1222  ;;  %v2293_v7 = vpop.permute.xlu1 %1227 }
  0x94   : > { %936 = vmatmul.mubr.bf16.gmra.mrb[44].mxu0 %v1909_v53  ;;  %1056 = vmatmul.mubr.bf16.gmra.mrb[44].mxu1 %v1910_v54 }
  0x95   : > { %1776 = vmatprep.mubr.msk.bf16.mxu0 %vm727_vm0, %v1911_v55  ;;  %1791 = vmatprep.mubr.msk.bf16.mxu1 %vm727_vm0, %v1913_v56 }
  0x96   : > { %v2291_v6 = vpop.permute.xlu0 %1232  ;;  %v2297_v9 = vpop.permute.xlu1 %1237 }
  0x9a   : > { %v2295_v8 = vpop.permute.xlu0 %1242  ;;  %v2301_v11 = vpop.permute.xlu1 %1247 }
  0x9c   : > { %944 = vmatmul.mubr.bf16.gmra.mrb[48].mxu0 %v1915_v57  ;;  %1064 = vmatmul.mubr.bf16.gmra.mrb[48].mxu1 %v1916_v58 }
  0x9d   : > { %1777 = vmatprep.mubr.msk.bf16.mxu0 %vm727_vm0, %v1917_v59  ;;  %1792 = vmatprep.mubr.msk.bf16.mxu1 %vm727_vm0, %v1919_v60 }
  0x9e   : > { %v2299_v10 = vpop.permute.xlu0 %1252  ;;  %v2305_v13 = vpop.permute.xlu1 %1257 }
  0xa2   : > { %v2303_v12 = vpop.permute.xlu0 %1262  ;;  %v2309_v15 = vpop.permute.xlu1 %1267 }
  0xa4   : > { %952 = vmatmul.mubr.bf16.gmra.mrb[52].mxu0 %v1921_v61  ;;  %1072 = vmatmul.mubr.bf16.gmra.mrb[52].mxu1 %v1922_v62 }
  0xa5   : > { %1778 = vmatprep.mubr.msk.bf16.mxu0 %vm727_vm0, %v1923_v63 }
  0xa6   : > { %v2307_v14 = vpop.permute.xlu0 %1272  ;;  %v2313_v17 = vpop.permute.xlu1 %1277 }
  0xaa   : > { %v2311_v16 = vpop.permute.xlu0 %1282  ;;  %v2317_v19 = vpop.permute.xlu1 %1287 }
  0xac   : > { %960 = vmatmul.mubr.bf16.gmra.mrb[56].mxu0 %v1925_v0 }
  0xae   : > { %v2315_v18 = vpop.permute.xlu0 %1292  ;;  %v2321_v21 = vpop.permute.xlu1 %1297 }
  0xb2   : > { %v2319_v20 = vpop.permute.xlu0 %1302  ;;  %v2325_v23 = vpop.permute.xlu1 %1307 }
  0xb6   : > { %v2323_v22 = vpop.permute.xlu0 %1312  ;;  %v2329_v25 = vpop.permute.xlu1 %1317 }
  0xba   : > { %v2327_v24 = vpop.permute.xlu0 %1322  ;;  %v2333_v27 = vpop.permute.xlu1 %1327 }
  0xbe   : > { %v2331_v26 = vpop.permute.xlu0 %1332  ;;  %v2337_v29 = vpop.permute.xlu1 %1337 }
  0xc2   : > { %v2335_v28 = vpop.permute.xlu0 %1342  ;;  %v2347_v32 = vpop.permute.xlu1 %1347 }
  0xc6   : > { %v2345_v31 = vpop.permute.xlu0 %1352  ;;  %v1358_v51 = vpop.permute.xlu1 %1357 }
  0xca   : > { %v1363_v52 = vpop.permute.xlu0 %1362 }
 0x10f   : > { %v849_v33 = vpop.f32.mrb[0].mxu0  ;;  %v969_v34 = vpop.f32.mrb[0].mxu1 }
 0x110   : > { %v850_v35 = vadd.f32 %v2343_v30, %v849_v33  ;;  %v970_v36 = vadd.f32 %v2343_v30, %v969_v34  ;;  %v851_v37 = vpop.f32.mrb[1].mxu0  ;;  %v971_v38 = vpop.f32.mrb[1].mxu1 }
 0x111   : > { %v852_v39 = vpop.f32.mrb[2].mxu0  ;;  %v972_v40 = vpop.f32.mrb[2].mxu1 }
 0x112   : > { %v1080_v41 = vmax.f32 %v850_v35, 0.0  ;;  %v1110_v42 = vmax.f32 %v970_v36, 0.0  ;;  %v853_v43 = vadd.f32 %v2343_v30, %v852_v39  ;;  %v973_v44 = vadd.f32 %v2343_v30, %v972_v40  ;;  %v854_v45 = vpop.f32.mrb[3].mxu0  ;;  %v974_v46 = vpop.f32.mrb[3].mxu1 }
 0x114   : > { %v1147_v47 = vmul.f32 %v2285_v1, %v1080_v41  ;;  %v1177_v48 = vmul.f32 %v2285_v1, %v1110_v42  ;;  %v1081_v49 = vmax.f32 %v853_v43, 0.0  ;;  %v1111_v50 = vmax.f32 %v973_v44, 0.0  ;;  %v1368_v43 = vpop.permute.xlu1 %1367  ;;  %v1373_v44 = vpop.permute.xlu0 %1372 }
 0x116   : > { %v1495_v53 = vmul.f32 %v1208_v2, %v1147_v47  ;;  %v1525_v54 = vmul.f32 %v1358_v51, %v1177_v48  ;;  %v1148_v55 = vmul.f32 %v2285_v1, %v1081_v49  ;;  %v1178_v56 = vmul.f32 %v2285_v1, %v1111_v50 }
 0x117   : > { %v857_v57 = vpop.f32.mrb[4].mxu0  ;;  %v977_v58 = vpop.f32.mrb[4].mxu1 }
 0x118   : > { %1553 = vst.msk [vmem:[%s2360_s15] sm:$0xff] %vm727_vm0, %v1495_v53  ;;  %1583 = vst.msk [vmem:[%s2360_s15 + $0xf0] sm:$0xff] %vm727_vm0, %v1525_v54  ;;  %v1496_v59 = vmul.f32 %v1213_v3, %v1148_v55  ;;  %v1526_v60 = vmul.f32 %v1363_v52, %v1178_v56  ;;  %v858_v61 = vadd.f32 %v2343_v30, %v857_v57  ;;  %v859_v63 = vpop.f32.mrb[5].mxu0  ;;  %v979_v0 = vpop.f32.mrb[5].mxu1 }
 0x119   : > { %v978_v62 = vadd.f32 %v2343_v30, %v977_v58  ;;  %v860_v2 = vpop.f32.mrb[6].mxu0  ;;  %v980_v33 = vpop.f32.mrb[6].mxu1 }
 0x11a   : > { %1554 = vst.msk [vmem:[%s2360_s15 + $0x8] sm:$0xff] %vm727_vm0, %v1496_v59  ;;  %1584 = vst.msk [vmem:[%s2360_s15 + $0xf8] sm:$0xff] %vm727_vm0, %v1526_v60  ;;  %v1082_v34 = vmax.f32 %v858_v61, 0.0  ;;  %v861_v36 = vadd.f32 %v2343_v30, %v860_v2  ;;  %v981_v3 = vadd.f32 %v2343_v30, %v980_v33  ;;  %v862_v37 = vpop.f32.mrb[7].mxu0  ;;  %v982_v38 = vpop.f32.mrb[7].mxu1 }
 0x11b   : > { %v1112_v35 = vmax.f32 %v978_v62, 0.0 }
 0x11c   : > { %v1149_v39 = vmul.f32 %v2285_v1, %v1082_v34  ;;  %v1083_v41 = vmax.f32 %v861_v36, 0.0  ;;  %v1113_v42 = vmax.f32 %v981_v3, 0.0  ;;  %v1378_v34 = vpop.permute.xlu1 %1377 }
 0x11d   : > { %v1179_v40 = vmul.f32 %v2285_v1, %v1112_v35  ;;  %v1383_v35 = vpop.permute.xlu0 %1382 }
 0x11e   : > { %v1497_v45 = vmul.f32 %v2289_v5, %v1149_v39  ;;  %v1150_v47 = vmul.f32 %v2285_v1, %v1083_v41  ;;  %v1180_v48 = vmul.f32 %v2285_v1, %v1113_v42 }
 0x11f   : > { %v1527_v46 = vmul.f32 %v1368_v43, %v1179_v40  ;;  %v865_v49 = vpop.f32.mrb[8].mxu0  ;;  %v985_v50 = vpop.f32.mrb[8].mxu1 }
 0x120   : > { %1555 = vst.msk [vmem:[%s2360_s15 + $0x10] sm:$0xff] %vm727_vm0, %v1497_v45  ;;  %v1498_v51 = vmul.f32 %v2287_v4, %v1150_v47  ;;  %v1528_v52 = vmul.f32 %v1373_v44, %v1180_v48  ;;  %v866_v53 = vadd.f32 %v2343_v30, %v865_v49  ;;  %v986_v5 = vadd.f32 %v2343_v30, %v985_v50  ;;  %v867_v54 = vpop.f32.mrb[9].mxu0  ;;  %v987_v55 = vpop.f32.mrb[9].mxu1 }
 0x121   : > { %1585 = vst.msk [vmem:[%s2360_s15 + $0x100] sm:$0xff] %vm727_vm0, %v1527_v46  ;;  %v868_v56 = vpop.f32.mrb[10].mxu0  ;;  %v988_v57 = vpop.f32.mrb[10].mxu1 }
 0x122   : > { %1556 = vst.msk [vmem:[%s2360_s15 + $0x18] sm:$0xff] %vm727_vm0, %v1498_v51  ;;  %1586 = vst.msk [vmem:[%s2360_s15 + $0x108] sm:$0xff] %vm727_vm0, %v1528_v52  ;;  %v1084_v58 = vmax.f32 %v866_v53, 0.0  ;;  %v1114_v59 = vmax.f32 %v986_v5, 0.0  ;;  %v869_v60 = vadd.f32 %v2343_v30, %v868_v56  ;;  %v989_v4 = vadd.f32 %v2343_v30, %v988_v57  ;;  %v870_v61 = vpop.f32.mrb[11].mxu0  ;;  %v990_v62 = vpop.f32.mrb[11].mxu1 }
 0x123   : > { %v1388_v56 = vpop.permute.xlu1 %1387  ;;  %v1393_v57 = vpop.permute.xlu0 %1392 }
 0x124   : > { %v1151_v63 = vmul.f32 %v2285_v1, %v1084_v58  ;;  %v1181_v0 = vmul.f32 %v2285_v1, %v1114_v59  ;;  %v1085_v2 = vmax.f32 %v869_v60, 0.0  ;;  %v1115_v33 = vmax.f32 %v989_v4, 0.0 }
 0x126   : > { %v1499_v36 = vmul.f32 %v2293_v7, %v1151_v63  ;;  %v1529_v3 = vmul.f32 %v1378_v34, %v1181_v0  ;;  %v1152_v37 = vmul.f32 %v2285_v1, %v1085_v2  ;;  %v1182_v38 = vmul.f32 %v2285_v1, %v1115_v33 }
 0x127   : > { %v873_v39 = vpop.f32.mrb[12].mxu0  ;;  %v993_v40 = vpop.f32.mrb[12].mxu1 }
 0x128   : > { %1557 = vst.msk [vmem:[%s2360_s15 + $0x20] sm:$0xff] %vm727_vm0, %v1499_v36  ;;  %1587 = vst.msk [vmem:[%s2360_s15 + $0x110] sm:$0xff] %vm727_vm0, %v1529_v3  ;;  %v1500_v41 = vmul.f32 %v2291_v6, %v1152_v37  ;;  %v1530_v42 = vmul.f32 %v1383_v35, %v1182_v38  ;;  %v874_v43 = vadd.f32 %v2343_v30, %v873_v39  ;;  %v875_v44 = vpop.f32.mrb[13].mxu0  ;;  %v995_v45 = vpop.f32.mrb[13].mxu1 }
 0x129   : > { %v994_v7 = vadd.f32 %v2343_v30, %v993_v40  ;;  %v876_v46 = vpop.f32.mrb[14].mxu0  ;;  %v996_v47 = vpop.f32.mrb[14].mxu1 }
 0x12a   : > { %1558 = vst.msk [vmem:[%s2360_s15 + $0x28] sm:$0xff] %vm727_vm0, %v1500_v41  ;;  %1588 = vst.msk [vmem:[%s2360_s15 + $0x118] sm:$0xff] %vm727_vm0, %v1530_v42  ;;  %v1086_v48 = vmax.f32 %v874_v43, 0.0  ;;  %v877_v50 = vadd.f32 %v2343_v30, %v876_v46  ;;  %v997_v6 = vadd.f32 %v2343_v30, %v996_v47  ;;  %v878_v51 = vpop.f32.mrb[15].mxu0  ;;  %v998_v52 = vpop.f32.mrb[15].mxu1 }
 0x12b   : > { %v1116_v49 = vmax.f32 %v994_v7, 0.0  ;;  %v1398_v44 = vpop.permute.xlu1 %1397  ;;  %v1403_v45 = vpop.permute.xlu0 %1402 }
 0x12c   : > { %v1153_v53 = vmul.f32 %v2285_v1, %v1086_v48  ;;  %v1087_v54 = vmax.f32 %v877_v50, 0.0  ;;  %v1117_v55 = vmax.f32 %v997_v6, 0.0 }
 0x12d   : > { %v1183_v5 = vmul.f32 %v2285_v1, %v1116_v49 }
 0x12e   : > { %v1501_v58 = vmul.f32 %v2297_v9, %v1153_v53  ;;  %v1154_v60 = vmul.f32 %v2285_v1, %v1087_v54  ;;  %v1184_v4 = vmul.f32 %v2285_v1, %v1117_v55 }
 0x12f   : > { %v1531_v59 = vmul.f32 %v1388_v56, %v1183_v5  ;;  %v881_v61 = vpop.f32.mrb[16].mxu0  ;;  %v1001_v62 = vpop.f32.mrb[16].mxu1 }
 0x130   : > { %1559 = vst.msk [vmem:[%s2360_s15 + $0x30] sm:$0xff] %vm727_vm0, %v1501_v58  ;;  %v1502_v63 = vmul.f32 %v2295_v8, %v1154_v60  ;;  %v1532_v0 = vmul.f32 %v1393_v57, %v1184_v4  ;;  %v882_v2 = vadd.f32 %v2343_v30, %v881_v61  ;;  %v1002_v9 = vadd.f32 %v2343_v30, %v1001_v62  ;;  %v883_v33 = vpop.f32.mrb[17].mxu0  ;;  %v1003_v34 = vpop.f32.mrb[17].mxu1 }
 0x131   : > { %1589 = vst.msk [vmem:[%s2360_s15 + $0x120] sm:$0xff] %vm727_vm0, %v1531_v59  ;;  %v884_v35 = vpop.f32.mrb[18].mxu0  ;;  %v1004_v36 = vpop.f32.mrb[18].mxu1 }
 0x132   : > { %1560 = vst.msk [vmem:[%s2360_s15 + $0x38] sm:$0xff] %vm727_vm0, %v1502_v63  ;;  %1590 = vst.msk [vmem:[%s2360_s15 + $0x128] sm:$0xff] %vm727_vm0, %v1532_v0  ;;  %v1088_v3 = vmax.f32 %v882_v2, 0.0  ;;  %v1118_v37 = vmax.f32 %v1002_v9, 0.0  ;;  %v885_v38 = vadd.f32 %v2343_v30, %v884_v35  ;;  %v1005_v8 = vadd.f32 %v2343_v30, %v1004_v36  ;;  %v886_v39 = vpop.f32.mrb[19].mxu0  ;;  %v1006_v40 = vpop.f32.mrb[19].mxu1 }
 0x133   : > { %v1408_v2 = vpop.permute.xlu1 %1407  ;;  %v1413_v9 = vpop.permute.xlu0 %1412 }
 0x134   : > { %v1155_v41 = vmul.f32 %v2285_v1, %v1088_v3  ;;  %v1185_v42 = vmul.f32 %v2285_v1, %v1118_v37  ;;  %v1089_v43 = vmax.f32 %v885_v38, 0.0  ;;  %v1119_v7 = vmax.f32 %v1005_v8, 0.0 }
 0x136   : > { %v1503_v46 = vmul.f32 %v2301_v11, %v1155_v41  ;;  %v1533_v47 = vmul.f32 %v1398_v44, %v1185_v42  ;;  %v1156_v48 = vmul.f32 %v2285_v1, %v1089_v43  ;;  %v1186_v49 = vmul.f32 %v2285_v1, %v1119_v7 }
 0x137   : > { %v889_v50 = vpop.f32.mrb[20].mxu0  ;;  %v1009_v6 = vpop.f32.mrb[20].mxu1 }
 0x138   : > { %1561 = vst.msk [vmem:[%s2360_s15 + $0x40] sm:$0xff] %vm727_vm0, %v1503_v46  ;;  %1591 = vst.msk [vmem:[%s2360_s15 + $0x130] sm:$0xff] %vm727_vm0, %v1533_v47  ;;  %v1504_v51 = vmul.f32 %v2299_v10, %v1156_v48  ;;  %v1534_v52 = vmul.f32 %v1403_v45, %v1186_v49  ;;  %v890_v53 = vadd.f32 %v2343_v30, %v889_v50  ;;  %v891_v5 = vpop.f32.mrb[21].mxu0  ;;  %v1011_v54 = vpop.f32.mrb[21].mxu1 }
 0x139   : > { %v1010_v11 = vadd.f32 %v2343_v30, %v1009_v6  ;;  %v892_v55 = vpop.f32.mrb[22].mxu0  ;;  %v1012_v56 = vpop.f32.mrb[22].mxu1 }
 0x13a   : > { %1562 = vst.msk [vmem:[%s2360_s15 + $0x48] sm:$0xff] %vm727_vm0, %v1504_v51  ;;  %1592 = vst.msk [vmem:[%s2360_s15 + $0x138] sm:$0xff] %vm727_vm0, %v1534_v52  ;;  %v1090_v57 = vmax.f32 %v890_v53, 0.0  ;;  %v893_v59 = vadd.f32 %v2343_v30, %v892_v55  ;;  %v1013_v10 = vadd.f32 %v2343_v30, %v1012_v56  ;;  %v894_v60 = vpop.f32.mrb[23].mxu0  ;;  %v1014_v4 = vpop.f32.mrb[23].mxu1 }
 0x13b   : > { %v1120_v58 = vmax.f32 %v1010_v11, 0.0  ;;  %v1418_v51 = vpop.permute.xlu1 %1417  ;;  %v1423_v52 = vpop.permute.xlu0 %1422 }
 0x13c   : > { %v1157_v61 = vmul.f32 %v2285_v1, %v1090_v57  ;;  %v1091_v63 = vmax.f32 %v893_v59, 0.0  ;;  %v1121_v0 = vmax.f32 %v1013_v10, 0.0 }
 0x13d   : > { %v1187_v62 = vmul.f32 %v2285_v1, %v1120_v58 }
 0x13e   : > { %v1505_v33 = vmul.f32 %v2305_v13, %v1157_v61  ;;  %v1158_v35 = vmul.f32 %v2285_v1, %v1091_v63  ;;  %v1188_v36 = vmul.f32 %v2285_v1, %v1121_v0 }
 0x13f   : > { %v1535_v34 = vmul.f32 %v1408_v2, %v1187_v62  ;;  %v897_v3 = vpop.f32.mrb[24].mxu0  ;;  %v1017_v37 = vpop.f32.mrb[24].mxu1 }
 0x140   : > { %1563 = vst.msk [vmem:[%s2360_s15 + $0x50] sm:$0xff] %vm727_vm0, %v1505_v33  ;;  %v1506_v38 = vmul.f32 %v2303_v12, %v1158_v35  ;;  %v1536_v8 = vmul.f32 %v1413_v9, %v1188_v36  ;;  %v898_v39 = vadd.f32 %v2343_v30, %v897_v3  ;;  %v1018_v13 = vadd.f32 %v2343_v30, %v1017_v37  ;;  %v899_v40 = vpop.f32.mrb[25].mxu0  ;;  %v1019_v41 = vpop.f32.mrb[25].mxu1 }
 0x141   : > { %1593 = vst.msk [vmem:[%s2360_s15 + $0x140] sm:$0xff] %vm727_vm0, %v1535_v34  ;;  %v900_v42 = vpop.f32.mrb[26].mxu0  ;;  %v1020_v43 = vpop.f32.mrb[26].mxu1 }
 0x142   : > { %1564 = vst.msk [vmem:[%s2360_s15 + $0x58] sm:$0xff] %vm727_vm0, %v1506_v38  ;;  %1594 = vst.msk [vmem:[%s2360_s15 + $0x148] sm:$0xff] %vm727_vm0, %v1536_v8  ;;  %v1092_v7 = vmax.f32 %v898_v39, 0.0  ;;  %v1122_v44 = vmax.f32 %v1018_v13, 0.0  ;;  %v901_v45 = vadd.f32 %v2343_v30, %v900_v42  ;;  %v1021_v12 = vadd.f32 %v2343_v30, %v1020_v43  ;;  %v902_v46 = vpop.f32.mrb[27].mxu0  ;;  %v1022_v47 = vpop.f32.mrb[27].mxu1 }
 0x143   : > { %v1428_v3 = vpop.permute.xlu1 %1427  ;;  %v1433_v37 = vpop.permute.xlu0 %1432 }
 0x144   : > { %v1159_v48 = vmul.f32 %v2285_v1, %v1092_v7  ;;  %v1189_v49 = vmul.f32 %v2285_v1, %v1122_v44  ;;  %v1093_v50 = vmax.f32 %v901_v45, 0.0  ;;  %v1123_v6 = vmax.f32 %v1021_v12, 0.0 }
 0x146   : > { %v1507_v53 = vmul.f32 %v2309_v15, %v1159_v48  ;;  %v1537_v11 = vmul.f32 %v1418_v51, %v1189_v49  ;;  %v1160_v5 = vmul.f32 %v2285_v1, %v1093_v50  ;;  %v1190_v54 = vmul.f32 %v2285_v1, %v1123_v6 }
 0x147   : > { %v905_v55 = vpop.f32.mrb[28].mxu0  ;;  %v1025_v56 = vpop.f32.mrb[28].mxu1 }
 0x148   : > { %1565 = vst.msk [vmem:[%s2360_s15 + $0x60] sm:$0xff] %vm727_vm0, %v1507_v53  ;;  %1595 = vst.msk [vmem:[%s2360_s15 + $0x150] sm:$0xff] %vm727_vm0, %v1537_v11  ;;  %v1508_v57 = vmul.f32 %v2307_v14, %v1160_v5  ;;  %v1538_v58 = vmul.f32 %v1423_v52, %v1190_v54  ;;  %v906_v59 = vadd.f32 %v2343_v30, %v905_v55  ;;  %v907_v10 = vpop.f32.mrb[29].mxu0  ;;  %v1027_v60 = vpop.f32.mrb[29].mxu1 }
 0x149   : > { %v1026_v15 = vadd.f32 %v2343_v30, %v1025_v56  ;;  %v908_v4 = vpop.f32.mrb[30].mxu0  ;;  %v1028_v61 = vpop.f32.mrb[30].mxu1 }
 0x14a   : > { %1566 = vst.msk [vmem:[%s2360_s15 + $0x68] sm:$0xff] %vm727_vm0, %v1508_v57  ;;  %1596 = vst.msk [vmem:[%s2360_s15 + $0x158] sm:$0xff] %vm727_vm0, %v1538_v58  ;;  %v1094_v62 = vmax.f32 %v906_v59, 0.0  ;;  %v909_v0 = vadd.f32 %v2343_v30, %v908_v4  ;;  %v1029_v14 = vadd.f32 %v2343_v30, %v1028_v61  ;;  %v910_v2 = vpop.f32.mrb[31].mxu0  ;;  %v1030_v9 = vpop.f32.mrb[31].mxu1 }
 0x14b   : > { %v1124_v63 = vmax.f32 %v1026_v15, 0.0  ;;  %v1438_v5 = vpop.permute.xlu1 %1437  ;;  %v1443_v54 = vpop.permute.xlu0 %1442 }
 0x14c   : > { %v1161_v33 = vmul.f32 %v2285_v1, %v1094_v62  ;;  %v1095_v35 = vmax.f32 %v909_v0, 0.0  ;;  %v1125_v36 = vmax.f32 %v1029_v14, 0.0 }
 0x14d   : > { %v1191_v34 = vmul.f32 %v2285_v1, %v1124_v63 }
 0x14e   : > { %v1509_v38 = vmul.f32 %v2313_v17, %v1161_v33  ;;  %v1162_v39 = vmul.f32 %v2285_v1, %v1095_v35  ;;  %v1192_v13 = vmul.f32 %v2285_v1, %v1125_v36 }
 0x14f   : > { %v1539_v8 = vmul.f32 %v1428_v3, %v1191_v34  ;;  %v913_v40 = vpop.f32.mrb[32].mxu0  ;;  %v1033_v41 = vpop.f32.mrb[32].mxu1 }
 0x150   : > { %1567 = vst.msk [vmem:[%s2360_s15 + $0x70] sm:$0xff] %vm727_vm0, %v1509_v38  ;;  %v1510_v42 = vmul.f32 %v2311_v16, %v1162_v39  ;;  %v1540_v43 = vmul.f32 %v1433_v37, %v1192_v13  ;;  %v914_v7 = vadd.f32 %v2343_v30, %v913_v40  ;;  %v1034_v17 = vadd.f32 %v2343_v30, %v1033_v41  ;;  %v915_v44 = vpop.f32.mrb[33].mxu0  ;;  %v1035_v45 = vpop.f32.mrb[33].mxu1 }
 0x151   : > { %1597 = vst.msk [vmem:[%s2360_s15 + $0x160] sm:$0xff] %vm727_vm0, %v1539_v8  ;;  %v916_v12 = vpop.f32.mrb[34].mxu0  ;;  %v1036_v46 = vpop.f32.mrb[34].mxu1 }
 0x152   : > { %1568 = vst.msk [vmem:[%s2360_s15 + $0x78] sm:$0xff] %vm727_vm0, %v1510_v42  ;;  %1598 = vst.msk [vmem:[%s2360_s15 + $0x168] sm:$0xff] %vm727_vm0, %v1540_v43  ;;  %v1096_v47 = vmax.f32 %v914_v7, 0.0  ;;  %v1126_v48 = vmax.f32 %v1034_v17, 0.0  ;;  %v917_v49 = vadd.f32 %v2343_v30, %v916_v12  ;;  %v1037_v16 = vadd.f32 %v2343_v30, %v1036_v46  ;;  %v918_v50 = vpop.f32.mrb[35].mxu0  ;;  %v1038_v6 = vpop.f32.mrb[35].mxu1 }
 0x153   : > { %v1448_v38 = vpop.permute.xlu1 %1447  ;;  %v1453_v8 = vpop.permute.xlu0 %1452 }
 0x154   : > { %v1163_v51 = vmul.f32 %v2285_v1, %v1096_v47  ;;  %v1193_v52 = vmul.f32 %v2285_v1, %v1126_v48  ;;  %v1097_v53 = vmax.f32 %v917_v49, 0.0  ;;  %v1127_v11 = vmax.f32 %v1037_v16, 0.0 }
 0x156   : > { %v1511_v55 = vmul.f32 %v2317_v19, %v1163_v51  ;;  %v1541_v56 = vmul.f32 %v1438_v5, %v1193_v52  ;;  %v1164_v57 = vmul.f32 %v2285_v1, %v1097_v53  ;;  %v1194_v58 = vmul.f32 %v2285_v1, %v1127_v11 }
 0x157   : > { %v921_v59 = vpop.f32.mrb[36].mxu0  ;;  %v1041_v15 = vpop.f32.mrb[36].mxu1 }
 0x158   : > { %1569 = vst.msk [vmem:[%s2360_s15 + $0x80] sm:$0xff] %vm727_vm0, %v1511_v55  ;;  %1599 = vst.msk [vmem:[%s2360_s15 + $0x170] sm:$0xff] %vm727_vm0, %v1541_v56  ;;  %v1512_v10 = vmul.f32 %v2315_v18, %v1164_v57  ;;  %v1542_v60 = vmul.f32 %v1443_v54, %v1194_v58  ;;  %v922_v4 = vadd.f32 %v2343_v30, %v921_v59  ;;  %v923_v61 = vpop.f32.mrb[37].mxu0  ;;  %v1043_v62 = vpop.f32.mrb[37].mxu1 }
 0x159   : > { %v1042_v19 = vadd.f32 %v2343_v30, %v1041_v15  ;;  %v924_v63 = vpop.f32.mrb[38].mxu0  ;;  %v1044_v0 = vpop.f32.mrb[38].mxu1 }
 0x15a   : > { %1570 = vst.msk [vmem:[%s2360_s15 + $0x88] sm:$0xff] %vm727_vm0, %v1512_v10  ;;  %1600 = vst.msk [vmem:[%s2360_s15 + $0x178] sm:$0xff] %vm727_vm0, %v1542_v60  ;;  %v1098_v14 = vmax.f32 %v922_v4, 0.0  ;;  %v925_v9 = vadd.f32 %v2343_v30, %v924_v63  ;;  %v1045_v18 = vadd.f32 %v2343_v30, %v1044_v0  ;;  %v926_v33 = vpop.f32.mrb[39].mxu0  ;;  %v1046_v34 = vpop.f32.mrb[39].mxu1 }
 0x15b   : > { %v1128_v2 = vmax.f32 %v1042_v19, 0.0  ;;  %v1458_v5 = vpop.permute.xlu1 %1457  ;;  %v1463_v54 = vpop.permute.xlu0 %1462 }
 0x15c   : > { %v1165_v35 = vmul.f32 %v2285_v1, %v1098_v14  ;;  %v1099_v3 = vmax.f32 %v925_v9, 0.0  ;;  %v1129_v37 = vmax.f32 %v1045_v18, 0.0 }
 0x15d   : > { %v1195_v36 = vmul.f32 %v2285_v1, %v1128_v2 }
 0x15e   : > { %v1513_v39 = vmul.f32 %v2321_v21, %v1165_v35  ;;  %v1166_v40 = vmul.f32 %v2285_v1, %v1099_v3  ;;  %v1196_v41 = vmul.f32 %v2285_v1, %v1129_v37 }
 0x15f   : > { %v1543_v13 = vmul.f32 %v1448_v38, %v1195_v36  ;;  %v929_v42 = vpop.f32.mrb[40].mxu0  ;;  %v1049_v43 = vpop.f32.mrb[40].mxu1 }
 0x160   : > { %1571 = vst.msk [vmem:[%s2360_s15 + $0x90] sm:$0xff] %vm727_vm0, %v1513_v39  ;;  %v1514_v7 = vmul.f32 %v2319_v20, %v1166_v40  ;;  %v1544_v17 = vmul.f32 %v1453_v8, %v1196_v41  ;;  %v930_v44 = vadd.f32 %v2343_v30, %v929_v42  ;;  %v1050_v21 = vadd.f32 %v2343_v30, %v1049_v43  ;;  %v931_v45 = vpop.f32.mrb[41].mxu0  ;;  %v1051_v12 = vpop.f32.mrb[41].mxu1 }
 0x161   : > { %1601 = vst.msk [vmem:[%s2360_s15 + $0x180] sm:$0xff] %vm727_vm0, %v1543_v13  ;;  %v932_v46 = vpop.f32.mrb[42].mxu0  ;;  %v1052_v47 = vpop.f32.mrb[42].mxu1 }
 0x162   : > { %1572 = vst.msk [vmem:[%s2360_s15 + $0x98] sm:$0xff] %vm727_vm0, %v1514_v7  ;;  %1602 = vst.msk [vmem:[%s2360_s15 + $0x188] sm:$0xff] %vm727_vm0, %v1544_v17  ;;  %v1100_v48 = vmax.f32 %v930_v44, 0.0  ;;  %v1130_v49 = vmax.f32 %v1050_v21, 0.0  ;;  %v933_v16 = vadd.f32 %v2343_v30, %v932_v46  ;;  %v1053_v20 = vadd.f32 %v2343_v30, %v1052_v47  ;;  %v934_v50 = vpop.f32.mrb[43].mxu0  ;;  %v1054_v6 = vpop.f32.mrb[43].mxu1 }
 0x163   : > { %v1468_v3 = vpop.permute.xlu1 %1467  ;;  %v1473_v37 = vpop.permute.xlu0 %1472 }
 0x164   : > { %v1167_v51 = vmul.f32 %v2285_v1, %v1100_v48  ;;  %v1197_v52 = vmul.f32 %v2285_v1, %v1130_v49  ;;  %v1101_v53 = vmax.f32 %v933_v16, 0.0  ;;  %v1131_v11 = vmax.f32 %v1053_v20, 0.0 }
 0x166   : > { %v1515_v55 = vmul.f32 %v2325_v23, %v1167_v51  ;;  %v1545_v56 = vmul.f32 %v1458_v5, %v1197_v52  ;;  %v1168_v57 = vmul.f32 %v2285_v1, %v1101_v53  ;;  %v1198_v58 = vmul.f32 %v2285_v1, %v1131_v11 }
 0x167   : > { %v937_v59 = vpop.f32.mrb[44].mxu0  ;;  %v1057_v15 = vpop.f32.mrb[44].mxu1 }
 0x168   : > { %1573 = vst.msk [vmem:[%s2360_s15 + $0xa0] sm:$0xff] %vm727_vm0, %v1515_v55  ;;  %1603 = vst.msk [vmem:[%s2360_s15 + $0x190] sm:$0xff] %vm727_vm0, %v1545_v56  ;;  %v1516_v10 = vmul.f32 %v2323_v22, %v1168_v57  ;;  %v1546_v60 = vmul.f32 %v1463_v54, %v1198_v58  ;;  %v938_v4 = vadd.f32 %v2343_v30, %v937_v59  ;;  %v939_v19 = vpop.f32.mrb[45].mxu0  ;;  %v1059_v61 = vpop.f32.mrb[45].mxu1 }
 0x169   : > { %v1058_v23 = vadd.f32 %v2343_v30, %v1057_v15  ;;  %v940_v62 = vpop.f32.mrb[46].mxu0  ;;  %v1060_v63 = vpop.f32.mrb[46].mxu1 }
 0x16a   : > { %1574 = vst.msk [vmem:[%s2360_s15 + $0xa8] sm:$0xff] %vm727_vm0, %v1516_v10  ;;  %1604 = vst.msk [vmem:[%s2360_s15 + $0x198] sm:$0xff] %vm727_vm0, %v1546_v60  ;;  %v1102_v0 = vmax.f32 %v938_v4, 0.0  ;;  %v941_v2 = vadd.f32 %v2343_v30, %v940_v62  ;;  %v1061_v22 = vadd.f32 %v2343_v30, %v1060_v63  ;;  %v942_v9 = vpop.f32.mrb[47].mxu0  ;;  %v1062_v18 = vpop.f32.mrb[47].mxu1 }
 0x16b   : > { %v1132_v14 = vmax.f32 %v1058_v23, 0.0  ;;  %v1478_v51 = vpop.permute.xlu1 %1477  ;;  %v1483_v52 = vpop.permute.xlu0 %1482 }
 0x16c   : > { %v1169_v33 = vmul.f32 %v2285_v1, %v1102_v0  ;;  %v1103_v35 = vmax.f32 %v941_v2, 0.0  ;;  %v1133_v36 = vmax.f32 %v1061_v22, 0.0 }
 0x16d   : > { %v1199_v34 = vmul.f32 %v2285_v1, %v1132_v14 }
 0x16e   : > { %v1517_v38 = vmul.f32 %v2329_v25, %v1169_v33  ;;  %v1170_v39 = vmul.f32 %v2285_v1, %v1103_v35  ;;  %v1200_v13 = vmul.f32 %v2285_v1, %v1133_v36 }
 0x16f   : > { %v1547_v8 = vmul.f32 %v1468_v3, %v1199_v34  ;;  %v945_v40 = vpop.f32.mrb[48].mxu0  ;;  %v1065_v41 = vpop.f32.mrb[48].mxu1 }
 0x170   : > { %1575 = vst.msk [vmem:[%s2360_s15 + $0xb0] sm:$0xff] %vm727_vm0, %v1517_v38  ;;  %v1518_v42 = vmul.f32 %v2327_v24, %v1170_v39  ;;  %v1548_v43 = vmul.f32 %v1473_v37, %v1200_v13  ;;  %v946_v7 = vadd.f32 %v2343_v30, %v945_v40  ;;  %v1066_v25 = vadd.f32 %v2343_v30, %v1065_v41  ;;  %v947_v17 = vpop.f32.mrb[49].mxu0  ;;  %v1067_v44 = vpop.f32.mrb[49].mxu1 }
 0x171   : > { %1605 = vst.msk [vmem:[%s2360_s15 + $0x1a0] sm:$0xff] %vm727_vm0, %v1547_v8  ;;  %v948_v21 = vpop.f32.mrb[50].mxu0  ;;  %v1068_v45 = vpop.f32.mrb[50].mxu1 }
 0x172   : > { %1576 = vst.msk [vmem:[%s2360_s15 + $0xb8] sm:$0xff] %vm727_vm0, %v1518_v42  ;;  %1606 = vst.msk [vmem:[%s2360_s15 + $0x1a8] sm:$0xff] %vm727_vm0, %v1548_v43  ;;  %v1104_v12 = vmax.f32 %v946_v7, 0.0  ;;  %v1134_v46 = vmax.f32 %v1066_v25, 0.0  ;;  %v949_v47 = vadd.f32 %v2343_v30, %v948_v21  ;;  %v1069_v24 = vadd.f32 %v2343_v30, %v1068_v45  ;;  %v950_v48 = vpop.f32.mrb[51].mxu0  ;;  %v1070_v49 = vpop.f32.mrb[51].mxu1 }
 0x173   : > { %v1488_v9 = vpop.permute.xlu1 %1487  ;;  %v1493_v36 = vpop.permute.xlu0 %1492 }
 0x174   : > { %v1171_v16 = vmul.f32 %v2285_v1, %v1104_v12  ;;  %v1201_v20 = vmul.f32 %v2285_v1, %v1134_v46  ;;  %v1105_v50 = vmax.f32 %v949_v47, 0.0  ;;  %v1135_v6 = vmax.f32 %v1069_v24, 0.0 }
 0x176   : > { %v1519_v53 = vmul.f32 %v2333_v27, %v1171_v16  ;;  %v1549_v11 = vmul.f32 %v1478_v51, %v1201_v20  ;;  %v1172_v5 = vmul.f32 %v2285_v1, %v1105_v50  ;;  %v1202_v54 = vmul.f32 %v2285_v1, %v1135_v6 }
 0x177   : > { %v953_v55 = vpop.f32.mrb[52].mxu0  ;;  %v1073_v56 = vpop.f32.mrb[52].mxu1 }
 0x178   : > { %1577 = vst.msk [vmem:[%s2360_s15 + $0xc0] sm:$0xff] %vm727_vm0, %v1519_v53  ;;  %1607 = vst.msk [vmem:[%s2360_s15 + $0x1b0] sm:$0xff] %vm727_vm0, %v1549_v11  ;;  %v1520_v57 = vmul.f32 %v2331_v26, %v1172_v5  ;;  %v1550_v58 = vmul.f32 %v1483_v52, %v1202_v54  ;;  %v954_v59 = vadd.f32 %v2343_v30, %v953_v55  ;;  %v955_v15 = vpop.f32.mrb[53].mxu0  ;;  %v1075_v10 = vpop.f32.mrb[53].mxu1 }
 0x179   : > { %v1074_v27 = vadd.f32 %v2343_v30, %v1073_v56  ;;  %v956_v60 = vpop.f32.mrb[54].mxu0  ;;  %v1076_v4 = vpop.f32.mrb[54].mxu1 }
 0x17a   : > { %1578 = vst.msk [vmem:[%s2360_s15 + $0xc8] sm:$0xff] %vm727_vm0, %v1520_v57  ;;  %1608 = vst.msk [vmem:[%s2360_s15 + $0x1b8] sm:$0xff] %vm727_vm0, %v1550_v58  ;;  %v1106_v23 = vmax.f32 %v954_v59, 0.0  ;;  %v957_v61 = vadd.f32 %v2343_v30, %v956_v60  ;;  %v1077_v26 = vadd.f32 %v2343_v30, %v1076_v4  ;;  %v958_v62 = vpop.f32.mrb[55].mxu0  ;;  %v1078_v63 = vpop.f32.mrb[55].mxu1 }
 0x17b   : > { %v1136_v19 = vmax.f32 %v1074_v27, 0.0 }
 0x17c   : > { %v1173_v0 = vmul.f32 %v2285_v1, %v1106_v23  ;;  %v1107_v2 = vmax.f32 %v957_v61, 0.0  ;;  %v1137_v22 = vmax.f32 %v1077_v26, 0.0 }
 0x17d   : > { %v1203_v14 = vmul.f32 %v2285_v1, %v1136_v19 }
 0x17e   : > { %v1521_v18 = vmul.f32 %v2337_v29, %v1173_v0  ;;  %v1174_v34 = vmul.f32 %v2285_v1, %v1107_v2  ;;  %v1204_v35 = vmul.f32 %v2285_v1, %v1137_v22 }
 0x17f   : > { %v1551_v33 = vmul.f32 %v1488_v9, %v1203_v14  ;;  %v961_v3 = vpop.f32.mrb[56].mxu0 }
 0x180   : > { %1579 = vst.msk [vmem:[%s2360_s15 + $0xd0] sm:$0xff] %vm727_vm0, %v1521_v18  ;;  %v1522_v37 = vmul.f32 %v2335_v28, %v1174_v34  ;;  %v1552_v38 = vmul.f32 %v1493_v36, %v1204_v35  ;;  %v962_v8 = vadd.f32 %v2343_v30, %v961_v3  ;;  %v963_v39 = vpop.f32.mrb[57].mxu0 }
 0x181   : > { %1609 = vst.msk [vmem:[%s2360_s15 + $0x1c0] sm:$0xff] %vm727_vm0, %v1551_v33  ;;  %v964_v29 = vpop.f32.mrb[58].mxu0 }
 0x182   : > { %1580 = vst.msk [vmem:[%s2360_s15 + $0xd8] sm:$0xff] %vm727_vm0, %v1522_v37  ;;  %1610 = vst.msk [vmem:[%s2360_s15 + $0x1c8] sm:$0xff] %vm727_vm0, %v1552_v38  ;;  %v1108_v13 = vmax.f32 %v962_v8, 0.0  ;;  %v965_v40 = vadd.f32 %v2343_v30, %v964_v29  ;;  %v966_v41 = vpop.f32.mrb[59].mxu0 }
 0x184   : > { %v1175_v42 = vmul.f32 %v2285_v1, %v1108_v13  ;;  %v1109_v43 = vmax.f32 %v965_v40, 0.0 }
 0x186   : > { %v1523_v7 = vmul.f32 %v2347_v32, %v1175_v42  ;;  %v1176_v28 = vmul.f32 %v2285_v1, %v1109_v43 }
 0x188   : > { %1581 = vst.msk [vmem:[%s2360_s15 + $0xe0] sm:$0xff] %vm727_vm0, %v1523_v7  ;;  %v1524_v25 = vmul.f32 %v2345_v31, %v1176_v28 }
 0x18a   : > { %1582 = vst.msk [vmem:[%s2360_s15 + $0xe8] sm:$0xff] %vm727_vm0, %v1524_v25 }
 0x18b PF: > { %s17_s20 = sadd.s32 1, %s1932_s20  }
 0x18c   : > { %p14_p4 = scmp.ge.s32.totalorder %s17_s20, 5  }
 0x18e   :  { %16 = sbr.rel (!%p14_p4) target bundleno = 3 (0x3), region = 76 }

// kernel: _lambda_.14
= control target key start
LH: loop header
LB: loop body
LE: loop exit
PB: predicated region body
PF: predicated region fallthrough
CT: control target
= control target key end

     0   :  { %s2150_s23 = smov 0   ;;  %s2870_s0 = inlined_call_operand.vmem [shape: bf16[3,1,464,160], index: 0, kind: input, shape index: {}]   ;;  %s2871_s1 = inlined_call_operand.vmem [shape: bf16[3,160,32], index: 1, kind: input, shape index: {}]   ;;  %s2872_s2 = inlined_call_operand.vmem [shape: f32[3,1,1,32], index: 2, kind: input, shape index: {}]   ;;  %s2873_s3 = inlined_call_operand.<no memory space> [shape: f32[1,1,1,1], index: 3, kind: input, shape index: {}]   ;;  %s2874_s4 = inlined_call_operand.vmem [shape: f32[1,1,464,1], index: 4, kind: input, shape index: {}]   ;;  %s2875_s5 = inlined_call_operand.vmem [shape: f32[3,1,464,32], index: 5, kind: input, shape index: {}]   ;;  %s2876_s6 = inlined_call_operand.vmem [shape: f32[3,1,464,32], index: 6, kind: output, shape index: {}]  }
   0x1   :  { %v11_v0 = vstv %s2873_s3 }
   0x2   :  { %12 = vst [vmem:[#allocation2] sm:$0x1] %v11_v0 }
   0x3 LB: > { %s1862_s24 = sadd.s32 4294967295, %s2109_s23   ;;  %p1866_p0 = scmp.ge.s32.totalorder %s2109_s23, 1  ;;  %s2109_s23 = sphi %s2150_s23, %s18_s23  }
   0x4   : > { %p242_p1 = scmp.lt.s32.totalorder %s2109_s23, 4 }
   0x6   : > { %p243_p2 = pnand %p1866_p0, %p242_p1 }
   0x7   : > { %p285_p3 = scmp.lt.s32.totalorder (!%p243_p2), %s1862_s24, 2  ;;  %v331_v2 = vld [vmem:[%s2874_s4 + $0x8] sm:$0xff] (!%p243_p2)  ;;  %v2111_v3 = vmov (!%p243_p2), 0   ;;  %v330_v4 = vld [vmem:[%s2874_s4] sm:$0xff] (!%p243_p2)  ;;  %v332_v5 = vld [vmem:[%s2874_s4 + $0x10] sm:$0xff] (!%p243_p2)  ;;  %vm774_vm0 = vcmask (!%p243_p2), 261120  }
   0x8   : > { %246 = sbr.rel (%p243_p2) target bundleno = 397 (0x18d), region = 44  ;;  %862 = vmatprep.subr.bf16.mxu0 (!%p243_p2), %v2111_v3  ;;  %1972 = vmatprep.subr.bf16.mxu1 (!%p243_p2), %v2111_v3  ;;  %v333_v6 = vld [vmem:[%s2874_s4 + $0x18] sm:$0xff] (!%p243_p2)  ;;  %v334_v8 = vld [vmem:[%s2874_s4 + $0x20] sm:$0xff] (!%p243_p2)  ;;  %v335_v10 = vld [vmem:[%s2874_s4 + $0x28] sm:$0xff] (!%p243_p2) }
   0x9   : > { %v1969_v1 = vld [vmem:[#allocation2] ss:$0 sm:$0xff] (!%p243_p2)  ;;  %2003 = vset.pattern.permute.xlu0 (!%p243_p2), %v2111_v3  ;;  %2004 = vset.pattern.permute.xlu1 (!%p243_p2), %v2111_v3  ;;  %v336_v11 = vld [vmem:[%s2874_s4 + $0x30] sm:$0xff] (!%p243_p2)  ;;  %v337_v13 = vld [vmem:[%s2874_s4 + $0x38] sm:$0xff] (!%p243_p2) }
   0xa   : > { %1191 = vperm.xlu0 (!%p243_p2), %2003, %v1969_v1   ;;  %1259 = vperm.xlu1 (!%p243_p2), %2004, %v331_v2   ;;  %v338_v14 = vld [vmem:[%s2874_s4 + $0x40] sm:$0xff] (!%p243_p2)  ;;  %v339_v18 = vld [vmem:[%s2874_s4 + $0x48] sm:$0xff] (!%p243_p2)  ;;  %v340_v19 = vld [vmem:[%s2874_s4 + $0x50] sm:$0xff] (!%p243_p2) }
   0xb   : > { %v341_v21 = vld [vmem:[%s2874_s4 + $0x58] sm:$0xff] (!%p243_p2)  ;;  %v342_v22 = vld [vmem:[%s2874_s4 + $0x60] sm:$0xff] (!%p243_p2)  ;;  %v343_v24 = vld [vmem:[%s2874_s4 + $0x68] sm:$0xff] (!%p243_p2) }
   0xc   : > { %v344_v25 = vld [vmem:[%s2874_s4 + $0x70] sm:$0xff] (!%p243_p2)  ;;  %v345_v27 = vld [vmem:[%s2874_s4 + $0x78] sm:$0xff] (!%p243_p2)  ;;  %v346_v28 = vld [vmem:[%s2874_s4 + $0x80] sm:$0xff] (!%p243_p2) }
   0xd   : > { %v347_v30 = vld [vmem:[%s2874_s4 + $0x88] sm:$0xff] (!%p243_p2)  ;;  %v348_v31 = vld [vmem:[%s2874_s4 + $0x90] sm:$0xff] (!%p243_p2)  ;;  %v349_v33 = vld [vmem:[%s2874_s4 + $0x98] sm:$0xff] (!%p243_p2) }
   0xe   : > { %1254 = vperm.xlu0 (!%p243_p2), %2003, %v330_v4   ;;  %1264 = vperm.xlu1 (!%p243_p2), %2004, %v332_v5   ;;  %v350_v34 = vld [vmem:[%s2874_s4 + $0xa0] sm:$0xff] (!%p243_p2)  ;;  %v351_v39 = vld [vmem:[%s2874_s4 + $0xa8] sm:$0xff] (!%p243_p2)  ;;  %v352_v40 = vld [vmem:[%s2874_s4 + $0xb0] sm:$0xff] (!%p243_p2) }
   0xf   : > { %s2878_s24 = smov (!%p285_p3, %s1862_s24), 2  ;;  %v353_v42 = vld [vmem:[%s2874_s4 + $0xb8] sm:$0xff]  ;;  %v354_v43 = vld [vmem:[%s2874_s4 + $0xc0] sm:$0xff]  ;;  %v355_v47 = vld [vmem:[%s2874_s4 + $0xc8] sm:$0xff] }
  0x10   : > { %s2168_s26 = smul.u32 464, %s2878_s24  ;;  %v356_v48 = vld [vmem:[%s2874_s4 + $0xd0] sm:$0xff]  ;;  %v357_v50 = vld [vmem:[%s2874_s4 + $0xd8] sm:$0xff]  ;;  %v358_v51 = vld [vmem:[%s2874_s4 + $0xe0] sm:$0xff]  ;;  %s2528_s21 = scalar_lea.vmem %s2872_s2, %s2878_s24 }
  0x11   : > { %s1993_s7 = smul.u32 80, %s2878_s24  ;;  %v359_v55 = vld [vmem:[%s2874_s4 + $0xe8] sm:$0xff]  ;;  %v360_v56 = vld [vmem:[%s2874_s4 + $0xf0] sm:$0xff]  ;;  %v361_v58 = vld [vmem:[%s2874_s4 + $0xf8] sm:$0xff] }
  0x12   : > { %s2181_s10 = scalar_lea.vmem %s2870_s0, %s2168_s26  ;;  %1269 = vperm.xlu0 %2003, %v333_v6   ;;  %1274 = vperm.xlu1 %2004, %v334_v8   ;;  %v362_v59 = vld [vmem:[%s2874_s4 + $0x100] sm:$0xff]  ;;  %v363_v62 = vld [vmem:[%s2874_s4 + $0x108] sm:$0xff]  ;;  %v364_v63 = vld [vmem:[%s2874_s4 + $0x110] sm:$0xff]  ;;  %s2543_s25 = scalar_lea.vmem %s2875_s5, %s2168_s26 }
  0x13   : > { %s2186_s13 = scalar_lea.vmem %s2871_s1, %s1993_s7  ;;  %v2017_v16 = vld [vmem:[%s2181_s10 + $0x4] ss:$8 sps:$4 sm:$0xff]   ;;  %v2020_v17 = vld [vmem:[%s2181_s10 + $0xf4] ss:$8 sps:$4 sm:$0xff]   ;;  %v2015_v36 = vld [vmem:[%s2181_s10] ss:$8 sps:$4 sm:$0xff]   ;;  %s2557_s28 = scalar_lea.vmem %s2876_s6, %s2168_s26 }
  0x14   : > { %v2005_v7 = vld [vmem:[%s2186_s13] sm:$0xff]   ;;  %v2006_v9 = vld [vmem:[%s2186_s13 + $0x8] sm:$0xff]   ;;  %v2007_v12 = vld [vmem:[%s2186_s13 + $0x10] sm:$0xff]   ;;  %1940 = vmatprep.mubr.msk.bf16.mxu0 %vm774_vm0, %v2017_v16  ;;  %1955 = vmatprep.mubr.msk.bf16.mxu1 %vm774_vm0, %v2020_v17 }
  0x15   : > { %863 = vmatpush1.bf16.msra.mxu0 %v2005_v7  ;;  %1982 = vmatpush1.bf16.msra.mxu1 %v2005_v7  ;;  %v2008_v15 = vld [vmem:[%s2186_s13 + $0x18] sm:$0xff]   ;;  %v2009_v20 = vld [vmem:[%s2186_s13 + $0x20] sm:$0xff]   ;;  %v2010_v23 = vld [vmem:[%s2186_s13 + $0x28] sm:$0xff]  }
  0x16   : > { %864 = vmatprep.subr.bf16.mxu0 %v2111_v3  ;;  %1973 = vmatprep.subr.bf16.mxu1 %v2111_v3  ;;  %v2011_v26 = vld [vmem:[%s2186_s13 + $0x30] sm:$0xff]   ;;  %v2012_v29 = vld [vmem:[%s2186_s13 + $0x38] sm:$0xff]   ;;  %v2013_v32 = vld [vmem:[%s2186_s13 + $0x40] sm:$0xff]  }
  0x17   : > { %1279 = vperm.xlu0 %2003, %v335_v10   ;;  %1284 = vperm.xlu1 %2004, %v336_v11   ;;  %v2014_v35 = vld [vmem:[%s2186_s13 + $0x48] sm:$0xff]   ;;  %v2018_v37 = vld [vmem:[%s2181_s10 + $0xf0] ss:$8 sps:$4 sm:$0xff]   ;;  %v2021_v38 = vld [vmem:[%s2181_s10 + $0x14] ss:$8 sps:$4 sm:$0xff]  }
  0x18   : > { %v2023_v41 = vld [vmem:[%s2181_s10 + $0x104] ss:$8 sps:$4 sm:$0xff]   ;;  %v2025_v44 = vld [vmem:[%s2181_s10 + $0x10] ss:$8 sps:$4 sm:$0xff]   ;;  %v2026_v45 = vld [vmem:[%s2181_s10 + $0x100] ss:$8 sps:$4 sm:$0xff]  }
  0x19   : > { %865 = vmatpush1.bf16.msra.mxu0 %v2006_v9  ;;  %1983 = vmatpush1.bf16.msra.mxu1 %v2006_v9  ;;  %v2027_v46 = vld [vmem:[%s2181_s10 + $0x24] ss:$8 sps:$4 sm:$0xff]   ;;  %v2029_v49 = vld [vmem:[%s2181_s10 + $0x114] ss:$8 sps:$4 sm:$0xff]   ;;  %v2031_v52 = vld [vmem:[%s2181_s10 + $0x20] ss:$8 sps:$4 sm:$0xff]  }
  0x1a   : > { %866 = vmatprep.subr.bf16.mxu0 %v2111_v3  ;;  %1974 = vmatprep.subr.bf16.mxu1 %v2111_v3  ;;  %v2032_v53 = vld [vmem:[%s2181_s10 + $0x110] ss:$8 sps:$4 sm:$0xff]   ;;  %v2033_v54 = vld [vmem:[%s2181_s10 + $0x34] ss:$8 sps:$4 sm:$0xff]   ;;  %v2035_v57 = vld [vmem:[%s2181_s10 + $0x124] ss:$8 sps:$4 sm:$0xff]  }
  0x1b   : > { %1289 = vperm.xlu0 %2003, %v337_v13   ;;  %1294 = vperm.xlu1 %2004, %v338_v14   ;;  %v2037_v60 = vld [vmem:[%s2181_s10 + $0x30] ss:$8 sps:$4 sm:$0xff]   ;;  %v2038_v61 = vld [vmem:[%s2181_s10 + $0x120] ss:$8 sps:$4 sm:$0xff]   ;;  %v2039_v0 = vld [vmem:[%s2181_s10 + $0x44] ss:$8 sps:$4 sm:$0xff]  }
  0x1c   : > { %v2041_v1 = vld [vmem:[%s2181_s10 + $0x134] ss:$8 sps:$4 sm:$0xff]   ;;  %v2043_v4 = vld [vmem:[%s2181_s10 + $0x40] ss:$8 sps:$4 sm:$0xff]   ;;  %v2044_v5 = vld [vmem:[%s2181_s10 + $0x130] ss:$8 sps:$4 sm:$0xff]  }
  0x1d   : > { %867 = vmatpush1.bf16.msra.mxu0 %v2007_v12  ;;  %1984 = vmatpush1.bf16.msra.mxu1 %v2007_v12  ;;  %v365_v2 = vld [vmem:[%s2874_s4 + $0x118] sm:$0xff]  ;;  %v367_v6 = vld [vmem:[%s2874_s4 + $0x128] sm:$0xff]  ;;  %v368_v7 = vld [vmem:[%s2874_s4 + $0x130] sm:$0xff] }
  0x1e   : > { %868 = vmatprep.subr.bf16.mxu0 %v2111_v3  ;;  %1975 = vmatprep.subr.bf16.mxu1 %v2111_v3  ;;  %v2045_v8 = vld [vmem:[%s2181_s10 + $0x54] ss:$8 sps:$4 sm:$0xff]   ;;  %v2047_v9 = vld [vmem:[%s2181_s10 + $0x144] ss:$8 sps:$4 sm:$0xff]   ;;  %v2049_v12 = vld [vmem:[%s2181_s10 + $0x50] ss:$8 sps:$4 sm:$0xff]  }
  0x1f   : > { %1299 = vperm.xlu0 %2003, %v339_v18   ;;  %1304 = vperm.xlu1 %2004, %v340_v19   ;;  %v369_v10 = vld [vmem:[%s2874_s4 + $0x138] sm:$0xff]  ;;  %v370_v11 = vld [vmem:[%s2874_s4 + $0x140] sm:$0xff]  ;;  %v371_v14 = vld [vmem:[%s2874_s4 + $0x148] sm:$0xff] }
  0x20   : > { %v2050_v13 = vld [vmem:[%s2181_s10 + $0x140] ss:$8 sps:$4 sm:$0xff]   ;;  %v2051_v16 = vld [vmem:[%s2181_s10 + $0x64] ss:$8 sps:$4 sm:$0xff]   ;;  %v2053_v17 = vld [vmem:[%s2181_s10 + $0x154] ss:$8 sps:$4 sm:$0xff]  }
  0x21   : > { %869 = vmatpush1.bf16.msra.mxu0 %v2008_v15  ;;  %1985 = vmatpush1.bf16.msra.mxu1 %v2008_v15  ;;  %v372_v15 = vld [vmem:[%s2874_s4 + $0x150] sm:$0xff]  ;;  %v373_v18 = vld [vmem:[%s2874_s4 + $0x158] sm:$0xff]  ;;  %v374_v19 = vld [vmem:[%s2874_s4 + $0x160] sm:$0xff] }
  0x22   : > { %870 = vmatprep.subr.bf16.mxu0 %v2111_v3  ;;  %1976 = vmatprep.subr.bf16.mxu1 %v2111_v3 }
  0x23   : > { %1309 = vperm.xlu0 %2003, %v341_v21   ;;  %1314 = vperm.xlu1 %2004, %v342_v22   ;;  %v2056_v21 = vld [vmem:[%s2181_s10 + $0x150] ss:$8 sps:$4 sm:$0xff]   ;;  %v375_v22 = vld [vmem:[%s2874_s4 + $0x168] sm:$0xff] }
  0x25   : > { %871 = vmatpush1.bf16.msra.mxu0 %v2009_v20  ;;  %1986 = vmatpush1.bf16.msra.mxu1 %v2009_v20  ;;  %v2055_v20 = vld [vmem:[%s2181_s10 + $0x60] ss:$8 sps:$4 sm:$0xff]  }
  0x26   : > { %872 = vmatprep.subr.bf16.mxu0 %v2111_v3  ;;  %1977 = vmatprep.subr.bf16.mxu1 %v2111_v3 }
  0x27   : > { %1319 = vperm.xlu0 %2003, %v343_v24   ;;  %1324 = vperm.xlu1 %2004, %v344_v25   ;;  %v2057_v24 = vld [vmem:[%s2181_s10 + $0x74] ss:$8 sps:$4 sm:$0xff]   ;;  %v2059_v25 = vld [vmem:[%s2181_s10 + $0x164] ss:$8 sps:$4 sm:$0xff]  }
  0x29   : > { %873 = vmatpush1.bf16.msra.mxu0 %v2010_v23  ;;  %1987 = vmatpush1.bf16.msra.mxu1 %v2010_v23  ;;  %v376_v23 = vld [vmem:[%s2874_s4 + $0x170] sm:$0xff] }
  0x2a   : > { %874 = vmatprep.subr.bf16.mxu0 %v2111_v3  ;;  %1978 = vmatprep.subr.bf16.mxu1 %v2111_v3 }
  0x2b   : > { %1329 = vperm.xlu0 %2003, %v345_v27   ;;  %1334 = vperm.xlu1 %2004, %v346_v28   ;;  %v378_v27 = vld [vmem:[%s2874_s4 + $0x180] sm:$0xff]  ;;  %v2061_v28 = vld [vmem:[%s2181_s10 + $0x70] ss:$8 sps:$4 sm:$0xff]  }
  0x2d   : > { %875 = vmatpush1.bf16.msra.mxu0 %v2011_v26  ;;  %1988 = vmatpush1.bf16.msra.mxu1 %v2011_v26  ;;  %v377_v26 = vld [vmem:[%s2874_s4 + $0x178] sm:$0xff] }
  0x2e   : > { %876 = vmatprep.subr.bf16.mxu0 %v2111_v3  ;;  %1979 = vmatprep.subr.bf16.mxu1 %v2111_v3 }
  0x2f   : > { %1339 = vperm.xlu0 %2003, %v347_v30   ;;  %1344 = vperm.xlu1 %2004, %v348_v31   ;;  %v379_v30 = vld [vmem:[%s2874_s4 + $0x188] sm:$0xff]  ;;  %v380_v31 = vld [vmem:[%s2874_s4 + $0x190] sm:$0xff] }
  0x31   : > { %877 = vmatpush1.bf16.msra.mxu0 %v2012_v29  ;;  %1989 = vmatpush1.bf16.msra.mxu1 %v2012_v29  ;;  %v2062_v29 = vld [vmem:[%s2181_s10 + $0x160] ss:$8 sps:$4 sm:$0xff]  }
  0x32   : > { %878 = vmatprep.subr.bf16.mxu0 %v2111_v3  ;;  %1980 = vmatprep.subr.bf16.mxu1 %v2111_v3 }
  0x33   : > { %1349 = vperm.xlu0 %2003, %v349_v33   ;;  %1354 = vperm.xlu1 %2004, %v350_v34   ;;  %v2065_v33 = vld [vmem:[%s2181_s10 + $0x174] ss:$8 sps:$4 sm:$0xff]  }
  0x34   : > { %v381_v34 = vld [vmem:[%s2874_s4 + $0x198] sm:$0xff] }
  0x35   : > { %879 = vmatpush1.bf16.msra.mxu0 %v2013_v32  ;;  %1990 = vmatpush1.bf16.msra.mxu1 %v2013_v32  ;;  %v2063_v32 = vld [vmem:[%s2181_s10 + $0x84] ss:$8 sps:$4 sm:$0xff]  }
  0x36   : > { %880 = vmatprep.subr.bf16.mxu0 %v2111_v3  ;;  %1981 = vmatprep.subr.bf16.mxu1 %v2111_v3  ;;  %v366_v3 = vld [vmem:[%s2874_s4 + $0x120] sm:$0xff] }
  0x37   : > { %1359 = vperm.xlu0 %2003, %v351_v39   ;;  %1364 = vperm.xlu1 %2004, %v352_v40   ;;  %v384_v39 = vld [vmem:[%s2874_s4 + $0x1b0] sm:$0xff] }
  0x38   : > { %v2069_v40 = vld [vmem:[%s2181_s10 + $0x94] ss:$8 sps:$4 sm:$0xff]  }
  0x39   : > { %881 = vmatpush1.bf16.msra.mxu0 %v2014_v35  ;;  %1991 = vmatpush1.bf16.msra.mxu1 %v2014_v35  ;;  %v382_v35 = vld [vmem:[%s2874_s4 + $0x1a0] sm:$0xff] }
  0x3b   : > { %1369 = vperm.xlu0 %2003, %v353_v42   ;;  %1374 = vperm.xlu1 %2004, %v354_v43   ;;  %v385_v42 = vld [vmem:[%s2874_s4 + $0x1b8] sm:$0xff]  ;;  %v386_v43 = vld [vmem:[%s2874_s4 + $0x1c0] sm:$0xff] }
  0x3c   : > { %895 = vmatmul.mubr.bf16.vlgmr.msra.gmra.mrb[0].mxu0 %v2015_v36  ;;  %1015 = vmatmul.mubr.bf16.vlgmr.msra.gmra.mrb[0].mxu1 %v2018_v37  ;;  %v2067_v36 = vld [vmem:[%s2181_s10 + $0x80] ss:$8 sps:$4 sm:$0xff]   ;;  %v2068_v37 = vld [vmem:[%s2181_s10 + $0x170] ss:$8 sps:$4 sm:$0xff]  }
  0x3d   : > { %1941 = vmatprep.mubr.msk.bf16.mxu0 %vm774_vm0, %v2021_v38  ;;  %1956 = vmatprep.mubr.msk.bf16.mxu1 %vm774_vm0, %v2023_v41  ;;  %v383_v38 = vld [vmem:[%s2874_s4 + $0x1a8] sm:$0xff] }
  0x3e   : > { %v2071_v41 = vld [vmem:[%s2181_s10 + $0x184] ss:$8 sps:$4 sm:$0xff]  }
  0x3f   : > { %1379 = vperm.xlu0 %2003, %v355_v47   ;;  %1384 = vperm.xlu1 %2004, %v356_v48   ;;  %v2075_v47 = vld [vmem:[%s2181_s10 + $0xa4] ss:$8 sps:$4 sm:$0xff]   ;;  %v2077_v48 = vld [vmem:[%s2181_s10 + $0x194] ss:$8 sps:$4 sm:$0xff]  }
  0x43   : > { %1389 = vperm.xlu0 %2003, %v357_v50   ;;  %1394 = vperm.xlu1 %2004, %v358_v51   ;;  %v2080_v50 = vld [vmem:[%s2181_s10 + $0x190] ss:$8 sps:$4 sm:$0xff]   ;;  %v2081_v51 = vld [vmem:[%s2181_s10 + $0xb4] ss:$8 sps:$4 sm:$0xff]  }
  0x44   : > { %903 = vmatmul.mubr.bf16.gmra.mrb[4].mxu0 %v2025_v44  ;;  %1023 = vmatmul.mubr.bf16.gmra.mrb[4].mxu1 %v2026_v45  ;;  %v2073_v44 = vld [vmem:[%s2181_s10 + $0x90] ss:$8 sps:$4 sm:$0xff]   ;;  %v2074_v45 = vld [vmem:[%s2181_s10 + $0x180] ss:$8 sps:$4 sm:$0xff]  }
  0x45   : > { %1942 = vmatprep.mubr.msk.bf16.mxu0 %vm774_vm0, %v2027_v46  ;;  %1957 = vmatprep.mubr.msk.bf16.mxu1 %vm774_vm0, %v2029_v49  ;;  %v387_v46 = vld [vmem:[%s2874_s4 + $0x1c8] sm:$0xff] }
  0x46   : > { %v2079_v49 = vld [vmem:[%s2181_s10 + $0xa0] ss:$8 sps:$4 sm:$0xff]  }
  0x47   : > { %1399 = vperm.xlu0 %2003, %v359_v55   ;;  %1404 = vperm.xlu1 %2004, %v360_v56   ;;  %v2087_v55 = vld [vmem:[%s2181_s10 + $0xc4] ss:$8 sps:$4 sm:$0xff]   ;;  %v2089_v56 = vld [vmem:[%s2181_s10 + $0x1b4] ss:$8 sps:$4 sm:$0xff]  }
  0x4b   : > { %1409 = vperm.xlu0 %2003, %v361_v58   ;;  %1414 = vperm.xlu1 %2004, %v362_v59   ;;  %v2092_v58 = vld [vmem:[%s2181_s10 + $0x1b0] ss:$8 sps:$4 sm:$0xff]   ;;  %v2093_v59 = vld [vmem:[%s2181_s10 + $0xd4] ss:$8 sps:$4 sm:$0xff]  }
  0x4c   : > { %911 = vmatmul.mubr.bf16.gmra.mrb[8].mxu0 %v2031_v52  ;;  %1031 = vmatmul.mubr.bf16.gmra.mrb[8].mxu1 %v2032_v53  ;;  %v2083_v52 = vld [vmem:[%s2181_s10 + $0x1a4] ss:$8 sps:$4 sm:$0xff]   ;;  %v2085_v53 = vld [vmem:[%s2181_s10 + $0xb0] ss:$8 sps:$4 sm:$0xff]  }
  0x4d   : > { %1943 = vmatprep.mubr.msk.bf16.mxu0 %vm774_vm0, %v2033_v54  ;;  %1958 = vmatprep.mubr.msk.bf16.mxu1 %vm774_vm0, %v2035_v57  ;;  %v2086_v54 = vld [vmem:[%s2181_s10 + $0x1a0] ss:$8 sps:$4 sm:$0xff]  }
  0x4e   : > { %v2091_v57 = vld [vmem:[%s2181_s10 + $0xc0] ss:$8 sps:$4 sm:$0xff]  }
  0x4f   : > { %1419 = vperm.xlu0 %2003, %v363_v62   ;;  %1424 = vperm.xlu1 %2004, %v364_v63   ;;  %v2098_v62 = vld [vmem:[%s2181_s10 + $0x1c0] ss:$8 sps:$4 sm:$0xff]   ;;  %v2099_v63 = vld [vmem:[%s2181_s10 + $0xe4] ss:$8 sps:$4 sm:$0xff]  }
  0x53   : > { %1429 = vperm.xlu0 %2003, %v365_v2   ;;  %1434 = vperm.xlu1 %2004, %v366_v3  }
  0x54   : > { %919 = vmatmul.mubr.bf16.gmra.mrb[12].mxu0 %v2037_v60  ;;  %1039 = vmatmul.mubr.bf16.gmra.mrb[12].mxu1 %v2038_v61  ;;  %v2095_v60 = vld [vmem:[%s2181_s10 + $0x1c4] ss:$8 sps:$4 sm:$0xff]   ;;  %v2097_v61 = vld [vmem:[%s2181_s10 + $0xd0] ss:$8 sps:$4 sm:$0xff]  }
  0x55   : > { %1944 = vmatprep.mubr.msk.bf16.mxu0 %vm774_vm0, %v2039_v0  ;;  %1959 = vmatprep.mubr.msk.bf16.mxu1 %vm774_vm0, %v2041_v1  ;;  %v2101_v0 = vld [vmem:[%s2181_s10 + $0xe0] ss:$8 sps:$4 sm:$0xff]  }
  0x57   : > { %1439 = vperm.xlu0 %2003, %v367_v6   ;;  %1444 = vperm.xlu1 %2004, %v368_v7  }
  0x5b   : > { %1449 = vperm.xlu0 %2003, %v369_v10   ;;  %1454 = vperm.xlu1 %2004, %v370_v11  }
  0x5c   : > { %927 = vmatmul.mubr.bf16.gmra.mrb[16].mxu0 %v2043_v4  ;;  %1047 = vmatmul.mubr.bf16.gmra.mrb[16].mxu1 %v2044_v5 }
  0x5d   : > { %1945 = vmatprep.mubr.msk.bf16.mxu0 %vm774_vm0, %v2045_v8  ;;  %1960 = vmatprep.mubr.msk.bf16.mxu1 %vm774_vm0, %v2047_v9 }
  0x5f   : > { %1459 = vperm.xlu0 %2003, %v371_v14   ;;  %1464 = vperm.xlu1 %2004, %v372_v15  }
  0x63   : > { %1469 = vperm.xlu0 %2003, %v373_v18   ;;  %1474 = vperm.xlu1 %2004, %v374_v19  }
  0x64   : > { %935 = vmatmul.mubr.bf16.gmra.mrb[20].mxu0 %v2049_v12  ;;  %1055 = vmatmul.mubr.bf16.gmra.mrb[20].mxu1 %v2050_v13 }
  0x65   : > { %1946 = vmatprep.mubr.msk.bf16.mxu0 %vm774_vm0, %v2051_v16  ;;  %1961 = vmatprep.mubr.msk.bf16.mxu1 %vm774_vm0, %v2053_v17 }
  0x67   : > { %1479 = vperm.xlu0 %2003, %v375_v22   ;;  %1484 = vperm.xlu1 %2004, %v376_v23  }
  0x6b   : > { %1489 = vperm.xlu0 %2003, %v377_v26   ;;  %1494 = vperm.xlu1 %2004, %v378_v27  }
  0x6c   : > { %943 = vmatmul.mubr.bf16.gmra.mrb[24].mxu0 %v2055_v20  ;;  %1063 = vmatmul.mubr.bf16.gmra.mrb[24].mxu1 %v2056_v21 }
  0x6d   : > { %1947 = vmatprep.mubr.msk.bf16.mxu0 %vm774_vm0, %v2057_v24  ;;  %1962 = vmatprep.mubr.msk.bf16.mxu1 %vm774_vm0, %v2059_v25 }
  0x6f   : > { %1499 = vperm.xlu0 %2003, %v379_v30   ;;  %1504 = vperm.xlu1 %2004, %v380_v31   ;;  %v2531_v30 = vld [vmem:[%s2528_s21] ss:$0 sm:$0xff] }
  0x73   : > { %1509 = vperm.xlu0 %2003, %v381_v34   ;;  %1514 = vperm.xlu1 %2004, %v382_v35  }
  0x74   : > { %951 = vmatmul.mubr.bf16.gmra.mrb[28].mxu0 %v2061_v28  ;;  %1071 = vmatmul.mubr.bf16.gmra.mrb[28].mxu1 %v2062_v29 }
  0x75   : > { %1948 = vmatprep.mubr.msk.bf16.mxu0 %vm774_vm0, %v2063_v32  ;;  %1963 = vmatprep.mubr.msk.bf16.mxu1 %vm774_vm0, %v2065_v33 }
  0x77   : > { %1519 = vperm.xlu0 %2003, %v383_v38   ;;  %1524 = vperm.xlu1 %2004, %v384_v39  }
  0x7b   : > { %1529 = vperm.xlu0 %2003, %v385_v42   ;;  %1534 = vperm.xlu1 %2004, %v386_v43  }
  0x7c   : > { %959 = vmatmul.mubr.bf16.gmra.mrb[32].mxu0 %v2067_v36  ;;  %1079 = vmatmul.mubr.bf16.gmra.mrb[32].mxu1 %v2068_v37 }
  0x7d   : > { %1949 = vmatprep.mubr.msk.bf16.mxu0 %vm774_vm0, %v2069_v40  ;;  %1964 = vmatprep.mubr.msk.bf16.mxu1 %vm774_vm0, %v2071_v41 }
  0x7f   : > { %1539 = vperm.xlu0 %2003, %v387_v46  }
  0x84   : > { %967 = vmatmul.mubr.bf16.gmra.mrb[36].mxu0 %v2073_v44  ;;  %1087 = vmatmul.mubr.bf16.gmra.mrb[36].mxu1 %v2074_v45 }
  0x85   : > { %1950 = vmatprep.mubr.msk.bf16.mxu0 %vm774_vm0, %v2075_v47  ;;  %1965 = vmatprep.mubr.msk.bf16.mxu1 %vm774_vm0, %v2077_v48 }
  0x89   : > { %v2468_v1 = vpop.permute.xlu0 %1191  ;;  %v2470_v3 = vpop.permute.xlu1 %1259 }
  0x8c   : > { %975 = vmatmul.mubr.bf16.gmra.mrb[40].mxu0 %v2079_v49  ;;  %1095 = vmatmul.mubr.bf16.gmra.mrb[40].mxu1 %v2080_v50 }
  0x8d   : > { %1951 = vmatprep.mubr.msk.bf16.mxu0 %vm774_vm0, %v2081_v51  ;;  %1966 = vmatprep.mubr.msk.bf16.mxu1 %vm774_vm0, %v2083_v52  ;;  %v1255_v2 = vpop.permute.xlu0 %1254  ;;  %v2474_v5 = vpop.permute.xlu1 %1264  ;;  %v1600_v52 = vld [vmem:[%s2543_s25] sm:$0xff] }
  0x91   : > { %v2472_v4 = vpop.permute.xlu0 %1269  ;;  %v2478_v7 = vpop.permute.xlu1 %1274 }
  0x94   : > { %983 = vmatmul.mubr.bf16.gmra.mrb[44].mxu0 %v2085_v53  ;;  %1103 = vmatmul.mubr.bf16.gmra.mrb[44].mxu1 %v2086_v54  ;;  %v1630_v53 = vld [vmem:[%s2543_s25 + $0xf0] sm:$0xff] }
  0x95   : > { %1952 = vmatprep.mubr.msk.bf16.mxu0 %vm774_vm0, %v2087_v55  ;;  %1967 = vmatprep.mubr.msk.bf16.mxu1 %vm774_vm0, %v2089_v56 }
  0x96   : > { %v2476_v6 = vpop.permute.xlu0 %1279  ;;  %v2482_v9 = vpop.permute.xlu1 %1284 }
  0x9a   : > { %v2480_v8 = vpop.permute.xlu0 %1289  ;;  %v2486_v11 = vpop.permute.xlu1 %1294 }
  0x9c   : > { %991 = vmatmul.mubr.bf16.gmra.mrb[48].mxu0 %v2091_v57  ;;  %1111 = vmatmul.mubr.bf16.gmra.mrb[48].mxu1 %v2092_v58 }
  0x9d   : > { %1953 = vmatprep.mubr.msk.bf16.mxu0 %vm774_vm0, %v2093_v59  ;;  %1968 = vmatprep.mubr.msk.bf16.mxu1 %vm774_vm0, %v2095_v60  ;;  %v1601_v59 = vld [vmem:[%s2543_s25 + $0x8] sm:$0xff]  ;;  %v1631_v60 = vld [vmem:[%s2543_s25 + $0xf8] sm:$0xff] }
  0x9e   : > { %v2484_v10 = vpop.permute.xlu0 %1299  ;;  %v2490_v13 = vpop.permute.xlu1 %1304 }
  0xa2   : > { %v2488_v12 = vpop.permute.xlu0 %1309  ;;  %v2494_v15 = vpop.permute.xlu1 %1314 }
  0xa4   : > { %999 = vmatmul.mubr.bf16.gmra.mrb[52].mxu0 %v2097_v61  ;;  %1119 = vmatmul.mubr.bf16.gmra.mrb[52].mxu1 %v2098_v62 }
  0xa5   : > { %1954 = vmatprep.mubr.msk.bf16.mxu0 %vm774_vm0, %v2099_v63 }
  0xa6   : > { %v2492_v14 = vpop.permute.xlu0 %1319  ;;  %v2498_v17 = vpop.permute.xlu1 %1324 }
  0xaa   : > { %v2496_v16 = vpop.permute.xlu0 %1329  ;;  %v2502_v19 = vpop.permute.xlu1 %1334 }
  0xac   : > { %1007 = vmatmul.mubr.bf16.gmra.mrb[56].mxu0 %v2101_v0 }
  0xae   : > { %v2500_v18 = vpop.permute.xlu0 %1339  ;;  %v2506_v21 = vpop.permute.xlu1 %1344 }
  0xb2   : > { %v2504_v20 = vpop.permute.xlu0 %1349  ;;  %v2510_v23 = vpop.permute.xlu1 %1354 }
  0xb6   : > { %v2508_v22 = vpop.permute.xlu0 %1359  ;;  %v2514_v25 = vpop.permute.xlu1 %1364 }
  0xba   : > { %v2512_v24 = vpop.permute.xlu0 %1369  ;;  %v2518_v27 = vpop.permute.xlu1 %1374 }
  0xbe   : > { %v2516_v26 = vpop.permute.xlu0 %1379  ;;  %v2522_v29 = vpop.permute.xlu1 %1384 }
  0xc2   : > { %v2520_v28 = vpop.permute.xlu0 %1389  ;;  %v2535_v32 = vpop.permute.xlu1 %1394 }
  0xc6   : > { %v2533_v31 = vpop.permute.xlu0 %1399  ;;  %v1405_v51 = vpop.permute.xlu1 %1404 }
  0xca   : > { %v1410_v54 = vpop.permute.xlu0 %1409 }
 0x10f   : > { %v896_v33 = vpop.f32.mrb[0].mxu0  ;;  %v1016_v34 = vpop.f32.mrb[0].mxu1 }
 0x110   : > { %v897_v35 = vadd.f32 %v2531_v30, %v896_v33  ;;  %v1017_v36 = vadd.f32 %v2531_v30, %v1016_v34  ;;  %v898_v37 = vpop.f32.mrb[1].mxu0  ;;  %v1018_v38 = vpop.f32.mrb[1].mxu1 }
 0x111   : > { %v899_v39 = vpop.f32.mrb[2].mxu0  ;;  %v1019_v40 = vpop.f32.mrb[2].mxu1 }
 0x112   : > { %v1127_v41 = vmax.f32 %v897_v35, 0.0  ;;  %v1157_v42 = vmax.f32 %v1017_v36, 0.0  ;;  %v900_v43 = vadd.f32 %v2531_v30, %v899_v39  ;;  %v1020_v44 = vadd.f32 %v2531_v30, %v1019_v40  ;;  %v901_v45 = vpop.f32.mrb[3].mxu0  ;;  %v1021_v46 = vpop.f32.mrb[3].mxu1 }
 0x114   : > { %v1194_v47 = vmul.f32 %v2468_v1, %v1127_v41  ;;  %v1224_v48 = vmul.f32 %v2468_v1, %v1157_v42  ;;  %v1128_v49 = vmax.f32 %v900_v43, 0.0  ;;  %v1158_v50 = vmax.f32 %v1020_v44, 0.0 }
 0x116   : > { %v1542_v55 = vmul.f32 %v1255_v2, %v1194_v47  ;;  %v1572_v56 = vmul.f32 %v1405_v51, %v1224_v48  ;;  %v1195_v57 = vmul.f32 %v2468_v1, %v1128_v49  ;;  %v1225_v58 = vmul.f32 %v2468_v1, %v1158_v50  ;;  %v1420_v51 = vpop.permute.xlu0 %1419 }
 0x117   : > { %v904_v61 = vpop.f32.mrb[4].mxu0  ;;  %v1024_v62 = vpop.f32.mrb[4].mxu1 }
 0x118   : > { %v1658_v63 = vadd.f32 %v1600_v52, %v1542_v55  ;;  %v1688_v0 = vadd.f32 %v1630_v53, %v1572_v56  ;;  %v1543_v2 = vmul.f32 %v2470_v3, %v1195_v57  ;;  %v1573_v33 = vmul.f32 %v1410_v54, %v1225_v58  ;;  %v906_v34 = vpop.f32.mrb[5].mxu0  ;;  %v1026_v35 = vpop.f32.mrb[5].mxu1  ;;  %v1602_v53 = vld [vmem:[%s2543_s25 + $0x10] sm:$0xff]  ;;  %v1632_v54 = vld [vmem:[%s2543_s25 + $0x100] sm:$0xff] }
 0x119   : > { %v905_v36 = vadd.f32 %v2531_v30, %v904_v61  ;;  %v1025_v37 = vadd.f32 %v2531_v30, %v1024_v62  ;;  %v907_v38 = vpop.f32.mrb[6].mxu0  ;;  %v1027_v39 = vpop.f32.mrb[6].mxu1 }
 0x11a   : > { %1716 = vst.msk [vmem:[%s2557_s28] sm:$0xff] %vm774_vm0, %v1658_v63  ;;  %1746 = vst.msk [vmem:[%s2557_s28 + $0xf0] sm:$0xff] %vm774_vm0, %v1688_v0  ;;  %v1659_v40 = vadd.f32 %v1601_v59, %v1543_v2  ;;  %v1689_v41 = vadd.f32 %v1631_v60, %v1573_v33  ;;  %v908_v3 = vadd.f32 %v2531_v30, %v907_v38  ;;  %v909_v43 = vpop.f32.mrb[7].mxu0  ;;  %v1029_v44 = vpop.f32.mrb[7].mxu1  ;;  %v1603_v59 = vld [vmem:[%s2543_s25 + $0x18] sm:$0xff]  ;;  %v1633_v60 = vld [vmem:[%s2543_s25 + $0x108] sm:$0xff] }
 0x11b   : > { %v1028_v42 = vadd.f32 %v2531_v30, %v1027_v39  ;;  %v1129_v45 = vmax.f32 %v905_v36, 0.0  ;;  %v1159_v46 = vmax.f32 %v1025_v37, 0.0  ;;  %v1415_v52 = vpop.permute.xlu1 %1414 }
 0x11c   : > { %1717 = vst.msk [vmem:[%s2557_s28 + $0x8] sm:$0xff] %vm774_vm0, %v1659_v40  ;;  %1747 = vst.msk [vmem:[%s2557_s28 + $0xf8] sm:$0xff] %vm774_vm0, %v1689_v41  ;;  %v1130_v47 = vmax.f32 %v908_v3, 0.0 }
 0x11d   : > { %v1160_v48 = vmax.f32 %v1028_v42, 0.0  ;;  %v1196_v49 = vmul.f32 %v2468_v1, %v1129_v45  ;;  %v1226_v50 = vmul.f32 %v2468_v1, %v1159_v46 }
 0x11e   : > { %v1197_v55 = vmul.f32 %v2468_v1, %v1130_v47 }
 0x11f   : > { %v1227_v56 = vmul.f32 %v2468_v1, %v1160_v48  ;;  %v1544_v57 = vmul.f32 %v2474_v5, %v1196_v49  ;;  %v1574_v58 = vmul.f32 %v1415_v52, %v1226_v50  ;;  %v912_v61 = vpop.f32.mrb[8].mxu0  ;;  %v1032_v62 = vpop.f32.mrb[8].mxu1  ;;  %v1604_v48 = vld [vmem:[%s2543_s25 + $0x20] sm:$0xff]  ;;  %v1634_v49 = vld [vmem:[%s2543_s25 + $0x110] sm:$0xff] }
 0x120   : > { %v1545_v63 = vmul.f32 %v2472_v4, %v1197_v55  ;;  %v913_v2 = vadd.f32 %v2531_v30, %v912_v61  ;;  %v1033_v33 = vadd.f32 %v2531_v30, %v1032_v62  ;;  %v914_v34 = vpop.f32.mrb[9].mxu0  ;;  %v1034_v35 = vpop.f32.mrb[9].mxu1  ;;  %v1605_v61 = vld [vmem:[%s2543_s25 + $0x28] sm:$0xff]  ;;  %v1635_v62 = vld [vmem:[%s2543_s25 + $0x118] sm:$0xff] }
 0x121   : > { %v1575_v0 = vmul.f32 %v1420_v51, %v1227_v56  ;;  %v1660_v36 = vadd.f32 %v1602_v53, %v1544_v57  ;;  %v1690_v5 = vadd.f32 %v1632_v54, %v1574_v58  ;;  %v915_v37 = vpop.f32.mrb[10].mxu0  ;;  %v1035_v38 = vpop.f32.mrb[10].mxu1 }
 0x122   : > { %v1661_v39 = vadd.f32 %v1603_v59, %v1545_v63  ;;  %v1131_v4 = vmax.f32 %v913_v2, 0.0  ;;  %v1161_v41 = vmax.f32 %v1033_v33, 0.0  ;;  %v917_v3 = vpop.f32.mrb[11].mxu0  ;;  %v1037_v42 = vpop.f32.mrb[11].mxu1  ;;  %v916_v43 = vadd.f32 %v2531_v30, %v915_v37 }
 0x123   : > { %v1691_v40 = vadd.f32 %v1633_v60, %v1575_v0  ;;  %1718 = vst.msk [vmem:[%s2557_s28 + $0x10] sm:$0xff] %vm774_vm0, %v1660_v36  ;;  %1748 = vst.msk [vmem:[%s2557_s28 + $0x100] sm:$0xff] %vm774_vm0, %v1690_v5  ;;  %v1036_v44 = vadd.f32 %v2531_v30, %v1035_v38  ;;  %v1425_v47 = vpop.permute.xlu1 %1424  ;;  %v1430_v52 = vpop.permute.xlu0 %1429 }
 0x124   : > { %1719 = vst.msk [vmem:[%s2557_s28 + $0x18] sm:$0xff] %vm774_vm0, %v1661_v39  ;;  %v1198_v45 = vmul.f32 %v2468_v1, %v1131_v4  ;;  %v1228_v46 = vmul.f32 %v2468_v1, %v1161_v41  ;;  %v1132_v50 = vmax.f32 %v916_v43, 0.0 }
 0x125   : > { %1749 = vst.msk [vmem:[%s2557_s28 + $0x108] sm:$0xff] %vm774_vm0, %v1691_v40  ;;  %v1162_v51 = vmax.f32 %v1036_v44, 0.0 }
 0x126   : > { %v1546_v53 = vmul.f32 %v2478_v7, %v1198_v45  ;;  %v1576_v54 = vmul.f32 %v1425_v47, %v1228_v46  ;;  %v1199_v55 = vmul.f32 %v2468_v1, %v1132_v50  ;;  %v1606_v46 = vld [vmem:[%s2543_s25 + $0x30] sm:$0xff]  ;;  %v1636_v47 = vld [vmem:[%s2543_s25 + $0x120] sm:$0xff] }
 0x127   : > { %v1229_v56 = vmul.f32 %v2468_v1, %v1162_v51  ;;  %v920_v57 = vpop.f32.mrb[12].mxu0  ;;  %v1040_v58 = vpop.f32.mrb[12].mxu1 }
 0x128   : > { %v1662_v59 = vadd.f32 %v1604_v48, %v1546_v53  ;;  %v1692_v60 = vadd.f32 %v1634_v49, %v1576_v54  ;;  %v921_v63 = vadd.f32 %v2531_v30, %v920_v57  ;;  %v1041_v0 = vadd.f32 %v2531_v30, %v1040_v58  ;;  %v922_v2 = vpop.f32.mrb[13].mxu0  ;;  %v1042_v33 = vpop.f32.mrb[13].mxu1  ;;  %v1607_v53 = vld [vmem:[%s2543_s25 + $0x38] sm:$0xff]  ;;  %v1637_v54 = vld [vmem:[%s2543_s25 + $0x128] sm:$0xff] }
 0x129   : > { %v1547_v7 = vmul.f32 %v2476_v6, %v1199_v55  ;;  %v1577_v34 = vmul.f32 %v1430_v52, %v1229_v56  ;;  %v923_v35 = vpop.f32.mrb[14].mxu0  ;;  %v1043_v36 = vpop.f32.mrb[14].mxu1 }
 0x12a   : > { %1720 = vst.msk [vmem:[%s2557_s28 + $0x20] sm:$0xff] %vm774_vm0, %v1662_v59  ;;  %1750 = vst.msk [vmem:[%s2557_s28 + $0x110] sm:$0xff] %vm774_vm0, %v1692_v60  ;;  %v1133_v5 = vmax.f32 %v921_v63, 0.0  ;;  %v1163_v37 = vmax.f32 %v1041_v0, 0.0  ;;  %v924_v38 = vadd.f32 %v2531_v30, %v923_v35  ;;  %v1044_v39 = vadd.f32 %v2531_v30, %v1043_v36  ;;  %v925_v40 = vpop.f32.mrb[15].mxu0  ;;  %v1045_v4 = vpop.f32.mrb[15].mxu1 }
 0x12b   : > { %v1663_v6 = vadd.f32 %v1605_v61, %v1547_v7  ;;  %v1693_v41 = vadd.f32 %v1635_v62, %v1577_v34  ;;  %v1435_v45 = vpop.permute.xlu1 %1434  ;;  %v1440_v48 = vpop.permute.xlu0 %1439 }
 0x12c   : > { %v1200_v3 = vmul.f32 %v2468_v1, %v1133_v5  ;;  %v1230_v42 = vmul.f32 %v2468_v1, %v1163_v37  ;;  %v1134_v43 = vmax.f32 %v924_v38, 0.0  ;;  %v1164_v44 = vmax.f32 %v1044_v39, 0.0 }
 0x12d   : > { %1721 = vst.msk [vmem:[%s2557_s28 + $0x28] sm:$0xff] %vm774_vm0, %v1663_v6  ;;  %1751 = vst.msk [vmem:[%s2557_s28 + $0x118] sm:$0xff] %vm774_vm0, %v1693_v41 }
 0x12e   : > { %v1548_v49 = vmul.f32 %v2482_v9, %v1200_v3  ;;  %v1578_v50 = vmul.f32 %v1435_v45, %v1230_v42  ;;  %v1201_v51 = vmul.f32 %v2468_v1, %v1134_v43  ;;  %v1231_v52 = vmul.f32 %v2468_v1, %v1164_v44  ;;  %v1608_v3 = vld [vmem:[%s2543_s25 + $0x40] sm:$0xff]  ;;  %v1638_v42 = vld [vmem:[%s2543_s25 + $0x130] sm:$0xff] }
 0x12f   : > { %v928_v55 = vpop.f32.mrb[16].mxu0  ;;  %v1048_v56 = vpop.f32.mrb[16].mxu1 }
 0x130   : > { %v1664_v57 = vadd.f32 %v1606_v46, %v1548_v49  ;;  %v1694_v58 = vadd.f32 %v1636_v47, %v1578_v50  ;;  %v1549_v59 = vmul.f32 %v2480_v8, %v1201_v51  ;;  %v1579_v60 = vmul.f32 %v1440_v48, %v1231_v52  ;;  %v930_v61 = vpop.f32.mrb[17].mxu0  ;;  %v1050_v62 = vpop.f32.mrb[17].mxu1  ;;  %v1609_v47 = vld [vmem:[%s2543_s25 + $0x48] sm:$0xff]  ;;  %v1639_v48 = vld [vmem:[%s2543_s25 + $0x138] sm:$0xff] }
 0x131   : > { %v929_v9 = vadd.f32 %v2531_v30, %v928_v55  ;;  %v1049_v63 = vadd.f32 %v2531_v30, %v1048_v56  ;;  %v931_v0 = vpop.f32.mrb[18].mxu0  ;;  %v1051_v2 = vpop.f32.mrb[18].mxu1 }
 0x132   : > { %1722 = vst.msk [vmem:[%s2557_s28 + $0x30] sm:$0xff] %vm774_vm0, %v1664_v57  ;;  %1752 = vst.msk [vmem:[%s2557_s28 + $0x120] sm:$0xff] %vm774_vm0, %v1694_v58  ;;  %v1665_v33 = vadd.f32 %v1607_v53, %v1549_v59  ;;  %v1695_v7 = vadd.f32 %v1637_v54, %v1579_v60  ;;  %v932_v8 = vadd.f32 %v2531_v30, %v931_v0  ;;  %v933_v35 = vpop.f32.mrb[19].mxu0  ;;  %v1053_v36 = vpop.f32.mrb[19].mxu1 }
 0x133   : > { %v1052_v34 = vadd.f32 %v2531_v30, %v1051_v2  ;;  %v1135_v5 = vmax.f32 %v929_v9, 0.0  ;;  %v1165_v37 = vmax.f32 %v1049_v63, 0.0  ;;  %v1450_v6 = vpop.permute.xlu0 %1449  ;;  %v1445_v41 = vpop.permute.xlu1 %1444  ;;  %v1640_v35 = vld [vmem:[%s2543_s25 + $0x140] sm:$0xff] }
 0x134   : > { %1723 = vst.msk [vmem:[%s2557_s28 + $0x38] sm:$0xff] %vm774_vm0, %v1665_v33  ;;  %1753 = vst.msk [vmem:[%s2557_s28 + $0x128] sm:$0xff] %vm774_vm0, %v1695_v7  ;;  %v1136_v38 = vmax.f32 %v932_v8, 0.0 }
 0x135   : > { %v1166_v39 = vmax.f32 %v1052_v34, 0.0  ;;  %v1202_v40 = vmul.f32 %v2468_v1, %v1135_v5  ;;  %v1232_v4 = vmul.f32 %v2468_v1, %v1165_v37  ;;  %v1610_v34 = vld [vmem:[%s2543_s25 + $0x50] sm:$0xff] }
 0x136   : > { %v1203_v43 = vmul.f32 %v2468_v1, %v1136_v38 }
 0x137   : > { %v1233_v44 = vmul.f32 %v2468_v1, %v1166_v39  ;;  %v1550_v45 = vmul.f32 %v2486_v11, %v1202_v40  ;;  %v1580_v46 = vmul.f32 %v1445_v41, %v1232_v4  ;;  %v936_v49 = vpop.f32.mrb[20].mxu0  ;;  %v1056_v50 = vpop.f32.mrb[20].mxu1 }
 0x138   : > { %v1551_v51 = vmul.f32 %v2484_v10, %v1203_v43  ;;  %v937_v53 = vadd.f32 %v2531_v30, %v936_v49  ;;  %v1057_v54 = vadd.f32 %v2531_v30, %v1056_v50  ;;  %v938_v55 = vpop.f32.mrb[21].mxu0  ;;  %v1058_v56 = vpop.f32.mrb[21].mxu1  ;;  %v1611_v43 = vld [vmem:[%s2543_s25 + $0x58] sm:$0xff] }
 0x139   : > { %v1581_v52 = vmul.f32 %v1450_v6, %v1233_v44  ;;  %v1666_v57 = vadd.f32 %v1608_v3, %v1550_v45  ;;  %v1696_v11 = vadd.f32 %v1638_v42, %v1580_v46  ;;  %v939_v58 = vpop.f32.mrb[22].mxu0  ;;  %v1059_v59 = vpop.f32.mrb[22].mxu1  ;;  %v1641_v44 = vld [vmem:[%s2543_s25 + $0x148] sm:$0xff] }
 0x13a   : > { %v1667_v60 = vadd.f32 %v1609_v47, %v1551_v51  ;;  %v1137_v10 = vmax.f32 %v937_v53, 0.0  ;;  %v1167_v62 = vmax.f32 %v1057_v54, 0.0  ;;  %v941_v9 = vpop.f32.mrb[23].mxu0  ;;  %v1061_v63 = vpop.f32.mrb[23].mxu1  ;;  %v940_v0 = vadd.f32 %v2531_v30, %v939_v58 }
 0x13b   : > { %v1697_v61 = vadd.f32 %v1639_v48, %v1581_v52  ;;  %1724 = vst.msk [vmem:[%s2557_s28 + $0x40] sm:$0xff] %vm774_vm0, %v1666_v57  ;;  %1754 = vst.msk [vmem:[%s2557_s28 + $0x130] sm:$0xff] %vm774_vm0, %v1696_v11  ;;  %v1060_v2 = vadd.f32 %v2531_v30, %v1059_v59  ;;  %v1455_v8 = vpop.permute.xlu1 %1454  ;;  %v1460_v37 = vpop.permute.xlu0 %1459  ;;  %v1642_v9 = vld [vmem:[%s2543_s25 + $0x150] sm:$0xff] }
 0x13c   : > { %1725 = vst.msk [vmem:[%s2557_s28 + $0x48] sm:$0xff] %vm774_vm0, %v1667_v60  ;;  %v1204_v33 = vmul.f32 %v2468_v1, %v1137_v10  ;;  %v1234_v7 = vmul.f32 %v2468_v1, %v1167_v62  ;;  %v1138_v36 = vmax.f32 %v940_v0, 0.0  ;;  %v1612_v62 = vld [vmem:[%s2543_s25 + $0x60] sm:$0xff] }
 0x13d   : > { %1755 = vst.msk [vmem:[%s2557_s28 + $0x138] sm:$0xff] %vm774_vm0, %v1697_v61  ;;  %v1168_v5 = vmax.f32 %v1060_v2, 0.0 }
 0x13e   : > { %v1552_v38 = vmul.f32 %v2490_v13, %v1204_v33  ;;  %v1582_v39 = vmul.f32 %v1455_v8, %v1234_v7  ;;  %v1205_v40 = vmul.f32 %v2468_v1, %v1138_v36  ;;  %v1613_v8 = vld [vmem:[%s2543_s25 + $0x68] sm:$0xff] }
 0x13f   : > { %v1235_v4 = vmul.f32 %v2468_v1, %v1168_v5  ;;  %v944_v6 = vpop.f32.mrb[24].mxu0  ;;  %v1064_v41 = vpop.f32.mrb[24].mxu1 }
 0x140   : > { %v1668_v3 = vadd.f32 %v1610_v34, %v1552_v38  ;;  %v1698_v42 = vadd.f32 %v1640_v35, %v1582_v39  ;;  %v945_v45 = vadd.f32 %v2531_v30, %v944_v6  ;;  %v1065_v46 = vadd.f32 %v2531_v30, %v1064_v41  ;;  %v946_v47 = vpop.f32.mrb[25].mxu0  ;;  %v1066_v48 = vpop.f32.mrb[25].mxu1  ;;  %v1643_v34 = vld [vmem:[%s2543_s25 + $0x158] sm:$0xff] }
 0x141   : > { %v1553_v13 = vmul.f32 %v2488_v12, %v1205_v40  ;;  %v1583_v49 = vmul.f32 %v1460_v37, %v1235_v4  ;;  %v947_v50 = vpop.f32.mrb[26].mxu0  ;;  %v1067_v51 = vpop.f32.mrb[26].mxu1 }
 0x142   : > { %1726 = vst.msk [vmem:[%s2557_s28 + $0x50] sm:$0xff] %vm774_vm0, %v1668_v3  ;;  %1756 = vst.msk [vmem:[%s2557_s28 + $0x140] sm:$0xff] %vm774_vm0, %v1698_v42  ;;  %v1139_v52 = vmax.f32 %v945_v45, 0.0  ;;  %v1169_v53 = vmax.f32 %v1065_v46, 0.0  ;;  %v948_v54 = vadd.f32 %v2531_v30, %v947_v50  ;;  %v1068_v55 = vadd.f32 %v2531_v30, %v1067_v51  ;;  %v949_v56 = vpop.f32.mrb[27].mxu0  ;;  %v1069_v57 = vpop.f32.mrb[27].mxu1 }
 0x143   : > { %v1669_v12 = vadd.f32 %v1611_v43, %v1553_v13  ;;  %v1699_v11 = vadd.f32 %v1641_v44, %v1583_v49  ;;  %v1465_v10 = vpop.permute.xlu1 %1464  ;;  %v1470_v63 = vpop.permute.xlu0 %1469 }
 0x144   : > { %v1206_v58 = vmul.f32 %v2468_v1, %v1139_v52  ;;  %v1236_v59 = vmul.f32 %v2468_v1, %v1169_v53  ;;  %v1140_v60 = vmax.f32 %v948_v54, 0.0  ;;  %v1170_v61 = vmax.f32 %v1068_v55, 0.0  ;;  %v1614_v54 = vld [vmem:[%s2543_s25 + $0x70] sm:$0xff]  ;;  %v1644_v55 = vld [vmem:[%s2543_s25 + $0x160] sm:$0xff] }
 0x145   : > { %1727 = vst.msk [vmem:[%s2557_s28 + $0x58] sm:$0xff] %vm774_vm0, %v1669_v12  ;;  %1757 = vst.msk [vmem:[%s2557_s28 + $0x148] sm:$0xff] %vm774_vm0, %v1699_v11 }
 0x146   : > { %v1554_v0 = vmul.f32 %v2494_v15, %v1206_v58  ;;  %v1584_v2 = vmul.f32 %v1465_v10, %v1236_v59  ;;  %v1207_v33 = vmul.f32 %v2468_v1, %v1140_v60  ;;  %v1237_v7 = vmul.f32 %v2468_v1, %v1170_v61  ;;  %v1615_v58 = vld [vmem:[%s2543_s25 + $0x78] sm:$0xff]  ;;  %v1645_v59 = vld [vmem:[%s2543_s25 + $0x168] sm:$0xff] }
 0x147   : > { %v952_v35 = vpop.f32.mrb[28].mxu0  ;;  %v1072_v36 = vpop.f32.mrb[28].mxu1 }
 0x148   : > { %v1670_v5 = vadd.f32 %v1612_v62, %v1554_v0  ;;  %v1700_v37 = vadd.f32 %v1642_v9, %v1584_v2  ;;  %v1555_v38 = vmul.f32 %v2492_v14, %v1207_v33  ;;  %v1585_v39 = vmul.f32 %v1470_v63, %v1237_v7  ;;  %v954_v40 = vpop.f32.mrb[29].mxu0  ;;  %v1074_v4 = vpop.f32.mrb[29].mxu1 }
 0x149   : > { %v953_v15 = vadd.f32 %v2531_v30, %v952_v35  ;;  %v1073_v6 = vadd.f32 %v2531_v30, %v1072_v36  ;;  %v955_v41 = vpop.f32.mrb[30].mxu0  ;;  %v1075_v3 = vpop.f32.mrb[30].mxu1 }
 0x14a   : > { %1728 = vst.msk [vmem:[%s2557_s28 + $0x60] sm:$0xff] %vm774_vm0, %v1670_v5  ;;  %1758 = vst.msk [vmem:[%s2557_s28 + $0x150] sm:$0xff] %vm774_vm0, %v1700_v37  ;;  %v1671_v42 = vadd.f32 %v1613_v8, %v1555_v38  ;;  %v1701_v43 = vadd.f32 %v1643_v34, %v1585_v39  ;;  %v956_v14 = vadd.f32 %v2531_v30, %v955_v41  ;;  %v957_v45 = vpop.f32.mrb[31].mxu0  ;;  %v1077_v46 = vpop.f32.mrb[31].mxu1  ;;  %v1646_v41 = vld [vmem:[%s2543_s25 + $0x170] sm:$0xff] }
 0x14b   : > { %v1076_v44 = vadd.f32 %v2531_v30, %v1075_v3  ;;  %v1141_v47 = vmax.f32 %v953_v15, 0.0  ;;  %v1171_v48 = vmax.f32 %v1073_v6, 0.0  ;;  %v1480_v52 = vpop.permute.xlu0 %1479  ;;  %v1475_v53 = vpop.permute.xlu1 %1474  ;;  %v1616_v6 = vld [vmem:[%s2543_s25 + $0x80] sm:$0xff] }
 0x14c   : > { %1729 = vst.msk [vmem:[%s2557_s28 + $0x68] sm:$0xff] %vm774_vm0, %v1671_v42  ;;  %1759 = vst.msk [vmem:[%s2557_s28 + $0x158] sm:$0xff] %vm774_vm0, %v1701_v43  ;;  %v1142_v13 = vmax.f32 %v956_v14, 0.0 }
 0x14d   : > { %v1172_v49 = vmax.f32 %v1076_v44, 0.0  ;;  %v1208_v50 = vmul.f32 %v2468_v1, %v1141_v47  ;;  %v1238_v51 = vmul.f32 %v2468_v1, %v1171_v48 }
 0x14e   : > { %v1209_v56 = vmul.f32 %v2468_v1, %v1142_v13 }
 0x14f   : > { %v1239_v57 = vmul.f32 %v2468_v1, %v1172_v49  ;;  %v1556_v12 = vmul.f32 %v2498_v17, %v1208_v50  ;;  %v1586_v11 = vmul.f32 %v1475_v53, %v1238_v51  ;;  %v960_v60 = vpop.f32.mrb[32].mxu0  ;;  %v1080_v61 = vpop.f32.mrb[32].mxu1  ;;  %v1617_v50 = vld [vmem:[%s2543_s25 + $0x88] sm:$0xff]  ;;  %v1647_v51 = vld [vmem:[%s2543_s25 + $0x178] sm:$0xff] }
 0x150   : > { %v1557_v10 = vmul.f32 %v2496_v16, %v1209_v56  ;;  %v961_v9 = vadd.f32 %v2531_v30, %v960_v60  ;;  %v1081_v63 = vadd.f32 %v2531_v30, %v1080_v61  ;;  %v962_v0 = vpop.f32.mrb[33].mxu0  ;;  %v1082_v2 = vpop.f32.mrb[33].mxu1 }
 0x151   : > { %v1587_v62 = vmul.f32 %v1480_v52, %v1239_v57  ;;  %v1672_v33 = vadd.f32 %v1614_v54, %v1556_v12  ;;  %v1702_v17 = vadd.f32 %v1644_v55, %v1586_v11  ;;  %v963_v7 = vpop.f32.mrb[34].mxu0  ;;  %v1083_v8 = vpop.f32.mrb[34].mxu1 }
 0x152   : > { %v1673_v34 = vadd.f32 %v1615_v58, %v1557_v10  ;;  %v1143_v16 = vmax.f32 %v961_v9, 0.0  ;;  %v1173_v36 = vmax.f32 %v1081_v63, 0.0  ;;  %v965_v5 = vpop.f32.mrb[35].mxu0  ;;  %v1085_v37 = vpop.f32.mrb[35].mxu1  ;;  %v964_v38 = vadd.f32 %v2531_v30, %v963_v7  ;;  %v1648_v7 = vld [vmem:[%s2543_s25 + $0x180] sm:$0xff] }
 0x153   : > { %v1703_v35 = vadd.f32 %v1645_v59, %v1587_v62  ;;  %1730 = vst.msk [vmem:[%s2557_s28 + $0x70] sm:$0xff] %vm774_vm0, %v1672_v33  ;;  %1760 = vst.msk [vmem:[%s2557_s28 + $0x160] sm:$0xff] %vm774_vm0, %v1702_v17  ;;  %v1084_v39 = vadd.f32 %v2531_v30, %v1083_v8  ;;  %v1485_v15 = vpop.permute.xlu1 %1484  ;;  %v1490_v43 = vpop.permute.xlu0 %1489  ;;  %v1618_v17 = vld [vmem:[%s2543_s25 + $0x90] sm:$0xff]  ;;  %v1619_v5 = vld [vmem:[%s2543_s25 + $0x98] sm:$0xff] }
 0x154   : > { %1731 = vst.msk [vmem:[%s2557_s28 + $0x78] sm:$0xff] %vm774_vm0, %v1673_v34  ;;  %v1210_v40 = vmul.f32 %v2468_v1, %v1143_v16  ;;  %v1240_v4 = vmul.f32 %v2468_v1, %v1173_v36  ;;  %v1144_v3 = vmax.f32 %v964_v38, 0.0  ;;  %v1649_v37 = vld [vmem:[%s2543_s25 + $0x188] sm:$0xff] }
 0x155   : > { %1761 = vst.msk [vmem:[%s2557_s28 + $0x168] sm:$0xff] %vm774_vm0, %v1703_v35  ;;  %v1174_v42 = vmax.f32 %v1084_v39, 0.0 }
 0x156   : > { %v1558_v14 = vmul.f32 %v2502_v19, %v1210_v40  ;;  %v1588_v44 = vmul.f32 %v1485_v15, %v1240_v4  ;;  %v1211_v45 = vmul.f32 %v2468_v1, %v1144_v3 }
 0x157   : > { %v1241_v46 = vmul.f32 %v2468_v1, %v1174_v42  ;;  %v968_v47 = vpop.f32.mrb[36].mxu0  ;;  %v1088_v48 = vpop.f32.mrb[36].mxu1 }
 0x158   : > { %v1674_v13 = vadd.f32 %v1616_v6, %v1558_v14  ;;  %v1704_v49 = vadd.f32 %v1646_v41, %v1588_v44  ;;  %v969_v52 = vadd.f32 %v2531_v30, %v968_v47  ;;  %v1089_v53 = vadd.f32 %v2531_v30, %v1088_v48  ;;  %v970_v54 = vpop.f32.mrb[37].mxu0  ;;  %v1090_v55 = vpop.f32.mrb[37].mxu1 }
 0x159   : > { %v1559_v19 = vmul.f32 %v2500_v18, %v1211_v45  ;;  %v1589_v56 = vmul.f32 %v1490_v43, %v1241_v46  ;;  %v971_v57 = vpop.f32.mrb[38].mxu0  ;;  %v1091_v12 = vpop.f32.mrb[38].mxu1 }
 0x15a   : > { %1732 = vst.msk [vmem:[%s2557_s28 + $0x80] sm:$0xff] %vm774_vm0, %v1674_v13  ;;  %1762 = vst.msk [vmem:[%s2557_s28 + $0x170] sm:$0xff] %vm774_vm0, %v1704_v49  ;;  %v1145_v11 = vmax.f32 %v969_v52, 0.0  ;;  %v1175_v58 = vmax.f32 %v1089_v53, 0.0  ;;  %v972_v59 = vadd.f32 %v2531_v30, %v971_v57  ;;  %v1092_v60 = vadd.f32 %v2531_v30, %v1091_v12  ;;  %v973_v61 = vpop.f32.mrb[39].mxu0  ;;  %v1093_v10 = vpop.f32.mrb[39].mxu1 }
 0x15b   : > { %v1675_v18 = vadd.f32 %v1617_v50, %v1559_v19  ;;  %v1705_v62 = vadd.f32 %v1647_v51, %v1589_v56  ;;  %v1495_v33 = vpop.permute.xlu1 %1494  ;;  %v1500_v8 = vpop.permute.xlu0 %1499  ;;  %v1620_v19 = vld [vmem:[%s2543_s25 + $0xa0] sm:$0xff]  ;;  %v1650_v56 = vld [vmem:[%s2543_s25 + $0x190] sm:$0xff] }
 0x15c   : > { %v1212_v9 = vmul.f32 %v2468_v1, %v1145_v11  ;;  %v1242_v63 = vmul.f32 %v2468_v1, %v1175_v58  ;;  %v1146_v0 = vmax.f32 %v972_v59, 0.0  ;;  %v1176_v2 = vmax.f32 %v1092_v60, 0.0  ;;  %v1621_v59 = vld [vmem:[%s2543_s25 + $0xa8] sm:$0xff]  ;;  %v1651_v60 = vld [vmem:[%s2543_s25 + $0x198] sm:$0xff] }
 0x15d   : > { %1733 = vst.msk [vmem:[%s2557_s28 + $0x88] sm:$0xff] %vm774_vm0, %v1675_v18  ;;  %1763 = vst.msk [vmem:[%s2557_s28 + $0x178] sm:$0xff] %vm774_vm0, %v1705_v62 }
 0x15e   : > { %v1560_v34 = vmul.f32 %v2506_v21, %v1212_v9  ;;  %v1590_v35 = vmul.f32 %v1495_v33, %v1242_v63  ;;  %v1213_v16 = vmul.f32 %v2468_v1, %v1146_v0  ;;  %v1243_v36 = vmul.f32 %v2468_v1, %v1176_v2 }
 0x15f   : > { %v976_v38 = vpop.f32.mrb[40].mxu0  ;;  %v1096_v39 = vpop.f32.mrb[40].mxu1 }
 0x160   : > { %v1676_v40 = vadd.f32 %v1618_v17, %v1560_v34  ;;  %v1706_v4 = vadd.f32 %v1648_v7, %v1590_v35  ;;  %v1561_v15 = vmul.f32 %v2504_v20, %v1213_v16  ;;  %v1591_v6 = vmul.f32 %v1500_v8, %v1243_v36  ;;  %v978_v41 = vpop.f32.mrb[41].mxu0  ;;  %v1098_v3 = vpop.f32.mrb[41].mxu1 }
 0x161   : > { %v977_v21 = vadd.f32 %v2531_v30, %v976_v38  ;;  %v1097_v42 = vadd.f32 %v2531_v30, %v1096_v39  ;;  %v979_v43 = vpop.f32.mrb[42].mxu0  ;;  %v1099_v14 = vpop.f32.mrb[42].mxu1 }
 0x162   : > { %1734 = vst.msk [vmem:[%s2557_s28 + $0x90] sm:$0xff] %vm774_vm0, %v1676_v40  ;;  %1764 = vst.msk [vmem:[%s2557_s28 + $0x180] sm:$0xff] %vm774_vm0, %v1706_v4  ;;  %v1677_v44 = vadd.f32 %v1619_v5, %v1561_v15  ;;  %v1707_v45 = vadd.f32 %v1649_v37, %v1591_v6  ;;  %v980_v20 = vadd.f32 %v2531_v30, %v979_v43  ;;  %v981_v47 = vpop.f32.mrb[43].mxu0  ;;  %v1101_v48 = vpop.f32.mrb[43].mxu1  ;;  %v1622_v4 = vld [vmem:[%s2543_s25 + $0xb0] sm:$0xff]  ;;  %v1652_v15 = vld [vmem:[%s2543_s25 + $0x1a0] sm:$0xff] }
 0x163   : > { %v1100_v46 = vadd.f32 %v2531_v30, %v1099_v14  ;;  %v1147_v13 = vmax.f32 %v977_v21, 0.0  ;;  %v1177_v49 = vmax.f32 %v1097_v42, 0.0  ;;  %v1510_v54 = vpop.permute.xlu0 %1509  ;;  %v1505_v55 = vpop.permute.xlu1 %1504  ;;  %v1623_v47 = vld [vmem:[%s2543_s25 + $0xb8] sm:$0xff]  ;;  %v1653_v48 = vld [vmem:[%s2543_s25 + $0x1a8] sm:$0xff] }
 0x164   : > { %1735 = vst.msk [vmem:[%s2557_s28 + $0x98] sm:$0xff] %vm774_vm0, %v1677_v44  ;;  %1765 = vst.msk [vmem:[%s2557_s28 + $0x188] sm:$0xff] %vm774_vm0, %v1707_v45  ;;  %v1148_v50 = vmax.f32 %v980_v20, 0.0 }
 0x165   : > { %v1178_v51 = vmax.f32 %v1100_v46, 0.0  ;;  %v1214_v52 = vmul.f32 %v2468_v1, %v1147_v13  ;;  %v1244_v53 = vmul.f32 %v2468_v1, %v1177_v49 }
 0x166   : > { %v1215_v57 = vmul.f32 %v2468_v1, %v1148_v50 }
 0x167   : > { %v1245_v12 = vmul.f32 %v2468_v1, %v1178_v51  ;;  %v1562_v11 = vmul.f32 %v2510_v23, %v1214_v52  ;;  %v1592_v58 = vmul.f32 %v1505_v55, %v1244_v53  ;;  %v984_v61 = vpop.f32.mrb[44].mxu0  ;;  %v1104_v10 = vpop.f32.mrb[44].mxu1 }
 0x168   : > { %v1563_v18 = vmul.f32 %v2508_v22, %v1215_v57  ;;  %v985_v9 = vadd.f32 %v2531_v30, %v984_v61  ;;  %v1105_v63 = vadd.f32 %v2531_v30, %v1104_v10  ;;  %v986_v0 = vpop.f32.mrb[45].mxu0  ;;  %v1106_v2 = vpop.f32.mrb[45].mxu1 }
 0x169   : > { %v1593_v62 = vmul.f32 %v1510_v54, %v1245_v12  ;;  %v1678_v33 = vadd.f32 %v1620_v19, %v1562_v11  ;;  %v1708_v23 = vadd.f32 %v1650_v56, %v1592_v58  ;;  %v987_v17 = vpop.f32.mrb[46].mxu0  ;;  %v1107_v7 = vpop.f32.mrb[46].mxu1 }
 0x16a   : > { %v1679_v8 = vadd.f32 %v1621_v59, %v1563_v18  ;;  %v1149_v22 = vmax.f32 %v985_v9, 0.0  ;;  %v1179_v35 = vmax.f32 %v1105_v63, 0.0  ;;  %v989_v16 = vpop.f32.mrb[47].mxu0  ;;  %v1109_v36 = vpop.f32.mrb[47].mxu1  ;;  %v988_v5 = vadd.f32 %v2531_v30, %v987_v17  ;;  %v1654_v9 = vld [vmem:[%s2543_s25 + $0x1b0] sm:$0xff]  ;;  %v1625_v17 = vld [vmem:[%s2543_s25 + $0xc8] sm:$0xff] }
 0x16b   : > { %v1709_v34 = vadd.f32 %v1651_v60, %v1593_v62  ;;  %1736 = vst.msk [vmem:[%s2557_s28 + $0xa0] sm:$0xff] %vm774_vm0, %v1678_v33  ;;  %1766 = vst.msk [vmem:[%s2557_s28 + $0x190] sm:$0xff] %vm774_vm0, %v1708_v23  ;;  %v1108_v37 = vadd.f32 %v2531_v30, %v1107_v7  ;;  %v1515_v40 = vpop.permute.xlu1 %1514  ;;  %v1520_v3 = vpop.permute.xlu0 %1519  ;;  %v1624_v62 = vld [vmem:[%s2543_s25 + $0xc0] sm:$0xff]  ;;  %v1655_v7 = vld [vmem:[%s2543_s25 + $0x1b8] sm:$0xff] }
 0x16c   : > { %1737 = vst.msk [vmem:[%s2557_s28 + $0xa8] sm:$0xff] %vm774_vm0, %v1679_v8  ;;  %v1216_v38 = vmul.f32 %v2468_v1, %v1149_v22  ;;  %v1246_v39 = vmul.f32 %v2468_v1, %v1179_v35  ;;  %v1150_v6 = vmax.f32 %v988_v5, 0.0 }
 0x16d   : > { %1767 = vst.msk [vmem:[%s2557_s28 + $0x198] sm:$0xff] %vm774_vm0, %v1709_v34  ;;  %v1180_v41 = vmax.f32 %v1108_v37, 0.0 }
 0x16e   : > { %v1564_v21 = vmul.f32 %v2514_v25, %v1216_v38  ;;  %v1594_v42 = vmul.f32 %v1515_v40, %v1246_v39  ;;  %v1217_v43 = vmul.f32 %v2468_v1, %v1150_v6 }
 0x16f   : > { %v1247_v14 = vmul.f32 %v2468_v1, %v1180_v41  ;;  %v992_v44 = vpop.f32.mrb[48].mxu0  ;;  %v1112_v45 = vpop.f32.mrb[48].mxu1 }
 0x170   : > { %v1680_v20 = vadd.f32 %v1622_v4, %v1564_v21  ;;  %v1710_v46 = vadd.f32 %v1652_v15, %v1594_v42  ;;  %v993_v13 = vadd.f32 %v2531_v30, %v992_v44  ;;  %v1113_v49 = vadd.f32 %v2531_v30, %v1112_v45  ;;  %v994_v50 = vpop.f32.mrb[49].mxu0  ;;  %v1114_v51 = vpop.f32.mrb[49].mxu1 }
 0x171   : > { %v1565_v25 = vmul.f32 %v2512_v24, %v1217_v43  ;;  %v1595_v52 = vmul.f32 %v1520_v3, %v1247_v14  ;;  %v995_v53 = vpop.f32.mrb[50].mxu0  ;;  %v1115_v54 = vpop.f32.mrb[50].mxu1  ;;  %v1627_v51 = vld [vmem:[%s2543_s25 + $0xd8] sm:$0xff] }
 0x172   : > { %1738 = vst.msk [vmem:[%s2557_s28 + $0xb0] sm:$0xff] %vm774_vm0, %v1680_v20  ;;  %1768 = vst.msk [vmem:[%s2557_s28 + $0x1a0] sm:$0xff] %vm774_vm0, %v1710_v46  ;;  %v1151_v55 = vmax.f32 %v993_v13, 0.0  ;;  %v1181_v19 = vmax.f32 %v1113_v49, 0.0  ;;  %v996_v56 = vadd.f32 %v2531_v30, %v995_v53  ;;  %v1116_v57 = vadd.f32 %v2531_v30, %v1115_v54  ;;  %v997_v12 = vpop.f32.mrb[51].mxu0  ;;  %v1117_v11 = vpop.f32.mrb[51].mxu1 }
 0x173   : > { %v1681_v24 = vadd.f32 %v1623_v47, %v1565_v25  ;;  %v1711_v58 = vadd.f32 %v1653_v48, %v1595_v52  ;;  %v1525_v18 = vpop.permute.xlu1 %1524  ;;  %v1530_v63 = vpop.permute.xlu0 %1529  ;;  %v1626_v46 = vld [vmem:[%s2543_s25 + $0xd0] sm:$0xff]  ;;  %v1657_v25 = vld [vmem:[%s2543_s25 + $0x1c8] sm:$0xff] }
 0x174   : > { %v1218_v59 = vmul.f32 %v2468_v1, %v1151_v55  ;;  %v1248_v60 = vmul.f32 %v2468_v1, %v1181_v19  ;;  %v1152_v61 = vmax.f32 %v996_v56, 0.0  ;;  %v1182_v10 = vmax.f32 %v1116_v57, 0.0  ;;  %v2102_v55 = vld [vmem:[%s2528_s21] ss:$0 sm:$0xff] }
 0x175   : > { %1739 = vst.msk [vmem:[%s2557_s28 + $0xb8] sm:$0xff] %vm774_vm0, %v1681_v24  ;;  %1769 = vst.msk [vmem:[%s2557_s28 + $0x1a8] sm:$0xff] %vm774_vm0, %v1711_v58 }
 0x176   : > { %v1566_v0 = vmul.f32 %v2518_v27, %v1218_v59  ;;  %v1596_v2 = vmul.f32 %v1525_v18, %v1248_v60  ;;  %v1219_v33 = vmul.f32 %v2468_v1, %v1152_v61  ;;  %v1249_v23 = vmul.f32 %v2468_v1, %v1182_v10  ;;  %v1628_v10 = vld [vmem:[%s2543_s25 + $0xe0] sm:$0xff] }
 0x177   : > { %v1000_v8 = vpop.f32.mrb[52].mxu0  ;;  %v1120_v34 = vpop.f32.mrb[52].mxu1 }
 0x178   : > { %v1682_v22 = vadd.f32 %v1624_v62, %v1566_v0  ;;  %v1712_v35 = vadd.f32 %v1654_v9, %v1596_v2  ;;  %v1567_v16 = vmul.f32 %v2516_v26, %v1219_v33  ;;  %v1597_v36 = vmul.f32 %v1530_v63, %v1249_v23  ;;  %v1002_v5 = vpop.f32.mrb[53].mxu0  ;;  %v1122_v37 = vpop.f32.mrb[53].mxu1  ;;  %v1629_v9 = vld [vmem:[%s2543_s25 + $0xe8] sm:$0xff] }
 0x179   : > { %v1001_v27 = vadd.f32 %v2531_v30, %v1000_v8  ;;  %v1121_v38 = vadd.f32 %v2531_v30, %v1120_v34  ;;  %v1003_v39 = vpop.f32.mrb[54].mxu0  ;;  %v1123_v40 = vpop.f32.mrb[54].mxu1 }
 0x17a   : > { %1740 = vst.msk [vmem:[%s2557_s28 + $0xc0] sm:$0xff] %vm774_vm0, %v1682_v22  ;;  %1770 = vst.msk [vmem:[%s2557_s28 + $0x1b0] sm:$0xff] %vm774_vm0, %v1712_v35  ;;  %v1683_v4 = vadd.f32 %v1625_v17, %v1567_v16  ;;  %v1713_v15 = vadd.f32 %v1655_v7, %v1597_v36  ;;  %v1004_v26 = vadd.f32 %v2531_v30, %v1003_v39  ;;  %v1005_v41 = vpop.f32.mrb[55].mxu0  ;;  %v1125_v3 = vpop.f32.mrb[55].mxu1 }
 0x17b   : > { %v1124_v6 = vadd.f32 %v2531_v30, %v1123_v40  ;;  %v1153_v21 = vmax.f32 %v1001_v27, 0.0  ;;  %v1183_v42 = vmax.f32 %v1121_v38, 0.0  ;;  %v1535_v20 = vpop.permute.xlu1 %1534  ;;  %v1656_v30 = vld [vmem:[%s2543_s25 + $0x1c0] sm:$0xff]  ;;  %v1540_v13 = vpop.permute.xlu0 %1539 }
 0x17c   : > { %1741 = vst.msk [vmem:[%s2557_s28 + $0xc8] sm:$0xff] %vm774_vm0, %v1683_v4  ;;  %1771 = vst.msk [vmem:[%s2557_s28 + $0x1b8] sm:$0xff] %vm774_vm0, %v1713_v15  ;;  %v1154_v43 = vmax.f32 %v1004_v26, 0.0 }
 0x17d   : > { %v1184_v14 = vmax.f32 %v1124_v6, 0.0  ;;  %v1220_v44 = vmul.f32 %v2468_v1, %v1153_v21  ;;  %v1250_v45 = vmul.f32 %v2468_v1, %v1183_v42 }
 0x17e   : > { %v1221_v47 = vmul.f32 %v2468_v1, %v1154_v43 }
 0x17f   : > { %v1251_v48 = vmul.f32 %v2468_v1, %v1184_v14  ;;  %v1568_v49 = vmul.f32 %v2522_v29, %v1220_v44  ;;  %v1598_v50 = vmul.f32 %v1535_v20, %v1250_v45  ;;  %v1008_v52 = vpop.f32.mrb[56].mxu0 }
 0x180   : > { %v1569_v53 = vmul.f32 %v2520_v28, %v1221_v47  ;;  %v1009_v19 = vadd.f32 %v2102_v55, %v1008_v52  ;;  %v1010_v56 = vpop.f32.mrb[57].mxu0 }
 0x181   : > { %v1599_v54 = vmul.f32 %v1540_v13, %v1251_v48  ;;  %v1684_v57 = vadd.f32 %v1626_v46, %v1568_v49  ;;  %v1714_v12 = vadd.f32 %v1656_v30, %v1598_v50  ;;  %v1011_v11 = vpop.f32.mrb[58].mxu0 }
 0x182   : > { %v1685_v29 = vadd.f32 %v1627_v51, %v1569_v53  ;;  %v1155_v58 = vmax.f32 %v1009_v19, 0.0  ;;  %v1012_v59 = vadd.f32 %v2102_v55, %v1011_v11  ;;  %v1013_v60 = vpop.f32.mrb[59].mxu0 }
 0x183   : > { %v1715_v24 = vadd.f32 %v1657_v25, %v1599_v54  ;;  %1742 = vst.msk [vmem:[%s2557_s28 + $0xd0] sm:$0xff] %vm774_vm0, %v1684_v57  ;;  %1772 = vst.msk [vmem:[%s2557_s28 + $0x1c0] sm:$0xff] %vm774_vm0, %v1714_v12 }
 0x184   : > { %1743 = vst.msk [vmem:[%s2557_s28 + $0xd8] sm:$0xff] %vm774_vm0, %v1685_v29  ;;  %v1222_v28 = vmul.f32 %v2468_v1, %v1155_v58  ;;  %v1156_v61 = vmax.f32 %v1012_v59, 0.0 }
 0x185   : > { %1773 = vst.msk [vmem:[%s2557_s28 + $0x1c8] sm:$0xff] %vm774_vm0, %v1715_v24 }
 0x186   : > { %v1570_v18 = vmul.f32 %v2535_v32, %v1222_v28  ;;  %v1223_v62 = vmul.f32 %v2468_v1, %v1156_v61 }
 0x188   : > { %v1686_v63 = vadd.f32 %v1628_v10, %v1570_v18  ;;  %v1571_v0 = vmul.f32 %v2533_v31, %v1223_v62 }
 0x18a   : > { %1744 = vst.msk [vmem:[%s2557_s28 + $0xe0] sm:$0xff] %vm774_vm0, %v1686_v63  ;;  %v1687_v2 = vadd.f32 %v1629_v9, %v1571_v0 }
 0x18c   : > { %1745 = vst.msk [vmem:[%s2557_s28 + $0xe8] sm:$0xff] %vm774_vm0, %v1687_v2 }
 0x18d PF: > { %s18_s23 = sadd.s32 1, %s2109_s23  }
 0x18e   : > { %p15_p4 = scmp.ge.s32.totalorder %s18_s23, 5  }
 0x190   :  { %17 = sbr.rel (!%p15_p4) target bundleno = 3 (0x3), region = 83 }

// kernel: tile.27
= control target key start
LH: loop header
LB: loop body
LE: loop exit
PB: predicated region body
PF: predicated region fallthrough
CT: control target
= control target key end

     0   :  { %s22_s0 = inlined_call_operand.vmem [shape: f32[40], index: 0, kind: input, shape index: {}]   ;;  %s23_s1 = inlined_call_operand.vmem [shape: f32[2,40], index: 1, kind: output, shape index: {}]  }
   0x1   :  { %v4_v0 = vld [vmem:[%s22_s0] ss:$0 sm:$0xff] }
   0x2   :  { %5 = vst [vmem:[%s23_s1] sm:$0x3] %v4_v0 }

// kernel: tile.1
= control target key start
LH: loop header
LB: loop body
LE: loop exit
PB: predicated region body
PF: predicated region fallthrough
CT: control target
= control target key end

     0   :  { %s338_s8 = smov 125   ;;  %s339_s9 = smov 126   ;;  %vm7_vm0 = vcmask 7168   ;;  %s549_s0 = inlined_call_operand.vmem [shape: f32[2,40], index: 0, kind: input, shape index: {}]   ;;  %s550_s1 = inlined_call_operand.vmem [shape: f32[1,1,80,1], index: 1, kind: output, shape index: {}]  }
   0x1   :  { %v4_v0 = vld [vmem:[%s549_s0] sm:$0x3]  ;;  %s337_s0 = smov 127   ;;  %s340_s10 = smov 124  }
   0x2   :  { %5 = vst [vmem:[#allocation0] sm:$0x3] %v4_v0  ;;  %s341_s11 = smov 123   ;;  %s342_s12 = smov 122  }
   0x3   :  { %s343_s13 = smov 121   ;;  %s344_s14 = smov 120  }
   0x4   :  { %s345_s15 = smov 119   ;;  %s346_s16 = smov 118  }
   0x5   :  { %s347_s17 = smov 117   ;;  %s348_s18 = smov 116  }
   0x6   :  { %s349_s19 = smov 115   ;;  %s350_s20 = smov 114  }
   0x7   :  { %s351_s21 = smov 113   ;;  %s352_s22 = smov 112  }
   0x8   :  { %s353_s23 = smov 111   ;;  %s354_s24 = smov 110  }
   0x9   :  { %v9_v1 = vld [vmem:[#allocation0] sm:$0x3]   ;;  %s355_s25 = smov 109   ;;  %s356_s26 = smov 108  }
   0xa   :  { %v21_v2 = vld [vmem:[#allocation0] sm:$0x3]   ;;  %10 = vrot.lane.b32.xlu0 %v9_v1, %s337_s0  ;;  %s148_s27 = smov 3  ;;  %s357_s28 = smov 107  }
   0xb   :  { %22 = vrot.lane.b32.xlu1 %v21_v2, %s338_s8  ;;  %v15_v3 = vld [vmem:[#allocation0] sm:$0x3]   ;;  %s358_s29 = smov 106   ;;  %s156_s30 = smov 3 }
   0xc   :  { %v27_v4 = vld [vmem:[#allocation0] sm:$0x3]   ;;  %s164_s2 = smov 3  ;;  %s359_s3 = smov 105  }
   0xd   :  { %v33_v5 = vld [vmem:[#allocation0] sm:$0x3]   ;;  %s360_s4 = smov 104   ;;  %s172_s5 = smov 3 }
   0xe   :  { %16 = vrot.lane.b32.xlu0 %v15_v3, %s339_s9  ;;  %v39_v6 = vld [vmem:[#allocation0] sm:$0x3]   ;;  %s180_s6 = smov 3  ;;  %s361_s7 = smov 103  }
   0xf   :  { %28 = vrot.lane.b32.xlu1 %v27_v4, %s340_s10  ;;  %v45_v7 = vld [vmem:[#allocation0] sm:$0x3]   ;;  %s362_s0 = smov 102   ;;  %s188_s8 = smov 3 }
  0x10   :  { %v51_v8 = vld [vmem:[#allocation0] sm:$0x3]   ;;  %s196_s9 = smov 3  ;;  %s363_s10 = smov 101  }
  0x11   :  { %v57_v9 = vld [vmem:[#allocation0] sm:$0x3]  }
  0x12   :  { %34 = vrot.lane.b32.xlu0 %v33_v5, %s341_s11  ;;  %v63_v10 = vld [vmem:[#allocation0] sm:$0x3]   ;;  %s364_s11 = smov 100  }
  0x13   :  { %40 = vrot.lane.b32.xlu1 %v39_v6, %s342_s12  ;;  %v69_v11 = vld [vmem:[#allocation0] sm:$0x3]   ;;  %s204_s12 = smov 3 }
  0x14   :  { %v75_v12 = vld [vmem:[#allocation0] sm:$0x3]  }
  0x15   :  { %v81_v13 = vld [vmem:[#allocation0] sm:$0x3]  }
  0x16   :  { %46 = vrot.lane.b32.xlu0 %v45_v7, %s343_s13  ;;  %v87_v14 = vld [vmem:[#allocation0] sm:$0x3]   ;;  %s365_s13 = smov 99  }
  0x17   :  { %52 = vrot.lane.b32.xlu1 %v51_v8, %s344_s14  ;;  %v93_v15 = vld [vmem:[#allocation0] sm:$0x3]   ;;  %s366_s14 = smov 98  }
  0x18   :  { %v99_v16 = vld [vmem:[#allocation0] sm:$0x3]  }
  0x19   :  { %v105_v17 = vld [vmem:[#allocation0] sm:$0x3]  }
  0x1a   :  { %58 = vrot.lane.b32.xlu0 %v57_v9, %s345_s15  ;;  %v111_v18 = vld [vmem:[#allocation0] sm:$0x3]   ;;  %s367_s15 = smov 97  }
  0x1b   :  { %64 = vrot.lane.b32.xlu1 %v63_v10, %s346_s16  ;;  %v117_v19 = vld [vmem:[#allocation0] sm:$0x3]   ;;  %s368_s16 = smov 96  }
  0x1c   :  { %v123_v20 = vld [vmem:[#allocation0] sm:$0x3]  }
  0x1d   :  { %v129_v21 = vld [vmem:[#allocation0] sm:$0x3]  }
  0x1e   :  { %70 = vrot.lane.b32.xlu0 %v69_v11, %s347_s17  ;;  %v135_v22 = vld [vmem:[#allocation0] sm:$0x3]  }
  0x1f   :  { %76 = vrot.lane.b32.xlu1 %v75_v12, %s348_s18  ;;  %v141_v23 = vld [vmem:[#allocation0] sm:$0x3]  }
  0x20   :  { %v149_v24 = vld [vmem:[#allocation0 + $0x1] ss:$-1 sm:%s148_s27]  }
  0x21   :  { %v157_v25 = vld [vmem:[#allocation0 + $0x1] ss:$-1 sm:%s156_s30]  }
  0x22   :  { %82 = vrot.lane.b32.xlu0 %v81_v13, %s349_s19  ;;  %v165_v26 = vld [vmem:[#allocation0 + $0x1] ss:$-1 sm:%s164_s2]   ;;  %s369_s19 = smov 95  }
  0x23   :  { %88 = vrot.lane.b32.xlu1 %v87_v14, %s350_s20  ;;  %v173_v27 = vld [vmem:[#allocation0 + $0x1] ss:$-1 sm:%s172_s5]   ;;  %s370_s20 = smov 94  }
  0x24   :  { %v181_v28 = vld [vmem:[#allocation0 + $0x1] ss:$-1 sm:%s180_s6]  }
  0x25   :  { %v189_v29 = vld [vmem:[#allocation0 + $0x1] ss:$-1 sm:%s188_s8]  }
  0x26   :  { %94 = vrot.lane.b32.xlu0 %v93_v15, %s351_s21  ;;  %v197_v30 = vld [vmem:[#allocation0 + $0x1] ss:$-1 sm:%s196_s9]   ;;  %s371_s21 = smov 93  }
  0x27   :  { %100 = vrot.lane.b32.xlu1 %v99_v16, %s352_s22  ;;  %v205_v31 = vld [vmem:[#allocation0 + $0x1] ss:$-1 sm:%s204_s12]   ;;  %s372_s22 = smov 92  }
  0x28   :  { %v211_v32 = vld [vmem:[#allocation0] sm:$0x3]  }
  0x29   :  { %v217_v33 = vld [vmem:[#allocation0] sm:$0x3]  }
  0x2a   :  { %106 = vrot.lane.b32.xlu0 %v105_v17, %s353_s23  ;;  %v223_v34 = vld [vmem:[#allocation0] sm:$0x3]   ;;  %s373_s23 = smov 91  }
  0x2b   :  { %112 = vrot.lane.b32.xlu1 %v111_v18, %s354_s24  ;;  %v6_v35 = vld [vmem:[#allocation0] sm:$0x3]   ;;  %s374_s24 = smov 90  }
  0x2c   :  { %8 = vst.msk [vmem:[%s550_s1] ss:$40 sm:$0x3] %vm7_vm0, %v6_v35   ;;  %v229_v36 = vld [vmem:[#allocation0] sm:$0x3]  }
  0x2d   :  { %v235_v37 = vld [vmem:[#allocation0] sm:$0x3]  }
  0x2e   :  { %118 = vrot.lane.b32.xlu0 %v117_v19, %s355_s25  ;;  %v241_v38 = vld [vmem:[#allocation0] sm:$0x3]   ;;  %s375_s25 = smov 89  }
  0x2f   :  { %124 = vrot.lane.b32.xlu1 %v123_v20, %s356_s26  ;;  %v247_v39 = vld [vmem:[#allocation0] sm:$0x3]  }
  0x30   :  { %v253_v40 = vld [vmem:[#allocation0] sm:$0x3]  }
  0x32   :  { %130 = vrot.lane.b32.xlu0 %v129_v21, %s357_s28 }
  0x33   :  { %136 = vrot.lane.b32.xlu1 %v135_v22, %s358_s29 }
  0x36   :  { %142 = vrot.lane.b32.xlu0 %v141_v23, %s359_s3 }
  0x37   :  { %150 = vrot.lane.b32.xlu1 %v149_v24, %s360_s4 }
  0x3a   :  { %158 = vrot.lane.b32.xlu0 %v157_v25, %s361_s7 }
  0x3b   :  { %166 = vrot.lane.b32.xlu1 %v165_v26, %s362_s0 }
  0x3e   :  { %174 = vrot.lane.b32.xlu0 %v173_v27, %s363_s10 }
  0x3f   :  { %182 = vrot.lane.b32.xlu1 %v181_v28, %s364_s11 }
  0x42   :  { %190 = vrot.lane.b32.xlu0 %v189_v29, %s365_s13 }
  0x43   :  { %198 = vrot.lane.b32.xlu1 %v197_v30, %s366_s14 }
  0x46   :  { %206 = vrot.lane.b32.xlu0 %v205_v31, %s367_s15 }
  0x47   :  { %212 = vrot.lane.b32.xlu1 %v211_v32, %s368_s16 }
  0x4a   :  { %218 = vrot.lane.b32.xlu0 %v217_v33, %s369_s19 }
  0x4b   :  { %224 = vrot.lane.b32.xlu1 %v223_v34, %s370_s20 }
  0x4e   :  { %230 = vrot.lane.b32.xlu0 %v229_v36, %s371_s21 }
  0x4f   :  { %236 = vrot.lane.b32.xlu1 %v235_v37, %s372_s22 }
  0x52   :  { %242 = vrot.lane.b32.xlu0 %v241_v38, %s373_s23 }
  0x53   :  { %248 = vrot.lane.b32.xlu1 %v247_v39, %s374_s24 }
  0x56   :  { %254 = vrot.lane.b32.xlu0 %v253_v40, %s375_s25 }
  0x7c   :  { %v11_v41 = vpop.permute.xlu0 %10  }
  0x7d   :  { %v23_v42 = vpop.permute.xlu1 %22   ;;  %259 = vst.msk [vmem:[%s550_s1 + $0x1] ss:$40 sm:$0x3] %vm7_vm0, %v11_v41  }
  0x7e   :  { %261 = vst.msk [vmem:[%s550_s1 + $0x3] ss:$40 sm:$0x3] %vm7_vm0, %v23_v42  }
  0x80   :  { %v17_v43 = vpop.permute.xlu0 %16  }
  0x81   :  { %v29_v44 = vpop.permute.xlu1 %28   ;;  %260 = vst.msk [vmem:[%s550_s1 + $0x2] ss:$40 sm:$0x3] %vm7_vm0, %v17_v43  }
  0x82   :  { %262 = vst.msk [vmem:[%s550_s1 + $0x4] ss:$40 sm:$0x3] %vm7_vm0, %v29_v44  }
  0x84   :  { %v35_v45 = vpop.permute.xlu0 %34  }
  0x85   :  { %v41_v46 = vpop.permute.xlu1 %40   ;;  %263 = vst.msk [vmem:[%s550_s1 + $0x5] ss:$40 sm:$0x3] %vm7_vm0, %v35_v45  }
  0x86   :  { %264 = vst.msk [vmem:[%s550_s1 + $0x6] ss:$40 sm:$0x3] %vm7_vm0, %v41_v46  }
  0x88   :  { %v47_v47 = vpop.permute.xlu0 %46  }
  0x89   :  { %v53_v48 = vpop.permute.xlu1 %52   ;;  %265 = vst.msk [vmem:[%s550_s1 + $0x7] ss:$40 sm:$0x3] %vm7_vm0, %v47_v47  }
  0x8a   :  { %266 = vst.msk [vmem:[%s550_s1 + $0x8] ss:$40 sm:$0x3] %vm7_vm0, %v53_v48  }
  0x8c   :  { %v59_v49 = vpop.permute.xlu0 %58  }
  0x8d   :  { %v65_v50 = vpop.permute.xlu1 %64   ;;  %267 = vst.msk [vmem:[%s550_s1 + $0x9] ss:$40 sm:$0x3] %vm7_vm0, %v59_v49  }
  0x8e   :  { %268 = vst.msk [vmem:[%s550_s1 + $0xa] ss:$40 sm:$0x3] %vm7_vm0, %v65_v50  }
  0x90   :  { %v71_v51 = vpop.permute.xlu0 %70  }
  0x91   :  { %v77_v52 = vpop.permute.xlu1 %76   ;;  %269 = vst.msk [vmem:[%s550_s1 + $0xb] ss:$40 sm:$0x3] %vm7_vm0, %v71_v51  }
  0x92   :  { %270 = vst.msk [vmem:[%s550_s1 + $0xc] ss:$40 sm:$0x3] %vm7_vm0, %v77_v52  }
  0x94   :  { %v83_v53 = vpop.permute.xlu0 %82  }
  0x95   :  { %v89_v54 = vpop.permute.xlu1 %88   ;;  %271 = vst.msk [vmem:[%s550_s1 + $0xd] ss:$40 sm:$0x3] %vm7_vm0, %v83_v53  }
  0x96   :  { %272 = vst.msk [vmem:[%s550_s1 + $0xe] ss:$40 sm:$0x3] %vm7_vm0, %v89_v54  }
  0x98   :  { %v95_v55 = vpop.permute.xlu0 %94  }
  0x99   :  { %v101_v56 = vpop.permute.xlu1 %100   ;;  %273 = vst.msk [vmem:[%s550_s1 + $0xf] ss:$40 sm:$0x3] %vm7_vm0, %v95_v55  }
  0x9a   :  { %274 = vst.msk [vmem:[%s550_s1 + $0x10] ss:$40 sm:$0x3] %vm7_vm0, %v101_v56  }
  0x9c   :  { %v107_v57 = vpop.permute.xlu0 %106  }
  0x9d   :  { %v113_v58 = vpop.permute.xlu1 %112   ;;  %275 = vst.msk [vmem:[%s550_s1 + $0x11] ss:$40 sm:$0x3] %vm7_vm0, %v107_v57  }
  0x9e   :  { %276 = vst.msk [vmem:[%s550_s1 + $0x12] ss:$40 sm:$0x3] %vm7_vm0, %v113_v58  }
  0xa0   :  { %v119_v59 = vpop.permute.xlu0 %118  }
  0xa1   :  { %v125_v60 = vpop.permute.xlu1 %124   ;;  %277 = vst.msk [vmem:[%s550_s1 + $0x13] ss:$40 sm:$0x3] %vm7_vm0, %v119_v59  }
  0xa2   :  { %278 = vst.msk [vmem:[%s550_s1 + $0x14] ss:$40 sm:$0x3] %vm7_vm0, %v125_v60  }
  0xa4   :  { %v131_v61 = vpop.permute.xlu0 %130  }
  0xa5   :  { %v137_v62 = vpop.permute.xlu1 %136   ;;  %279 = vst.msk [vmem:[%s550_s1 + $0x15] ss:$40 sm:$0x3] %vm7_vm0, %v131_v61  }
  0xa6   :  { %280 = vst.msk [vmem:[%s550_s1 + $0x16] ss:$40 sm:$0x3] %vm7_vm0, %v137_v62  }
  0xa8   :  { %v143_v63 = vpop.permute.xlu0 %142  }
  0xa9   :  { %v151_v0 = vpop.permute.xlu1 %150   ;;  %281 = vst.msk [vmem:[%s550_s1 + $0x17] ss:$40 sm:$0x3] %vm7_vm0, %v143_v63  }
  0xaa   :  { %282 = vst.msk [vmem:[%s550_s1 + $0x40] ss:$-40 sm:$0x3] %vm7_vm0, %v151_v0  }
  0xac   :  { %v159_v1 = vpop.permute.xlu0 %158  }
  0xad   :  { %v167_v2 = vpop.permute.xlu1 %166   ;;  %283 = vst.msk [vmem:[%s550_s1 + $0x41] ss:$-40 sm:$0x3] %vm7_vm0, %v159_v1  }
  0xae   :  { %284 = vst.msk [vmem:[%s550_s1 + $0x42] ss:$-40 sm:$0x3] %vm7_vm0, %v167_v2  }
  0xb0   :  { %v175_v3 = vpop.permute.xlu0 %174  }
  0xb1   :  { %v183_v4 = vpop.permute.xlu1 %182   ;;  %285 = vst.msk [vmem:[%s550_s1 + $0x43] ss:$-40 sm:$0x3] %vm7_vm0, %v175_v3  }
  0xb2   :  { %286 = vst.msk [vmem:[%s550_s1 + $0x44] ss:$-40 sm:$0x3] %vm7_vm0, %v183_v4  }
  0xb4   :  { %v191_v5 = vpop.permute.xlu0 %190  }
  0xb5   :  { %v199_v6 = vpop.permute.xlu1 %198   ;;  %287 = vst.msk [vmem:[%s550_s1 + $0x45] ss:$-40 sm:$0x3] %vm7_vm0, %v191_v5  }
  0xb6   :  { %288 = vst.msk [vmem:[%s550_s1 + $0x46] ss:$-40 sm:$0x3] %vm7_vm0, %v199_v6  }
  0xb8   :  { %v207_v7 = vpop.permute.xlu0 %206  }
  0xb9   :  { %v213_v8 = vpop.permute.xlu1 %212   ;;  %289 = vst.msk [vmem:[%s550_s1 + $0x47] ss:$-40 sm:$0x3] %vm7_vm0, %v207_v7  }
  0xba   :  { %290 = vst.msk [vmem:[%s550_s1 + $0x20] ss:$40 sm:$0x3] %vm7_vm0, %v213_v8  }
  0xbc   :  { %v219_v9 = vpop.permute.xlu0 %218  }
  0xbd   :  { %v225_v10 = vpop.permute.xlu1 %224   ;;  %291 = vst.msk [vmem:[%s550_s1 + $0x21] ss:$40 sm:$0x3] %vm7_vm0, %v219_v9  }
  0xbe   :  { %292 = vst.msk [vmem:[%s550_s1 + $0x22] ss:$40 sm:$0x3] %vm7_vm0, %v225_v10  }
  0xc0   :  { %v231_v11 = vpop.permute.xlu0 %230  }
  0xc1   :  { %v237_v12 = vpop.permute.xlu1 %236   ;;  %293 = vst.msk [vmem:[%s550_s1 + $0x23] ss:$40 sm:$0x3] %vm7_vm0, %v231_v11  }
  0xc2   :  { %294 = vst.msk [vmem:[%s550_s1 + $0x24] ss:$40 sm:$0x3] %vm7_vm0, %v237_v12  }
  0xc4   :  { %v243_v13 = vpop.permute.xlu0 %242  }
  0xc5   :  { %v249_v14 = vpop.permute.xlu1 %248   ;;  %295 = vst.msk [vmem:[%s550_s1 + $0x25] ss:$40 sm:$0x3] %vm7_vm0, %v243_v13  }
  0xc6   :  { %296 = vst.msk [vmem:[%s550_s1 + $0x26] ss:$40 sm:$0x3] %vm7_vm0, %v249_v14  }
  0xc8   :  { %v255_v15 = vpop.permute.xlu0 %254  }
  0xc9   :  { %297 = vst.msk [vmem:[%s550_s1 + $0x27] ss:$40 sm:$0x3] %vm7_vm0, %v255_v15  }

// kernel: _lambda_.15
= control target key start
LH: loop header
LB: loop body
LE: loop exit
PB: predicated region body
PF: predicated region fallthrough
CT: control target
= control target key end

     0   :  { %v1333_v1 = vmov 0   ;;  %vm463_vm0 = vcmask 261120   ;;  %s1875_s1 = inlined_call_operand.vmem [shape: bf16[1,672,32], index: 1, kind: input, shape index: {}]   ;;  %s1876_s0 = inlined_call_operand.vmem [shape: bf16[1,2,40,672], index: 0, kind: input, shape index: {}]   ;;  %s1877_s4 = inlined_call_operand.vmem [shape: f32[1,1,40,1], index: 4, kind: input, shape index: {}]   ;;  %s1878_s2 = inlined_call_operand.vmem [shape: f32[1,1,1,32], index: 2, kind: input, shape index: {}]   ;;  %s1879_s3 = inlined_call_operand.vmem [shape: f32[1,2,1,32], index: 3, kind: input, shape index: {}]   ;;  %s1880_s5 = inlined_call_operand.vmem [shape: f32[1,2,40,32], index: 5, kind: output, shape index: {}]  }
   0x1   :  { %v1367_v0 = vld [vmem:[%s1875_s1 + $0x40] sm:$0xff]   ;;  %1241 = vset.pattern.permute.xlu0 %v1333_v1  ;;  %1242 = vset.pattern.permute.xlu1 %v1333_v1  ;;  %v1392_v5 = vld [vmem:[%s1875_s1 + $0x48] sm:$0xff]   ;;  %v1416_v9 = vld [vmem:[%s1875_s1 + $0x50] sm:$0xff]  }
   0x2   :  { %v1374_v2 = vld [vmem:[%s1875_s1 + $0xc0] sm:$0xff]   ;;  %1104 = vmatprep.subr.bf16.mxu0 %v1367_v0  ;;  %v1398_v6 = vld [vmem:[%s1875_s1 + $0xc8] sm:$0xff]   ;;  %v1422_v10 = vld [vmem:[%s1875_s1 + $0xd0] sm:$0xff]  }
   0x3   :  { %v1380_v3 = vld [vmem:[%s1875_s1] sm:$0xff]   ;;  %1138 = vmatprep.subr.bf16.mxu1 %v1374_v2  ;;  %v1404_v7 = vld [vmem:[%s1875_s1 + $0x8] sm:$0xff]   ;;  %v1428_v11 = vld [vmem:[%s1875_s1 + $0x10] sm:$0xff]  }
   0x4   :  { %v1386_v4 = vld [vmem:[%s1875_s1 + $0x80] sm:$0xff]   ;;  %1105 = vmatpush3.bf16.msra.mxu0 %v1380_v3  ;;  %v1410_v8 = vld [vmem:[%s1875_s1 + $0x88] sm:$0xff]   ;;  %v1434_v12 = vld [vmem:[%s1875_s1 + $0x90] sm:$0xff]  }
   0x5   :  { %1139 = vmatpush3.bf16.msra.mxu1 %v1386_v4  ;;  %1106 = vmatprep.subr.bf16.mxu0 %v1392_v5  ;;  %v1440_v13 = vld [vmem:[%s1875_s1 + $0x58] sm:$0xff]   ;;  %v1464_v17 = vld [vmem:[%s1875_s1 + $0x60] sm:$0xff]   ;;  %v1488_v21 = vld [vmem:[%s1875_s1 + $0x68] sm:$0xff]  }
   0x6   :  { %1140 = vmatprep.subr.bf16.mxu1 %v1398_v6  ;;  %v1446_v14 = vld [vmem:[%s1875_s1 + $0xd8] sm:$0xff]   ;;  %v1470_v18 = vld [vmem:[%s1875_s1 + $0xe0] sm:$0xff]   ;;  %v1494_v22 = vld [vmem:[%s1875_s1 + $0xe8] sm:$0xff]  }
   0x7   :  { %v1452_v15 = vld [vmem:[%s1875_s1 + $0x18] sm:$0xff]   ;;  %v1476_v19 = vld [vmem:[%s1875_s1 + $0x20] sm:$0xff]   ;;  %v1500_v23 = vld [vmem:[%s1875_s1 + $0x28] sm:$0xff]  }
   0x8   :  { %1107 = vmatpush3.bf16.msra.mxu0 %v1404_v7  ;;  %v1458_v16 = vld [vmem:[%s1875_s1 + $0x98] sm:$0xff]   ;;  %v1482_v20 = vld [vmem:[%s1875_s1 + $0xa0] sm:$0xff]   ;;  %v1506_v24 = vld [vmem:[%s1875_s1 + $0xa8] sm:$0xff]  }
   0x9   :  { %1141 = vmatpush3.bf16.msra.mxu1 %v1410_v8  ;;  %1108 = vmatprep.subr.bf16.mxu0 %v1416_v9  ;;  %v1512_v25 = vld [vmem:[%s1875_s1 + $0x70] sm:$0xff]   ;;  %v1536_v29 = vld [vmem:[%s1875_s1 + $0x78] sm:$0xff]   ;;  %v1278_v35 = vld [vmem:[%s1876_s0 + $0x8] ss:$24 sps:$4 sm:$0xff]  }
   0xa   :  { %1142 = vmatprep.subr.bf16.mxu1 %v1422_v10  ;;  %v1518_v26 = vld [vmem:[%s1875_s1 + $0xf0] sm:$0xff]   ;;  %v1542_v30 = vld [vmem:[%s1875_s1 + $0xf8] sm:$0xff]   ;;  %v1280_v36 = vld [vmem:[%s1876_s0 + $0xc] ss:$24 sps:$4 sm:$0xff]  }
   0xb   :  { %v1524_v27 = vld [vmem:[%s1875_s1 + $0x30] sm:$0xff]   ;;  %v1548_v31 = vld [vmem:[%s1875_s1 + $0x38] sm:$0xff]   ;;  %v1575_v37 = vld [vmem:[%s1875_s1 + $0x100] sm:$0xff]   ;;  %561 = vmatprep.mubr.bf16.mxu1 %v1280_v36 }
   0xc   :  { %1109 = vmatpush3.bf16.msra.mxu0 %v1428_v11  ;;  %v1530_v28 = vld [vmem:[%s1875_s1 + $0xb0] sm:$0xff]   ;;  %v1554_v32 = vld [vmem:[%s1875_s1 + $0xb8] sm:$0xff]   ;;  %v1581_v38 = vld [vmem:[%s1875_s1 + $0x108] sm:$0xff]  }
   0xd   :  { %1143 = vmatpush3.bf16.msra.mxu1 %v1434_v12  ;;  %1110 = vmatprep.subr.bf16.mxu0 %v1440_v13  ;;  %v1275_v33 = vld [vmem:[%s1876_s0] ss:$24 sps:$4 sm:$0xff]   ;;  %v1277_v34 = vld [vmem:[%s1876_s0 + $0x4] ss:$24 sps:$4 sm:$0xff]   ;;  %v1589_v39 = vld [vmem:[%s1875_s1 + $0x110] sm:$0xff]  }
   0xe   :  { %1144 = vmatprep.subr.bf16.mxu1 %v1446_v14  ;;  %505 = vmatprep.mubr.bf16.mxu0 %v1277_v34  ;;  %v1285_v40 = vld [vmem:[%s1876_s0 + $0x3c] ss:$24 sps:$4 sm:$0xff]   ;;  %v1287_v41 = vld [vmem:[%s1876_s0 + $0x38] ss:$24 sps:$4 sm:$0xff]   ;;  %v124_v44 = vld [vmem:[%s1876_s0 + $0x68] sm:$0xff] }
   0xf   :  { %v1289_v42 = vld [vmem:[%s1876_s0 + $0x34] ss:$24 sps:$4 sm:$0xff]   ;;  %v1292_v43 = vld [vmem:[%s1876_s0 + $0x30] ss:$24 sps:$4 sm:$0xff]   ;;  %v1012_v45 = vcombine.high %v124_v44, %v124_v44  ;;  %v123_v46 = vld [vmem:[%s1876_s0 + $0x60] sm:$0xff]  ;;  %v1011_v50 = vcombine.low %v124_v44, %v124_v44 }
  0x10   :  { %1111 = vmatpush3.bf16.msra.mxu0 %v1452_v15  ;;  %v1617_v47 = vld [vmem:[%s1875_s1 + $0x118] sm:$0xff]   ;;  %v1010_v48 = vcombine.high %v123_v46, %v123_v46  ;;  %v1626_v49 = vld [vmem:[%s1875_s1 + $0x120] sm:$0xff]   ;;  %v1009_v51 = vcombine.low %v123_v46, %v123_v46  ;;  %v1306_v53 = vld [vmem:[%s1876_s0 + $0x14] ss:$24 sps:$4 sm:$0xff]  }
  0x11   :  { %1145 = vmatpush3.bf16.msra.mxu1 %v1458_v16  ;;  %1112 = vmatprep.subr.bf16.mxu0 %v1464_v17  ;;  %v1301_v52 = vld [vmem:[%s1876_s0 + $0x7c] ss:$24 sps:$4 sm:$0xff]   ;;  %v1641_v54 = vld [vmem:[%s1875_s1 + $0x128] sm:$0xff]   ;;  %v106_v56 = vld [vmem:[%s1877_s4] sm:$0xff] }
  0x12   :  { %1146 = vmatprep.subr.bf16.mxu1 %v1470_v18  ;;  %v1651_v55 = vld [vmem:[%s1875_s1 + $0x130] sm:$0xff]   ;;  %v1666_v58 = vld [vmem:[%s1875_s1 + $0x138] sm:$0xff]   ;;  %659 = vperm.xlu0 %1241, %v106_v56   ;;  %v107_v59 = vld [vmem:[%s1877_s4 + $0x8] sm:$0xff] }
  0x13   :  { %v108_v57 = vld [vmem:[%s1877_s4 + $0x10] sm:$0xff]  ;;  %v109_v60 = vld [vmem:[%s1877_s4 + $0x18] sm:$0xff]  ;;  %v1684_v62 = vld [vmem:[%s1875_s1 + $0x140] sm:$0xff]  }
  0x14   :  { %1113 = vmatpush3.bf16.msra.mxu0 %v1476_v19  ;;  %669 = vperm.xlu1 %1242, %v108_v57   ;;  %v1299_v61 = vld [vmem:[%s1876_s0 + $0x78] ss:$24 sps:$4 sm:$0xff]   ;;  %v1309_v63 = vld [vmem:[%s1876_s0 + $0xac] ss:$24 sps:$4 sm:$0xff]  }
  0x15   :  { %1147 = vmatpush3.bf16.msra.mxu1 %v1482_v20  ;;  %1114 = vmatprep.subr.bf16.mxu0 %v1488_v21 }
  0x16   :  { %1148 = vmatprep.subr.bf16.mxu1 %v1494_v22  ;;  %664 = vperm.xlu0 %1241, %v107_v59  }
  0x18   :  { %1115 = vmatpush3.bf16.msra.mxu0 %v1500_v23  ;;  %674 = vperm.xlu1 %1242, %v109_v60  }
  0x19   :  { %1149 = vmatpush3.bf16.msra.mxu1 %v1506_v24  ;;  %1116 = vmatprep.subr.bf16.mxu0 %v1512_v25 }
  0x1a   :  { %1150 = vmatprep.subr.bf16.mxu1 %v1518_v26 }
  0x1c   :  { %1117 = vmatpush3.bf16.msra.mxu0 %v1524_v27 }
  0x1d   :  { %1151 = vmatpush3.bf16.msra.mxu1 %v1530_v28  ;;  %1118 = vmatprep.subr.bf16.mxu0 %v1536_v29 }
  0x1e   :  { %1152 = vmatprep.subr.bf16.mxu1 %v1542_v30 }
  0x20   :  { %1119 = vmatpush3.bf16.msra.mxu0 %v1548_v31 }
  0x21   :  { %1153 = vmatpush3.bf16.msra.mxu1 %v1554_v32  ;;  %585 = vmatprep.subr.bf16.mxu0 %v1333_v1 }
  0x22   :  { %1172 = vmatprep.subr.bf16.mxu1 %v1367_v0  ;;  %v1696_v0 = vld [vmem:[%s1875_s1 + $0x148] sm:$0xff]  }
  0x23   :  { %506 = vmatmul.mubr.bf16.vlgmr.msra.gmra.mrb[0].mxu0 %v1275_v33 }
  0x24   :  { %562 = vmatmul.mubr.bf16.vlgmr.msra.gmra.mrb[0].mxu1 %v1278_v35  ;;  %586 = vmatpush1.bf16.msra.mxu0 %v1575_v37 }
  0x25   :  { %1173 = vmatpush3.bf16.msra.mxu1 %v1380_v3  ;;  %587 = vmatprep.subr.bf16.mxu0 %v1333_v1  ;;  %v110_v3 = vld [vmem:[%s1877_s4 + $0x20] sm:$0xff] }
  0x26   :  { %1174 = vmatprep.subr.bf16.mxu1 %v1392_v5  ;;  %569 = vmatprep.mubr.bf16.mxu1 %v1285_v40  ;;  %v1307_v5 = vld [vmem:[%s1876_s0 + $0x44] ss:$24 sps:$4 sm:$0xff]  }
  0x27   :  { %513 = vmatprep.mubr.bf16.mxu0 %v1289_v42  ;;  %679 = vperm.xlu0 %1241, %v110_v3  }
  0x28   :  { %588 = vmatpush1.bf16.msra.mxu0 %v1581_v38 }
  0x29   :  { %1175 = vmatpush3.bf16.msra.mxu1 %v1404_v7  ;;  %589 = vmatprep.subr.bf16.mxu0 %v1333_v1 }
  0x2a   :  { %1176 = vmatprep.subr.bf16.mxu1 %v1416_v9  ;;  %v1311_v9 = vld [vmem:[%s1876_s0 + $0x40] ss:$24 sps:$4 sm:$0xff]  }
  0x2b   :  { %514 = vmatmul.mubr.bf16.gmra.mrb[4].mxu0 %v1292_v43 }
  0x2c   :  { %590 = vmatpush1.bf16.msra.mxu0 %v1589_v39  ;;  %570 = vmatmul.mubr.bf16.gmra.mrb[4].mxu1 %v1287_v41 }
  0x2d   :  { %1177 = vmatpush3.bf16.msra.mxu1 %v1428_v11  ;;  %591 = vmatprep.subr.bf16.mxu0 %v1333_v1 }
  0x2e   :  { %1178 = vmatprep.subr.bf16.mxu1 %v1440_v13  ;;  %577 = vmatprep.mubr.bf16.mxu1 %v1012_v45 }
  0x2f   :  { %521 = vmatprep.mubr.bf16.mxu0 %v1010_v48 }
  0x30   :  { %592 = vmatpush1.bf16.msra.mxu0 %v1617_v47 }
  0x31   :  { %1179 = vmatpush3.bf16.msra.mxu1 %v1452_v15  ;;  %593 = vmatprep.subr.bf16.mxu0 %v1333_v1  ;;  %v1317_v15 = vld [vmem:[%s1876_s0 + $0x80] ss:$24 sps:$4 sm:$0xff]  }
  0x32   :  { %1180 = vmatprep.subr.bf16.mxu1 %v1464_v17  ;;  %v1074_v17 = vld [vmem:[%s1876_s0 + $0xe0] sm:$0xff] }
  0x33   :  { %522 = vmatmul.mubr.bf16.gmra.mrb[8].mxu0 %v1009_v51 }
  0x34   :  { %594 = vmatpush1.bf16.msra.mxu0 %v1626_v49  ;;  %578 = vmatmul.mubr.bf16.gmra.mrb[8].mxu1 %v1011_v50 }
  0x35   :  { %1181 = vmatpush3.bf16.msra.mxu1 %v1476_v19  ;;  %595 = vmatprep.subr.bf16.mxu0 %v1333_v1  ;;  %v1092_v19 = vcombine.high %v1074_v17, %v1074_v17 }
  0x36   :  { %1182 = vmatprep.subr.bf16.mxu1 %v1488_v21  ;;  %829 = vmatprep.mubr.bf16.mxu1 %v1301_v52  ;;  %v1091_v21 = vcombine.low %v1074_v17, %v1074_v17 }
  0x37   :  { %1057 = vmatprep.mubr.msk.bf16.mxu0 %vm463_vm0, %v1306_v53 }
  0x38   :  { %596 = vmatpush1.bf16.msra.mxu0 %v1641_v54 }
  0x39   :  { %1183 = vmatpush3.bf16.msra.mxu1 %v1500_v23  ;;  %597 = vmatprep.subr.bf16.mxu0 %v1333_v1  ;;  %v1330_v23 = vld [vmem:[%s1876_s0 + $0xb8] ss:$24 sps:$4 sm:$0xff]  }
  0x3a   :  { %1184 = vmatprep.subr.bf16.mxu1 %v1512_v25 }
  0x3c   :  { %598 = vmatpush1.bf16.msra.mxu0 %v1651_v55 }
  0x3d   :  { %1185 = vmatpush3.bf16.msra.mxu1 %v1524_v27  ;;  %599 = vmatprep.subr.bf16.mxu0 %v1333_v1  ;;  %v1794_v27 = vld [vmem:[%s1878_s2] ss:$0 sm:$0xff] }
  0x3e   :  { %1186 = vmatprep.subr.bf16.mxu1 %v1536_v29 }
  0x40   :  { %600 = vmatpush1.bf16.msra.mxu0 %v1666_v58 }
  0x41   :  { %1187 = vmatpush3.bf16.msra.mxu1 %v1548_v31  ;;  %601 = vmatprep.subr.bf16.mxu0 %v1333_v1 }
  0x42   :  { %1206 = vmatprep.subr.bf16.mxu1 %v1374_v2  ;;  %v1304_v2 = vld [vmem:[%s1876_s0 + $0x10] ss:$24 sps:$4 sm:$0xff]  }
  0x44   :  { %602 = vmatpush1.bf16.msra.mxu0 %v1684_v62  ;;  %830 = vmatmul.mubr.bf16.vlgmr.msra.gmra.mrb[12].mxu1 %v1299_v61 }
  0x45   :  { %1207 = vmatpush3.bf16.msra.mxu1 %v1386_v4  ;;  %603 = vmatprep.subr.bf16.mxu0 %v1333_v1  ;;  %v1073_v4 = vld [vmem:[%s1876_s0 + $0xd8] sm:$0xff] }
  0x46   :  { %1208 = vmatprep.subr.bf16.mxu1 %v1398_v6  ;;  %837 = vmatprep.mubr.bf16.mxu1 %v1309_v63  ;;  %v1312_v6 = vld [vmem:[%s1876_s0 + $0xa8] ss:$24 sps:$4 sm:$0xff]   ;;  %v1090_v7 = vcombine.high %v1073_v4, %v1073_v4  ;;  %v1089_v11 = vcombine.low %v1073_v4, %v1073_v4 }
  0x48   :  { %604 = vmatpush1.bf16.msra.mxu0 %v1696_v0 }
  0x49   :  { %1209 = vmatpush3.bf16.msra.mxu1 %v1410_v8  ;;  %909 = vmatprep.subr.bf16.mxu0 %v1333_v1  ;;  %v125_v8 = vld [vmem:[%s1876_s0 + $0x70] sm:$0xff] }
  0x4a   :  { %1210 = vmatprep.subr.bf16.mxu1 %v1422_v10  ;;  %v1014_v10 = vcombine.high %v125_v8, %v125_v8  ;;  %v1013_v13 = vcombine.low %v125_v8, %v125_v8 }
  0x4b   :  { %618 = vmatmul.mubr.bf16.vlgmr.msra.gmra.mrb[12].mxu0 %v1304_v2 }
  0x4c   :  { %910 = vmatpush1.bf16.msra.mxu0 %v1575_v37  ;;  %1058 = vmatprep.mubr.msk.bf16.mxu0 %vm463_vm0, %v1307_v5 }
  0x4d   :  { %1211 = vmatpush3.bf16.msra.mxu1 %v1434_v12  ;;  %911 = vmatprep.subr.bf16.mxu0 %v1333_v1  ;;  %v1319_v12 = vld [vmem:[%s1876_s0 + $0x84] ss:$24 sps:$4 sm:$0xff]  }
  0x4e   :  { %1212 = vmatprep.subr.bf16.mxu1 %v1446_v14  ;;  %838 = vmatmul.mubr.bf16.gmra.mrb[16].mxu1 %v1312_v6  ;;  %v1326_v14 = vld [vmem:[%s1876_s0 + $0x8c] ss:$24 sps:$4 sm:$0xff]  }
  0x4f   :  { %845 = vmatprep.mubr.bf16.mxu1 %v1090_v7 }
  0x50   :  { %912 = vmatpush1.bf16.msra.mxu0 %v1581_v38 }
  0x51   :  { %1213 = vmatpush3.bf16.msra.mxu1 %v1458_v16  ;;  %913 = vmatprep.subr.bf16.mxu0 %v1333_v1  ;;  %v1320_v16 = vld [vmem:[%s1876_s0 + $0xb4] ss:$24 sps:$4 sm:$0xff]  }
  0x52   :  { %1214 = vmatprep.subr.bf16.mxu1 %v1470_v18  ;;  %v1322_v18 = vld [vmem:[%s1876_s0 + $0xb0] ss:$24 sps:$4 sm:$0xff]  }
  0x53   :  { %626 = vmatmul.mubr.bf16.gmra.mrb[16].mxu0 %v1311_v9 }
  0x54   :  { %914 = vmatpush1.bf16.msra.mxu0 %v1589_v39  ;;  %1059 = vmatprep.mubr.msk.bf16.mxu0 %vm463_vm0, %v1014_v10 }
  0x55   :  { %1215 = vmatpush3.bf16.msra.mxu1 %v1482_v20  ;;  %915 = vmatprep.subr.bf16.mxu0 %v1333_v1  ;;  %v1324_v20 = vld [vmem:[%s1876_s0 + $0x88] ss:$24 sps:$4 sm:$0xff]  }
  0x56   :  { %1216 = vmatprep.subr.bf16.mxu1 %v1494_v22  ;;  %846 = vmatmul.mubr.bf16.gmra.mrb[20].mxu1 %v1089_v11  ;;  %v1328_v22 = vld [vmem:[%s1876_s0 + $0xbc] ss:$24 sps:$4 sm:$0xff]  }
  0x57   :  { %885 = vmatprep.mubr.bf16.mxu1 %v1319_v12 }
  0x58   :  { %916 = vmatpush1.bf16.msra.mxu0 %v1617_v47 }
  0x59   :  { %1217 = vmatpush3.bf16.msra.mxu1 %v1506_v24  ;;  %917 = vmatprep.subr.bf16.mxu0 %v1333_v1 }
  0x5a   :  { %1218 = vmatprep.subr.bf16.mxu1 %v1518_v26 }
  0x5b   :  { %634 = vmatmul.mubr.bf16.gmra.mrb[20].mxu0 %v1013_v13 }
  0x5c   :  { %918 = vmatpush1.bf16.msra.mxu0 %v1626_v49  ;;  %1095 = vmatprep.mubr.msk.bf16.mxu0 %vm463_vm0, %v1326_v14 }
  0x5d   :  { %1219 = vmatpush3.bf16.msra.mxu1 %v1530_v28  ;;  %919 = vmatprep.subr.bf16.mxu0 %v1333_v1 }
  0x5e   :  { %1220 = vmatprep.subr.bf16.mxu1 %v1542_v30 }
  0x60   :  { %920 = vmatpush1.bf16.msra.mxu0 %v1641_v54 }
  0x61   :  { %1221 = vmatpush3.bf16.msra.mxu1 %v1554_v32  ;;  %921 = vmatprep.subr.bf16.mxu0 %v1333_v1 }
  0x64   :  { %886 = vmatmul.mubr.bf16.vlgmr.msra.gmra.mrb[24].mxu1 %v1317_v15  ;;  %922 = vmatpush1.bf16.msra.mxu0 %v1651_v55 }
  0x65   :  { %923 = vmatprep.subr.bf16.mxu0 %v1333_v1  ;;  %893 = vmatprep.mubr.bf16.mxu1 %v1320_v16 }
  0x68   :  { %924 = vmatpush1.bf16.msra.mxu0 %v1666_v58 }
  0x69   :  { %925 = vmatprep.subr.bf16.mxu0 %v1333_v1 }
  0x6c   :  { %894 = vmatmul.mubr.bf16.gmra.mrb[28].mxu1 %v1322_v18  ;;  %926 = vmatpush1.bf16.msra.mxu0 %v1684_v62  ;;  %v1060_v18 = vld [vmem:[%s1879_s3] ss:$0 sm:$0xff] }
  0x6d   :  { %927 = vmatprep.subr.bf16.mxu0 %v1333_v1  ;;  %901 = vmatprep.mubr.bf16.mxu1 %v1092_v19  ;;  %v1075_v1 = vld [vmem:[%s1876_s0 + $0xe8] sm:$0xff] }
  0x6e   :  { %v1094_v24 = vcombine.high %v1075_v1, %v1075_v1  ;;  %v1093_v25 = vcombine.low %v1075_v1, %v1075_v1 }
  0x70   :  { %928 = vmatpush1.bf16.msra.mxu0 %v1696_v0 }
  0x73   :  { %942 = vmatmul.mubr.bf16.vlgmr.msra.gmra.mrb[24].mxu0 %v1324_v20 }
  0x74   :  { %902 = vmatmul.mubr.bf16.gmra.mrb[32].mxu1 %v1091_v21  ;;  %1096 = vmatprep.mubr.msk.bf16.mxu0 %vm463_vm0, %v1328_v22 }
  0x7b   :  { %950 = vmatmul.mubr.bf16.gmra.mrb[28].mxu0 %v1330_v23 }
  0x7c   :  { %1097 = vmatprep.mubr.msk.bf16.mxu0 %vm463_vm0, %v1094_v24 }
  0x83   :  { %958 = vmatmul.mubr.bf16.gmra.mrb[32].mxu0 %v1093_v25 }
  0x91   :  { %v1803_v15 = vpop.permute.xlu0 %659 }
  0xf6   :  { %v1120_v26 = vpop.f32.mrb[0].mxu0 }
  0xf7   :  { %v1121_v28 = vpop.f32.mrb[1].mxu0  ;;  %v1154_v29 = vpop.f32.mrb[0].mxu1 }
  0xf8   :  { %v1122_v30 = vadd.f32 %v1121_v28, %v1120_v26  ;;  %v1123_v31 = vpop.f32.mrb[2].mxu0  ;;  %v1155_v32 = vpop.f32.mrb[1].mxu1 }
  0xf9   :  { %v1124_v33 = vpop.f32.mrb[3].mxu0  ;;  %v1156_v34 = vadd.f32 %v1155_v32, %v1154_v29  ;;  %v1157_v35 = vpop.f32.mrb[2].mxu1 }
  0xfa   :  { %v508_v36 = vadd.f32 %v1122_v30, %v1794_v27  ;;  %v1125_v37 = vadd.f32 %v1124_v33, %v1123_v31  ;;  %v1158_v38 = vpop.f32.mrb[3].mxu1  ;;  %v1808_v29 = vpop.permute.xlu0 %664 }
  0xfb   :  { %v1159_v39 = vadd.f32 %v1158_v38, %v1157_v35  ;;  %v1811_v35 = vpop.permute.xlu1 %669 }
  0xfc   :  { %v511_v40 = vadd.f32 %v1125_v37, %v1794_v27  ;;  %v564_v41 = vadd.f32 %v1156_v34, %v508_v36 }
  0xfe   :  { %v567_v42 = vadd.f32 %v1159_v39, %v511_v40  ;;  %v1126_v45 = vpop.f32.mrb[4].mxu0 }
  0xff   :  { %v1160_v43 = vpop.f32.mrb[4].mxu1  ;;  %v1127_v48 = vpop.f32.mrb[5].mxu0 }
 0x100   :  { %v1161_v44 = vpop.f32.mrb[5].mxu1  ;;  %v1128_v50 = vadd.f32 %v1127_v48, %v1126_v45  ;;  %v1129_v51 = vpop.f32.mrb[6].mxu0 }
 0x101   :  { %v1162_v46 = vadd.f32 %v1161_v44, %v1160_v43  ;;  %v1163_v47 = vpop.f32.mrb[6].mxu1  ;;  %v1130_v53 = vpop.f32.mrb[7].mxu0 }
 0x102   :  { %v1164_v49 = vpop.f32.mrb[7].mxu1  ;;  %v516_v54 = vadd.f32 %v1128_v50, %v1794_v27  ;;  %v1131_v55 = vadd.f32 %v1130_v53, %v1129_v51 }
 0x103   :  { %v1165_v52 = vadd.f32 %v1164_v49, %v1163_v47  ;;  %v1822_v49 = vpop.permute.xlu1 %674 }
 0x104   :  { %v519_v56 = vadd.f32 %v1131_v55, %v1794_v27  ;;  %v572_v58 = vadd.f32 %v1162_v46, %v516_v54 }
 0x106   :  { %v1132_v60 = vpop.f32.mrb[8].mxu0  ;;  %v575_v63 = vadd.f32 %v1165_v52, %v519_v56 }
 0x107   :  { %v1166_v57 = vpop.f32.mrb[8].mxu1  ;;  %v1133_v0 = vpop.f32.mrb[9].mxu0 }
 0x108   :  { %v1167_v59 = vpop.f32.mrb[9].mxu1  ;;  %v1134_v2 = vadd.f32 %v1133_v0, %v1132_v60  ;;  %v1135_v5 = vpop.f32.mrb[10].mxu0 }
 0x109   :  { %v1168_v61 = vadd.f32 %v1167_v59, %v1166_v57  ;;  %v1169_v62 = vpop.f32.mrb[10].mxu1  ;;  %v1136_v4 = vpop.f32.mrb[11].mxu0 }
 0x10a   :  { %v1170_v3 = vpop.f32.mrb[11].mxu1  ;;  %v524_v6 = vadd.f32 %v1134_v2, %v1794_v27  ;;  %v1834_v60 = vpop.permute.xlu0 %679 }
 0x10c   :  { %v580_v7 = vadd.f32 %v1168_v61, %v524_v6 }
 0x117   :  { %v1188_v8 = vpop.f32.mrb[12].mxu1 }
 0x118   :  { %v1189_v9 = vpop.f32.mrb[13].mxu1 }
 0x119   :  { %v1190_v10 = vadd.f32 %v1189_v9, %v1188_v8  ;;  %v1191_v11 = vpop.f32.mrb[14].mxu1 }
 0x11a   :  { %v1192_v12 = vpop.f32.mrb[15].mxu1 }
 0x11b   :  { %v1801_v13 = vadd.f32 %v1192_v12, %v1191_v11  ;;  %v832_v3 = vadd.f32 %v1190_v10, %v1794_v27 }
 0x11d   :  { %v835_v6 = vadd.f32 %v1801_v13, %v1794_v27  ;;  %v1098_v13 = vld [vmem:[%s1879_s3 + $0x1] ss:$0 sm:$0xff] }
 0x11e   :  { %v619_v14 = vpop.f32.mrb[12].mxu0 }
 0x11f   :  { %v620_v16 = vadd.f32 %v619_v14, %v564_v41  ;;  %v621_v17 = vpop.f32.mrb[13].mxu0 }
 0x120   :  { %v622_v19 = vpop.f32.mrb[14].mxu0 }
 0x121   :  { %v641_v20 = vmax.f32 %v620_v16, 0.0  ;;  %v623_v21 = vadd.f32 %v622_v19, %v567_v42  ;;  %v624_v22 = vpop.f32.mrb[15].mxu0  ;;  %v1194_v1 = vpop.f32.mrb[16].mxu1 }
 0x122   :  { %v1195_v23 = vpop.f32.mrb[17].mxu1 }
 0x123   :  { %v652_v24 = vmul.f32 %v1060_v18, %v641_v20  ;;  %v642_v25 = vmax.f32 %v623_v21, 0.0  ;;  %v1196_v26 = vadd.f32 %v1195_v23, %v1194_v1  ;;  %v1197_v28 = vpop.f32.mrb[18].mxu1 }
 0x124   :  { %v1198_v30 = vpop.f32.mrb[19].mxu1 }
 0x125   :  { %v653_v31 = vmul.f32 %v1060_v18, %v642_v25  ;;  %v682_v32 = vmul.f32 %v1803_v15, %v652_v24  ;;  %v1199_v33 = vadd.f32 %v1198_v30, %v1197_v28  ;;  %v840_v14 = vadd.f32 %v1196_v26, %v1794_v27 }
 0x126   :  { %v627_v34 = vpop.f32.mrb[16].mxu0 }
 0x127   :  { %687 = vst.msk [vmem:[%s1880_s5] sm:$0xff] %vm463_vm0, %v682_v32  ;;  %v683_v36 = vmul.f32 %v1808_v29, %v653_v31  ;;  %v628_v37 = vadd.f32 %v627_v34, %v572_v58  ;;  %v629_v38 = vpop.f32.mrb[17].mxu0  ;;  %v843_v19 = vadd.f32 %v1199_v33, %v1794_v27 }
 0x128   :  { %v630_v39 = vpop.f32.mrb[18].mxu0 }
 0x129   :  { %688 = vst.msk [vmem:[%s1880_s5 + $0x8] sm:$0xff] %vm463_vm0, %v683_v36  ;;  %v643_v40 = vmax.f32 %v628_v37, 0.0  ;;  %v631_v41 = vadd.f32 %v630_v39, %v575_v63  ;;  %v632_v42 = vpop.f32.mrb[19].mxu0  ;;  %v1200_v43 = vpop.f32.mrb[20].mxu1 }
 0x12a   :  { %v1201_v44 = vpop.f32.mrb[21].mxu1 }
 0x12b   :  { %v654_v45 = vmul.f32 %v1060_v18, %v643_v40  ;;  %v644_v46 = vmax.f32 %v631_v41, 0.0  ;;  %v1202_v47 = vadd.f32 %v1201_v44, %v1200_v43  ;;  %v1203_v48 = vpop.f32.mrb[22].mxu1 }
 0x12c   :  { %v1204_v50 = vpop.f32.mrb[23].mxu1 }
 0x12d   :  { %v684_v51 = vmul.f32 %v1811_v35, %v654_v45  ;;  %v655_v52 = vmul.f32 %v1060_v18, %v644_v46  ;;  %v848_v26 = vadd.f32 %v1202_v47, %v1794_v27 }
 0x12e   :  { %v635_v53 = vpop.f32.mrb[20].mxu0 }
 0x12f   :  { %689 = vst.msk [vmem:[%s1880_s5 + $0x10] sm:$0xff] %vm463_vm0, %v684_v51  ;;  %v685_v54 = vmul.f32 %v1822_v49, %v655_v52  ;;  %v636_v55 = vadd.f32 %v635_v53, %v580_v7  ;;  %v637_v56 = vpop.f32.mrb[21].mxu0 }
 0x130   :  { %v638_v57 = vpop.f32.mrb[22].mxu0 }
 0x131   :  { %690 = vst.msk [vmem:[%s1880_s5 + $0x18] sm:$0xff] %vm463_vm0, %v685_v54  ;;  %v645_v58 = vmax.f32 %v636_v55, 0.0  ;;  %v639_v59 = vpop.f32.mrb[23].mxu0 }
 0x133   :  { %v656_v61 = vmul.f32 %v1060_v18, %v645_v58 }
 0x135   :  { %v686_v62 = vmul.f32 %v1834_v60, %v656_v61 }
 0x137   :  { %691 = vst.msk [vmem:[%s1880_s5 + $0x20] sm:$0xff] %vm463_vm0, %v686_v62  ;;  %v1222_v63 = vpop.f32.mrb[24].mxu1 }
 0x138   :  { %v1223_v0 = vpop.f32.mrb[25].mxu1 }
 0x139   :  { %v1224_v2 = vadd.f32 %v1223_v0, %v1222_v63  ;;  %v1225_v5 = vpop.f32.mrb[26].mxu1 }
 0x13a   :  { %v1226_v4 = vpop.f32.mrb[27].mxu1 }
 0x13b   :  { %v1227_v7 = vadd.f32 %v1226_v4, %v1225_v5  ;;  %v888_v8 = vadd.f32 %v1224_v2, %v832_v3 }
 0x13d   :  { %v891_v9 = vadd.f32 %v1227_v7, %v835_v6 }
 0x13f   :  { %v1228_v11 = vpop.f32.mrb[28].mxu1 }
 0x140   :  { %v1229_v12 = vpop.f32.mrb[29].mxu1 }
 0x141   :  { %v1230_v16 = vadd.f32 %v1229_v12, %v1228_v11  ;;  %v1231_v17 = vpop.f32.mrb[30].mxu1 }
 0x142   :  { %v1232_v18 = vpop.f32.mrb[31].mxu1 }
 0x143   :  { %v1233_v20 = vadd.f32 %v1232_v18, %v1231_v17  ;;  %v896_v10 = vadd.f32 %v1230_v16, %v840_v14 }
 0x145   :  { %v899_v21 = vadd.f32 %v1233_v20, %v843_v19 }
 0x146   :  { %v943_v22 = vpop.f32.mrb[24].mxu0 }
 0x147   :  { %v1234_v1 = vpop.f32.mrb[32].mxu1  ;;  %v944_v23 = vadd.f32 %v943_v22, %v888_v8  ;;  %v945_v24 = vpop.f32.mrb[25].mxu0 }
 0x148   :  { %v1235_v25 = vpop.f32.mrb[33].mxu1  ;;  %v946_v28 = vpop.f32.mrb[26].mxu0 }
 0x149   :  { %v965_v30 = vmax.f32 %v944_v23, 0.0  ;;  %v1236_v31 = vadd.f32 %v1235_v25, %v1234_v1  ;;  %v947_v32 = vadd.f32 %v946_v28, %v891_v9  ;;  %v948_v34 = vpop.f32.mrb[27].mxu0  ;;  %v1237_v33 = vpop.f32.mrb[34].mxu1 }
 0x14a   :  { %v1238_v36 = vpop.f32.mrb[35].mxu1 }
 0x14b   :  { %v976_v37 = vmul.f32 %v1098_v13, %v965_v30  ;;  %v966_v38 = vmax.f32 %v947_v32, 0.0  ;;  %v904_v39 = vadd.f32 %v1236_v31, %v848_v26 }
 0x14d   :  { %v981_v40 = vmul.f32 %v976_v37, %v1803_v15  ;;  %v977_v41 = vmul.f32 %v1098_v13, %v966_v38 }
 0x14e   :  { %v951_v42 = vpop.f32.mrb[28].mxu0 }
 0x14f   :  { %1099 = vst.msk [vmem:[%s1880_s5 + $0x28] sm:$0xff] %vm463_vm0, %v981_v40  ;;  %v982_v27 = vmul.f32 %v977_v41, %v1808_v29  ;;  %v952_v43 = vadd.f32 %v951_v42, %v896_v10  ;;  %v953_v44 = vpop.f32.mrb[29].mxu0 }
 0x150   :  { %v954_v45 = vpop.f32.mrb[30].mxu0 }
 0x151   :  { %1100 = vst.msk [vmem:[%s1880_s5 + $0x30] sm:$0xff] %vm463_vm0, %v982_v27  ;;  %v967_v46 = vmax.f32 %v952_v43, 0.0  ;;  %v955_v47 = vadd.f32 %v954_v45, %v899_v21  ;;  %v956_v15 = vpop.f32.mrb[31].mxu0 }
 0x153   :  { %v978_v48 = vmul.f32 %v1098_v13, %v967_v46  ;;  %v968_v50 = vmax.f32 %v955_v47, 0.0 }
 0x155   :  { %v983_v51 = vmul.f32 %v978_v48, %v1811_v35  ;;  %v979_v52 = vmul.f32 %v1098_v13, %v968_v50 }
 0x156   :  { %v959_v53 = vpop.f32.mrb[32].mxu0 }
 0x157   :  { %1101 = vst.msk [vmem:[%s1880_s5 + $0x38] sm:$0xff] %vm463_vm0, %v983_v51  ;;  %v984_v29 = vmul.f32 %v979_v52, %v1822_v49  ;;  %v960_v54 = vadd.f32 %v959_v53, %v904_v39  ;;  %v961_v55 = vpop.f32.mrb[33].mxu0 }
 0x158   :  { %v962_v56 = vpop.f32.mrb[34].mxu0 }
 0x159   :  { %1102 = vst.msk [vmem:[%s1880_s5 + $0x40] sm:$0xff] %vm463_vm0, %v984_v29  ;;  %v969_v57 = vmax.f32 %v960_v54, 0.0  ;;  %v963_v58 = vpop.f32.mrb[35].mxu0 }
 0x15b   :  { %v980_v35 = vmul.f32 %v1098_v13, %v969_v57 }
 0x15d   :  { %v985_v59 = vmul.f32 %v980_v35, %v1834_v60 }
 0x15f   :  { %1103 = vst.msk [vmem:[%s1880_s5 + $0x48] sm:$0xff] %vm463_vm0, %v985_v59 }

// kernel: _lambda_.16
= control target key start
LH: loop header
LB: loop body
LE: loop exit
PB: predicated region body
PF: predicated region fallthrough
CT: control target
= control target key end

     0   :  { %v406_v0 = vmov 0.0   ;;  %vm407_vm0 = vmmov 0   ;;  %v408_v4 = vmov 0   ;;  %vm124_vm1 = vcmask 785408   ;;  %s608_s1 = inlined_call_operand.vmem [shape: bf16[1,96,64], index: 1, kind: input, shape index: {}]   ;;  %s609_s3 = inlined_call_operand.<no memory space> [shape: f32[1,1,1,1], index: 3, kind: input, shape index: {}]   ;;  %s610_s0 = inlined_call_operand.vmem [shape: bf16[1,1,80,96], index: 0, kind: input, shape index: {}]   ;;  %s611_s4 = inlined_call_operand.vmem [shape: f32[1,1,80,1], index: 4, kind: input, shape index: {}]   ;;  %s612_s2 = inlined_call_operand.vmem [shape: f32[1,1,1,64], index: 2, kind: input, shape index: {}]   ;;  %s613_s5 = inlined_call_operand.vmem [shape: f32[1,1,80,64], index: 5, kind: output, shape index: {}]  }
   0x1   :  { %346 = vmatprep.subr.bf16.mxu0 %v406_v0  ;;  %378 = vmatprep.subr.bf16.mxu1 %v406_v0  ;;  %v395_v1 = vld [vmem:[%s608_s1] sm:$0xff]   ;;  %v10_v2 = vstv %s609_s3  ;;  %v396_v3 = vld [vmem:[%s608_s1 + $0x8] sm:$0xff]   ;;  %v397_v5 = vld [vmem:[%s608_s1 + $0x10] sm:$0xff]   ;;  %vm302_vm2 = vcmask 523264  }
   0x2   :  { %358 = vmatprep.mubr.msk.bf16.mxu0 %vm407_vm0, %v406_v0  ;;  %370 = vmatprep.mubr.msk.bf16.mxu1 %vm407_vm0, %v406_v0  ;;  %11 = vst [vmem:[#allocation2] sm:$0x1] %v10_v2  ;;  %v398_v6 = vld [vmem:[%s608_s1 + $0x18] sm:$0xff]   ;;  %v36_v7 = vld [vmem:[%s611_s4] sm:$0xff]  ;;  %v37_v8 = vld [vmem:[%s611_s4 + $0x8] sm:$0xff] }
   0x3   :  { %347 = vmatpush3.bf16.msra.mxu0 %v395_v1  ;;  %384 = vmatpush3.bf16.msra.mxu1 %v395_v1  ;;  %v39_v9 = vld [vmem:[%s611_s4 + $0x18] sm:$0xff]  ;;  %v38_v10 = vld [vmem:[%s611_s4 + $0x10] sm:$0xff]  ;;  %v399_v11 = vld [vmem:[%s608_s1 + $0x20] sm:$0xff]  }
   0x4   :  { %348 = vmatprep.subr.bf16.mxu0 %v406_v0  ;;  %379 = vmatprep.subr.bf16.mxu1 %v406_v0  ;;  %v40_v13 = vld [vmem:[%s611_s4 + $0x20] sm:$0xff]  ;;  %v400_v14 = vld [vmem:[%s608_s1 + $0x28] sm:$0xff]   ;;  %v402_v16 = vld [vmem:[%s610_s0 + $0x18] sm:$0xff]  }
   0x5   :  { %393 = vset.pattern.permute.xlu0 %v408_v4  ;;  %394 = vset.pattern.permute.xlu1 %v408_v4  ;;  %v401_v15 = vld [vmem:[%s610_s0] sm:$0xff]   ;;  %v41_v17 = vld [vmem:[%s611_s4 + $0x28] sm:$0xff]  ;;  %v42_v18 = vld [vmem:[%s611_s4 + $0x30] sm:$0xff] }
   0x6   :  { %244 = vperm.xlu0 %393, %v36_v7   ;;  %249 = vperm.xlu1 %394, %v37_v8   ;;  %v43_v19 = vld [vmem:[%s611_s4 + $0x38] sm:$0xff]  ;;  %v44_v20 = vld [vmem:[%s611_s4 + $0x40] sm:$0xff]  ;;  %v403_v21 = vld [vmem:[%s610_s0 + $0x8] sm:$0xff]  }
   0x7   :  { %349 = vmatpush3.bf16.msra.mxu0 %v396_v3  ;;  %385 = vmatpush3.bf16.msra.mxu1 %v396_v3  ;;  %v404_v22 = vld [vmem:[%s610_s0 + $0x20] sm:$0xff]   ;;  %v45_v23 = vld [vmem:[%s611_s4 + $0x48] sm:$0xff]  ;;  %v405_v24 = vld [vmem:[%s610_s0 + $0x10] sm:$0xff]  }
   0x8   :  { %350 = vmatprep.subr.bf16.mxu0 %v406_v0  ;;  %380 = vmatprep.subr.bf16.mxu1 %v406_v0  ;;  %v539_v30 = vld [vmem:[%s612_s2] ss:$0 sm:$0xff] }
   0x9   :  { %v334_v12 = vld [vmem:[#allocation2] ss:$0 sm:$0xff] }
   0xa   :  { %259 = vperm.xlu0 %393, %v39_v9   ;;  %254 = vperm.xlu1 %394, %v38_v10  }
   0xb   :  { %351 = vmatpush3.bf16.msra.mxu0 %v397_v5  ;;  %386 = vmatpush3.bf16.msra.mxu1 %v397_v5 }
   0xc   :  { %352 = vmatprep.subr.bf16.mxu0 %v406_v0  ;;  %381 = vmatprep.subr.bf16.mxu1 %v406_v0 }
   0xe   :  { %229 = vperm.xlu0 %393, %v334_v12   ;;  %264 = vperm.xlu1 %394, %v40_v13  }
   0xf   :  { %353 = vmatpush3.bf16.msra.mxu0 %v398_v6  ;;  %387 = vmatpush3.bf16.msra.mxu1 %v398_v6 }
  0x10   :  { %354 = vmatprep.subr.bf16.mxu0 %v406_v0  ;;  %382 = vmatprep.subr.bf16.mxu1 %v406_v0 }
  0x12   :  { %269 = vperm.xlu0 %393, %v41_v17   ;;  %274 = vperm.xlu1 %394, %v42_v18  }
  0x13   :  { %355 = vmatpush3.bf16.msra.mxu0 %v399_v11  ;;  %388 = vmatpush3.bf16.msra.mxu1 %v399_v11 }
  0x14   :  { %356 = vmatprep.subr.bf16.mxu0 %v406_v0  ;;  %383 = vmatprep.subr.bf16.mxu1 %v406_v0 }
  0x16   :  { %279 = vperm.xlu0 %393, %v43_v19   ;;  %284 = vperm.xlu1 %394, %v44_v20  }
  0x17   :  { %357 = vmatpush3.bf16.msra.mxu0 %v400_v14  ;;  %389 = vmatpush3.bf16.msra.mxu1 %v400_v14 }
  0x1a   :  { %359 = vmatmul.mubr.msk.bf16.vlgmr.msra.gmra.mrb[0].mxu0 %vm124_vm1, %v401_v15  ;;  %371 = vmatmul.mubr.msk.bf16.vlgmr.msra.gmra.mrb[0].mxu1 %vm124_vm1, %v402_v16 }
  0x1b   :  { %362 = vmatprep.mubr.msk.bf16.mxu0 %vm407_vm0, %v406_v0  ;;  %374 = vmatprep.mubr.msk.bf16.mxu1 %vm407_vm0, %v406_v0 }
  0x1c   :  { %289 = vperm.xlu0 %393, %v45_v23  }
  0x22   :  { %363 = vmatmul.mubr.msk.bf16.gmra.mrb[4].mxu0 %vm124_vm1, %v403_v21  ;;  %375 = vmatmul.mubr.msk.bf16.gmra.mrb[4].mxu1 %vm124_vm1, %v404_v22 }
  0x23   :  { %366 = vmatprep.mubr.msk.bf16.mxu0 %vm407_vm0, %v406_v0 }
  0x2a   :  { %367 = vmatmul.mubr.msk.bf16.gmra.mrb[8].mxu0 %vm124_vm1, %v405_v24 }
  0x85   :  { %v245_v25 = vpop.permute.xlu0 %244  ;;  %v250_v27 = vpop.permute.xlu1 %249 }
  0x89   :  { %v532_v26 = vpop.permute.xlu0 %259  ;;  %v255_v29 = vpop.permute.xlu1 %254 }
  0x8d   :  { %v534_v28 = vpop.permute.xlu0 %229  ;;  %v543_v32 = vpop.permute.xlu1 %264 }
  0x91   :  { %v541_v31 = vpop.permute.xlu0 %269  ;;  %v275_v51 = vpop.permute.xlu1 %274 }
  0x95   :  { %v280_v52 = vpop.permute.xlu0 %279  ;;  %v285_v13 = vpop.permute.xlu1 %284 }
  0x9b   :  { %v290_v18 = vpop.permute.xlu0 %289 }
  0xed   :  { %v174_v33 = vpop.f32.mrb[0].mxu0  ;;  %v198_v34 = vpop.f32.mrb[0].mxu1 }
  0xee   :  { %v175_v35 = vadd.f32 %v539_v30, %v174_v33  ;;  %v199_v36 = vadd.f32 %v539_v30, %v198_v34  ;;  %v360_v37 = vpop.f32.mrb[1].mxu0  ;;  %v372_v38 = vpop.f32.mrb[1].mxu1 }
  0xef   :  { %v177_v39 = vpop.f32.mrb[2].mxu0  ;;  %v201_v40 = vpop.f32.mrb[2].mxu1 }
  0xf0   :  { %v213_v41 = vmax.f32 %v175_v35, 0.0  ;;  %v219_v42 = vmax.f32 %v199_v36, 0.0  ;;  %v178_v43 = vadd.f32 %v539_v30, %v177_v39  ;;  %v202_v44 = vadd.f32 %v539_v30, %v201_v40  ;;  %v361_v45 = vpop.f32.mrb[3].mxu0  ;;  %v373_v46 = vpop.f32.mrb[3].mxu1 }
  0xf2   :  { %v232_v47 = vmul.f32 %v534_v28, %v213_v41  ;;  %v214_v48 = vmax.f32 %v178_v43, 0.0  ;;  %v220_v49 = vmax.f32 %v202_v44, 0.0  ;;  %v238_v50 = vmul.f32 %v534_v28, %v219_v42 }
  0xf4   :  { %v292_v53 = vmul.f32 %v245_v25, %v232_v47  ;;  %v233_v54 = vmul.f32 %v534_v28, %v214_v48  ;;  %v239_v55 = vmul.f32 %v534_v28, %v220_v49  ;;  %v298_v56 = vmul.f32 %v275_v51, %v238_v50 }
  0xf5   :  { %v182_v57 = vpop.f32.mrb[4].mxu0  ;;  %v206_v58 = vpop.f32.mrb[4].mxu1 }
  0xf6   :  { %303 = vst.msk [vmem:[%s613_s5] sm:$0xff] %vm302_vm2, %v292_v53  ;;  %v293_v59 = vmul.f32 %v250_v27, %v233_v54  ;;  %v299_v60 = vmul.f32 %v280_v52, %v239_v55  ;;  %309 = vst.msk [vmem:[%s613_s5 + $0x30] sm:$0xff] %vm302_vm2, %v298_v56  ;;  %v183_v61 = vadd.f32 %v539_v30, %v182_v57  ;;  %v364_v63 = vpop.f32.mrb[5].mxu0  ;;  %v376_v0 = vpop.f32.mrb[5].mxu1 }
  0xf7   :  { %v207_v62 = vadd.f32 %v539_v30, %v206_v58  ;;  %v185_v1 = vpop.f32.mrb[6].mxu0  ;;  %v209_v2 = vpop.f32.mrb[6].mxu1 }
  0xf8   :  { %304 = vst.msk [vmem:[%s613_s5 + $0x8] sm:$0xff] %vm302_vm2, %v293_v59  ;;  %310 = vst.msk [vmem:[%s613_s5 + $0x38] sm:$0xff] %vm302_vm2, %v299_v60  ;;  %v215_v3 = vmax.f32 %v183_v61, 0.0  ;;  %v186_v5 = vadd.f32 %v539_v30, %v185_v1  ;;  %v210_v6 = vadd.f32 %v539_v30, %v209_v2  ;;  %v365_v7 = vpop.f32.mrb[7].mxu0  ;;  %v377_v8 = vpop.f32.mrb[7].mxu1 }
  0xf9   :  { %v221_v4 = vmax.f32 %v207_v62, 0.0 }
  0xfa   :  { %v234_v9 = vmul.f32 %v534_v28, %v215_v3  ;;  %v216_v11 = vmax.f32 %v186_v5, 0.0  ;;  %v222_v12 = vmax.f32 %v210_v6, 0.0 }
  0xfb   :  { %v240_v10 = vmul.f32 %v534_v28, %v221_v4 }
  0xfc   :  { %v294_v14 = vmul.f32 %v255_v29, %v234_v9  ;;  %v235_v16 = vmul.f32 %v534_v28, %v216_v11  ;;  %v241_v17 = vmul.f32 %v534_v28, %v222_v12 }
  0xfd   :  { %v300_v15 = vmul.f32 %v285_v13, %v240_v10  ;;  %v190_v19 = vpop.f32.mrb[8].mxu0 }
  0xfe   :  { %305 = vst.msk [vmem:[%s613_s5 + $0x10] sm:$0xff] %vm302_vm2, %v294_v14  ;;  %v295_v20 = vmul.f32 %v532_v26, %v235_v16  ;;  %v301_v21 = vmul.f32 %v290_v18, %v241_v17  ;;  %v191_v22 = vadd.f32 %v539_v30, %v190_v19  ;;  %v368_v23 = vpop.f32.mrb[9].mxu0 }
  0xff   :  { %311 = vst.msk [vmem:[%s613_s5 + $0x40] sm:$0xff] %vm302_vm2, %v300_v15  ;;  %v193_v24 = vpop.f32.mrb[10].mxu0 }
 0x100   :  { %306 = vst.msk [vmem:[%s613_s5 + $0x18] sm:$0xff] %vm302_vm2, %v295_v20  ;;  %312 = vst.msk [vmem:[%s613_s5 + $0x48] sm:$0xff] %vm302_vm2, %v301_v21  ;;  %v217_v25 = vmax.f32 %v191_v22, 0.0  ;;  %v194_v27 = vadd.f32 %v539_v30, %v193_v24  ;;  %v369_v29 = vpop.f32.mrb[11].mxu0 }
 0x102   :  { %v236_v26 = vmul.f32 %v534_v28, %v217_v25  ;;  %v218_v33 = vmax.f32 %v194_v27, 0.0 }
 0x104   :  { %v296_v34 = vmul.f32 %v543_v32, %v236_v26  ;;  %v237_v35 = vmul.f32 %v534_v28, %v218_v33 }
 0x106   :  { %307 = vst.msk [vmem:[%s613_s5 + $0x20] sm:$0xff] %vm302_vm2, %v296_v34  ;;  %v297_v36 = vmul.f32 %v541_v31, %v237_v35 }
 0x108   :  { %308 = vst.msk [vmem:[%s613_s5 + $0x28] sm:$0xff] %vm302_vm2, %v297_v36 }

// kernel: _lambda_.18
= control target key start
LH: loop header
LB: loop body
LE: loop exit
PB: predicated region body
PF: predicated region fallthrough
CT: control target
= control target key end

     0   :  { %v491_v0 = vmov 0   ;;  %vm195_vm0 = vcmask 523264   ;;  %vm393_vm1 = vcmask 261120   ;;  %s766_s1 = inlined_call_operand.vmem [shape: bf16[1,192,32], index: 1, kind: input, shape index: {}]   ;;  %s767_s3 = inlined_call_operand.<no memory space> [shape: f32[1,1,1,1], index: 3, kind: input, shape index: {}]   ;;  %s768_s0 = inlined_call_operand.vmem [shape: bf16[1,1,80,192], index: 0, kind: input, shape index: {}]   ;;  %s769_s4 = inlined_call_operand.vmem [shape: f32[1,1,80,1], index: 4, kind: input, shape index: {}]   ;;  %s770_s2 = inlined_call_operand.vmem [shape: f32[1,1,1,32], index: 2, kind: input, shape index: {}]   ;;  %s771_s5 = inlined_call_operand.vmem [shape: f32[1,1,80,32], index: 5, kind: input, shape index: {}]   ;;  %s772_s6 = inlined_call_operand.vmem [shape: f32[1,1,80,32], index: 6, kind: output, shape index: {}]  }
   0x1   :  { %211 = vmatprep.subr.bf16.mxu0 %v491_v0  ;;  %437 = vmatprep.subr.bf16.mxu1 %v491_v0  ;;  %v464_v1 = vld [vmem:[%s766_s1] sm:$0xff]   ;;  %v11_v2 = vstv %s767_s3  ;;  %v465_v3 = vld [vmem:[%s766_s1 + $0x8] sm:$0xff]   ;;  %v466_v4 = vld [vmem:[%s766_s1 + $0x10] sm:$0xff]  }
   0x2   :  { %462 = vset.pattern.permute.xlu0 %v491_v0  ;;  %463 = vset.pattern.permute.xlu1 %v491_v0  ;;  %12 = vst [vmem:[#allocation2] sm:$0x1] %v11_v2  ;;  %v467_v5 = vld [vmem:[%s766_s1 + $0x18] sm:$0xff]   ;;  %v478_v6 = vld [vmem:[%s768_s0 + $0x4] ss:$8 sps:$4 sm:$0xff]   ;;  %v53_v13 = vld [vmem:[%s769_s4 + $0x10] sm:$0xff] }
   0x3   :  { %212 = vmatpush1.bf16.msra.mxu0 %v464_v1  ;;  %449 = vmatpush1.bf16.msra.mxu1 %v464_v1  ;;  %v468_v7 = vld [vmem:[%s766_s1 + $0x20] sm:$0xff]   ;;  %v481_v8 = vld [vmem:[%s768_s0 + $0x34] ss:$8 sps:$4 sm:$0xff]   ;;  %v469_v9 = vld [vmem:[%s766_s1 + $0x28] sm:$0xff]  }
   0x4   :  { %213 = vmatprep.subr.bf16.mxu0 %v491_v0  ;;  %438 = vmatprep.subr.bf16.mxu1 %v491_v0  ;;  %v51_v10 = vld [vmem:[%s769_s4] sm:$0xff]  ;;  %v52_v11 = vld [vmem:[%s769_s4 + $0x8] sm:$0xff]  ;;  %v54_v12 = vld [vmem:[%s769_s4 + $0x18] sm:$0xff] }
   0x5   :  { %431 = vmatprep.mubr.msk.bf16.mxu0 %vm195_vm0, %v478_v6  ;;  %434 = vmatprep.mubr.msk.bf16.mxu1 %vm195_vm0, %v481_v8  ;;  %v470_v14 = vld [vmem:[%s766_s1 + $0x30] sm:$0xff]   ;;  %v55_v16 = vld [vmem:[%s769_s4 + $0x20] sm:$0xff]  ;;  %v471_v17 = vld [vmem:[%s766_s1 + $0x38] sm:$0xff]  }
   0x6   :  { %315 = vperm.xlu0 %462, %v51_v10   ;;  %320 = vperm.xlu1 %463, %v52_v11   ;;  %v56_v18 = vld [vmem:[%s769_s4 + $0x28] sm:$0xff]  ;;  %v57_v19 = vld [vmem:[%s769_s4 + $0x30] sm:$0xff]  ;;  %v472_v20 = vld [vmem:[%s766_s1 + $0x40] sm:$0xff]  }
   0x7   :  { %214 = vmatpush1.bf16.msra.mxu0 %v465_v3  ;;  %450 = vmatpush1.bf16.msra.mxu1 %v465_v3  ;;  %v58_v21 = vld [vmem:[%s769_s4 + $0x38] sm:$0xff]  ;;  %v59_v22 = vld [vmem:[%s769_s4 + $0x40] sm:$0xff]  ;;  %v473_v23 = vld [vmem:[%s766_s1 + $0x48] sm:$0xff]  }
   0x8   :  { %215 = vmatprep.subr.bf16.mxu0 %v491_v0  ;;  %439 = vmatprep.subr.bf16.mxu1 %v491_v0  ;;  %v60_v24 = vld [vmem:[%s769_s4 + $0x48] sm:$0xff]  ;;  %v474_v25 = vld [vmem:[%s766_s1 + $0x50] sm:$0xff]   ;;  %v475_v26 = vld [vmem:[%s766_s1 + $0x58] sm:$0xff]  }
   0x9   :  { %v436_v15 = vld [vmem:[#allocation2] ss:$0 sm:$0xff]  ;;  %v479_v28 = vld [vmem:[%s768_s0 + $0x30] ss:$8 sps:$4 sm:$0xff]   ;;  %v482_v29 = vld [vmem:[%s768_s0 + $0x14] ss:$8 sps:$4 sm:$0xff]  }
   0xa   :  { %330 = vperm.xlu0 %462, %v54_v12   ;;  %325 = vperm.xlu1 %463, %v53_v13   ;;  %v476_v27 = vld [vmem:[%s768_s0] ss:$8 sps:$4 sm:$0xff]   ;;  %v484_v30 = vld [vmem:[%s768_s0 + $0x44] ss:$8 sps:$4 sm:$0xff]   ;;  %v486_v31 = vld [vmem:[%s768_s0 + $0x10] ss:$8 sps:$4 sm:$0xff]  }
   0xb   :  { %216 = vmatpush1.bf16.msra.mxu0 %v466_v4  ;;  %451 = vmatpush1.bf16.msra.mxu1 %v466_v4  ;;  %v487_v32 = vld [vmem:[%s768_s0 + $0x40] ss:$8 sps:$4 sm:$0xff]   ;;  %v488_v33 = vld [vmem:[%s768_s0 + $0x24] ss:$8 sps:$4 sm:$0xff]   ;;  %v379_v62 = vld [vmem:[%s771_s5 + $0x30] sm:$0xff] }
   0xc   :  { %217 = vmatprep.subr.bf16.mxu0 %v491_v0  ;;  %440 = vmatprep.subr.bf16.mxu1 %v491_v0  ;;  %v490_v34 = vld [vmem:[%s768_s0 + $0x20] ss:$8 sps:$4 sm:$0xff]   ;;  %v380_v6 = vld [vmem:[%s771_s5 + $0x38] sm:$0xff] }
   0xd   :  { %v666_v40 = vld [vmem:[%s770_s2] ss:$0 sm:$0xff] }
   0xe   :  { %300 = vperm.xlu0 %462, %v436_v15   ;;  %335 = vperm.xlu1 %463, %v55_v16   ;;  %v373_v61 = vld [vmem:[%s771_s5] sm:$0xff] }
   0xf   :  { %218 = vmatpush1.bf16.msra.mxu0 %v467_v5  ;;  %452 = vmatpush1.bf16.msra.mxu1 %v467_v5  ;;  %v374_v5 = vld [vmem:[%s771_s5 + $0x8] sm:$0xff] }
  0x10   :  { %219 = vmatprep.subr.bf16.mxu0 %v491_v0  ;;  %441 = vmatprep.subr.bf16.mxu1 %v491_v0 }
  0x12   :  { %340 = vperm.xlu0 %462, %v56_v18   ;;  %345 = vperm.xlu1 %463, %v57_v19  }
  0x13   :  { %220 = vmatpush1.bf16.msra.mxu0 %v468_v7  ;;  %453 = vmatpush1.bf16.msra.mxu1 %v468_v7 }
  0x14   :  { %221 = vmatprep.subr.bf16.mxu0 %v491_v0  ;;  %442 = vmatprep.subr.bf16.mxu1 %v491_v0 }
  0x16   :  { %350 = vperm.xlu0 %462, %v58_v21   ;;  %355 = vperm.xlu1 %463, %v59_v22  }
  0x17   :  { %222 = vmatpush1.bf16.msra.mxu0 %v469_v9  ;;  %454 = vmatpush1.bf16.msra.mxu1 %v469_v9 }
  0x18   :  { %223 = vmatprep.subr.bf16.mxu0 %v491_v0  ;;  %443 = vmatprep.subr.bf16.mxu1 %v491_v0 }
  0x1a   :  { %360 = vperm.xlu0 %462, %v60_v24  }
  0x1b   :  { %224 = vmatpush1.bf16.msra.mxu0 %v470_v14  ;;  %455 = vmatpush1.bf16.msra.mxu1 %v470_v14 }
  0x1c   :  { %225 = vmatprep.subr.bf16.mxu0 %v491_v0  ;;  %444 = vmatprep.subr.bf16.mxu1 %v491_v0 }
  0x1f   :  { %226 = vmatpush1.bf16.msra.mxu0 %v471_v17  ;;  %456 = vmatpush1.bf16.msra.mxu1 %v471_v17 }
  0x20   :  { %227 = vmatprep.subr.bf16.mxu0 %v491_v0  ;;  %445 = vmatprep.subr.bf16.mxu1 %v491_v0 }
  0x23   :  { %228 = vmatpush1.bf16.msra.mxu0 %v472_v20  ;;  %457 = vmatpush1.bf16.msra.mxu1 %v472_v20 }
  0x24   :  { %229 = vmatprep.subr.bf16.mxu0 %v491_v0  ;;  %446 = vmatprep.subr.bf16.mxu1 %v491_v0 }
  0x27   :  { %230 = vmatpush1.bf16.msra.mxu0 %v473_v23  ;;  %458 = vmatpush1.bf16.msra.mxu1 %v473_v23 }
  0x28   :  { %231 = vmatprep.subr.bf16.mxu0 %v491_v0  ;;  %447 = vmatprep.subr.bf16.mxu1 %v491_v0 }
  0x2b   :  { %232 = vmatpush1.bf16.msra.mxu0 %v474_v25  ;;  %459 = vmatpush1.bf16.msra.mxu1 %v474_v25 }
  0x2c   :  { %233 = vmatprep.subr.bf16.mxu0 %v491_v0  ;;  %448 = vmatprep.subr.bf16.mxu1 %v491_v0 }
  0x2f   :  { %234 = vmatpush1.bf16.msra.mxu0 %v475_v26  ;;  %460 = vmatpush1.bf16.msra.mxu1 %v475_v26 }
  0x32   :  { %244 = vmatmul.mubr.bf16.vlgmr.msra.gmra.mrb[0].mxu0 %v476_v27  ;;  %268 = vmatmul.mubr.bf16.vlgmr.msra.gmra.mrb[0].mxu1 %v479_v28 }
  0x33   :  { %432 = vmatprep.mubr.msk.bf16.mxu0 %vm195_vm0, %v482_v29  ;;  %435 = vmatprep.mubr.msk.bf16.mxu1 %vm195_vm0, %v484_v30 }
  0x3a   :  { %252 = vmatmul.mubr.bf16.gmra.mrb[4].mxu0 %v486_v31  ;;  %276 = vmatmul.mubr.bf16.gmra.mrb[4].mxu1 %v487_v32  ;;  %v375_v32 = vld [vmem:[%s771_s5 + $0x10] sm:$0xff] }
  0x3b   :  { %433 = vmatprep.mubr.msk.bf16.mxu0 %vm195_vm0, %v488_v33  ;;  %v381_v33 = vld [vmem:[%s771_s5 + $0x40] sm:$0xff] }
  0x42   :  { %260 = vmatmul.mubr.bf16.gmra.mrb[8].mxu0 %v490_v34 }
  0x85   :  { %v316_v35 = vpop.permute.xlu0 %315  ;;  %v321_v37 = vpop.permute.xlu1 %320 }
  0x89   :  { %v657_v36 = vpop.permute.xlu0 %330  ;;  %v661_v39 = vpop.permute.xlu1 %325 }
  0x8d   :  { %v659_v38 = vpop.permute.xlu0 %300  ;;  %v670_v42 = vpop.permute.xlu1 %335 }
  0x91   :  { %v668_v41 = vpop.permute.xlu0 %340  ;;  %v346_v63 = vpop.permute.xlu1 %345 }
  0x95   :  { %v351_v0 = vpop.permute.xlu0 %350  ;;  %v356_v31 = vpop.permute.xlu1 %355 }
 0x105   :  { %v245_v43 = vpop.f32.mrb[0].mxu0  ;;  %v269_v44 = vpop.f32.mrb[0].mxu1 }
 0x106   :  { %v246_v45 = vadd.f32 %v666_v40, %v245_v43  ;;  %v270_v46 = vadd.f32 %v666_v40, %v269_v44  ;;  %v247_v47 = vpop.f32.mrb[1].mxu0  ;;  %v271_v48 = vpop.f32.mrb[1].mxu1 }
 0x107   :  { %v248_v49 = vpop.f32.mrb[2].mxu0  ;;  %v272_v50 = vpop.f32.mrb[2].mxu1 }
 0x108   :  { %v284_v51 = vmax.f32 %v246_v45, 0.0  ;;  %v290_v52 = vmax.f32 %v270_v46, 0.0  ;;  %v249_v53 = vadd.f32 %v666_v40, %v248_v49  ;;  %v273_v54 = vadd.f32 %v666_v40, %v272_v50  ;;  %v250_v55 = vpop.f32.mrb[3].mxu0  ;;  %v274_v56 = vpop.f32.mrb[3].mxu1  ;;  %v376_v45 = vld [vmem:[%s771_s5 + $0x18] sm:$0xff]  ;;  %v382_v46 = vld [vmem:[%s771_s5 + $0x48] sm:$0xff] }
 0x10a   :  { %v303_v57 = vmul.f32 %v659_v38, %v284_v51  ;;  %v285_v58 = vmax.f32 %v249_v53, 0.0  ;;  %v291_v59 = vmax.f32 %v273_v54, 0.0  ;;  %v309_v60 = vmul.f32 %v659_v38, %v290_v52 }
 0x10c   :  { %v363_v1 = vmul.f32 %v316_v35, %v303_v57  ;;  %v304_v2 = vmul.f32 %v659_v38, %v285_v58  ;;  %v310_v3 = vmul.f32 %v659_v38, %v291_v59  ;;  %v369_v4 = vmul.f32 %v346_v63, %v309_v60  ;;  %v377_v59 = vld [vmem:[%s771_s5 + $0x20] sm:$0xff] }
 0x10d   :  { %v253_v7 = vpop.f32.mrb[4].mxu0  ;;  %v277_v8 = vpop.f32.mrb[4].mxu1 }
 0x10e   :  { %v383_v9 = vadd.f32 %v373_v61, %v363_v1  ;;  %v364_v10 = vmul.f32 %v321_v37, %v304_v2  ;;  %v370_v11 = vmul.f32 %v351_v0, %v310_v3  ;;  %v389_v12 = vadd.f32 %v379_v62, %v369_v4  ;;  %v255_v13 = vpop.f32.mrb[5].mxu0  ;;  %v279_v14 = vpop.f32.mrb[5].mxu1  ;;  %v378_v62 = vld [vmem:[%s771_s5 + $0x28] sm:$0xff] }
 0x10f   :  { %v254_v15 = vadd.f32 %v666_v40, %v253_v7  ;;  %v278_v16 = vadd.f32 %v666_v40, %v277_v8  ;;  %v256_v17 = vpop.f32.mrb[6].mxu0  ;;  %v280_v18 = vpop.f32.mrb[6].mxu1 }
 0x110   :  { %394 = vst.msk [vmem:[%s772_s6] sm:$0xff] %vm393_vm1, %v383_v9  ;;  %v384_v19 = vadd.f32 %v374_v5, %v364_v10  ;;  %v390_v20 = vadd.f32 %v380_v6, %v370_v11  ;;  %400 = vst.msk [vmem:[%s772_s6 + $0x30] sm:$0xff] %vm393_vm1, %v389_v12  ;;  %v257_v21 = vadd.f32 %v666_v40, %v256_v17  ;;  %v258_v23 = vpop.f32.mrb[7].mxu0  ;;  %v282_v24 = vpop.f32.mrb[7].mxu1 }
 0x111   :  { %v281_v22 = vadd.f32 %v666_v40, %v280_v18  ;;  %v286_v25 = vmax.f32 %v254_v15, 0.0  ;;  %v292_v26 = vmax.f32 %v278_v16, 0.0  ;;  %v361_v37 = vpop.permute.xlu0 %360 }
 0x112   :  { %395 = vst.msk [vmem:[%s772_s6 + $0x8] sm:$0xff] %vm393_vm1, %v384_v19  ;;  %401 = vst.msk [vmem:[%s772_s6 + $0x38] sm:$0xff] %vm393_vm1, %v390_v20  ;;  %v287_v27 = vmax.f32 %v257_v21, 0.0 }
 0x113   :  { %v293_v28 = vmax.f32 %v281_v22, 0.0  ;;  %v305_v29 = vmul.f32 %v659_v38, %v286_v25  ;;  %v311_v30 = vmul.f32 %v659_v38, %v292_v26 }
 0x114   :  { %v306_v34 = vmul.f32 %v659_v38, %v287_v27 }
 0x115   :  { %v312_v35 = vmul.f32 %v659_v38, %v293_v28  ;;  %v365_v43 = vmul.f32 %v661_v39, %v305_v29  ;;  %v371_v44 = vmul.f32 %v356_v31, %v311_v30  ;;  %v261_v47 = vpop.f32.mrb[8].mxu0 }
 0x116   :  { %v366_v48 = vmul.f32 %v657_v36, %v306_v34  ;;  %v262_v50 = vadd.f32 %v666_v40, %v261_v47  ;;  %v263_v51 = vpop.f32.mrb[9].mxu0 }
 0x117   :  { %v372_v49 = vmul.f32 %v361_v37, %v312_v35  ;;  %v385_v52 = vadd.f32 %v375_v32, %v365_v43  ;;  %v391_v53 = vadd.f32 %v381_v33, %v371_v44  ;;  %v264_v54 = vpop.f32.mrb[10].mxu0 }
 0x118   :  { %v386_v39 = vadd.f32 %v376_v45, %v366_v48  ;;  %v288_v56 = vmax.f32 %v262_v50, 0.0  ;;  %v265_v57 = vadd.f32 %v666_v40, %v264_v54  ;;  %v266_v58 = vpop.f32.mrb[11].mxu0 }
 0x119   :  { %v392_v55 = vadd.f32 %v382_v46, %v372_v49  ;;  %396 = vst.msk [vmem:[%s772_s6 + $0x10] sm:$0xff] %vm393_vm1, %v385_v52  ;;  %402 = vst.msk [vmem:[%s772_s6 + $0x40] sm:$0xff] %vm393_vm1, %v391_v53 }
 0x11a   :  { %397 = vst.msk [vmem:[%s772_s6 + $0x18] sm:$0xff] %vm393_vm1, %v386_v39  ;;  %v307_v36 = vmul.f32 %v659_v38, %v288_v56  ;;  %v289_v40 = vmax.f32 %v265_v57, 0.0 }
 0x11b   :  { %403 = vst.msk [vmem:[%s772_s6 + $0x48] sm:$0xff] %vm393_vm1, %v392_v55 }
 0x11c   :  { %v367_v60 = vmul.f32 %v670_v42, %v307_v36  ;;  %v308_v61 = vmul.f32 %v659_v38, %v289_v40 }
 0x11e   :  { %v387_v63 = vadd.f32 %v377_v59, %v367_v60  ;;  %v368_v0 = vmul.f32 %v668_v41, %v308_v61 }
 0x120   :  { %398 = vst.msk [vmem:[%s772_s6 + $0x20] sm:$0xff] %vm393_vm1, %v387_v63  ;;  %v388_v1 = vadd.f32 %v378_v62, %v368_v0 }
 0x122   :  { %399 = vst.msk [vmem:[%s772_s6 + $0x28] sm:$0xff] %vm393_vm1, %v388_v1 }

// kernel: tile.33
= control target key start
LH: loop header
LB: loop body
LE: loop exit
PB: predicated region body
PF: predicated region fallthrough
CT: control target
= control target key end

     0   :  { %s7_s6 = smov 3  ;;  %s21_s9 = smov 3  ;;  %vm4_vm0 = vcmask 130048   ;;  %vm11_vm1 = vcmask 786048   ;;  %vm18_vm2 = vcmask 654848   ;;  %vm25_vm3 = vcmask 523648   ;;  %s93_s0 = inlined_call_operand.vmem [shape: f32[2,6,16], index: 0, kind: input, shape index: {}]   ;;  %s94_s1 = inlined_call_operand.vmem [shape: f32[2,96], index: 1, kind: output, shape index: {}]  }
   0x1   :  { %v47_v0 = vld [vmem:[%s93_s0 + $0x5] ss:$8 sm:%s7_s6]   ;;  %s57_s10 = smov 80   ;;  %v49_v1 = vld [vmem:[%s93_s0 + $0x3] ss:$8 sm:%s21_s9]   ;;  %s14_s13 = smov 3 }
   0x2   :  { %9 = vrot.lane.b32.xlu0 %v47_v0, %s57_s10  ;;  %s58_s14 = smov 48   ;;  %v48_v2 = vld [vmem:[%s93_s0 + $0x4] ss:$8 sm:%s14_s13]   ;;  %s28_s17 = smov 3  ;;  %vm32_vm4 = vcmask 392448   ;;  %vm39_vm5 = vcmask 261248  }
   0x3   :  { %23 = vrot.lane.b32.xlu1 %v49_v1, %s58_s14  ;;  %v50_v3 = vld [vmem:[%s93_s0 + $0x2] ss:$8 sm:%s28_s17]   ;;  %s35_s20 = smov 3  ;;  %s2_s21 = smov 3 }
   0x4   :  { %s59_s22 = smov 64   ;;  %v3_v4 = vld [vmem:[%s93_s0] ss:$8 sm:%s2_s21]   ;;  %s60_s25 = smov 32   ;;  %v51_v5 = vld [vmem:[%s93_s0 + $0x1] ss:$8 sm:%s35_s20]  }
   0x5   :  { %5 = vst.msk [vmem:[#allocation0] sm:$0x3] %vm4_vm0, %v3_v4   ;;  %s61_s0 = smov 16  }
   0x6   :  { %16 = vrot.lane.b32.xlu0 %v48_v2, %s59_s22 }
   0x7   :  { %30 = vrot.lane.b32.xlu1 %v50_v3, %s60_s25 }
   0xa   :  { %37 = vrot.lane.b32.xlu0 %v51_v5, %s61_s0 }
  0x74   :  { %v10_v6 = vpop.permute.xlu0 %9  }
  0x75   :  { %12 = vst.msk [vmem:[#allocation0] sm:$0x3] %vm11_vm1, %v10_v6   ;;  %v24_v7 = vpop.permute.xlu1 %23  }
  0x78   :  { %v17_v8 = vpop.permute.xlu0 %16  }
  0x79   :  { %19 = vst.msk [vmem:[#allocation0] sm:$0x3] %vm18_vm2, %v17_v8   ;;  %v31_v9 = vpop.permute.xlu1 %30  }
  0x7a   :  { %26 = vst.msk [vmem:[#allocation0] sm:$0x3] %vm25_vm3, %v24_v7  }
  0x7b   :  { %33 = vst.msk [vmem:[#allocation0] sm:$0x3] %vm32_vm4, %v31_v9  }
  0x7c   :  { %v38_v10 = vpop.permute.xlu0 %37  }
  0x7d   :  { %40 = vst.msk [vmem:[#allocation0] sm:$0x3] %vm39_vm5, %v38_v10  }
  0x84   :  { %v44_v11 = vld [vmem:[#allocation0] sm:$0x3] }
  0x85   :  { %46 = vst [vmem:[%s94_s1] sm:$0x3] %v44_v11 }

// kernel: _lambda_.17
= control target key start
LH: loop header
LB: loop body
LE: loop exit
PB: predicated region body
PF: predicated region fallthrough
CT: control target
= control target key end

     0   :  { %v467_v0 = vmov 0   ;;  %vm192_vm0 = vcmask 523264   ;;  %s704_s1 = inlined_call_operand.vmem [shape: bf16[1,192,64], index: 1, kind: input, shape index: {}]   ;;  %s705_s3 = inlined_call_operand.<no memory space> [shape: f32[1,1,1,1], index: 3, kind: input, shape index: {}]   ;;  %s706_s0 = inlined_call_operand.vmem [shape: bf16[1,1,80,192], index: 0, kind: input, shape index: {}]   ;;  %s707_s4 = inlined_call_operand.vmem [shape: f32[1,1,80,1], index: 4, kind: input, shape index: {}]   ;;  %s708_s2 = inlined_call_operand.vmem [shape: f32[1,1,1,64], index: 2, kind: input, shape index: {}]   ;;  %s709_s5 = inlined_call_operand.vmem [shape: f32[1,1,80,64], index: 5, kind: output, shape index: {}]  }
   0x1   :  { %208 = vmatprep.subr.bf16.mxu0 %v467_v0  ;;  %413 = vmatprep.subr.bf16.mxu1 %v467_v0  ;;  %v440_v1 = vld [vmem:[%s704_s1] sm:$0xff]   ;;  %v10_v2 = vstv %s705_s3  ;;  %v441_v3 = vld [vmem:[%s704_s1 + $0x8] sm:$0xff]   ;;  %v442_v4 = vld [vmem:[%s704_s1 + $0x10] sm:$0xff]  }
   0x2   :  { %438 = vset.pattern.permute.xlu0 %v467_v0  ;;  %439 = vset.pattern.permute.xlu1 %v467_v0  ;;  %11 = vst [vmem:[#allocation2] sm:$0x1] %v10_v2  ;;  %v443_v5 = vld [vmem:[%s704_s1 + $0x18] sm:$0xff]   ;;  %v454_v6 = vld [vmem:[%s706_s0 + $0x4] ss:$8 sps:$4 sm:$0xff]   ;;  %v50_v13 = vld [vmem:[%s707_s4 + $0x10] sm:$0xff] }
   0x3   :  { %209 = vmatpush1.bf16.msra.mxu0 %v440_v1  ;;  %425 = vmatpush1.bf16.msra.mxu1 %v440_v1  ;;  %v444_v7 = vld [vmem:[%s704_s1 + $0x20] sm:$0xff]   ;;  %v457_v8 = vld [vmem:[%s706_s0 + $0x34] ss:$8 sps:$4 sm:$0xff]   ;;  %v445_v9 = vld [vmem:[%s704_s1 + $0x28] sm:$0xff]  }
   0x4   :  { %210 = vmatprep.subr.bf16.mxu0 %v467_v0  ;;  %414 = vmatprep.subr.bf16.mxu1 %v467_v0  ;;  %v48_v10 = vld [vmem:[%s707_s4] sm:$0xff]  ;;  %v49_v11 = vld [vmem:[%s707_s4 + $0x8] sm:$0xff]  ;;  %v51_v12 = vld [vmem:[%s707_s4 + $0x18] sm:$0xff] }
   0x5   :  { %407 = vmatprep.mubr.msk.bf16.mxu0 %vm192_vm0, %v454_v6  ;;  %410 = vmatprep.mubr.msk.bf16.mxu1 %vm192_vm0, %v457_v8  ;;  %v446_v14 = vld [vmem:[%s704_s1 + $0x30] sm:$0xff]   ;;  %v52_v16 = vld [vmem:[%s707_s4 + $0x20] sm:$0xff]  ;;  %v447_v17 = vld [vmem:[%s704_s1 + $0x38] sm:$0xff]  }
   0x6   :  { %312 = vperm.xlu0 %438, %v48_v10   ;;  %317 = vperm.xlu1 %439, %v49_v11   ;;  %v53_v18 = vld [vmem:[%s707_s4 + $0x28] sm:$0xff]  ;;  %v54_v19 = vld [vmem:[%s707_s4 + $0x30] sm:$0xff]  ;;  %v448_v20 = vld [vmem:[%s704_s1 + $0x40] sm:$0xff]  }
   0x7   :  { %211 = vmatpush1.bf16.msra.mxu0 %v441_v3  ;;  %426 = vmatpush1.bf16.msra.mxu1 %v441_v3  ;;  %v55_v21 = vld [vmem:[%s707_s4 + $0x38] sm:$0xff]  ;;  %v56_v22 = vld [vmem:[%s707_s4 + $0x40] sm:$0xff]  ;;  %v449_v23 = vld [vmem:[%s704_s1 + $0x48] sm:$0xff]  }
   0x8   :  { %212 = vmatprep.subr.bf16.mxu0 %v467_v0  ;;  %415 = vmatprep.subr.bf16.mxu1 %v467_v0  ;;  %v57_v24 = vld [vmem:[%s707_s4 + $0x48] sm:$0xff]  ;;  %v450_v25 = vld [vmem:[%s704_s1 + $0x50] sm:$0xff]   ;;  %v451_v26 = vld [vmem:[%s704_s1 + $0x58] sm:$0xff]  }
   0x9   :  { %v412_v15 = vld [vmem:[#allocation2] ss:$0 sm:$0xff]  ;;  %v455_v28 = vld [vmem:[%s706_s0 + $0x30] ss:$8 sps:$4 sm:$0xff]   ;;  %v458_v29 = vld [vmem:[%s706_s0 + $0x14] ss:$8 sps:$4 sm:$0xff]  }
   0xa   :  { %327 = vperm.xlu0 %438, %v51_v12   ;;  %322 = vperm.xlu1 %439, %v50_v13   ;;  %v452_v27 = vld [vmem:[%s706_s0] ss:$8 sps:$4 sm:$0xff]   ;;  %v460_v30 = vld [vmem:[%s706_s0 + $0x44] ss:$8 sps:$4 sm:$0xff]   ;;  %v462_v31 = vld [vmem:[%s706_s0 + $0x10] ss:$8 sps:$4 sm:$0xff]  }
   0xb   :  { %213 = vmatpush1.bf16.msra.mxu0 %v442_v4  ;;  %427 = vmatpush1.bf16.msra.mxu1 %v442_v4  ;;  %v463_v32 = vld [vmem:[%s706_s0 + $0x40] ss:$8 sps:$4 sm:$0xff]   ;;  %v464_v33 = vld [vmem:[%s706_s0 + $0x24] ss:$8 sps:$4 sm:$0xff]  }
   0xc   :  { %214 = vmatprep.subr.bf16.mxu0 %v467_v0  ;;  %416 = vmatprep.subr.bf16.mxu1 %v467_v0  ;;  %v466_v34 = vld [vmem:[%s706_s0 + $0x20] ss:$8 sps:$4 sm:$0xff]  }
   0xd   :  { %v635_v40 = vld [vmem:[%s708_s2] ss:$0 sm:$0xff] }
   0xe   :  { %297 = vperm.xlu0 %438, %v412_v15   ;;  %332 = vperm.xlu1 %439, %v52_v16  }
   0xf   :  { %215 = vmatpush1.bf16.msra.mxu0 %v443_v5  ;;  %428 = vmatpush1.bf16.msra.mxu1 %v443_v5 }
  0x10   :  { %216 = vmatprep.subr.bf16.mxu0 %v467_v0  ;;  %417 = vmatprep.subr.bf16.mxu1 %v467_v0 }
  0x12   :  { %337 = vperm.xlu0 %438, %v53_v18   ;;  %342 = vperm.xlu1 %439, %v54_v19  }
  0x13   :  { %217 = vmatpush1.bf16.msra.mxu0 %v444_v7  ;;  %429 = vmatpush1.bf16.msra.mxu1 %v444_v7 }
  0x14   :  { %218 = vmatprep.subr.bf16.mxu0 %v467_v0  ;;  %418 = vmatprep.subr.bf16.mxu1 %v467_v0 }
  0x16   :  { %347 = vperm.xlu0 %438, %v55_v21   ;;  %352 = vperm.xlu1 %439, %v56_v22  }
  0x17   :  { %219 = vmatpush1.bf16.msra.mxu0 %v445_v9  ;;  %430 = vmatpush1.bf16.msra.mxu1 %v445_v9 }
  0x18   :  { %220 = vmatprep.subr.bf16.mxu0 %v467_v0  ;;  %419 = vmatprep.subr.bf16.mxu1 %v467_v0 }
  0x1a   :  { %357 = vperm.xlu0 %438, %v57_v24  }
  0x1b   :  { %221 = vmatpush1.bf16.msra.mxu0 %v446_v14  ;;  %431 = vmatpush1.bf16.msra.mxu1 %v446_v14 }
  0x1c   :  { %222 = vmatprep.subr.bf16.mxu0 %v467_v0  ;;  %420 = vmatprep.subr.bf16.mxu1 %v467_v0 }
  0x1f   :  { %223 = vmatpush1.bf16.msra.mxu0 %v447_v17  ;;  %432 = vmatpush1.bf16.msra.mxu1 %v447_v17 }
  0x20   :  { %224 = vmatprep.subr.bf16.mxu0 %v467_v0  ;;  %421 = vmatprep.subr.bf16.mxu1 %v467_v0 }
  0x23   :  { %225 = vmatpush1.bf16.msra.mxu0 %v448_v20  ;;  %433 = vmatpush1.bf16.msra.mxu1 %v448_v20 }
  0x24   :  { %226 = vmatprep.subr.bf16.mxu0 %v467_v0  ;;  %422 = vmatprep.subr.bf16.mxu1 %v467_v0 }
  0x27   :  { %227 = vmatpush1.bf16.msra.mxu0 %v449_v23  ;;  %434 = vmatpush1.bf16.msra.mxu1 %v449_v23 }
  0x28   :  { %228 = vmatprep.subr.bf16.mxu0 %v467_v0  ;;  %423 = vmatprep.subr.bf16.mxu1 %v467_v0 }
  0x2b   :  { %229 = vmatpush1.bf16.msra.mxu0 %v450_v25  ;;  %435 = vmatpush1.bf16.msra.mxu1 %v450_v25 }
  0x2c   :  { %230 = vmatprep.subr.bf16.mxu0 %v467_v0  ;;  %424 = vmatprep.subr.bf16.mxu1 %v467_v0 }
  0x2f   :  { %231 = vmatpush1.bf16.msra.mxu0 %v451_v26  ;;  %436 = vmatpush1.bf16.msra.mxu1 %v451_v26 }
  0x32   :  { %241 = vmatmul.mubr.bf16.vlgmr.msra.gmra.mrb[0].mxu0 %v452_v27  ;;  %265 = vmatmul.mubr.bf16.vlgmr.msra.gmra.mrb[0].mxu1 %v455_v28 }
  0x33   :  { %408 = vmatprep.mubr.msk.bf16.mxu0 %vm192_vm0, %v458_v29  ;;  %411 = vmatprep.mubr.msk.bf16.mxu1 %vm192_vm0, %v460_v30 }
  0x3a   :  { %249 = vmatmul.mubr.bf16.gmra.mrb[4].mxu0 %v462_v31  ;;  %273 = vmatmul.mubr.bf16.gmra.mrb[4].mxu1 %v463_v32 }
  0x3b   :  { %409 = vmatprep.mubr.msk.bf16.mxu0 %vm192_vm0, %v464_v33 }
  0x42   :  { %257 = vmatmul.mubr.bf16.gmra.mrb[8].mxu0 %v466_v34 }
  0x85   :  { %v313_v35 = vpop.permute.xlu0 %312  ;;  %v318_v37 = vpop.permute.xlu1 %317 }
  0x89   :  { %v628_v36 = vpop.permute.xlu0 %327  ;;  %v323_v39 = vpop.permute.xlu1 %322 }
  0x8d   :  { %v630_v38 = vpop.permute.xlu0 %297  ;;  %v639_v42 = vpop.permute.xlu1 %332 }
  0x91   :  { %v637_v41 = vpop.permute.xlu0 %337  ;;  %v343_v61 = vpop.permute.xlu1 %342 }
  0x95   :  { %v348_v62 = vpop.permute.xlu0 %347  ;;  %v353_v23 = vpop.permute.xlu1 %352 }
  0x99   :  { %v358_v28 = vpop.permute.xlu0 %357 }
 0x105   :  { %v242_v43 = vpop.f32.mrb[0].mxu0  ;;  %v266_v44 = vpop.f32.mrb[0].mxu1 }
 0x106   :  { %v243_v45 = vadd.f32 %v635_v40, %v242_v43  ;;  %v267_v46 = vadd.f32 %v635_v40, %v266_v44  ;;  %v244_v47 = vpop.f32.mrb[1].mxu0  ;;  %v268_v48 = vpop.f32.mrb[1].mxu1 }
 0x107   :  { %v245_v49 = vpop.f32.mrb[2].mxu0  ;;  %v269_v50 = vpop.f32.mrb[2].mxu1 }
 0x108   :  { %v281_v51 = vmax.f32 %v243_v45, 0.0  ;;  %v287_v52 = vmax.f32 %v267_v46, 0.0  ;;  %v246_v53 = vadd.f32 %v635_v40, %v245_v49  ;;  %v270_v54 = vadd.f32 %v635_v40, %v269_v50  ;;  %v247_v55 = vpop.f32.mrb[3].mxu0  ;;  %v271_v56 = vpop.f32.mrb[3].mxu1 }
 0x10a   :  { %v300_v57 = vmul.f32 %v630_v38, %v281_v51  ;;  %v282_v58 = vmax.f32 %v246_v53, 0.0  ;;  %v288_v59 = vmax.f32 %v270_v54, 0.0  ;;  %v306_v60 = vmul.f32 %v630_v38, %v287_v52 }
 0x10c   :  { %v360_v63 = vmul.f32 %v313_v35, %v300_v57  ;;  %v301_v0 = vmul.f32 %v630_v38, %v282_v58  ;;  %v307_v1 = vmul.f32 %v630_v38, %v288_v59  ;;  %v366_v2 = vmul.f32 %v343_v61, %v306_v60 }
 0x10d   :  { %v250_v3 = vpop.f32.mrb[4].mxu0  ;;  %v274_v4 = vpop.f32.mrb[4].mxu1 }
 0x10e   :  { %370 = vst.msk [vmem:[%s709_s5] sm:$0xff] %vm192_vm0, %v360_v63  ;;  %v361_v5 = vmul.f32 %v318_v37, %v301_v0  ;;  %v367_v6 = vmul.f32 %v348_v62, %v307_v1  ;;  %376 = vst.msk [vmem:[%s709_s5 + $0x30] sm:$0xff] %vm192_vm0, %v366_v2  ;;  %v251_v7 = vadd.f32 %v635_v40, %v250_v3  ;;  %v252_v9 = vpop.f32.mrb[5].mxu0  ;;  %v276_v10 = vpop.f32.mrb[5].mxu1 }
 0x10f   :  { %v275_v8 = vadd.f32 %v635_v40, %v274_v4  ;;  %v253_v11 = vpop.f32.mrb[6].mxu0  ;;  %v277_v12 = vpop.f32.mrb[6].mxu1 }
 0x110   :  { %371 = vst.msk [vmem:[%s709_s5 + $0x8] sm:$0xff] %vm192_vm0, %v361_v5  ;;  %377 = vst.msk [vmem:[%s709_s5 + $0x38] sm:$0xff] %vm192_vm0, %v367_v6  ;;  %v283_v13 = vmax.f32 %v251_v7, 0.0  ;;  %v254_v15 = vadd.f32 %v635_v40, %v253_v11  ;;  %v278_v16 = vadd.f32 %v635_v40, %v277_v12  ;;  %v255_v17 = vpop.f32.mrb[7].mxu0  ;;  %v279_v18 = vpop.f32.mrb[7].mxu1 }
 0x111   :  { %v289_v14 = vmax.f32 %v275_v8, 0.0 }
 0x112   :  { %v302_v19 = vmul.f32 %v630_v38, %v283_v13  ;;  %v284_v21 = vmax.f32 %v254_v15, 0.0  ;;  %v290_v22 = vmax.f32 %v278_v16, 0.0 }
 0x113   :  { %v308_v20 = vmul.f32 %v630_v38, %v289_v14 }
 0x114   :  { %v362_v24 = vmul.f32 %v323_v39, %v302_v19  ;;  %v303_v26 = vmul.f32 %v630_v38, %v284_v21  ;;  %v309_v27 = vmul.f32 %v630_v38, %v290_v22 }
 0x115   :  { %v368_v25 = vmul.f32 %v353_v23, %v308_v20  ;;  %v258_v29 = vpop.f32.mrb[8].mxu0 }
 0x116   :  { %372 = vst.msk [vmem:[%s709_s5 + $0x10] sm:$0xff] %vm192_vm0, %v362_v24  ;;  %v363_v30 = vmul.f32 %v628_v36, %v303_v26  ;;  %v369_v31 = vmul.f32 %v358_v28, %v309_v27  ;;  %v259_v32 = vadd.f32 %v635_v40, %v258_v29  ;;  %v260_v33 = vpop.f32.mrb[9].mxu0 }
 0x117   :  { %378 = vst.msk [vmem:[%s709_s5 + $0x40] sm:$0xff] %vm192_vm0, %v368_v25  ;;  %v261_v34 = vpop.f32.mrb[10].mxu0 }
 0x118   :  { %373 = vst.msk [vmem:[%s709_s5 + $0x18] sm:$0xff] %vm192_vm0, %v363_v30  ;;  %379 = vst.msk [vmem:[%s709_s5 + $0x48] sm:$0xff] %vm192_vm0, %v369_v31  ;;  %v285_v35 = vmax.f32 %v259_v32, 0.0  ;;  %v262_v37 = vadd.f32 %v635_v40, %v261_v34  ;;  %v263_v39 = vpop.f32.mrb[11].mxu0 }
 0x11a   :  { %v304_v36 = vmul.f32 %v630_v38, %v285_v35  ;;  %v286_v43 = vmax.f32 %v262_v37, 0.0 }
 0x11c   :  { %v364_v44 = vmul.f32 %v639_v42, %v304_v36  ;;  %v305_v45 = vmul.f32 %v630_v38, %v286_v43 }
 0x11e   :  { %374 = vst.msk [vmem:[%s709_s5 + $0x20] sm:$0xff] %vm192_vm0, %v364_v44  ;;  %v365_v46 = vmul.f32 %v637_v41, %v305_v45 }
 0x120   :  { %375 = vst.msk [vmem:[%s709_s5 + $0x28] sm:$0xff] %vm192_vm0, %v365_v46 }

// kernel: tile.36
= control target key start
LH: loop header
LB: loop body
LE: loop exit
PB: predicated region body
PF: predicated region fallthrough
CT: control target
= control target key end

     0   :  { %s22_s0 = inlined_call_operand.vmem [shape: f32[16], index: 0, kind: input, shape index: {}]   ;;  %s23_s1 = inlined_call_operand.vmem [shape: f32[6,16], index: 1, kind: output, shape index: {}]  }
   0x1   :  { %v4_v0 = vld [vmem:[%s22_s0] ss:$0 sm:$0xff] }
   0x2   :  { %5 = vst [vmem:[%s23_s1] sm:$0xff] %v4_v0 }

// kernel: tile.37
= control target key start
LH: loop header
LB: loop body
LE: loop exit
PB: predicated region body
PF: predicated region fallthrough
CT: control target
= control target key end

     0   :  { %s51_s10 = smov 80   ;;  %s52_s11 = smov 48   ;;  %vm3_vm0 = vcmask 130048   ;;  %vm9_vm1 = vcmask 786048   ;;  %vm15_vm2 = vcmask 654848   ;;  %vm21_vm3 = vcmask 523648   ;;  %s87_s0 = inlined_call_operand.vmem [shape: f32[6,16], index: 0, kind: input, shape index: {}]   ;;  %s88_s1 = inlined_call_operand.vmem [shape: f32[1,96], index: 1, kind: output, shape index: {}]  }
   0x1   :  { %v41_v0 = vld [vmem:[%s87_s0 + $0x5] sm:$0x1]   ;;  %v43_v1 = vld [vmem:[%s87_s0 + $0x3] sm:$0x1]   ;;  %v42_v2 = vld [vmem:[%s87_s0 + $0x4] sm:$0x1]  }
   0x2   :  { %7 = vrot.lane.b32.xlu0 %v41_v0, %s51_s10  ;;  %19 = vrot.lane.b32.xlu1 %v43_v1, %s52_s11  ;;  %v44_v3 = vld [vmem:[%s87_s0 + $0x2] sm:$0x1]   ;;  %v2_v4 = vld [vmem:[%s87_s0] sm:$0x1]   ;;  %s53_s18 = smov 64   ;;  %s54_s19 = smov 32  }
   0x3   :  { %4 = vst.msk [vmem:[#allocation0] sm:$0x1] %vm3_vm0, %v2_v4   ;;  %v45_v5 = vld [vmem:[%s87_s0 + $0x1] sm:$0x1]   ;;  %s55_s0 = smov 16   ;;  %vm27_vm4 = vcmask 392448  }
   0x4   :  { %vm33_vm5 = vcmask 261248  }
   0x6   :  { %13 = vrot.lane.b32.xlu0 %v42_v2, %s53_s18  ;;  %25 = vrot.lane.b32.xlu1 %v44_v3, %s54_s19 }
   0xa   :  { %31 = vrot.lane.b32.xlu0 %v45_v5, %s55_s0 }
  0x74   :  { %v8_v6 = vpop.permute.xlu0 %7   ;;  %v20_v7 = vpop.permute.xlu1 %19  }
  0x75   :  { %10 = vst.msk [vmem:[#allocation0] sm:$0x1] %vm9_vm1, %v8_v6  }
  0x78   :  { %v14_v8 = vpop.permute.xlu0 %13   ;;  %v26_v9 = vpop.permute.xlu1 %25  }
  0x79   :  { %16 = vst.msk [vmem:[#allocation0] sm:$0x1] %vm15_vm2, %v14_v8  }
  0x7a   :  { %22 = vst.msk [vmem:[#allocation0] sm:$0x1] %vm21_vm3, %v20_v7  }
  0x7b   :  { %28 = vst.msk [vmem:[#allocation0] sm:$0x1] %vm27_vm4, %v26_v9  }
  0x7c   :  { %v32_v10 = vpop.permute.xlu0 %31  }
  0x7d   :  { %34 = vst.msk [vmem:[#allocation0] sm:$0x1] %vm33_vm5, %v32_v10  }
  0x84   :  { %v38_v11 = vld [vmem:[#allocation0] sm:$0x1] }
  0x85   :  { %40 = vst [vmem:[%s88_s1] sm:$0x1] %v38_v11 }

// kernel: _lambda_.19
= control target key start
LH: loop header
LB: loop body
LE: loop exit
PB: predicated region body
PF: predicated region fallthrough
CT: control target
= control target key end

     0   :  { %v200_v27 = vlaneseq  ;;  %v1446_v35 = vmov 1966171168   ;;  %s1807_s0 = inlined_call_operand.vmem [shape: bf16[2,1280], index: 0, kind: input, shape index: {}]   ;;  %s1808_s1 = inlined_call_operand.vmem [shape: bf16[1280,96], index: 1, kind: input, shape index: {}]   ;;  %s1809_s2 = inlined_call_operand.vmem [shape: f32[1,96], index: 2, kind: input, shape index: {}]   ;;  %s1810_s3 = inlined_call_operand.vmem [shape: f32[2,96], index: 3, kind: input, shape index: {}]   ;;  %s1811_s4 = inlined_call_operand.vmem [shape: f32[96,4], index: 4, kind: input, shape index: {}]   ;;  %s1812_s5 = inlined_call_operand.vmem [shape: f32[1,4], index: 5, kind: input, shape index: {}]   ;;  %s1813_s6 = inlined_call_operand.hbm [shape: f32[2,4], index: 6, kind: output, shape index: {}]  }
   0x1   :  { %v1337_v0 = vld [vmem:[%s1808_s1 + $0x40] sm:$0xff]   ;;  %v1341_v4 = vld [vmem:[%s1808_s1 + $0x48] sm:$0xff]   ;;  %v1345_v8 = vld [vmem:[%s1808_s1 + $0x50] sm:$0xff]   ;;  %v198_v36 = vunpack.c.l.s4 %v1446_v35 }
   0x2   :  { %v1338_v1 = vld [vmem:[%s1808_s1] sm:$0xff]   ;;  %1164 = vmatprep.subr.bf16.mxu0 %v1337_v0  ;;  %v1342_v5 = vld [vmem:[%s1808_s1 + $0x8] sm:$0xff]   ;;  %v1346_v9 = vld [vmem:[%s1808_s1 + $0x10] sm:$0xff]   ;;  %v201_v32 = vshrl.u32 %v200_v27, 7 }
   0x3   :  { %v1339_v2 = vld [vmem:[%s1808_s1 + $0xc0] sm:$0xff]   ;;  %1165 = vmatpush3.bf16.msra.mxu0 %v1338_v1  ;;  %v1343_v6 = vld [vmem:[%s1808_s1 + $0xc8] sm:$0xff]   ;;  %v1347_v10 = vld [vmem:[%s1808_s1 + $0xd0] sm:$0xff]   ;;  %v199_v39 = vunpack.c.0.s8 %v198_v36 }
   0x4   :  { %v1340_v3 = vld [vmem:[%s1808_s1 + $0x80] sm:$0xff]   ;;  %1186 = vmatprep.subr.bf16.mxu1 %v1339_v2  ;;  %1166 = vmatprep.subr.bf16.mxu0 %v1341_v4  ;;  %v1344_v7 = vld [vmem:[%s1808_s1 + $0x88] sm:$0xff]   ;;  %v1348_v11 = vld [vmem:[%s1808_s1 + $0x90] sm:$0xff]  }
   0x5   :  { %1187 = vmatpush3.bf16.msra.mxu1 %v1340_v3  ;;  %v1349_v12 = vld [vmem:[%s1808_s1 + $0x58] sm:$0xff]   ;;  %v1353_v16 = vld [vmem:[%s1808_s1 + $0x60] sm:$0xff]   ;;  %v1357_v20 = vld [vmem:[%s1808_s1 + $0x68] sm:$0xff]   ;;  %v1591_v41 = vsub.s32 %v199_v39, %v201_v32 }
   0x6   :  { %1188 = vmatprep.subr.bf16.mxu1 %v1343_v6  ;;  %v1350_v13 = vld [vmem:[%s1808_s1 + $0x18] sm:$0xff]   ;;  %v1354_v17 = vld [vmem:[%s1808_s1 + $0x20] sm:$0xff]   ;;  %v1358_v21 = vld [vmem:[%s1808_s1 + $0x28] sm:$0xff]  }
   0x7   :  { %1167 = vmatpush3.bf16.msra.mxu0 %v1342_v5  ;;  %v1351_v14 = vld [vmem:[%s1808_s1 + $0xd8] sm:$0xff]   ;;  %v1355_v18 = vld [vmem:[%s1808_s1 + $0xe0] sm:$0xff]   ;;  %v1359_v22 = vld [vmem:[%s1808_s1 + $0xe8] sm:$0xff]  }
   0x8   :  { %1168 = vmatprep.subr.bf16.mxu0 %v1345_v8  ;;  %v1352_v15 = vld [vmem:[%s1808_s1 + $0x98] sm:$0xff]   ;;  %v1356_v19 = vld [vmem:[%s1808_s1 + $0xa0] sm:$0xff]   ;;  %v1360_v23 = vld [vmem:[%s1808_s1 + $0xa8] sm:$0xff]  }
   0x9   :  { %1189 = vmatpush3.bf16.msra.mxu1 %v1344_v7  ;;  %v1361_v24 = vld [vmem:[%s1808_s1 + $0x70] sm:$0xff]   ;;  %v1365_v29 = vld [vmem:[%s1808_s1 + $0x78] sm:$0xff]   ;;  %v25_v33 = vld [vmem:[%s1807_s0] sm:$0xff] }
   0xa   :  { %1190 = vmatprep.subr.bf16.mxu1 %v1347_v10  ;;  %v1362_v25 = vld [vmem:[%s1808_s1 + $0x30] sm:$0xff]   ;;  %v1366_v30 = vld [vmem:[%s1808_s1 + $0x38] sm:$0xff]   ;;  %v1370_v37 = vld [vmem:[%s1808_s1 + $0x140] sm:$0xff]   ;;  %v196_v38 = vcombine.high %v25_v33, %v25_v33  ;;  %v203_v42 = vrot.slane %v25_v33, %v1591_v41 }
   0xb   :  { %1169 = vmatpush3.bf16.msra.mxu0 %v1346_v9  ;;  %v1363_v26 = vld [vmem:[%s1808_s1 + $0xf0] sm:$0xff]   ;;  %v1367_v31 = vld [vmem:[%s1808_s1 + $0xf8] sm:$0xff]   ;;  %v1372_v40 = vld [vmem:[%s1808_s1 + $0x1c0] sm:$0xff]  }
   0xc   :  { %1170 = vmatprep.subr.bf16.mxu0 %v1349_v12  ;;  %v1364_v28 = vld [vmem:[%s1808_s1 + $0xb0] sm:$0xff]   ;;  %v1369_v34 = vld [vmem:[%s1808_s1 + $0xb8] sm:$0xff]   ;;  %v1595_v43 = vrot.slane %v196_v38, %v1591_v41  ;;  %v211_v44 = vcombine.high %v203_v42, %v203_v42  ;;  %v219_v45 = vrot.slane %v203_v42, %v1591_v41  ;;  %v1371_v48 = vld [vmem:[%s1808_s1 + $0x100] sm:$0xff]  }
   0xd   :  { %1191 = vmatpush3.bf16.msra.mxu1 %v1348_v11  ;;  %v1374_v51 = vld [vmem:[%s1808_s1 + $0x148] sm:$0xff]   ;;  %v1373_v53 = vld [vmem:[%s1808_s1 + $0x180] sm:$0xff]   ;;  %v1378_v57 = vld [vmem:[%s1808_s1 + $0x150] sm:$0xff]  }
   0xe   :  { %1192 = vmatprep.subr.bf16.mxu1 %v1351_v14  ;;  %v212_v46 = vcombine.high %v1595_v43, %v1595_v43  ;;  %v233_v47 = vrot.slane %v211_v44, %v1591_v41  ;;  %v241_v50 = vcombine.high %v219_v45, %v219_v45  ;;  %v1376_v54 = vld [vmem:[%s1808_s1 + $0x1c8] sm:$0xff]   ;;  %v1380_v59 = vld [vmem:[%s1808_s1 + $0x1d0] sm:$0xff]   ;;  %v1382_v61 = vld [vmem:[%s1808_s1 + $0x158] sm:$0xff]  }
   0xf   :  { %1171 = vmatpush3.bf16.msra.mxu0 %v1350_v13  ;;  %v1375_v56 = vld [vmem:[%s1808_s1 + $0x108] sm:$0xff]   ;;  %v1379_v60 = vld [vmem:[%s1808_s1 + $0x110] sm:$0xff]   ;;  %v1384_v63 = vld [vmem:[%s1808_s1 + $0x1d8] sm:$0xff]  }
  0x10   :  { %1172 = vmatprep.subr.bf16.mxu0 %v1353_v16  ;;  %v240_v49 = vrot.slane %v212_v46, %v1591_v41  ;;  %789 = vmatprep.mubr.bf16.mxu0 %v233_v47  ;;  %v243_v52 = vcombine.high %v233_v47, %v233_v47  ;;  %v1377_v58 = vld [vmem:[%s1808_s1 + $0x188] sm:$0xff]   ;;  %v1381_v62 = vld [vmem:[%s1808_s1 + $0x190] sm:$0xff]   ;;  %v1383_v0 = vld [vmem:[%s1808_s1 + $0x118] sm:$0xff]  }
  0x11   :  { %1193 = vmatpush3.bf16.msra.mxu1 %v1352_v15  ;;  %v1386_v1 = vld [vmem:[%s1808_s1 + $0x160] sm:$0xff]   ;;  %v1385_v2 = vld [vmem:[%s1808_s1 + $0x198] sm:$0xff]   ;;  %v1390_v5 = vld [vmem:[%s1808_s1 + $0x168] sm:$0xff]  }
  0x12   :  { %1194 = vmatprep.subr.bf16.mxu1 %v1355_v18  ;;  %v244_v55 = vcombine.high %v240_v49, %v240_v49  ;;  %829 = vmatprep.mubr.bf16.mxu1 %v243_v52  ;;  %v1388_v3 = vld [vmem:[%s1808_s1 + $0x1e0] sm:$0xff]   ;;  %v1392_v7 = vld [vmem:[%s1808_s1 + $0x1e8] sm:$0xff]   ;;  %v1394_v9 = vld [vmem:[%s1808_s1 + $0x170] sm:$0xff]  }
  0x13   :  { %1173 = vmatpush3.bf16.msra.mxu0 %v1354_v17  ;;  %v1387_v4 = vld [vmem:[%s1808_s1 + $0x120] sm:$0xff]   ;;  %v1391_v8 = vld [vmem:[%s1808_s1 + $0x128] sm:$0xff]   ;;  %v1396_v11 = vld [vmem:[%s1808_s1 + $0x1f0] sm:$0xff]   ;;  %v226_v17 = vrot.slane %v1595_v43, %v1591_v41 }
  0x14   :  { %1174 = vmatprep.subr.bf16.mxu0 %v1357_v20  ;;  %v1389_v6 = vld [vmem:[%s1808_s1 + $0x1a0] sm:$0xff]   ;;  %v1393_v10 = vld [vmem:[%s1808_s1 + $0x1a8] sm:$0xff]   ;;  %v1395_v12 = vld [vmem:[%s1808_s1 + $0x130] sm:$0xff]  }
  0x15   :  { %1195 = vmatpush3.bf16.msra.mxu1 %v1356_v19  ;;  %v1398_v13 = vld [vmem:[%s1808_s1 + $0x178] sm:$0xff]   ;;  %v1397_v14 = vld [vmem:[%s1808_s1 + $0x1b0] sm:$0xff]   ;;  %v1402_v18 = vld [vmem:[%s1808_s1 + $0x240] sm:$0xff]  }
  0x16   :  { %1196 = vmatprep.subr.bf16.mxu1 %v1359_v22  ;;  %v1400_v15 = vld [vmem:[%s1808_s1 + $0x1f8] sm:$0xff]   ;;  %v1403_v20 = vld [vmem:[%s1808_s1 + $0x200] sm:$0xff]   ;;  %v1404_v22 = vld [vmem:[%s1808_s1 + $0x248] sm:$0xff]  }
  0x17   :  { %1175 = vmatpush3.bf16.msra.mxu0 %v1358_v21  ;;  %v1399_v16 = vld [vmem:[%s1808_s1 + $0x138] sm:$0xff]   ;;  %v242_v21 = vcombine.high %v226_v17, %v226_v17 }
  0x18   :  { %1176 = vmatprep.subr.bf16.mxu0 %v1361_v24  ;;  %v1401_v19 = vld [vmem:[%s1808_s1 + $0x1b8] sm:$0xff]   ;;  %v1406_v24 = vld [vmem:[%s1808_s1 + $0x250] sm:$0xff]  }
  0x19   :  { %1197 = vmatpush3.bf16.msra.mxu1 %v1360_v23  ;;  %v1405_v23 = vld [vmem:[%s1808_s1 + $0x208] sm:$0xff]  }
  0x1a   :  { %1198 = vmatprep.subr.bf16.mxu1 %v1363_v26 }
  0x1b   :  { %1177 = vmatpush3.bf16.msra.mxu0 %v1362_v25  ;;  %v1081_v25 = vld.sshfl [vmem:[%s1807_s0 + $0x8] sm:$0x11 pattern:$0x75316420] }
  0x1c   :  { %1178 = vmatprep.subr.bf16.mxu0 %v1365_v29  ;;  %v252_v26 = vcombine.high %v1081_v25, %v1081_v25 }
  0x1d   :  { %1199 = vmatpush3.bf16.msra.mxu1 %v1364_v28 }
  0x1e   :  { %1200 = vmatprep.subr.bf16.mxu1 %v1367_v31 }
  0x1f   :  { %1179 = vmatpush3.bf16.msra.mxu0 %v1366_v30 }
  0x20   :  { %1208 = vmatprep.subr.bf16.mxu0 %v1370_v37 }
  0x21   :  { %1201 = vmatpush3.bf16.msra.mxu1 %v1369_v34 }
  0x22   :  { %1230 = vmatprep.subr.bf16.mxu1 %v1372_v40  ;;  %790 = vmatmul.mubr.bf16.vlgmr.msra.gmra.mrb[0].mxu0 %v219_v45 }
  0x23   :  { %1209 = vmatpush3.bf16.msra.mxu0 %v1371_v48  ;;  %869 = vmatprep.mubr.bf16.mxu0 %v240_v49 }
  0x24   :  { %830 = vmatmul.mubr.bf16.vlgmr.msra.gmra.mrb[0].mxu1 %v241_v50  ;;  %1210 = vmatprep.subr.bf16.mxu0 %v1374_v51 }
  0x25   :  { %1231 = vmatpush3.bf16.msra.mxu1 %v1373_v53  ;;  %909 = vmatprep.mubr.bf16.mxu1 %v244_v55 }
  0x26   :  { %1232 = vmatprep.subr.bf16.mxu1 %v1376_v54 }
  0x27   :  { %1211 = vmatpush3.bf16.msra.mxu0 %v1375_v56 }
  0x28   :  { %1212 = vmatprep.subr.bf16.mxu0 %v1378_v57 }
  0x29   :  { %1233 = vmatpush3.bf16.msra.mxu1 %v1377_v58 }
  0x2a   :  { %1234 = vmatprep.subr.bf16.mxu1 %v1380_v59 }
  0x2b   :  { %1213 = vmatpush3.bf16.msra.mxu0 %v1379_v60 }
  0x2c   :  { %1214 = vmatprep.subr.bf16.mxu0 %v1382_v61 }
  0x2d   :  { %1235 = vmatpush3.bf16.msra.mxu1 %v1381_v62 }
  0x2e   :  { %1236 = vmatprep.subr.bf16.mxu1 %v1384_v63 }
  0x2f   :  { %1215 = vmatpush3.bf16.msra.mxu0 %v1383_v0 }
  0x30   :  { %1216 = vmatprep.subr.bf16.mxu0 %v1386_v1 }
  0x31   :  { %1237 = vmatpush3.bf16.msra.mxu1 %v1385_v2 }
  0x32   :  { %1238 = vmatprep.subr.bf16.mxu1 %v1388_v3 }
  0x33   :  { %1217 = vmatpush3.bf16.msra.mxu0 %v1387_v4 }
  0x34   :  { %1218 = vmatprep.subr.bf16.mxu0 %v1390_v5 }
  0x35   :  { %1239 = vmatpush3.bf16.msra.mxu1 %v1389_v6 }
  0x36   :  { %1240 = vmatprep.subr.bf16.mxu1 %v1392_v7 }
  0x37   :  { %1219 = vmatpush3.bf16.msra.mxu0 %v1391_v8 }
  0x38   :  { %1220 = vmatprep.subr.bf16.mxu0 %v1394_v9 }
  0x39   :  { %1241 = vmatpush3.bf16.msra.mxu1 %v1393_v10 }
  0x3a   :  { %1242 = vmatprep.subr.bf16.mxu1 %v1396_v11 }
  0x3b   :  { %1221 = vmatpush3.bf16.msra.mxu0 %v1395_v12 }
  0x3c   :  { %1222 = vmatprep.subr.bf16.mxu0 %v1398_v13 }
  0x3d   :  { %1243 = vmatpush3.bf16.msra.mxu1 %v1397_v14 }
  0x3e   :  { %1244 = vmatprep.subr.bf16.mxu1 %v1400_v15 }
  0x3f   :  { %1223 = vmatpush3.bf16.msra.mxu0 %v1399_v16 }
  0x40   :  { %1252 = vmatprep.subr.bf16.mxu0 %v1402_v18 }
  0x41   :  { %1245 = vmatpush3.bf16.msra.mxu1 %v1401_v19 }
  0x42   :  { %870 = vmatmul.mubr.bf16.vlgmr.msra.gmra.mrb[4].mxu0 %v226_v17 }
  0x43   :  { %1253 = vmatpush3.bf16.msra.mxu0 %v1403_v20 }
  0x44   :  { %910 = vmatmul.mubr.bf16.vlgmr.msra.gmra.mrb[4].mxu1 %v242_v21  ;;  %1254 = vmatprep.subr.bf16.mxu0 %v1404_v22 }
  0x45   :  { %11 = vsyncpa [#allocation3], 0  ;;  %v1407_v27 = vld [vmem:[%s1808_s1 + $0x210] sm:$0xff]   ;;  %v1408_v28 = vld [vmem:[%s1808_s1 + $0x258] sm:$0xff]   ;;  %v266_v29 = vrot.slane %v252_v26, %v1591_v41  ;;  %v259_v39 = vrot.slane %v1081_v25, %v1591_v41  ;;  %v1447_v44 = vmov 0.0|0.0   ;;  %vm1448_vm0 = vmmov 0  }
  0x46   :  { %v1409_v30 = vld [vmem:[%s1808_s1 + $0x218] sm:$0xff]   ;;  %v1410_v31 = vld [vmem:[%s1808_s1 + $0x260] sm:$0xff]   ;;  %v1412_v33 = vld [vmem:[%s1808_s1 + $0x268] sm:$0xff]   ;;  %1314 = vmatprep.subr.bf16.mxu1 %v1447_v44  ;;  %v1449_v59 = vmov 0.0   ;;  %vm979_vm1 = vcmask 785408   ;;  %vm1053_vm2 = vcmask 25600  }
  0x47   :  { %1255 = vmatpush3.bf16.msra.mxu0 %v1405_v23  ;;  %949 = vmatprep.mubr.bf16.mxu0 %v266_v29  ;;  %v1411_v32 = vld [vmem:[%s1808_s1 + $0x220] sm:$0xff]   ;;  %v1413_v34 = vld [vmem:[%s1808_s1 + $0x228] sm:$0xff]   ;;  %v1414_v35 = vld [vmem:[%s1808_s1 + $0x270] sm:$0xff]  }
  0x48   :  { %1256 = vmatprep.subr.bf16.mxu0 %v1406_v24  ;;  %v1415_v36 = vld [vmem:[%s1808_s1 + $0x230] sm:$0xff]   ;;  %v1416_v37 = vld [vmem:[%s1808_s1 + $0x278] sm:$0xff]   ;;  %v960_v40 = vld [vmem:[%s1811_s4] sm:$0xff]  ;;  %1311 = vmatprep.mubr.msk.f32.mxu1 %vm1448_vm0, %v1449_v59 }
  0x49   :  { %v1417_v38 = vld [vmem:[%s1808_s1 + $0x238] sm:$0xff]   ;;  %v961_v42 = vld [vmem:[%s1811_s4 + $0x8] sm:$0xff]  ;;  %v962_v43 = vld [vmem:[%s1811_s4 + $0x10] sm:$0xff] }
  0x4a   :  { %v1315_v45 = vpack.c.bf16 %v961_v42, %v960_v40  ;;  %v963_v41 = vld [vmem:[%s1811_s4 + $0x18] sm:$0xff]  ;;  %v964_v47 = vld [vmem:[%s1811_s4 + $0x20] sm:$0xff]  ;;  %v965_v48 = vld [vmem:[%s1811_s4 + $0x28] sm:$0xff] }
  0x4b   :  { %1257 = vmatpush3.bf16.msra.mxu0 %v1407_v27  ;;  %v1318_v46 = vpack.c.bf16 %v963_v41, %v962_v43  ;;  %v1321_v49 = vpack.c.bf16 %v965_v48, %v964_v47  ;;  %v966_v50 = vld [vmem:[%s1811_s4 + $0x30] sm:$0xff]  ;;  %v967_v51 = vld [vmem:[%s1811_s4 + $0x38] sm:$0xff]  ;;  %v968_v53 = vld [vmem:[%s1811_s4 + $0x40] sm:$0xff] }
  0x4c   :  { %1258 = vmatprep.subr.bf16.mxu0 %v1408_v28  ;;  %1316 = vmatpush3.bf16.msra.mxu1 %v1315_v45  ;;  %v1324_v52 = vpack.c.bf16 %v967_v51, %v966_v50  ;;  %v969_v54 = vld [vmem:[%s1811_s4 + $0x48] sm:$0xff]  ;;  %v970_v56 = vld [vmem:[%s1811_s4 + $0x50] sm:$0xff]  ;;  %v971_v57 = vld [vmem:[%s1811_s4 + $0x58] sm:$0xff] }
  0x4d   :  { %1317 = vmatprep.subr.bf16.mxu1 %v1447_v44  ;;  %v1327_v55 = vpack.c.bf16 %v969_v54, %v968_v53  ;;  %v1330_v58 = vpack.c.bf16 %v971_v57, %v970_v56  ;;  %v1080_v61 = vld [vmem:[%s1809_s2] ss:$0 sm:$0xff] }
  0x4e   :  { %v958_v27 = vld [vmem:[%s1810_s3] sm:$0x3]  ;;  %s1450_s3 = smov [#allocation2]  }
  0x4f   :  { %1259 = vmatpush3.bf16.msra.mxu0 %v1409_v30  ;;  %v1162_v30 = vld [vmem:[%s1812_s5] ss:$0 sm:$0xff]  ;;  %s1072_s18 = sshll.u32 %s1450_s3, 4  ;;  %s1073_s18 = int_to_ptr.vmem [resolvable:$true] %s1072_s18 }
  0x50   :  { %1260 = vmatprep.subr.bf16.mxu0 %v1410_v31  ;;  %1319 = vmatpush3.bf16.msra.mxu1 %v1318_v46  ;;  %s1422_s5 = scalar_lea.vmem %s1073_s18, 32  ;;  %p1427_p1 = scmp.lt.s32.totalorder %s1073_s18, %s1073_s18 }
  0x51   :  { %1320 = vmatprep.subr.bf16.mxu1 %v1447_v44  ;;  %p1423_p0 = scmp.ne.s32.totalorder %s1073_s18, %s1422_s5  ;;  %p1428_p2 = scmp.lt.s32.totalorder %s1422_s5, %s1422_s5 }
  0x53   :  { %1261 = vmatpush3.bf16.msra.mxu0 %v1411_v32  ;;  %p1429_p3 = por %p1428_p2, %p1427_p1 }
  0x54   :  { %1262 = vmatprep.subr.bf16.mxu0 %v1412_v33  ;;  %1322 = vmatpush3.bf16.msra.mxu1 %v1321_v49 }
  0x55   :  { %1323 = vmatprep.subr.bf16.mxu1 %v1447_v44  ;;  %p1430_p4 = pnand %p1429_p3, %p1423_p0 }
  0x57   :  { %1263 = vmatpush3.bf16.msra.mxu0 %v1413_v34 }
  0x58   :  { %1264 = vmatprep.subr.bf16.mxu0 %v1414_v35  ;;  %1325 = vmatpush3.bf16.msra.mxu1 %v1324_v52 }
  0x59   :  { %1326 = vmatprep.subr.bf16.mxu1 %v1447_v44 }
  0x5b   :  { %1265 = vmatpush3.bf16.msra.mxu0 %v1415_v36 }
  0x5c   :  { %1266 = vmatprep.subr.bf16.mxu0 %v1416_v37  ;;  %1328 = vmatpush3.bf16.msra.mxu1 %v1327_v55 }
  0x5d   :  { %1329 = vmatprep.subr.bf16.mxu1 %v1447_v44 }
  0x5f   :  { %1267 = vmatpush3.bf16.msra.mxu0 %v1417_v38 }
  0x60   :  { %1331 = vmatpush3.bf16.msra.mxu1 %v1330_v58 }
  0x62   :  { %950 = vmatmul.mubr.bf16.vlgmr.msra.gmra.mrb[8].mxu0 %v259_v39 }
  0xf5   :  { %v1180_v60 = vpop.f32.mrb[0].mxu0 }
  0xf6   :  { %v1181_v62 = vpop.f32.mrb[1].mxu0 }
  0xf7   :  { %v1182_v63 = vadd.f32 %v1181_v62, %v1180_v60  ;;  %v1183_v0 = vpop.f32.mrb[2].mxu0  ;;  %v1202_v1 = vpop.f32.mrb[0].mxu1 }
  0xf8   :  { %v1184_v2 = vpop.f32.mrb[3].mxu0  ;;  %v1203_v3 = vpop.f32.mrb[1].mxu1 }
  0xf9   :  { %v792_v4 = vadd.f32 %v1182_v63, %v1080_v61  ;;  %v1204_v5 = vadd.f32 %v1203_v3, %v1202_v1  ;;  %v1205_v6 = vpop.f32.mrb[2].mxu1 }
  0xfa   :  { %v1206_v7 = vpop.f32.mrb[3].mxu1 }
  0xfb   :  { %v832_v8 = vadd.f32 %v1204_v5, %v792_v4 }
 0x115   :  { %v1224_v9 = vpop.f32.mrb[4].mxu0 }
 0x116   :  { %v1225_v10 = vpop.f32.mrb[5].mxu0 }
 0x117   :  { %v1226_v11 = vadd.f32 %v1225_v10, %v1224_v9  ;;  %v1227_v12 = vpop.f32.mrb[6].mxu0  ;;  %v1246_v13 = vpop.f32.mrb[4].mxu1 }
 0x118   :  { %v1228_v14 = vpop.f32.mrb[7].mxu0  ;;  %v1247_v15 = vpop.f32.mrb[5].mxu1 }
 0x119   :  { %v872_v16 = vadd.f32 %v1226_v11, %v832_v8  ;;  %v1248_v17 = vadd.f32 %v1247_v15, %v1246_v13  ;;  %v1249_v18 = vpop.f32.mrb[6].mxu1 }
 0x11a   :  { %v1250_v19 = vpop.f32.mrb[7].mxu1 }
 0x11b   :  { %v912_v20 = vadd.f32 %v1248_v17, %v872_v16 }
 0x135   :  { %v1268_v21 = vpop.f32.mrb[8].mxu0 }
 0x136   :  { %v1269_v22 = vpop.f32.mrb[9].mxu0 }
 0x137   :  { %v1270_v23 = vadd.f32 %v1269_v22, %v1268_v21  ;;  %v1271_v24 = vpop.f32.mrb[10].mxu0 }
 0x138   :  { %v1272_v25 = vpop.f32.mrb[11].mxu0 }
 0x139   :  { %v952_v26 = vadd.f32 %v1270_v23, %v912_v20 }
 0x13b   :  { %v957_v28 = vmax.f32 %v952_v26, 0.0 }
 0x13d   :  { %v959_v29 = vmul.f32 %v958_v27, %v957_v28 }
 0x13f   :  { %1312 = vmatmul.mubr.msk.f32.vlgmr.msra.gmra.mrb[8].mxu1 %vm979_vm1, %v959_v29 }
 0x212   :  { %v1049_v31 = vpop.f32.mrb[8].mxu1 }
 0x213   :  { %v1050_v32 = vadd.f32 %v1162_v30, %v1049_v31  ;;  %v1313_v33 = vpop.f32.mrb[9].mxu1 }
 0x215   :  { %v1054_v34 = vsel %vm1053_vm2, %v1050_v32, -inf }
 0x216   :  { %1055 = vmax.xlane.f32.xlu0 %v1054_v34 }
 0x2a3   :  { %v1056_v35 = vpop.xlane.xlu0 %1055 }
 0x2a4   :  { %v1057_v36 = vsub.f32 %v1050_v32, %v1056_v35 }
 0x2a6   :  { %v1058_v37 = vmul.f32 1.442695, %v1057_v36 }
 0x2a8   :  { %1418 = vpow2.f32 %v1058_v37 }
 0x2b2   :  { %v1419_v38 = vpop.eup %1418 }
 0x2b3   :  { %v1060_v39 = vsel %vm1053_vm2, %v1419_v38, 0.0 }
 0x2b4   :  { %1061 = vadd.xlane.f32.xlu0 %v1060_v39 }
 0x341   :  { %v1062_v40 = vpop.xlane.xlu0 %1061 }
 0x342   :  { %1420 = vrcp.f32 %v1062_v40 }
 0x34c   :  { %v1421_v42 = vpop.eup %1420 }
 0x34d   :  { %v1064_v43 = vmul.f32 %v1421_v42, %v1419_v38 }
 0x34f   :  { %1065 = vst.msk [vmem:[#allocation2] sm:$0x3] %vm1053_vm2, %v1064_v43 }
 0x350   :  { %1433 = shalt.err (!%p1430_p4)
}
 0x351   :  { %s1434_s21 = scalar_lea.hbm %s1813_s6, 32 }
 0x352   :  { %p1435_p5 = scmp.ne.s32.totalorder %s1813_s6, %s1434_s21  ;;  %p1438_p6 = scmp.lt.u32.totalorder %s1434_s21, %s1813_s6 }
 0x354   :  { %p1440_p7 = pnand %p1438_p6, %p1435_p5 }
 0x356   :  { %1443 = shalt.err (!%p1440_p7)
}
 0x357   :  { %1075 = dma.vmem_to_hbm [thread:$0]  %s1073_s18, 32, %s1813_s6, [#allocation3]  }
 0x358   :  { %1444 = dma.done.wait [#allocation3], 32  }
 0x359   :  { %1445 = vsyncadd [#allocation3], 4294967264 }
 0x35a   :  { %1079 = vsyncpa [#allocation3], 1 }

</bundles_post_ra>
